<compile_context>
chip_gen: v5e
topology: v5e:2x2
jax: 0.10.0
libtpu: 0.0.40
codegen_flags: <defaults>
</compile_context>

<pallas_src>
import numpy as np
import jax
import jax.numpy as jnp
from jax.experimental import pallas as pl
from jax.experimental.pallas import tpu as pltpu


# ------------------------------ fused kernel ---------------------------------

def _disc_kernel(p1_ref, w1_ref, b1_ref,
                 s2_ref, w2_ref, g2_ref, bb2_ref,
                 s3_ref, w3_ref, g3_ref, bb3_ref,
                 s4_ref, w4_ref, b4_ref,
                 o_ref):
    f32 = jnp.float32

    def leaky(x):
        return jnp.maximum(x, 0.2 * x)

    def batchnorm(x, gamma, beta):
        # Training-mode BN over the M = N*Ho*Wo columns (biased variance).
        mu = jnp.mean(x, axis=1, keepdims=True)
        var = jnp.mean(jnp.square(x - mu), axis=1, keepdims=True)
        return (x - mu) * jax.lax.rsqrt(var + 1e-5) * gamma + beta

    def conv(h, s_ref, w_ref):
        # h: (C_in, M_in) activation. s: (M_in, 16*M_out) 0/1 selection (bf16,
        # exact). w: (C_out, 16*C_in) with tap-major columns.
        m_out = s_ref.shape[1] // 16
        w = w_ref[...]
        cout, cin = w.shape[0], w.shape[1] // 16
        # In-kernel im2col: one MXU matmul gathers all 16 shifted taps (each
        # output element is an exact copy of one h element, or 0 at padding).
        g = jnp.dot(h, s_ref[...].astype(f32), preferred_element_type=f32)
        acc = jnp.zeros((cout, m_out), f32)
        for t in range(16):
            acc = acc + jnp.dot(w[:, t * cin:(t + 1) * cin],
                                g[:, t * m_out:(t + 1) * m_out],
                                preferred_element_type=f32)
        return acc

    # Layer 1: merged conv1_1(image) / conv1_2(label) + bias + leaky ReLU.
    h = jnp.dot(w1_ref[...], p1_ref[...], preferred_element_type=f32) + b1_ref[...]
    h = leaky(h)                                                  # (d, N*16*16)
    # Layers 2/3: conv + BN(train) + leaky. Conv bias cancels under BN.
    h = leaky(batchnorm(conv(h, s2_ref, w2_ref), g2_ref[...], bb2_ref[...]))
    h = leaky(batchnorm(conv(h, s3_ref, w3_ref), g3_ref[...], bb3_ref[...]))
    # Layer 4: conv + bias + sigmoid.
    h = conv(h, s4_ref, w4_ref) + b4_ref[...]                     # (1, N)
    o_ref[...] = (1.0 / (1.0 + jnp.exp(-h))).astype(o_ref.dtype)


# ------------------------------ JAX wrapper -----------------------------------

def _make_select(n, h, w, k, stride, pad):
    """0/1 gather matrix S: S[m_in, tap*M_out + m_out] = 1 iff flattened input
    position m_in feeds output position m_out at conv tap (i, j). Shape-only;
    built with numpy at trace time."""
    ho = (h + 2 * pad - k) // stride + 1
    wo = (w + 2 * pad - k) // stride + 1
    m_out_sz = n * ho * wo
    s = np.zeros((n * h * w, k * k * m_out_sz), np.float32)
    for i in range(k):
        for j in range(k):
            tap = i * k + j
            for b in range(n):
                for oh in range(ho):
                    ih = stride * oh + i - pad
                    if ih < 0 or ih >= h:
                        continue
                    for ow in range(wo):
                        iw = stride * ow + j - pad
                        if iw < 0 or iw >= w:
                            continue
                        s[(b * h + ih) * w + iw,
                          tap * m_out_sz + (b * ho + oh) * wo + ow] = 1.0
    return jnp.asarray(s, jnp.bfloat16)   # 0/1 is exact in bf16


def _im2col_t(x_nhwc, k, stride, pad):
    """(N,H,W,C) -> transposed patch matrix (k*k*C, N*Ho*Wo), tap-major rows."""
    n, h, w, c = x_nhwc.shape
    xp = jnp.pad(x_nhwc, ((0, 0), (pad, pad), (pad, pad), (0, 0)))
    ho = (h + 2 * pad - k) // stride + 1
    wo = (w + 2 * pad - k) // stride + 1
    rows = []
    for i in range(k):
        for j in range(k):
            slab = xp[:, i:i + stride * ho:stride, j:j + stride * wo:stride, :]
            rows.append(jnp.transpose(slab.reshape(n * ho * wo, c)))
    return jnp.concatenate(rows, axis=0)


def _flatten_w(w):
    """(Cout, Cin, k, k) -> (Cout, k*k*Cin) with tap-major columns."""
    return jnp.transpose(w, (0, 2, 3, 1)).reshape(w.shape[0], -1)


def _merged_w1(w11, w12):
    """Block-diagonal merge of conv1_1/conv1_2 so one matmul produces
    torch.cat([conv1_1(image), conv1_2(label)], dim=1) directly."""
    c1, c2 = w11.shape[1], w12.shape[1]
    t11 = jnp.transpose(w11, (0, 2, 3, 1))           # (d/2, k, k, c1)
    t12 = jnp.transpose(w12, (0, 2, 3, 1))           # (d/2, k, k, c2)
    top = jnp.concatenate([t11, jnp.zeros(t11.shape[:3] + (c2,), t11.dtype)], -1)
    bot = jnp.concatenate([jnp.zeros(t12.shape[:3] + (c1,), t12.dtype), t12], -1)
    return jnp.concatenate([top, bot], axis=0).reshape(w11.shape[0] * 2, -1)


@jax.jit
def discriminator_forward(params, image, label):
    # image: (N, C, 32, 32), label: (N, 10, 32, 32) — NCHW like PyTorch.
    n, _, hh, ww = image.shape
    # NHWC + channel-concat so layer 1 is one matmul with block-diag weights.
    x_in = jnp.concatenate([jnp.transpose(image, (0, 2, 3, 1)),
                            jnp.transpose(label, (0, 2, 3, 1))], axis=-1)
    p1 = _im2col_t(x_in, 4, 2, 1)                    # (16*(C+10), N*16*16)

    w1 = _merged_w1(params["conv1_1_w"], params["conv1_2_w"])
    b1 = jnp.concatenate([params["conv1_1_b"], params["conv1_2_b"]]).reshape(-1, 1)

    # Static 0/1 gather matrices for the in-kernel im2col of layers 2-4.
    s2 = _make_select(n, hh // 2, ww // 2, 4, 2, 1)
    s3 = _make_select(n, hh // 4, ww // 4, 4, 2, 1)
    s4 = _make_select(n, hh // 8, ww // 8, 4, 1, 0)

    col = lambda v: v.reshape(-1, 1)
    vmem = pl.BlockSpec(memory_space=pltpu.MemorySpace.VMEM)
    out = pl.pallas_call(
        _disc_kernel,
        out_shape=jax.ShapeDtypeStruct((1, n), jnp.float32),
        in_specs=[vmem] * 14,
        out_specs=vmem,
        compiler_params=pltpu.CompilerParams(vmem_limit_bytes=32 * 1024 * 1024),
    )(p1, w1, b1,
      s2, _flatten_w(params["conv2_w"]),
      col(params["conv2_bn_g"]), col(params["conv2_bn_b"]),
      s3, _flatten_w(params["conv3_w"]),
      col(params["conv3_bn_g"]), col(params["conv3_bn_b"]),
      s4, _flatten_w(params["conv4_w"]), col(params["conv4_b"]))
    return out.reshape(n, 1, 1, 1)


# ------------------------------- params ---------------------------------------

def init_discriminator_params(key, d=16, c_img=3):
    ks = jax.random.split(key, 5)

    def wconv(k, cout, cin):
        return 0.02 * jax.random.normal(k, (cout, cin, 4, 4), jnp.float32)

    return {
        "conv1_1_w": wconv(ks[0], d // 2, c_img),
        "conv1_1_b": jnp.zeros((d // 2,), jnp.float32),
        "conv1_2_w": wconv(ks[1], d // 2, 10),
        "conv1_2_b": jnp.zeros((d // 2,), jnp.float32),
        "conv2_w": wconv(ks[2], d * 2, d),
        "conv2_b": jnp.zeros((d * 2,), jnp.float32),   # unused: cancels under BN
        "conv2_bn_g": jnp.ones((d * 2,), jnp.float32),
        "conv2_bn_b": jnp.zeros((d * 2,), jnp.float32),
        "conv3_w": wconv(ks[3], d * 4, d * 2),
        "conv3_b": jnp.zeros((d * 4,), jnp.float32),   # unused: cancels under BN
        "conv3_bn_g": jnp.ones((d * 4,), jnp.float32),
        "conv3_bn_b": jnp.zeros((d * 4,), jnp.float32),
        "conv4_w": wconv(ks[4], 1, d * 4),
        "conv4_b": jnp.zeros((1,), jnp.float32),
    }


# --------------------------------- main ----------------------------------------

if __name__ == "__main__":
    key = jax.random.PRNGKey(0)
    k_params, k_img, k_lab = jax.random.split(key, 3)

    N, C_IMG, D = 2, 3, 16
    params = init_discriminator_params(k_params, d=D, c_img=C_IMG)

    # 32x32 input is required by the architecture (conv4 reduces 4x4 -> 1x1).
    image = jax.random.normal(k_img, (N, C_IMG, 32, 32), jnp.float32)
    cls = jax.random.randint(k_lab, (N,), 0, 10)
    label = jnp.broadcast_to(
        jax.nn.one_hot(cls, 10, dtype=jnp.float32)[:, :, None, None],
        (N, 10, 32, 32))

    out = discriminator_forward(params, image, label)
    out = jax.block_until_ready(out)
    assert out.shape == (N, 1, 1, 1)
    assert bool(jnp.all((out >= 0.0) & (out <= 1.0)))
    print("KERNEL_OK")
</pallas_src>

<mosaic_0001>
module attributes {stable_mosaic.version = 11 : i64} {
  func.func @_disc_kernel(%arg0: memref<208x512xf32, #tpu.memory_space<vmem>>, %arg1: memref<16x208xf32, #tpu.memory_space<vmem>>, %arg2: memref<16x1xf32, #tpu.memory_space<vmem>>, %arg3: memref<512x2048xbf16, #tpu.memory_space<vmem>>, %arg4: memref<32x256xf32, #tpu.memory_space<vmem>>, %arg5: memref<32x1xf32, #tpu.memory_space<vmem>>, %arg6: memref<32x1xf32, #tpu.memory_space<vmem>>, %arg7: memref<128x512xbf16, #tpu.memory_space<vmem>>, %arg8: memref<64x512xf32, #tpu.memory_space<vmem>>, %arg9: memref<64x1xf32, #tpu.memory_space<vmem>>, %arg10: memref<64x1xf32, #tpu.memory_space<vmem>>, %arg11: memref<32x32xbf16, #tpu.memory_space<vmem>>, %arg12: memref<1x1024xf32, #tpu.memory_space<vmem>>, %arg13: memref<1x1xf32, #tpu.memory_space<vmem>>, %arg14: memref<1x2xf32, #tpu.memory_space<vmem>>) attributes {dimension_semantics = [], scalar_prefetch = 0 : i64, scratch_operands = 0 : i64, tpu.core_type = #tpu.core_type<tc>} {
    %c0 = arith.constant 0 : index
    %c0_0 = arith.constant 0 : index
    %0 = vector.load %arg1[%c0, %c0_0] : memref<16x208xf32, #tpu.memory_space<vmem>>, vector<16x208xf32>
    %c0_1 = arith.constant 0 : index
    %c0_2 = arith.constant 0 : index
    %1 = vector.load %arg0[%c0_1, %c0_2] : memref<208x512xf32, #tpu.memory_space<vmem>>, vector<208x512xf32>
    %cst = arith.constant dense<0.000000e+00> : vector<16x512xf32>
    %2 = tpu.matmul %0, %1, %cst {dimension_numbers = #tpu.dot_dimension_numbers<[1], [0], [0], [1], [0, 0, 1, 1], [], []>} : vector<16x208xf32>, vector<208x512xf32>, vector<16x512xf32> -> vector<16x512xf32>
    %c0_3 = arith.constant 0 : index
    %c0_4 = arith.constant 0 : index
    %3 = vector.load %arg2[%c0_3, %c0_4] : memref<16x1xf32, #tpu.memory_space<vmem>>, vector<16x1xf32>
    %4 = vector.broadcast %3 : vector<16x1xf32> to vector<16x512xf32>
    %5 = arith.addf %2, %4 : vector<16x512xf32>
    %cst_5 = arith.constant 2.000000e-01 : f32
    %6 = vector.broadcast %cst_5 : f32 to vector<16x512xf32>
    %7 = arith.mulf %6, %5 : vector<16x512xf32>
    %8 = arith.maximumf %5, %7 : vector<16x512xf32>
    %c0_6 = arith.constant 0 : index
    %c0_7 = arith.constant 0 : index
    %9 = vector.load %arg4[%c0_6, %c0_7] : memref<32x256xf32, #tpu.memory_space<vmem>>, vector<32x256xf32>
    %c0_8 = arith.constant 0 : index
    %c0_9 = arith.constant 0 : index
    %10 = vector.load %arg3[%c0_8, %c0_9] : memref<512x2048xbf16, #tpu.memory_space<vmem>>, vector<512x2048xbf16>
    %11 = arith.extf %10 : vector<512x2048xbf16> to vector<512x2048xf32>
    %cst_10 = arith.constant dense<0.000000e+00> : vector<16x2048xf32>
    %12 = tpu.matmul %8, %11, %cst_10 {dimension_numbers = #tpu.dot_dimension_numbers<[1], [0], [0], [1], [0, 0, 1, 1], [], []>} : vector<16x512xf32>, vector<512x2048xf32>, vector<16x2048xf32> -> vector<16x2048xf32>
    %cst_11 = arith.constant 0.000000e+00 : f32
    %13 = vector.broadcast %cst_11 : f32 to vector<32x128xf32>
    %14 = vector.extract_strided_slice %9 {offsets = [0, 0], sizes = [32, 16], strides = [1, 1]} : vector<32x256xf32> to vector<32x16xf32>
    %15 = vector.extract_strided_slice %12 {offsets = [0, 0], sizes = [16, 128], strides = [1, 1]} : vector<16x2048xf32> to vector<16x128xf32>
    %cst_12 = arith.constant dense<0.000000e+00> : vector<32x128xf32>
    %16 = tpu.matmul %14, %15, %cst_12 {dimension_numbers = #tpu.dot_dimension_numbers<[1], [0], [0], [1], [0, 0, 1, 1], [], []>} : vector<32x16xf32>, vector<16x128xf32>, vector<32x128xf32> -> vector<32x128xf32>
    %17 = arith.addf %13, %16 : vector<32x128xf32>
    %18 = vector.extract_strided_slice %9 {offsets = [0, 16], sizes = [32, 16], strides = [1, 1]} : vector<32x256xf32> to vector<32x16xf32>
    %19 = vector.extract_strided_slice %12 {offsets = [0, 128], sizes = [16, 128], strides = [1, 1]} : vector<16x2048xf32> to vector<16x128xf32>
    %cst_13 = arith.constant dense<0.000000e+00> : vector<32x128xf32>
    %20 = tpu.matmul %18, %19, %cst_13 {dimension_numbers = #tpu.dot_dimension_numbers<[1], [0], [0], [1], [0, 0, 1, 1], [], []>} : vector<32x16xf32>, vector<16x128xf32>, vector<32x128xf32> -> vector<32x128xf32>
    %21 = arith.addf %17, %20 : vector<32x128xf32>
    %22 = vector.extract_strided_slice %9 {offsets = [0, 32], sizes = [32, 16], strides = [1, 1]} : vector<32x256xf32> to vector<32x16xf32>
    %23 = vector.extract_strided_slice %12 {offsets = [0, 256], sizes = [16, 128], strides = [1, 1]} : vector<16x2048xf32> to vector<16x128xf32>
    %cst_14 = arith.constant dense<0.000000e+00> : vector<32x128xf32>
    %24 = tpu.matmul %22, %23, %cst_14 {dimension_numbers = #tpu.dot_dimension_numbers<[1], [0], [0], [1], [0, 0, 1, 1], [], []>} : vector<32x16xf32>, vector<16x128xf32>, vector<32x128xf32> -> vector<32x128xf32>
    %25 = arith.addf %21, %24 : vector<32x128xf32>
    %26 = vector.extract_strided_slice %9 {offsets = [0, 48], sizes = [32, 16], strides = [1, 1]} : vector<32x256xf32> to vector<32x16xf32>
    %27 = vector.extract_strided_slice %12 {offsets = [0, 384], sizes = [16, 128], strides = [1, 1]} : vector<16x2048xf32> to vector<16x128xf32>
    %cst_15 = arith.constant dense<0.000000e+00> : vector<32x128xf32>
    %28 = tpu.matmul %26, %27, %cst_15 {dimension_numbers = #tpu.dot_dimension_numbers<[1], [0], [0], [1], [0, 0, 1, 1], [], []>} : vector<32x16xf32>, vector<16x128xf32>, vector<32x128xf32> -> vector<32x128xf32>
    %29 = arith.addf %25, %28 : vector<32x128xf32>
    %30 = vector.extract_strided_slice %9 {offsets = [0, 64], sizes = [32, 16], strides = [1, 1]} : vector<32x256xf32> to vector<32x16xf32>
    %31 = vector.extract_strided_slice %12 {offsets = [0, 512], sizes = [16, 128], strides = [1, 1]} : vector<16x2048xf32> to vector<16x128xf32>
    %cst_16 = arith.constant dense<0.000000e+00> : vector<32x128xf32>
    %32 = tpu.matmul %30, %31, %cst_16 {dimension_numbers = #tpu.dot_dimension_numbers<[1], [0], [0], [1], [0, 0, 1, 1], [], []>} : vector<32x16xf32>, vector<16x128xf32>, vector<32x128xf32> -> vector<32x128xf32>
    %33 = arith.addf %29, %32 : vector<32x128xf32>
    %34 = vector.extract_strided_slice %9 {offsets = [0, 80], sizes = [32, 16], strides = [1, 1]} : vector<32x256xf32> to vector<32x16xf32>
    %35 = vector.extract_strided_slice %12 {offsets = [0, 640], sizes = [16, 128], strides = [1, 1]} : vector<16x2048xf32> to vector<16x128xf32>
    %cst_17 = arith.constant dense<0.000000e+00> : vector<32x128xf32>
    %36 = tpu.matmul %34, %35, %cst_17 {dimension_numbers = #tpu.dot_dimension_numbers<[1], [0], [0], [1], [0, 0, 1, 1], [], []>} : vector<32x16xf32>, vector<16x128xf32>, vector<32x128xf32> -> vector<32x128xf32>
    %37 = arith.addf %33, %36 : vector<32x128xf32>
    %38 = vector.extract_strided_slice %9 {offsets = [0, 96], sizes = [32, 16], strides = [1, 1]} : vector<32x256xf32> to vector<32x16xf32>
    %39 = vector.extract_strided_slice %12 {offsets = [0, 768], sizes = [16, 128], strides = [1, 1]} : vector<16x2048xf32> to vector<16x128xf32>
    %cst_18 = arith.constant dense<0.000000e+00> : vector<32x128xf32>
    %40 = tpu.matmul %38, %39, %cst_18 {dimension_numbers = #tpu.dot_dimension_numbers<[1], [0], [0], [1], [0, 0, 1, 1], [], []>} : vector<32x16xf32>, vector<16x128xf32>, vector<32x128xf32> -> vector<32x128xf32>
    %41 = arith.addf %37, %40 : vector<32x128xf32>
    %42 = vector.extract_strided_slice %9 {offsets = [0, 112], sizes = [32, 16], strides = [1, 1]} : vector<32x256xf32> to vector<32x16xf32>
    %43 = vector.extract_strided_slice %12 {offsets = [0, 896], sizes = [16, 128], strides = [1, 1]} : vector<16x2048xf32> to vector<16x128xf32>
    %cst_19 = arith.constant dense<0.000000e+00> : vector<32x128xf32>
    %44 = tpu.matmul %42, %43, %cst_19 {dimension_numbers = #tpu.dot_dimension_numbers<[1], [0], [0], [1], [0, 0, 1, 1], [], []>} : vector<32x16xf32>, vector<16x128xf32>, vector<32x128xf32> -> vector<32x128xf32>
    %45 = arith.addf %41, %44 : vector<32x128xf32>
    %46 = vector.extract_strided_slice %9 {offsets = [0, 128], sizes = [32, 16], strides = [1, 1]} : vector<32x256xf32> to vector<32x16xf32>
    %47 = vector.extract_strided_slice %12 {offsets = [0, 1024], sizes = [16, 128], strides = [1, 1]} : vector<16x2048xf32> to vector<16x128xf32>
    %cst_20 = arith.constant dense<0.000000e+00> : vector<32x128xf32>
    %48 = tpu.matmul %46, %47, %cst_20 {dimension_numbers = #tpu.dot_dimension_numbers<[1], [0], [0], [1], [0, 0, 1, 1], [], []>} : vector<32x16xf32>, vector<16x128xf32>, vector<32x128xf32> -> vector<32x128xf32>
    %49 = arith.addf %45, %48 : vector<32x128xf32>
    %50 = vector.extract_strided_slice %9 {offsets = [0, 144], sizes = [32, 16], strides = [1, 1]} : vector<32x256xf32> to vector<32x16xf32>
    %51 = vector.extract_strided_slice %12 {offsets = [0, 1152], sizes = [16, 128], strides = [1, 1]} : vector<16x2048xf32> to vector<16x128xf32>
    %cst_21 = arith.constant dense<0.000000e+00> : vector<32x128xf32>
    %52 = tpu.matmul %50, %51, %cst_21 {dimension_numbers = #tpu.dot_dimension_numbers<[1], [0], [0], [1], [0, 0, 1, 1], [], []>} : vector<32x16xf32>, vector<16x128xf32>, vector<32x128xf32> -> vector<32x128xf32>
    %53 = arith.addf %49, %52 : vector<32x128xf32>
    %54 = vector.extract_strided_slice %9 {offsets = [0, 160], sizes = [32, 16], strides = [1, 1]} : vector<32x256xf32> to vector<32x16xf32>
    %55 = vector.extract_strided_slice %12 {offsets = [0, 1280], sizes = [16, 128], strides = [1, 1]} : vector<16x2048xf32> to vector<16x128xf32>
    %cst_22 = arith.constant dense<0.000000e+00> : vector<32x128xf32>
    %56 = tpu.matmul %54, %55, %cst_22 {dimension_numbers = #tpu.dot_dimension_numbers<[1], [0], [0], [1], [0, 0, 1, 1], [], []>} : vector<32x16xf32>, vector<16x128xf32>, vector<32x128xf32> -> vector<32x128xf32>
    %57 = arith.addf %53, %56 : vector<32x128xf32>
    %58 = vector.extract_strided_slice %9 {offsets = [0, 176], sizes = [32, 16], strides = [1, 1]} : vector<32x256xf32> to vector<32x16xf32>
    %59 = vector.extract_strided_slice %12 {offsets = [0, 1408], sizes = [16, 128], strides = [1, 1]} : vector<16x2048xf32> to vector<16x128xf32>
    %cst_23 = arith.constant dense<0.000000e+00> : vector<32x128xf32>
    %60 = tpu.matmul %58, %59, %cst_23 {dimension_numbers = #tpu.dot_dimension_numbers<[1], [0], [0], [1], [0, 0, 1, 1], [], []>} : vector<32x16xf32>, vector<16x128xf32>, vector<32x128xf32> -> vector<32x128xf32>
    %61 = arith.addf %57, %60 : vector<32x128xf32>
    %62 = vector.extract_strided_slice %9 {offsets = [0, 192], sizes = [32, 16], strides = [1, 1]} : vector<32x256xf32> to vector<32x16xf32>
    %63 = vector.extract_strided_slice %12 {offsets = [0, 1536], sizes = [16, 128], strides = [1, 1]} : vector<16x2048xf32> to vector<16x128xf32>
    %cst_24 = arith.constant dense<0.000000e+00> : vector<32x128xf32>
    %64 = tpu.matmul %62, %63, %cst_24 {dimension_numbers = #tpu.dot_dimension_numbers<[1], [0], [0], [1], [0, 0, 1, 1], [], []>} : vector<32x16xf32>, vector<16x128xf32>, vector<32x128xf32> -> vector<32x128xf32>
    %65 = arith.addf %61, %64 : vector<32x128xf32>
    %66 = vector.extract_strided_slice %9 {offsets = [0, 208], sizes = [32, 16], strides = [1, 1]} : vector<32x256xf32> to vector<32x16xf32>
    %67 = vector.extract_strided_slice %12 {offsets = [0, 1664], sizes = [16, 128], strides = [1, 1]} : vector<16x2048xf32> to vector<16x128xf32>
    %cst_25 = arith.constant dense<0.000000e+00> : vector<32x128xf32>
    %68 = tpu.matmul %66, %67, %cst_25 {dimension_numbers = #tpu.dot_dimension_numbers<[1], [0], [0], [1], [0, 0, 1, 1], [], []>} : vector<32x16xf32>, vector<16x128xf32>, vector<32x128xf32> -> vector<32x128xf32>
    %69 = arith.addf %65, %68 : vector<32x128xf32>
    %70 = vector.extract_strided_slice %9 {offsets = [0, 224], sizes = [32, 16], strides = [1, 1]} : vector<32x256xf32> to vector<32x16xf32>
    %71 = vector.extract_strided_slice %12 {offsets = [0, 1792], sizes = [16, 128], strides = [1, 1]} : vector<16x2048xf32> to vector<16x128xf32>
    %cst_26 = arith.constant dense<0.000000e+00> : vector<32x128xf32>
    %72 = tpu.matmul %70, %71, %cst_26 {dimension_numbers = #tpu.dot_dimension_numbers<[1], [0], [0], [1], [0, 0, 1, 1], [], []>} : vector<32x16xf32>, vector<16x128xf32>, vector<32x128xf32> -> vector<32x128xf32>
    %73 = arith.addf %69, %72 : vector<32x128xf32>
    %74 = vector.extract_strided_slice %9 {offsets = [0, 240], sizes = [32, 16], strides = [1, 1]} : vector<32x256xf32> to vector<32x16xf32>
    %75 = vector.extract_strided_slice %12 {offsets = [0, 1920], sizes = [16, 128], strides = [1, 1]} : vector<16x2048xf32> to vector<16x128xf32>
    %cst_27 = arith.constant dense<0.000000e+00> : vector<32x128xf32>
    %76 = tpu.matmul %74, %75, %cst_27 {dimension_numbers = #tpu.dot_dimension_numbers<[1], [0], [0], [1], [0, 0, 1, 1], [], []>} : vector<32x16xf32>, vector<16x128xf32>, vector<32x128xf32> -> vector<32x128xf32>
    %77 = arith.addf %73, %76 : vector<32x128xf32>
    %c0_28 = arith.constant 0 : index
    %c0_29 = arith.constant 0 : index
    %78 = vector.load %arg5[%c0_28, %c0_29] : memref<32x1xf32, #tpu.memory_space<vmem>>, vector<32x1xf32>
    %c0_30 = arith.constant 0 : index
    %c0_31 = arith.constant 0 : index
    %79 = vector.load %arg6[%c0_30, %c0_31] : memref<32x1xf32, #tpu.memory_space<vmem>>, vector<32x1xf32>
    %cst_32 = arith.constant dense<0.000000e+00> : vector<32xf32>
    %80 = vector.multi_reduction <add>, %77, %cst_32 [1] : vector<32x128xf32> to vector<32xf32>
    %81 = vector.shape_cast %80 : vector<32xf32> to vector<32x1xf32>
    %cst_33 = arith.constant 1.280000e+02 : f32
    %82 = vector.broadcast %cst_33 : f32 to vector<32x1xf32>
    %83 = arith.divf %81, %82 : vector<32x1xf32>
    %84 = vector.broadcast %83 : vector<32x1xf32> to vector<32x128xf32>
    %85 = arith.subf %77, %84 : vector<32x128xf32>
    %86 = arith.mulf %85, %85 : vector<32x128xf32>
    %cst_34 = arith.constant dense<0.000000e+00> : vector<32xf32>
    %87 = vector.multi_reduction <add>, %86, %cst_34 [1] : vector<32x128xf32> to vector<32xf32>
    %88 = vector.shape_cast %87 : vector<32xf32> to vector<32x1xf32>
    %cst_35 = arith.constant 1.280000e+02 : f32
    %89 = vector.broadcast %cst_35 : f32 to vector<32x1xf32>
    %90 = arith.divf %88, %89 : vector<32x1xf32>
    %91 = vector.broadcast %83 : vector<32x1xf32> to vector<32x128xf32>
    %92 = arith.subf %77, %91 : vector<32x128xf32>
    %cst_36 = arith.constant 9.99999974E-6 : f32
    %93 = vector.broadcast %cst_36 : f32 to vector<32x1xf32>
    %94 = arith.addf %90, %93 : vector<32x1xf32>
    %95 = math.rsqrt %94 : vector<32x1xf32>
    %96 = vector.broadcast %95 : vector<32x1xf32> to vector<32x128xf32>
    %97 = arith.mulf %92, %96 : vector<32x128xf32>
    %98 = vector.broadcast %78 : vector<32x1xf32> to vector<32x128xf32>
    %99 = arith.mulf %97, %98 : vector<32x128xf32>
    %100 = vector.broadcast %79 : vector<32x1xf32> to vector<32x128xf32>
    %101 = arith.addf %99, %100 : vector<32x128xf32>
    %cst_37 = arith.constant 2.000000e-01 : f32
    %102 = vector.broadcast %cst_37 : f32 to vector<32x128xf32>
    %103 = arith.mulf %102, %101 : vector<32x128xf32>
    %104 = arith.maximumf %101, %103 : vector<32x128xf32>
    %c0_38 = arith.constant 0 : index
    %c0_39 = arith.constant 0 : index
    %105 = vector.load %arg8[%c0_38, %c0_39] : memref<64x512xf32, #tpu.memory_space<vmem>>, vector<64x512xf32>
    %c0_40 = arith.constant 0 : index
    %c0_41 = arith.constant 0 : index
    %106 = vector.load %arg7[%c0_40, %c0_41] : memref<128x512xbf16, #tpu.memory_space<vmem>>, vector<128x512xbf16>
    %107 = arith.extf %106 : vector<128x512xbf16> to vector<128x512xf32>
    %cst_42 = arith.constant dense<0.000000e+00> : vector<32x512xf32>
    %108 = tpu.matmul %104, %107, %cst_42 {dimension_numbers = #tpu.dot_dimension_numbers<[1], [0], [0], [1], [0, 0, 1, 1], [], []>} : vector<32x128xf32>, vector<128x512xf32>, vector<32x512xf32> -> vector<32x512xf32>
    %cst_43 = arith.constant 0.000000e+00 : f32
    %109 = vector.broadcast %cst_43 : f32 to vector<64x32xf32>
    %110 = vector.extract_strided_slice %105 {offsets = [0, 0], sizes = [64, 32], strides = [1, 1]} : vector<64x512xf32> to vector<64x32xf32>
    %111 = vector.extract_strided_slice %108 {offsets = [0, 0], sizes = [32, 32], strides = [1, 1]} : vector<32x512xf32> to vector<32x32xf32>
    %cst_44 = arith.constant dense<0.000000e+00> : vector<64x32xf32>
    %112 = tpu.matmul %110, %111, %cst_44 {dimension_numbers = #tpu.dot_dimension_numbers<[1], [0], [0], [1], [0, 0, 1, 1], [], []>} : vector<64x32xf32>, vector<32x32xf32>, vector<64x32xf32> -> vector<64x32xf32>
    %113 = arith.addf %109, %112 : vector<64x32xf32>
    %114 = vector.extract_strided_slice %105 {offsets = [0, 32], sizes = [64, 32], strides = [1, 1]} : vector<64x512xf32> to vector<64x32xf32>
    %115 = vector.extract_strided_slice %108 {offsets = [0, 32], sizes = [32, 32], strides = [1, 1]} : vector<32x512xf32> to vector<32x32xf32>
    %cst_45 = arith.constant dense<0.000000e+00> : vector<64x32xf32>
    %116 = tpu.matmul %114, %115, %cst_45 {dimension_numbers = #tpu.dot_dimension_numbers<[1], [0], [0], [1], [0, 0, 1, 1], [], []>} : vector<64x32xf32>, vector<32x32xf32>, vector<64x32xf32> -> vector<64x32xf32>
    %117 = arith.addf %113, %116 : vector<64x32xf32>
    %118 = vector.extract_strided_slice %105 {offsets = [0, 64], sizes = [64, 32], strides = [1, 1]} : vector<64x512xf32> to vector<64x32xf32>
    %119 = vector.extract_strided_slice %108 {offsets = [0, 64], sizes = [32, 32], strides = [1, 1]} : vector<32x512xf32> to vector<32x32xf32>
    %cst_46 = arith.constant dense<0.000000e+00> : vector<64x32xf32>
    %120 = tpu.matmul %118, %119, %cst_46 {dimension_numbers = #tpu.dot_dimension_numbers<[1], [0], [0], [1], [0, 0, 1, 1], [], []>} : vector<64x32xf32>, vector<32x32xf32>, vector<64x32xf32> -> vector<64x32xf32>
    %121 = arith.addf %117, %120 : vector<64x32xf32>
    %122 = vector.extract_strided_slice %105 {offsets = [0, 96], sizes = [64, 32], strides = [1, 1]} : vector<64x512xf32> to vector<64x32xf32>
    %123 = vector.extract_strided_slice %108 {offsets = [0, 96], sizes = [32, 32], strides = [1, 1]} : vector<32x512xf32> to vector<32x32xf32>
    %cst_47 = arith.constant dense<0.000000e+00> : vector<64x32xf32>
    %124 = tpu.matmul %122, %123, %cst_47 {dimension_numbers = #tpu.dot_dimension_numbers<[1], [0], [0], [1], [0, 0, 1, 1], [], []>} : vector<64x32xf32>, vector<32x32xf32>, vector<64x32xf32> -> vector<64x32xf32>
    %125 = arith.addf %121, %124 : vector<64x32xf32>
    %126 = vector.extract_strided_slice %105 {offsets = [0, 128], sizes = [64, 32], strides = [1, 1]} : vector<64x512xf32> to vector<64x32xf32>
    %127 = vector.extract_strided_slice %108 {offsets = [0, 128], sizes = [32, 32], strides = [1, 1]} : vector<32x512xf32> to vector<32x32xf32>
    %cst_48 = arith.constant dense<0.000000e+00> : vector<64x32xf32>
    %128 = tpu.matmul %126, %127, %cst_48 {dimension_numbers = #tpu.dot_dimension_numbers<[1], [0], [0], [1], [0, 0, 1, 1], [], []>} : vector<64x32xf32>, vector<32x32xf32>, vector<64x32xf32> -> vector<64x32xf32>
    %129 = arith.addf %125, %128 : vector<64x32xf32>
    %130 = vector.extract_strided_slice %105 {offsets = [0, 160], sizes = [64, 32], strides = [1, 1]} : vector<64x512xf32> to vector<64x32xf32>
    %131 = vector.extract_strided_slice %108 {offsets = [0, 160], sizes = [32, 32], strides = [1, 1]} : vector<32x512xf32> to vector<32x32xf32>
    %cst_49 = arith.constant dense<0.000000e+00> : vector<64x32xf32>
    %132 = tpu.matmul %130, %131, %cst_49 {dimension_numbers = #tpu.dot_dimension_numbers<[1], [0], [0], [1], [0, 0, 1, 1], [], []>} : vector<64x32xf32>, vector<32x32xf32>, vector<64x32xf32> -> vector<64x32xf32>
    %133 = arith.addf %129, %132 : vector<64x32xf32>
    %134 = vector.extract_strided_slice %105 {offsets = [0, 192], sizes = [64, 32], strides = [1, 1]} : vector<64x512xf32> to vector<64x32xf32>
    %135 = vector.extract_strided_slice %108 {offsets = [0, 192], sizes = [32, 32], strides = [1, 1]} : vector<32x512xf32> to vector<32x32xf32>
    %cst_50 = arith.constant dense<0.000000e+00> : vector<64x32xf32>
    %136 = tpu.matmul %134, %135, %cst_50 {dimension_numbers = #tpu.dot_dimension_numbers<[1], [0], [0], [1], [0, 0, 1, 1], [], []>} : vector<64x32xf32>, vector<32x32xf32>, vector<64x32xf32> -> vector<64x32xf32>
    %137 = arith.addf %133, %136 : vector<64x32xf32>
    %138 = vector.extract_strided_slice %105 {offsets = [0, 224], sizes = [64, 32], strides = [1, 1]} : vector<64x512xf32> to vector<64x32xf32>
    %139 = vector.extract_strided_slice %108 {offsets = [0, 224], sizes = [32, 32], strides = [1, 1]} : vector<32x512xf32> to vector<32x32xf32>
    %cst_51 = arith.constant dense<0.000000e+00> : vector<64x32xf32>
    %140 = tpu.matmul %138, %139, %cst_51 {dimension_numbers = #tpu.dot_dimension_numbers<[1], [0], [0], [1], [0, 0, 1, 1], [], []>} : vector<64x32xf32>, vector<32x32xf32>, vector<64x32xf32> -> vector<64x32xf32>
    %141 = arith.addf %137, %140 : vector<64x32xf32>
    %142 = vector.extract_strided_slice %105 {offsets = [0, 256], sizes = [64, 32], strides = [1, 1]} : vector<64x512xf32> to vector<64x32xf32>
    %143 = vector.extract_strided_slice %108 {offsets = [0, 256], sizes = [32, 32], strides = [1, 1]} : vector<32x512xf32> to vector<32x32xf32>
    %cst_52 = arith.constant dense<0.000000e+00> : vector<64x32xf32>
    %144 = tpu.matmul %142, %143, %cst_52 {dimension_numbers = #tpu.dot_dimension_numbers<[1], [0], [0], [1], [0, 0, 1, 1], [], []>} : vector<64x32xf32>, vector<32x32xf32>, vector<64x32xf32> -> vector<64x32xf32>
    %145 = arith.addf %141, %144 : vector<64x32xf32>
    %146 = vector.extract_strided_slice %105 {offsets = [0, 288], sizes = [64, 32], strides = [1, 1]} : vector<64x512xf32> to vector<64x32xf32>
    %147 = vector.extract_strided_slice %108 {offsets = [0, 288], sizes = [32, 32], strides = [1, 1]} : vector<32x512xf32> to vector<32x32xf32>
    %cst_53 = arith.constant dense<0.000000e+00> : vector<64x32xf32>
    %148 = tpu.matmul %146, %147, %cst_53 {dimension_numbers = #tpu.dot_dimension_numbers<[1], [0], [0], [1], [0, 0, 1, 1], [], []>} : vector<64x32xf32>, vector<32x32xf32>, vector<64x32xf32> -> vector<64x32xf32>
    %149 = arith.addf %145, %148 : vector<64x32xf32>
    %150 = vector.extract_strided_slice %105 {offsets = [0, 320], sizes = [64, 32], strides = [1, 1]} : vector<64x512xf32> to vector<64x32xf32>
    %151 = vector.extract_strided_slice %108 {offsets = [0, 320], sizes = [32, 32], strides = [1, 1]} : vector<32x512xf32> to vector<32x32xf32>
    %cst_54 = arith.constant dense<0.000000e+00> : vector<64x32xf32>
    %152 = tpu.matmul %150, %151, %cst_54 {dimension_numbers = #tpu.dot_dimension_numbers<[1], [0], [0], [1], [0, 0, 1, 1], [], []>} : vector<64x32xf32>, vector<32x32xf32>, vector<64x32xf32> -> vector<64x32xf32>
    %153 = arith.addf %149, %152 : vector<64x32xf32>
    %154 = vector.extract_strided_slice %105 {offsets = [0, 352], sizes = [64, 32], strides = [1, 1]} : vector<64x512xf32> to vector<64x32xf32>
    %155 = vector.extract_strided_slice %108 {offsets = [0, 352], sizes = [32, 32], strides = [1, 1]} : vector<32x512xf32> to vector<32x32xf32>
    %cst_55 = arith.constant dense<0.000000e+00> : vector<64x32xf32>
    %156 = tpu.matmul %154, %155, %cst_55 {dimension_numbers = #tpu.dot_dimension_numbers<[1], [0], [0], [1], [0, 0, 1, 1], [], []>} : vector<64x32xf32>, vector<32x32xf32>, vector<64x32xf32> -> vector<64x32xf32>
    %157 = arith.addf %153, %156 : vector<64x32xf32>
    %158 = vector.extract_strided_slice %105 {offsets = [0, 384], sizes = [64, 32], strides = [1, 1]} : vector<64x512xf32> to vector<64x32xf32>
    %159 = vector.extract_strided_slice %108 {offsets = [0, 384], sizes = [32, 32], strides = [1, 1]} : vector<32x512xf32> to vector<32x32xf32>
    %cst_56 = arith.constant dense<0.000000e+00> : vector<64x32xf32>
    %160 = tpu.matmul %158, %159, %cst_56 {dimension_numbers = #tpu.dot_dimension_numbers<[1], [0], [0], [1], [0, 0, 1, 1], [], []>} : vector<64x32xf32>, vector<32x32xf32>, vector<64x32xf32> -> vector<64x32xf32>
    %161 = arith.addf %157, %160 : vector<64x32xf32>
    %162 = vector.extract_strided_slice %105 {offsets = [0, 416], sizes = [64, 32], strides = [1, 1]} : vector<64x512xf32> to vector<64x32xf32>
    %163 = vector.extract_strided_slice %108 {offsets = [0, 416], sizes = [32, 32], strides = [1, 1]} : vector<32x512xf32> to vector<32x32xf32>
    %cst_57 = arith.constant dense<0.000000e+00> : vector<64x32xf32>
    %164 = tpu.matmul %162, %163, %cst_57 {dimension_numbers = #tpu.dot_dimension_numbers<[1], [0], [0], [1], [0, 0, 1, 1], [], []>} : vector<64x32xf32>, vector<32x32xf32>, vector<64x32xf32> -> vector<64x32xf32>
    %165 = arith.addf %161, %164 : vector<64x32xf32>
    %166 = vector.extract_strided_slice %105 {offsets = [0, 448], sizes = [64, 32], strides = [1, 1]} : vector<64x512xf32> to vector<64x32xf32>
    %167 = vector.extract_strided_slice %108 {offsets = [0, 448], sizes = [32, 32], strides = [1, 1]} : vector<32x512xf32> to vector<32x32xf32>
    %cst_58 = arith.constant dense<0.000000e+00> : vector<64x32xf32>
    %168 = tpu.matmul %166, %167, %cst_58 {dimension_numbers = #tpu.dot_dimension_numbers<[1], [0], [0], [1], [0, 0, 1, 1], [], []>} : vector<64x32xf32>, vector<32x32xf32>, vector<64x32xf32> -> vector<64x32xf32>
    %169 = arith.addf %165, %168 : vector<64x32xf32>
    %170 = vector.extract_strided_slice %105 {offsets = [0, 480], sizes = [64, 32], strides = [1, 1]} : vector<64x512xf32> to vector<64x32xf32>
    %171 = vector.extract_strided_slice %108 {offsets = [0, 480], sizes = [32, 32], strides = [1, 1]} : vector<32x512xf32> to vector<32x32xf32>
    %cst_59 = arith.constant dense<0.000000e+00> : vector<64x32xf32>
    %172 = tpu.matmul %170, %171, %cst_59 {dimension_numbers = #tpu.dot_dimension_numbers<[1], [0], [0], [1], [0, 0, 1, 1], [], []>} : vector<64x32xf32>, vector<32x32xf32>, vector<64x32xf32> -> vector<64x32xf32>
    %173 = arith.addf %169, %172 : vector<64x32xf32>
    %c0_60 = arith.constant 0 : index
    %c0_61 = arith.constant 0 : index
    %174 = vector.load %arg9[%c0_60, %c0_61] : memref<64x1xf32, #tpu.memory_space<vmem>>, vector<64x1xf32>
    %c0_62 = arith.constant 0 : index
    %c0_63 = arith.constant 0 : index
    %175 = vector.load %arg10[%c0_62, %c0_63] : memref<64x1xf32, #tpu.memory_space<vmem>>, vector<64x1xf32>
    %cst_64 = arith.constant dense<0.000000e+00> : vector<64xf32>
    %176 = vector.multi_reduction <add>, %173, %cst_64 [1] : vector<64x32xf32> to vector<64xf32>
    %177 = vector.shape_cast %176 : vector<64xf32> to vector<64x1xf32>
    %cst_65 = arith.constant 3.200000e+01 : f32
    %178 = vector.broadcast %cst_65 : f32 to vector<64x1xf32>
    %179 = arith.divf %177, %178 : vector<64x1xf32>
    %180 = vector.broadcast %179 : vector<64x1xf32> to vector<64x32xf32>
    %181 = arith.subf %173, %180 : vector<64x32xf32>
    %182 = arith.mulf %181, %181 : vector<64x32xf32>
    %cst_66 = arith.constant dense<0.000000e+00> : vector<64xf32>
    %183 = vector.multi_reduction <add>, %182, %cst_66 [1] : vector<64x32xf32> to vector<64xf32>
    %184 = vector.shape_cast %183 : vector<64xf32> to vector<64x1xf32>
    %cst_67 = arith.constant 3.200000e+01 : f32
    %185 = vector.broadcast %cst_67 : f32 to vector<64x1xf32>
    %186 = arith.divf %184, %185 : vector<64x1xf32>
    %187 = vector.broadcast %179 : vector<64x1xf32> to vector<64x32xf32>
    %188 = arith.subf %173, %187 : vector<64x32xf32>
    %cst_68 = arith.constant 9.99999974E-6 : f32
    %189 = vector.broadcast %cst_68 : f32 to vector<64x1xf32>
    %190 = arith.addf %186, %189 : vector<64x1xf32>
    %191 = math.rsqrt %190 : vector<64x1xf32>
    %192 = vector.broadcast %191 : vector<64x1xf32> to vector<64x32xf32>
    %193 = arith.mulf %188, %192 : vector<64x32xf32>
    %194 = vector.broadcast %174 : vector<64x1xf32> to vector<64x32xf32>
    %195 = arith.mulf %193, %194 : vector<64x32xf32>
    %196 = vector.broadcast %175 : vector<64x1xf32> to vector<64x32xf32>
    %197 = arith.addf %195, %196 : vector<64x32xf32>
    %cst_69 = arith.constant 2.000000e-01 : f32
    %198 = vector.broadcast %cst_69 : f32 to vector<64x32xf32>
    %199 = arith.mulf %198, %197 : vector<64x32xf32>
    %200 = arith.maximumf %197, %199 : vector<64x32xf32>
    %c0_70 = arith.constant 0 : index
    %c0_71 = arith.constant 0 : index
    %201 = vector.load %arg12[%c0_70, %c0_71] : memref<1x1024xf32, #tpu.memory_space<vmem>>, vector<1x1024xf32>
    %c0_72 = arith.constant 0 : index
    %c0_73 = arith.constant 0 : index
    %202 = vector.load %arg11[%c0_72, %c0_73] : memref<32x32xbf16, #tpu.memory_space<vmem>>, vector<32x32xbf16>
    %203 = arith.extf %202 : vector<32x32xbf16> to vector<32x32xf32>
    %cst_74 = arith.constant dense<0.000000e+00> : vector<64x32xf32>
    %204 = tpu.matmul %200, %203, %cst_74 {dimension_numbers = #tpu.dot_dimension_numbers<[1], [0], [0], [1], [0, 0, 1, 1], [], []>} : vector<64x32xf32>, vector<32x32xf32>, vector<64x32xf32> -> vector<64x32xf32>
    %cst_75 = arith.constant 0.000000e+00 : f32
    %205 = vector.broadcast %cst_75 : f32 to vector<1x2xf32>
    %206 = vector.extract_strided_slice %201 {offsets = [0, 0], sizes = [1, 64], strides = [1, 1]} : vector<1x1024xf32> to vector<1x64xf32>
    %207 = vector.extract_strided_slice %204 {offsets = [0, 0], sizes = [64, 2], strides = [1, 1]} : vector<64x32xf32> to vector<64x2xf32>
    %cst_76 = arith.constant dense<0.000000e+00> : vector<1x2xf32>
    %208 = tpu.matmul %206, %207, %cst_76 {dimension_numbers = #tpu.dot_dimension_numbers<[1], [0], [0], [1], [0, 0, 1, 1], [], []>} : vector<1x64xf32>, vector<64x2xf32>, vector<1x2xf32> -> vector<1x2xf32>
    %209 = arith.addf %205, %208 : vector<1x2xf32>
    %210 = vector.extract_strided_slice %201 {offsets = [0, 64], sizes = [1, 64], strides = [1, 1]} : vector<1x1024xf32> to vector<1x64xf32>
    %211 = vector.extract_strided_slice %204 {offsets = [0, 2], sizes = [64, 2], strides = [1, 1]} : vector<64x32xf32> to vector<64x2xf32>
    %cst_77 = arith.constant dense<0.000000e+00> : vector<1x2xf32>
    %212 = tpu.matmul %210, %211, %cst_77 {dimension_numbers = #tpu.dot_dimension_numbers<[1], [0], [0], [1], [0, 0, 1, 1], [], []>} : vector<1x64xf32>, vector<64x2xf32>, vector<1x2xf32> -> vector<1x2xf32>
    %213 = arith.addf %209, %212 : vector<1x2xf32>
    %214 = vector.extract_strided_slice %201 {offsets = [0, 128], sizes = [1, 64], strides = [1, 1]} : vector<1x1024xf32> to vector<1x64xf32>
    %215 = vector.extract_strided_slice %204 {offsets = [0, 4], sizes = [64, 2], strides = [1, 1]} : vector<64x32xf32> to vector<64x2xf32>
    %cst_78 = arith.constant dense<0.000000e+00> : vector<1x2xf32>
    %216 = tpu.matmul %214, %215, %cst_78 {dimension_numbers = #tpu.dot_dimension_numbers<[1], [0], [0], [1], [0, 0, 1, 1], [], []>} : vector<1x64xf32>, vector<64x2xf32>, vector<1x2xf32> -> vector<1x2xf32>
    %217 = arith.addf %213, %216 : vector<1x2xf32>
    %218 = vector.extract_strided_slice %201 {offsets = [0, 192], sizes = [1, 64], strides = [1, 1]} : vector<1x1024xf32> to vector<1x64xf32>
    %219 = vector.extract_strided_slice %204 {offsets = [0, 6], sizes = [64, 2], strides = [1, 1]} : vector<64x32xf32> to vector<64x2xf32>
    %cst_79 = arith.constant dense<0.000000e+00> : vector<1x2xf32>
    %220 = tpu.matmul %218, %219, %cst_79 {dimension_numbers = #tpu.dot_dimension_numbers<[1], [0], [0], [1], [0, 0, 1, 1], [], []>} : vector<1x64xf32>, vector<64x2xf32>, vector<1x2xf32> -> vector<1x2xf32>
    %221 = arith.addf %217, %220 : vector<1x2xf32>
    %222 = vector.extract_strided_slice %201 {offsets = [0, 256], sizes = [1, 64], strides = [1, 1]} : vector<1x1024xf32> to vector<1x64xf32>
    %223 = vector.extract_strided_slice %204 {offsets = [0, 8], sizes = [64, 2], strides = [1, 1]} : vector<64x32xf32> to vector<64x2xf32>
    %cst_80 = arith.constant dense<0.000000e+00> : vector<1x2xf32>
    %224 = tpu.matmul %222, %223, %cst_80 {dimension_numbers = #tpu.dot_dimension_numbers<[1], [0], [0], [1], [0, 0, 1, 1], [], []>} : vector<1x64xf32>, vector<64x2xf32>, vector<1x2xf32> -> vector<1x2xf32>
    %225 = arith.addf %221, %224 : vector<1x2xf32>
    %226 = vector.extract_strided_slice %201 {offsets = [0, 320], sizes = [1, 64], strides = [1, 1]} : vector<1x1024xf32> to vector<1x64xf32>
    %227 = vector.extract_strided_slice %204 {offsets = [0, 10], sizes = [64, 2], strides = [1, 1]} : vector<64x32xf32> to vector<64x2xf32>
    %cst_81 = arith.constant dense<0.000000e+00> : vector<1x2xf32>
    %228 = tpu.matmul %226, %227, %cst_81 {dimension_numbers = #tpu.dot_dimension_numbers<[1], [0], [0], [1], [0, 0, 1, 1], [], []>} : vector<1x64xf32>, vector<64x2xf32>, vector<1x2xf32> -> vector<1x2xf32>
    %229 = arith.addf %225, %228 : vector<1x2xf32>
    %230 = vector.extract_strided_slice %201 {offsets = [0, 384], sizes = [1, 64], strides = [1, 1]} : vector<1x1024xf32> to vector<1x64xf32>
    %231 = vector.extract_strided_slice %204 {offsets = [0, 12], sizes = [64, 2], strides = [1, 1]} : vector<64x32xf32> to vector<64x2xf32>
    %cst_82 = arith.constant dense<0.000000e+00> : vector<1x2xf32>
    %232 = tpu.matmul %230, %231, %cst_82 {dimension_numbers = #tpu.dot_dimension_numbers<[1], [0], [0], [1], [0, 0, 1, 1], [], []>} : vector<1x64xf32>, vector<64x2xf32>, vector<1x2xf32> -> vector<1x2xf32>
    %233 = arith.addf %229, %232 : vector<1x2xf32>
    %234 = vector.extract_strided_slice %201 {offsets = [0, 448], sizes = [1, 64], strides = [1, 1]} : vector<1x1024xf32> to vector<1x64xf32>
    %235 = vector.extract_strided_slice %204 {offsets = [0, 14], sizes = [64, 2], strides = [1, 1]} : vector<64x32xf32> to vector<64x2xf32>
    %cst_83 = arith.constant dense<0.000000e+00> : vector<1x2xf32>
    %236 = tpu.matmul %234, %235, %cst_83 {dimension_numbers = #tpu.dot_dimension_numbers<[1], [0], [0], [1], [0, 0, 1, 1], [], []>} : vector<1x64xf32>, vector<64x2xf32>, vector<1x2xf32> -> vector<1x2xf32>
    %237 = arith.addf %233, %236 : vector<1x2xf32>
    %238 = vector.extract_strided_slice %201 {offsets = [0, 512], sizes = [1, 64], strides = [1, 1]} : vector<1x1024xf32> to vector<1x64xf32>
    %239 = vector.extract_strided_slice %204 {offsets = [0, 16], sizes = [64, 2], strides = [1, 1]} : vector<64x32xf32> to vector<64x2xf32>
    %cst_84 = arith.constant dense<0.000000e+00> : vector<1x2xf32>
    %240 = tpu.matmul %238, %239, %cst_84 {dimension_numbers = #tpu.dot_dimension_numbers<[1], [0], [0], [1], [0, 0, 1, 1], [], []>} : vector<1x64xf32>, vector<64x2xf32>, vector<1x2xf32> -> vector<1x2xf32>
    %241 = arith.addf %237, %240 : vector<1x2xf32>
    %242 = vector.extract_strided_slice %201 {offsets = [0, 576], sizes = [1, 64], strides = [1, 1]} : vector<1x1024xf32> to vector<1x64xf32>
    %243 = vector.extract_strided_slice %204 {offsets = [0, 18], sizes = [64, 2], strides = [1, 1]} : vector<64x32xf32> to vector<64x2xf32>
    %cst_85 = arith.constant dense<0.000000e+00> : vector<1x2xf32>
    %244 = tpu.matmul %242, %243, %cst_85 {dimension_numbers = #tpu.dot_dimension_numbers<[1], [0], [0], [1], [0, 0, 1, 1], [], []>} : vector<1x64xf32>, vector<64x2xf32>, vector<1x2xf32> -> vector<1x2xf32>
    %245 = arith.addf %241, %244 : vector<1x2xf32>
    %246 = vector.extract_strided_slice %201 {offsets = [0, 640], sizes = [1, 64], strides = [1, 1]} : vector<1x1024xf32> to vector<1x64xf32>
    %247 = vector.extract_strided_slice %204 {offsets = [0, 20], sizes = [64, 2], strides = [1, 1]} : vector<64x32xf32> to vector<64x2xf32>
    %cst_86 = arith.constant dense<0.000000e+00> : vector<1x2xf32>
    %248 = tpu.matmul %246, %247, %cst_86 {dimension_numbers = #tpu.dot_dimension_numbers<[1], [0], [0], [1], [0, 0, 1, 1], [], []>} : vector<1x64xf32>, vector<64x2xf32>, vector<1x2xf32> -> vector<1x2xf32>
    %249 = arith.addf %245, %248 : vector<1x2xf32>
    %250 = vector.extract_strided_slice %201 {offsets = [0, 704], sizes = [1, 64], strides = [1, 1]} : vector<1x1024xf32> to vector<1x64xf32>
    %251 = vector.extract_strided_slice %204 {offsets = [0, 22], sizes = [64, 2], strides = [1, 1]} : vector<64x32xf32> to vector<64x2xf32>
    %cst_87 = arith.constant dense<0.000000e+00> : vector<1x2xf32>
    %252 = tpu.matmul %250, %251, %cst_87 {dimension_numbers = #tpu.dot_dimension_numbers<[1], [0], [0], [1], [0, 0, 1, 1], [], []>} : vector<1x64xf32>, vector<64x2xf32>, vector<1x2xf32> -> vector<1x2xf32>
    %253 = arith.addf %249, %252 : vector<1x2xf32>
    %254 = vector.extract_strided_slice %201 {offsets = [0, 768], sizes = [1, 64], strides = [1, 1]} : vector<1x1024xf32> to vector<1x64xf32>
    %255 = vector.extract_strided_slice %204 {offsets = [0, 24], sizes = [64, 2], strides = [1, 1]} : vector<64x32xf32> to vector<64x2xf32>
    %cst_88 = arith.constant dense<0.000000e+00> : vector<1x2xf32>
    %256 = tpu.matmul %254, %255, %cst_88 {dimension_numbers = #tpu.dot_dimension_numbers<[1], [0], [0], [1], [0, 0, 1, 1], [], []>} : vector<1x64xf32>, vector<64x2xf32>, vector<1x2xf32> -> vector<1x2xf32>
    %257 = arith.addf %253, %256 : vector<1x2xf32>
    %258 = vector.extract_strided_slice %201 {offsets = [0, 832], sizes = [1, 64], strides = [1, 1]} : vector<1x1024xf32> to vector<1x64xf32>
    %259 = vector.extract_strided_slice %204 {offsets = [0, 26], sizes = [64, 2], strides = [1, 1]} : vector<64x32xf32> to vector<64x2xf32>
    %cst_89 = arith.constant dense<0.000000e+00> : vector<1x2xf32>
    %260 = tpu.matmul %258, %259, %cst_89 {dimension_numbers = #tpu.dot_dimension_numbers<[1], [0], [0], [1], [0, 0, 1, 1], [], []>} : vector<1x64xf32>, vector<64x2xf32>, vector<1x2xf32> -> vector<1x2xf32>
    %261 = arith.addf %257, %260 : vector<1x2xf32>
    %262 = vector.extract_strided_slice %201 {offsets = [0, 896], sizes = [1, 64], strides = [1, 1]} : vector<1x1024xf32> to vector<1x64xf32>
    %263 = vector.extract_strided_slice %204 {offsets = [0, 28], sizes = [64, 2], strides = [1, 1]} : vector<64x32xf32> to vector<64x2xf32>
    %cst_90 = arith.constant dense<0.000000e+00> : vector<1x2xf32>
    %264 = tpu.matmul %262, %263, %cst_90 {dimension_numbers = #tpu.dot_dimension_numbers<[1], [0], [0], [1], [0, 0, 1, 1], [], []>} : vector<1x64xf32>, vector<64x2xf32>, vector<1x2xf32> -> vector<1x2xf32>
    %265 = arith.addf %261, %264 : vector<1x2xf32>
    %266 = vector.extract_strided_slice %201 {offsets = [0, 960], sizes = [1, 64], strides = [1, 1]} : vector<1x1024xf32> to vector<1x64xf32>
    %267 = vector.extract_strided_slice %204 {offsets = [0, 30], sizes = [64, 2], strides = [1, 1]} : vector<64x32xf32> to vector<64x2xf32>
    %cst_91 = arith.constant dense<0.000000e+00> : vector<1x2xf32>
    %268 = tpu.matmul %266, %267, %cst_91 {dimension_numbers = #tpu.dot_dimension_numbers<[1], [0], [0], [1], [0, 0, 1, 1], [], []>} : vector<1x64xf32>, vector<64x2xf32>, vector<1x2xf32> -> vector<1x2xf32>
    %269 = arith.addf %265, %268 : vector<1x2xf32>
    %c0_92 = arith.constant 0 : index
    %c0_93 = arith.constant 0 : index
    %270 = vector.load %arg13[%c0_92, %c0_93] : memref<1x1xf32, #tpu.memory_space<vmem>>, vector<1x1xf32>
    %271 = vector.broadcast %270 : vector<1x1xf32> to vector<1x2xf32>
    %272 = arith.addf %269, %271 : vector<1x2xf32>
    %cst_94 = arith.constant 0.000000e+00 : f32
    %273 = vector.broadcast %cst_94 : f32 to vector<1x2xf32>
    %274 = arith.subf %273, %272 : vector<1x2xf32>
    %275 = math.exp %274 : vector<1x2xf32>
    %cst_95 = arith.constant 1.000000e+00 : f32
    %276 = vector.broadcast %cst_95 : f32 to vector<1x2xf32>
    %277 = arith.addf %276, %275 : vector<1x2xf32>
    %cst_96 = arith.constant 1.000000e+00 : f32
    %278 = vector.broadcast %cst_96 : f32 to vector<1x2xf32>
    %279 = arith.divf %278, %277 : vector<1x2xf32>
    %c0_97 = arith.constant 0 : index
    %c0_98 = arith.constant 0 : index
    %280 = vector.load %arg14[%c0_97, %c0_98] : memref<1x2xf32, #tpu.memory_space<vmem>>, vector<1x2xf32>
    tpu.vector_store %arg14[%c0_97, %c0_98], %279 {strides = array<i32>} : memref<1x2xf32, #tpu.memory_space<vmem>>, vector<1x2xf32>,
    return
  }
}

</mosaic_0001>

<bundles_post_ra>
// kernel: discriminator_forward.1
= control target key start
LH: loop header
LB: loop body
LE: loop exit
PB: predicated region body
PF: predicated region fallthrough
CT: control target
= control target key end

     0   :  { %s14272_s0 = inlined_call_operand.vmem [shape: f32[208,512], index: 0, kind: input, shape index: {}]   ;;  %s14273_s1 = inlined_call_operand.vmem [shape: f32[16,208], index: 1, kind: input, shape index: {}]   ;;  %s14274_s2 = inlined_call_operand.vmem [shape: f32[16,1], index: 2, kind: input, shape index: {}]   ;;  %s14275_s3 = inlined_call_operand.vmem [shape: bf16[512,2048], index: 3, kind: input, shape index: {}]   ;;  %s14276_s4 = inlined_call_operand.vmem [shape: f32[32,256], index: 4, kind: input, shape index: {}]   ;;  %s14277_s5 = inlined_call_operand.vmem [shape: f32[32,1], index: 5, kind: input, shape index: {}]   ;;  %s14278_s6 = inlined_call_operand.vmem [shape: f32[32,1], index: 6, kind: input, shape index: {}]   ;;  %s14279_s7 = inlined_call_operand.vmem [shape: bf16[128,512], index: 7, kind: input, shape index: {}]   ;;  %s14280_s8 = inlined_call_operand.vmem [shape: f32[64,512], index: 8, kind: input, shape index: {}]   ;;  %s14281_s9 = inlined_call_operand.vmem [shape: f32[64,1], index: 9, kind: input, shape index: {}]   ;;  %s14282_s10 = inlined_call_operand.vmem [shape: f32[64,1], index: 10, kind: input, shape index: {}]   ;;  %s14283_s11 = inlined_call_operand.vmem [shape: bf16[32,32], index: 11, kind: input, shape index: {}]   ;;  %s14284_s12 = inlined_call_operand.vmem [shape: f32[1,1024], index: 12, kind: input, shape index: {}]   ;;  %s14285_s13 = inlined_call_operand.<no memory space> [shape: f32[1,1], index: 13, kind: input, shape index: {}]   ;;  %s14286_s14 = inlined_call_operand.hbm [shape: f32[1,2], index: 14, kind: output, shape index: {}]  }
   0x1   :  { %v19_v0 = vstv %s14285_s13 }
   0x2   :  { %20 = vst [vmem:[#allocation2] sm:$0x1] %v19_v0 }
   0x3   :  { %v114_v1 = vld [vmem:[%s14272_s0 + $0x1e0] sm:$0xff]  ;;  %v115_v3 = vld [vmem:[%s14272_s0 + $0x1e8] sm:$0xff]  ;;  %v116_v38 = vld [vmem:[%s14272_s0 + $0x1f0] sm:$0xff]  ;;  %vm170_vm0 = vcmask 654336  }
   0x4   :  { %v154_v2 = vld [vmem:[%s14272_s0 + $0x320] sm:$0xff]  ;;  %177 = vmatpush.msra.mxu0 %v114_v1  ;;  %v111_v6 = vld [vmem:[%s14272_s0 + $0x1c8] sm:$0xff]  ;;  %223 = vmatpush.msra.mxu2 %v115_v3  ;;  %v112_v42 = vld [vmem:[%s14272_s0 + $0x1d0] sm:$0xff] }
   0x5   :  { %206 = vmatpush.msra.mxu1 %v154_v2  ;;  %v110_v4 = vld [vmem:[%s14272_s0 + $0x1c0] sm:$0xff]  ;;  %v107_v9 = vld [vmem:[%s14272_s0 + $0x1a8] sm:$0xff]  ;;  %v108_v46 = vld [vmem:[%s14272_s0 + $0x1b0] sm:$0xff] }
   0x6   :  { %v150_v5 = vld [vmem:[%s14272_s0 + $0x300] sm:$0xff]  ;;  %178 = vmatpush.msra.mxu0 %v110_v4  ;;  %224 = vmatpush.msra.mxu2 %v111_v6  ;;  %v103_v12 = vld [vmem:[%s14272_s0 + $0x188] sm:$0xff]  ;;  %v104_v50 = vld [vmem:[%s14272_s0 + $0x190] sm:$0xff] }
   0x7   :  { %v106_v7 = vld [vmem:[%s14272_s0 + $0x1a0] sm:$0xff]  ;;  %207 = vmatpush.msra.mxu1 %v150_v5  ;;  %v155_v13 = vld [vmem:[%s14272_s0 + $0x328] sm:$0xff]  ;;  %v156_v52 = vld [vmem:[%s14272_s0 + $0x330] sm:$0xff] }
   0x8   :  { %v146_v8 = vld [vmem:[%s14272_s0 + $0x2e0] sm:$0xff]  ;;  %179 = vmatpush.msra.mxu0 %v106_v7  ;;  %225 = vmatpush.msra.mxu2 %v107_v9  ;;  %v151_v16 = vld [vmem:[%s14272_s0 + $0x308] sm:$0xff]  ;;  %v100_v54 = vld [vmem:[%s14272_s0 + $0x170] sm:$0xff] }
   0x9   :  { %v102_v10 = vld [vmem:[%s14272_s0 + $0x180] sm:$0xff]  ;;  %208 = vmatpush.msra.mxu1 %v146_v8  ;;  %252 = vmatpush.msra.mxu3 %v155_v13  ;;  %v99_v17 = vld [vmem:[%s14272_s0 + $0x168] sm:$0xff]  ;;  %v152_v56 = vld [vmem:[%s14272_s0 + $0x310] sm:$0xff] }
   0xa   :  { %v142_v11 = vld [vmem:[%s14272_s0 + $0x2c0] sm:$0xff]  ;;  %180 = vmatpush.msra.mxu0 %v102_v10  ;;  %v147_v18 = vld [vmem:[%s14272_s0 + $0x2e8] sm:$0xff]  ;;  %226 = vmatpush.msra.mxu2 %v103_v12  ;;  %v96_v58 = vld [vmem:[%s14272_s0 + $0x150] sm:$0xff] }
   0xb   :  { %v98_v14 = vld [vmem:[%s14272_s0 + $0x160] sm:$0xff]  ;;  %209 = vmatpush.msra.mxu1 %v142_v11  ;;  %253 = vmatpush.msra.mxu3 %v151_v16  ;;  %v95_v21 = vld [vmem:[%s14272_s0 + $0x148] sm:$0xff]  ;;  %v92_v63 = vld [vmem:[%s14272_s0 + $0x130] sm:$0xff] }
   0xc   :  { %v138_v15 = vld [vmem:[%s14272_s0 + $0x2a0] sm:$0xff]  ;;  %181 = vmatpush.msra.mxu0 %v98_v14  ;;  %v143_v22 = vld [vmem:[%s14272_s0 + $0x2c8] sm:$0xff]  ;;  %227 = vmatpush.msra.mxu2 %v99_v17  ;;  %v148_v0 = vld [vmem:[%s14272_s0 + $0x2f0] sm:$0xff] }
   0xd   :  { %v94_v19 = vld [vmem:[%s14272_s0 + $0x140] sm:$0xff]  ;;  %210 = vmatpush.msra.mxu1 %v138_v15  ;;  %254 = vmatpush.msra.mxu3 %v147_v18  ;;  %v91_v25 = vld [vmem:[%s14272_s0 + $0x128] sm:$0xff]  ;;  %v117_v1 = vld [vmem:[%s14272_s0 + $0x1f8] sm:$0xff] }
   0xe   :  { %v134_v20 = vld [vmem:[%s14272_s0 + $0x280] sm:$0xff]  ;;  %182 = vmatpush.msra.mxu0 %v94_v19  ;;  %v139_v26 = vld [vmem:[%s14272_s0 + $0x2a8] sm:$0xff]  ;;  %228 = vmatpush.msra.mxu2 %v95_v21  ;;  %v157_v2 = vld [vmem:[%s14272_s0 + $0x338] sm:$0xff] }
   0xf   :  { %v90_v23 = vld [vmem:[%s14272_s0 + $0x120] sm:$0xff]  ;;  %211 = vmatpush.msra.mxu1 %v134_v20  ;;  %255 = vmatpush.msra.mxu3 %v143_v22  ;;  %v87_v29 = vld [vmem:[%s14272_s0 + $0x108] sm:$0xff]  ;;  %v88_v3 = vld [vmem:[%s14272_s0 + $0x110] sm:$0xff] }
  0x10   :  { %v130_v24 = vld [vmem:[%s14272_s0 + $0x260] sm:$0xff]  ;;  %183 = vmatpush.msra.mxu0 %v90_v23  ;;  %v135_v30 = vld [vmem:[%s14272_s0 + $0x288] sm:$0xff]  ;;  %229 = vmatpush.msra.mxu2 %v91_v25  ;;  %v144_v4 = vld [vmem:[%s14272_s0 + $0x2d0] sm:$0xff] }
  0x11   :  { %v86_v27 = vld [vmem:[%s14272_s0 + $0x100] sm:$0xff]  ;;  %212 = vmatpush.msra.mxu1 %v130_v24  ;;  %256 = vmatpush.msra.mxu3 %v139_v26  ;;  %v83_v33 = vld [vmem:[%s14272_s0 + $0xe8] sm:$0xff]  ;;  %v113_v5 = vld [vmem:[%s14272_s0 + $0x1d8] sm:$0xff] }
  0x12   :  { %v126_v28 = vld [vmem:[%s14272_s0 + $0x240] sm:$0xff]  ;;  %184 = vmatpush.msra.mxu0 %v86_v27  ;;  %v131_v34 = vld [vmem:[%s14272_s0 + $0x268] sm:$0xff]  ;;  %230 = vmatpush.msra.mxu2 %v87_v29  ;;  %v84_v6 = vld [vmem:[%s14272_s0 + $0xf0] sm:$0xff] }
  0x13   :  { %v82_v31 = vld [vmem:[%s14272_s0 + $0xe0] sm:$0xff]  ;;  %213 = vmatpush.msra.mxu1 %v126_v28  ;;  %257 = vmatpush.msra.mxu3 %v135_v30  ;;  %v79_v37 = vld [vmem:[%s14272_s0 + $0xc8] sm:$0xff]  ;;  %v140_v7 = vld [vmem:[%s14272_s0 + $0x2b0] sm:$0xff] }
  0x14   :  { %v122_v32 = vld [vmem:[%s14272_s0 + $0x220] sm:$0xff]  ;;  %185 = vmatpush.msra.mxu0 %v82_v31  ;;  %231 = vmatpush.msra.mxu2 %v83_v33  ;;  %v127_v40 = vld [vmem:[%s14272_s0 + $0x248] sm:$0xff]  ;;  %v109_v8 = vld [vmem:[%s14272_s0 + $0x1b8] sm:$0xff] }
  0x15   :  { %v78_v35 = vld [vmem:[%s14272_s0 + $0xc0] sm:$0xff]  ;;  %214 = vmatpush.msra.mxu1 %v122_v32  ;;  %258 = vmatpush.msra.mxu3 %v131_v34  ;;  %v75_v41 = vld [vmem:[%s14272_s0 + $0xa8] sm:$0xff]  ;;  %v8231_v9 = vld [vmem:[%s14273_s1 + $0x18] sm:$0xff] }
  0x16   :  { %v118_v36 = vld [vmem:[%s14272_s0 + $0x200] sm:$0xff]  ;;  %186 = vmatpush.msra.mxu0 %v78_v35  ;;  %232 = vmatpush.msra.mxu2 %v79_v37  ;;  %v123_v44 = vld [vmem:[%s14272_s0 + $0x228] sm:$0xff] }
  0x17   :  { %v74_v39 = vld [vmem:[%s14272_s0 + $0xa0] sm:$0xff]  ;;  %215 = vmatpush.msra.mxu1 %v118_v36  ;;  %v71_v45 = vld [vmem:[%s14272_s0 + $0x88] sm:$0xff]  ;;  %259 = vmatpush.msra.mxu3 %v127_v40 }
  0x18   :  { %v70_v43 = vld [vmem:[%s14272_s0 + $0x80] sm:$0xff]  ;;  %187 = vmatpush.msra.mxu0 %v74_v39  ;;  %233 = vmatpush.msra.mxu2 %v75_v41  ;;  %v119_v48 = vld [vmem:[%s14272_s0 + $0x208] sm:$0xff] }
  0x19   :  { %269 = vmatpush.msrb.mxu1 %v116_v38  ;;  %v66_v47 = vld [vmem:[%s14272_s0 + $0x60] sm:$0xff]  ;;  %v67_v49 = vld [vmem:[%s14272_s0 + $0x68] sm:$0xff]  ;;  %260 = vmatpush.msra.mxu3 %v123_v44 }
  0x1a   :  { %188 = vmatpush.msra.mxu0 %v70_v43  ;;  %234 = vmatpush.msra.mxu2 %v71_v45  ;;  %v62_v51 = vld [vmem:[%s14272_s0 + $0x40] sm:$0xff]  ;;  %v63_v53 = vld [vmem:[%s14272_s0 + $0x48] sm:$0xff] }
  0x1b   :  { %270 = vmatpush.msrb.mxu1 %v112_v42  ;;  %261 = vmatpush.msra.mxu3 %v119_v48  ;;  %v58_v55 = vld [vmem:[%s14272_s0 + $0x20] sm:$0xff]  ;;  %v59_v57 = vld [vmem:[%s14272_s0 + $0x28] sm:$0xff] }
  0x1c   :  { %189 = vmatpush.msra.mxu0 %v66_v47  ;;  %235 = vmatpush.msra.mxu2 %v67_v49  ;;  %v54_v59 = vld [vmem:[%s14272_s0] sm:$0xff]  ;;  %v8182_v60 = vld [vmem:[%s14273_s1 + $0x8] sm:$0xff] }
  0x1d   :  { %271 = vmatpush.msrb.mxu1 %v108_v46  ;;  %298 = vmatpush.msrb.mxu3 %v156_v52  ;;  %v55_v61 = vld [vmem:[%s14272_s0 + $0x8] sm:$0xff]  ;;  %v8190_v62 = vld [vmem:[%s14273_s1] sm:$0xff] }
  0x1e   :  { %190 = vmatpush.msra.mxu0 %v62_v51  ;;  %236 = vmatpush.msra.mxu2 %v63_v53 }
  0x1f   :  { %272 = vmatpush.msrb.mxu1 %v104_v50  ;;  %299 = vmatpush.msrb.mxu3 %v152_v56 }
  0x20   :  { %191 = vmatpush.msra.mxu0 %v58_v55  ;;  %237 = vmatpush.msra.mxu2 %v59_v57 }
  0x21   :  { %273 = vmatpush.msrb.mxu1 %v100_v54  ;;  %7158 = vmatmul.msk.f32.vlgmr.msra.gmra.mxu3 %vm170_vm0, %v8182_v60 }
  0x22   :  { %192 = vmatpush.msra.mxu0 %v54_v59  ;;  %238 = vmatpush.msra.mxu2 %v55_v61 }
  0x23   :  { %274 = vmatpush.msrb.mxu1 %v96_v58  ;;  %193 = vmatmul.f32.vlgmr.msra.gmra.mxu0 %v8190_v62 }
  0x24   :  { %239 = vmatmul.f32.vlgmr.msra.gmra.mxu2 %v8190_v62  ;;  %300 = vmatpush.msrb.mxu3 %v148_v0 }
  0x25   :  { %275 = vmatpush.msrb.mxu1 %v92_v63  ;;  %315 = vmatpush.msrb.mxu0 %v117_v1 }
  0x26   :  { %7156 = vmatmul.msk.f32.vlgmr.msra.gmra.mxu1 %vm170_vm0, %v8182_v60  ;;  %344 = vmatpush.msrb.mxu2 %v157_v2 }
  0x27   :  { %276 = vmatpush.msrb.mxu1 %v88_v3  ;;  %301 = vmatpush.msrb.mxu3 %v144_v4 }
  0x28   :  { %21 = vsyncpa [#allocation4], 0  ;;  %316 = vmatpush.msrb.mxu0 %v113_v5  ;;  %v80_v10 = vld [vmem:[%s14272_s0 + $0xd0] sm:$0xff]  ;;  %v14287_v12 = vmov 0   ;;  %v105_v13 = vld [vmem:[%s14272_s0 + $0x198] sm:$0xff]  ;;  %s7901_s24 = smov 96  }
  0x29   :  { %v136_v11 = vld [vmem:[%s14272_s0 + $0x290] sm:$0xff]  ;;  %7414 = vset.pattern.permute.xlu0 %v14287_v12  ;;  %277 = vmatpush.msrb.mxu1 %v84_v6  ;;  %v101_v17 = vld [vmem:[%s14272_s0 + $0x178] sm:$0xff]  ;;  %v158_v22 = vld [vmem:[%s14274_s2] sm:$0xff]  ;;  %s7902_s15 = smov 80   ;;  %s7903_s23 = smov 64   ;;  %vm3405_vm1 = vcmask 130048  }
  0x2a   :  { %302 = vmatpush.msrb.mxu3 %v140_v7  ;;  %v8246_v14 = vld [vmem:[%s14273_s1 + $0x10] sm:$0xff]  ;;  %317 = vmatpush.msrb.mxu0 %v109_v8  ;;  %v153_v18 = vld [vmem:[%s14272_s0 + $0x318] sm:$0xff]  ;;  %v8299_v29 = vld [vmem:[%s14275_s3 + $0x3c0] sm:$0xff]  ;;  %s7904_s21 = smov 32   ;;  %s7905_s30 = smov 16   ;;  %vm4597_vm15 = vcmask 261120  }
  0x2b   :  { %7159 = vmatmul.msk.f32.gmra.mxu3 %vm170_vm0, %v8231_v9  ;;  %v76_v15 = vld [vmem:[%s14272_s0 + $0xb0] sm:$0xff]  ;;  %278 = vmatpush.msrb.mxu1 %v80_v10  ;;  %v97_v21 = vld [vmem:[%s14272_s0 + $0x158] sm:$0xff]  ;;  %v1137_v35 = vunpack.c.l.bf16 %v8299_v29  ;;  %v8323_v37 = vld [vmem:[%s14275_s3 + $0x380] sm:$0xff]  ;;  %s7906_s26 = smov 48   ;;  %s7911_s20 = smov 124  }
  0x2c   :  { %303 = vmatpush.msrb.mxu3 %v136_v11  ;;  %v132_v16 = vld [vmem:[%s14272_s0 + $0x270] sm:$0xff]  ;;  %318 = vmatpush.msrb.mxu0 %v105_v13  ;;  %v93_v25 = vld [vmem:[%s14272_s0 + $0x138] sm:$0xff]  ;;  %v8328_v38 = vld [vmem:[%s14275_s3 + $0x7c0] sm:$0xff]  ;;  %v1121_v45 = vunpack.c.l.bf16 %v8323_v37  ;;  %s7914_s1 = smov 120   ;;  %s7915_s22 = smov 110  }
  0x2d   :  { %242 = vmatmul.f32.gmra.mxu2 %v8246_v14  ;;  %196 = vmatmul.f32.gmra.mxu0 %v8246_v14  ;;  %v72_v19 = vld [vmem:[%s14272_s0 + $0x90] sm:$0xff]  ;;  %v149_v26 = vld [vmem:[%s14272_s0 + $0x2f8] sm:$0xff]  ;;  %v159_v41 = vld [vmem:[%s14274_s2 + $0x8] sm:$0xff]  ;;  %v1393_v46 = vunpack.c.l.bf16 %v8328_v38  ;;  %s7910_s2 = smov 126   ;;  %s7916_s13 = smov 118  }
  0x2e   :  { %279 = vmatpush.msrb.mxu1 %v76_v15  ;;  %v128_v20 = vld [vmem:[%s14272_s0 + $0x250] sm:$0xff]  ;;  %304 = vmatpush.msrb.mxu3 %v132_v16  ;;  %v89_v30 = vld [vmem:[%s14272_s0 + $0x118] sm:$0xff]  ;;  %v8344_v42 = vld [vmem:[%s14275_s3 + $0x780] sm:$0xff]  ;;  %s7917_s25 = smov 116   ;;  %s7918_s27 = smov 108  }
  0x2f   :  { %319 = vmatpush.msrb.mxu0 %v101_v17  ;;  %7157 = vmatmul.msk.f32.gmra.mxu1 %vm170_vm0, %v8231_v9  ;;  %v68_v23 = vld [vmem:[%s14272_s0 + $0x70] sm:$0xff]  ;;  %v145_v31 = vld [vmem:[%s14272_s0 + $0x2d8] sm:$0xff]  ;;  %v8357_v47 = vld [vmem:[%s14275_s3 + $0x340] sm:$0xff]  ;;  %v1377_v51 = vunpack.c.l.bf16 %v8344_v42  ;;  %s7919_s28 = smov 104  }
  0x30   :  { %345 = vmatpush.msrb.mxu2 %v153_v18  ;;  %v124_v24 = vld [vmem:[%s14272_s0 + $0x230] sm:$0xff]  ;;  %280 = vmatpush.msrb.mxu1 %v72_v19  ;;  %v85_v33 = vld [vmem:[%s14272_s0 + $0xf8] sm:$0xff]  ;;  %v8362_v48 = vld [vmem:[%s14275_s3 + $0x740] sm:$0xff]  ;;  %v1105_v54 = vunpack.c.l.bf16 %v8357_v47 }
  0x31   :  { %305 = vmatpush.msrb.mxu3 %v128_v20  ;;  %320 = vmatpush.msrb.mxu0 %v97_v21  ;;  %v64_v27 = vld [vmem:[%s14272_s0 + $0x50] sm:$0xff]  ;;  %v141_v34 = vld [vmem:[%s14272_s0 + $0x2b8] sm:$0xff]  ;;  %v8382_v55 = vld [vmem:[%s14275_s3 + $0x300] sm:$0xff]  ;;  %v1361_v56 = vunpack.c.l.bf16 %v8362_v48 }
  0x32   :  { %162 = vperm.xlu0 %7414, %v158_v22   ;;  %v120_v28 = vld [vmem:[%s14272_s0 + $0x210] sm:$0xff]  ;;  %281 = vmatpush.msrb.mxu1 %v68_v23  ;;  %v81_v39 = vld [vmem:[%s14272_s0 + $0xd8] sm:$0xff]  ;;  %v8388_v57 = vld [vmem:[%s14275_s3 + $0x700] sm:$0xff]  ;;  %v1089_v0 = vunpack.c.l.bf16 %v8382_v55 }
  0x33   :  { %306 = vmatpush.msrb.mxu3 %v124_v24  ;;  %321 = vmatpush.msrb.mxu0 %v93_v25  ;;  %v60_v32 = vld [vmem:[%s14272_s0 + $0x30] sm:$0xff]  ;;  %v137_v40 = vld [vmem:[%s14272_s0 + $0x298] sm:$0xff]  ;;  %v8393_v58 = vld [vmem:[%s14275_s3 + $0xbc0] sm:$0xff]  ;;  %v1345_v4 = vunpack.c.l.bf16 %v8388_v57 }
  0x34   :  { %346 = vmatpush.msrb.mxu2 %v149_v26  ;;  %282 = vmatpush.msrb.mxu1 %v64_v27  ;;  %v56_v36 = vld [vmem:[%s14272_s0 + $0x10] sm:$0xff]  ;;  %v77_v43 = vld [vmem:[%s14272_s0 + $0xb8] sm:$0xff]  ;;  %v8406_v63 = vld [vmem:[%s14275_s3 + $0x2c0] sm:$0xff]  ;;  %v1649_v5 = vunpack.c.l.bf16 %v8393_v58 }
  0x35   :  { %307 = vmatpush.msrb.mxu3 %v120_v28  ;;  %322 = vmatpush.msrb.mxu0 %v89_v30  ;;  %v133_v44 = vld [vmem:[%s14272_s0 + $0x278] sm:$0xff]  ;;  %v8412_v1 = vld [vmem:[%s14275_s3 + $0x6c0] sm:$0xff]  ;;  %v1073_v7 = vunpack.c.l.bf16 %v8406_v63 }
  0x36   :  { %347 = vmatpush.msrb.mxu2 %v145_v31  ;;  %7160 = vmatmul.msk.f32.vlgmr.msrb.gmra.mxu3 %vm170_vm0, %v8182_v60  ;;  %v73_v49 = vld [vmem:[%s14272_s0 + $0x98] sm:$0xff]  ;;  %v8420_v3 = vld [vmem:[%s14275_s3 + $0x280] sm:$0xff]  ;;  %v1329_v15 = vunpack.c.l.bf16 %v8412_v1 }
  0x37   :  { %283 = vmatpush.msrb.mxu1 %v60_v32  ;;  %323 = vmatpush.msrb.mxu0 %v85_v33  ;;  %v129_v50 = vld [vmem:[%s14272_s0 + $0x258] sm:$0xff]  ;;  %v8427_v6 = vld [vmem:[%s14275_s3 + $0xb80] sm:$0xff] }
  0x38   :  { %348 = vmatpush.msrb.mxu2 %v141_v34  ;;  %1921 = vmatpush.msra.mxu3 %v1137_v35  ;;  %v69_v52 = vld [vmem:[%s14272_s0 + $0x78] sm:$0xff]  ;;  %v8433_v8 = vld [vmem:[%s14275_s3 + $0x680] sm:$0xff]  ;;  %v1633_v18 = vunpack.c.l.bf16 %v8427_v6 }
  0x39   :  { %284 = vmatpush.msrb.mxu1 %v56_v36  ;;  %324 = vmatpush.msrb.mxu0 %v81_v39  ;;  %v125_v53 = vld [vmem:[%s14272_s0 + $0x238] sm:$0xff]  ;;  %v8438_v10 = vld [vmem:[%s14275_s3 + $0xfc0] sm:$0xff]  ;;  %v1313_v20 = vunpack.c.l.bf16 %v8433_v8 }
  0x3a   :  { %349 = vmatpush.msrb.mxu2 %v137_v40  ;;  %167 = vperm.xlu0 %7414, %v159_v41   ;;  %v65_v59 = vld [vmem:[%s14272_s0 + $0x58] sm:$0xff]  ;;  %v8449_v13 = vld [vmem:[%s14275_s3 + $0x240] sm:$0xff]  ;;  %v1905_v22 = vunpack.c.l.bf16 %v8438_v10 }
  0x3b   :  { %285 = vmatmul.f32.vlgmr.msrb.gmra.mxu1 %v8190_v62  ;;  %325 = vmatpush.msrb.mxu0 %v77_v43  ;;  %v121_v61 = vld [vmem:[%s14272_s0 + $0x218] sm:$0xff]  ;;  %v8455_v16 = vld [vmem:[%s14275_s3 + $0xb40] sm:$0xff]  ;;  %v1041_v23 = vunpack.c.l.bf16 %v8449_v13 }
  0x3c   :  { %350 = vmatpush.msrb.mxu2 %v133_v44  ;;  %1922 = vmatpush.msra.mxu3 %v1121_v45  ;;  %v61_v2 = vld [vmem:[%s14272_s0 + $0x38] sm:$0xff]  ;;  %v8461_v17 = vld [vmem:[%s14275_s3 + $0x640] sm:$0xff]  ;;  %v1617_v25 = vunpack.c.l.bf16 %v8455_v16 }
  0x3d   :  { %1944 = vmatpush.msra.mxu1 %v1393_v46  ;;  %326 = vmatpush.msrb.mxu0 %v73_v49  ;;  %v57_v11 = vld [vmem:[%s14272_s0 + $0x18] sm:$0xff]  ;;  %v8467_v19 = vld [vmem:[%s14275_s3 + $0x200] sm:$0xff]  ;;  %v1297_v28 = vunpack.c.l.bf16 %v8461_v17  ;;  %s7900_s0 = smov 112  }
  0x3e   :  { %351 = vmatpush.msrb.mxu2 %v129_v50  ;;  %7161 = vmatmul.msk.f32.gmra.mxu3 %vm170_vm0, %v8231_v9  ;;  %v8473_v21 = vld [vmem:[%s14275_s3 + $0xb00] sm:$0xff]  ;;  %v1025_v31 = vunpack.c.l.bf16 %v8467_v19 }
  0x3f   :  { %1945 = vmatpush.msra.mxu1 %v1377_v51  ;;  %327 = vmatpush.msrb.mxu0 %v69_v52  ;;  %v8480_v24 = vld [vmem:[%s14275_s3 + $0x600] sm:$0xff]  ;;  %v1601_v32 = vunpack.c.l.bf16 %v8473_v21 }
  0x40   :  { %352 = vmatpush.msrb.mxu2 %v125_v53  ;;  %1923 = vmatpush.msra.mxu3 %v1105_v54  ;;  %v8486_v26 = vld [vmem:[%s14275_s3 + $0xf80] sm:$0xff]  ;;  %v1281_v34 = vunpack.c.l.bf16 %v8480_v24 }
  0x41   :  { %1946 = vmatpush.msra.mxu1 %v1361_v56  ;;  %328 = vmatpush.msrb.mxu0 %v65_v59  ;;  %v8492_v27 = vld [vmem:[%s14275_s3 + $0x1c0] sm:$0xff]  ;;  %v1889_v36 = vunpack.c.l.bf16 %v8486_v26 }
  0x42   :  { %353 = vmatpush.msrb.mxu2 %v121_v61  ;;  %1924 = vmatpush.msra.mxu3 %v1089_v0  ;;  %v8498_v30 = vld [vmem:[%s14275_s3 + $0xac0] sm:$0xff]  ;;  %v1009_v39 = vunpack.c.l.bf16 %v8492_v27 }
  0x43   :  { %288 = vmatmul.f32.gmra.mxu1 %v8246_v14  ;;  %7162 = vmatmul.msk.f32.vlgmr.msrb.gmra.mxu2 %vm170_vm0, %v8182_v60  ;;  %v1057_v60 = vunpack.c.l.bf16 %v8420_v3  ;;  %v8510_v33 = vld [vmem:[%s14275_s3 + $0x180] sm:$0xff]  ;;  %v1585_v41 = vunpack.c.l.bf16 %v8498_v30 }
  0x44   :  { %329 = vmatpush.msrb.mxu0 %v61_v2  ;;  %1947 = vmatpush.msra.mxu1 %v1345_v4  ;;  %v8516_v35 = vld [vmem:[%s14275_s3 + $0xa80] sm:$0xff]  ;;  %v993_v49 = vunpack.c.l.bf16 %v8510_v33 }
  0x45   :  { %1967 = vmatpush.msra.mxu2 %v1649_v5  ;;  %1925 = vmatpush.msra.mxu3 %v1073_v7  ;;  %v8523_v40 = vld [vmem:[%s14275_s3 + $0x580] sm:$0xff]  ;;  %v1569_v50 = vunpack.c.l.bf16 %v8516_v35 }
  0x46   :  { %330 = vmatpush.msrb.mxu0 %v57_v11  ;;  %1948 = vmatpush.msra.mxu1 %v1329_v15  ;;  %v8529_v43 = vld [vmem:[%s14275_s3 + $0xf40] sm:$0xff]  ;;  %v1249_v53 = vunpack.c.l.bf16 %v8523_v40 }
  0x47   :  { %331 = vmatmul.f32.vlgmr.msrb.gmra.mxu0 %v8190_v62  ;;  %1926 = vmatpush.msra.mxu3 %v1057_v60  ;;  %v8504_v62 = vld [vmem:[%s14275_s3 + $0x5c0] sm:$0xff]  ;;  %v1873_v56 = vunpack.c.l.bf16 %v8529_v43 }
  0x48   :  { %1968 = vmatpush.msra.mxu2 %v1633_v18  ;;  %1949 = vmatpush.msra.mxu1 %v1313_v20  ;;  %v8536_v44 = vld [vmem:[%s14275_s3 + $0x140] sm:$0xff]  ;;  %v1265_v45 = vunpack.c.l.bf16 %v8504_v62 }
  0x49   :  { %1990 = vmatpush.msra.mxu0 %v1905_v22  ;;  %1927 = vmatpush.msra.mxu3 %v1041_v23  ;;  %v8542_v46 = vld [vmem:[%s14275_s3 + $0xa40] sm:$0xff]  ;;  %v977_v59 = vunpack.c.l.bf16 %v8536_v44 }
  0x4a   :  { %1969 = vmatpush.msra.mxu2 %v1617_v25  ;;  %1950 = vmatpush.msra.mxu1 %v1297_v28  ;;  %v8554_v51 = vld [vmem:[%s14275_s3 + $0xf00] sm:$0xff]  ;;  %v1553_v0 = vunpack.c.l.bf16 %v8542_v46 }
  0x4b   :  { %7163 = vmatmul.msk.f32.gmra.mxu2 %vm170_vm0, %v8231_v9  ;;  %1928 = vmatpush.msra.mxu3 %v1025_v31  ;;  %v8548_v9 = vld [vmem:[%s14275_s3 + $0x540] sm:$0xff]  ;;  %v1857_v11 = vunpack.c.l.bf16 %v8554_v51 }
  0x4c   :  { %1970 = vmatpush.msra.mxu2 %v1601_v32  ;;  %1951 = vmatpush.msra.mxu1 %v1281_v34  ;;  %v8559_v52 = vld [vmem:[%s14275_s3 + $0x100] sm:$0xff]  ;;  %v1233_v5 = vunpack.c.l.bf16 %v8548_v9 }
  0x4d   :  { %v8565_v54 = vld [vmem:[%s14275_s3 + $0xa00] sm:$0xff]  ;;  %1991 = vmatpush.msra.mxu0 %v1889_v36  ;;  %1929 = vmatpush.msra.mxu3 %v1009_v39  ;;  %v961_v15 = vunpack.c.l.bf16 %v8559_v52 }
  0x4e   :  { %1971 = vmatpush.msra.mxu2 %v1585_v41  ;;  %v8572_v61 = vld [vmem:[%s14275_s3 + $0x500] sm:$0xff]  ;;  %1952 = vmatpush.msra.mxu1 %v1265_v45  ;;  %v1537_v60 = vunpack.c.l.bf16 %v8565_v54 }
  0x4f   :  { %v8578_v2 = vld [vmem:[%s14275_s3 + $0xec0] sm:$0xff]  ;;  %334 = vmatmul.f32.gmra.mxu0 %v8246_v14  ;;  %1930 = vmatpush.msra.mxu3 %v993_v49  ;;  %v1217_v22 = vunpack.c.l.bf16 %v8572_v61 }
  0x50   :  { %v8584_v4 = vld [vmem:[%s14275_s3 + $0xc0] sm:$0xff]  ;;  %1972 = vmatpush.msra.mxu2 %v1569_v50  ;;  %1953 = vmatpush.msra.mxu1 %v1249_v53  ;;  %v1841_v25 = vunpack.c.l.bf16 %v8578_v2 }
  0x51   :  { %v8590_v7 = vld [vmem:[%s14275_s3 + $0x9c0] sm:$0xff]  ;;  %1992 = vmatpush.msra.mxu0 %v1873_v56  ;;  %1931 = vmatpush.msra.mxu3 %v977_v59  ;;  %v945_v28 = vunpack.c.l.bf16 %v8584_v4 }
  0x52   :  { %v8597_v14 = vld [vmem:[%s14275_s3 + $0x4c0] sm:$0xff]  ;;  %1973 = vmatpush.msra.mxu2 %v1553_v0  ;;  %v1521_v32 = vunpack.c.l.bf16 %v8590_v7  ;;  %1954 = vmatpush.msra.mxu1 %v1233_v5 }
  0x53   :  { %v8603_v18 = vld [vmem:[%s14275_s3 + $0xe80] sm:$0xff]  ;;  %v1201_v39 = vunpack.c.l.bf16 %v8597_v14  ;;  %1993 = vmatpush.msra.mxu0 %v1857_v11  ;;  %1932 = vmatpush.msra.mxu3 %v961_v15 }
  0x54   :  { %14319 = vst [vmem:[#allocation6_spill] sm:$0xff] %v8603_v18  ;;  %v8608_v20 = vld [vmem:[%s14275_s3 + $0x80] sm:$0xff]  ;;  %v1825_v45 = vunpack.c.l.bf16 %v8603_v18  ;;  %1974 = vmatpush.msra.mxu2 %v1537_v60  ;;  %1955 = vmatpush.msra.mxu1 %v1217_v22 }
  0x55   :  { %v8614_v23 = vld [vmem:[%s14275_s3 + $0x980] sm:$0xff]  ;;  %v929_v49 = vunpack.c.l.bf16 %v8608_v20  ;;  %1994 = vmatpush.msra.mxu0 %v1841_v25  ;;  %1933 = vmatpush.msra.mxu3 %v945_v28 }
  0x56   :  { %v8621_v31 = vld [vmem:[%s14275_s3 + $0x480] sm:$0xff]  ;;  %v1505_v53 = vunpack.c.l.bf16 %v8614_v23  ;;  %1975 = vmatpush.msra.mxu2 %v1521_v32  ;;  %1956 = vmatpush.msra.mxu1 %v1201_v39 }
  0x57   :  { %v8627_v34 = vld [vmem:[%s14275_s3 + $0xe40] sm:$0xff]  ;;  %v1185_v0 = vunpack.c.l.bf16 %v8621_v31  ;;  %1995 = vmatpush.msra.mxu0 %v1825_v45  ;;  %1934 = vmatpush.msra.mxu3 %v929_v49  ;;  %v1138_v45 = vunpack.c.h.bf16 %v8299_v29  ;;  %v1122_v29 = vunpack.c.h.bf16 %v8323_v37  ;;  %v1106_v37 = vunpack.c.h.bf16 %v8357_v47 }
  0x58   :  { %14320 = vst [vmem:[#allocation7_spill] sm:$0xff] %v8627_v34  ;;  %v8632_v36 = vld [vmem:[%s14275_s3 + $0x40] sm:$0xff]  ;;  %v1809_v11 = vunpack.c.l.bf16 %v8627_v34  ;;  %1976 = vmatpush.msra.mxu2 %v1505_v53  ;;  %v1394_v53 = vunpack.c.h.bf16 %v8328_v38  ;;  %v1378_v38 = vunpack.c.h.bf16 %v8344_v42  ;;  %v1362_v42 = vunpack.c.h.bf16 %v8362_v48 }
  0x59   :  { %v8638_v41 = vld [vmem:[%s14275_s3 + $0x940] sm:$0xff]  ;;  %v913_v15 = vunpack.c.l.bf16 %v8632_v36  ;;  %1957 = vmatpush.msra.mxu1 %v1185_v0  ;;  %v1650_v48 = vunpack.c.h.bf16 %v8393_v58  ;;  %v1298_v58 = vunpack.c.h.bf16 %v8461_v17 }
  0x5a   :  { %v8645_v50 = vld [vmem:[%s14275_s3 + $0x440] sm:$0xff]  ;;  %v1489_v22 = vunpack.c.l.bf16 %v8638_v41  ;;  %1996 = vmatpush.msra.mxu0 %v1809_v11 }
  0x5b   :  { %v8651_v56 = vld [vmem:[%s14275_s3 + $0xe00] sm:$0xff]  ;;  %v1169_v25 = vunpack.c.l.bf16 %v8645_v50  ;;  %1935 = vmatpush.msra.mxu3 %v913_v15 }
  0x5c   :  { %14321 = vst [vmem:[#allocation8_spill] sm:$0xff] %v8651_v56  ;;  %v8656_v59 = vld [vmem:[%s14275_s3] sm:$0xff]  ;;  %v1793_v28 = vunpack.c.l.bf16 %v8651_v56  ;;  %1977 = vmatpush.msra.mxu2 %v1489_v22 }
  0x5d   :  { %v8662_v5 = vld [vmem:[%s14275_s3 + $0x900] sm:$0xff]  ;;  %v897_v32 = vunpack.c.l.bf16 %v8656_v59  ;;  %1958 = vmatpush.msra.mxu1 %v1169_v25 }
  0x5e   :  { %14322 = vst [vmem:[#allocation9_spill] sm:$0xff] %v8662_v5  ;;  %v8669_v60 = vld [vmem:[%s14275_s3 + $0x400] sm:$0xff]  ;;  %v1473_v34 = vunpack.c.l.bf16 %v8662_v5  ;;  %1997 = vmatpush.msra.mxu0 %v1793_v28 }
  0x5f   :  { %v8676_v12 = vld [vmem:[%s14275_s3 + $0x8c0] sm:$0xff]  ;;  %v1153_v18 = vunpack.c.l.bf16 %v8669_v60  ;;  %1936 = vmatpush.msra.mxu3 %v897_v32  ;;  %v1090_v32 = vunpack.c.h.bf16 %v8382_v55  ;;  %v1058_v55 = vunpack.c.h.bf16 %v8420_v3  ;;  %v1282_v3 = vunpack.c.h.bf16 %v8480_v24 }
  0x60   :  { %v8684_v39 = vld [vmem:[%s14275_s3 + $0xdc0] sm:$0xff]  ;;  %v1457_v56 = vunpack.c.l.bf16 %v8676_v12  ;;  %1978 = vmatpush.msra.mxu2 %v1473_v34  ;;  %v962_v24 = vunpack.c.h.bf16 %v8559_v52  ;;  %v1602_v52 = vunpack.c.h.bf16 %v8473_v21 }
  0x61   :  { %v8691_v49 = vld [vmem:[%s14275_s3 + $0x880] sm:$0xff]  ;;  %v1777_v11 = vunpack.c.l.bf16 %v8684_v39  ;;  %2013 = vmatpush.msrb.mxu3 %v1138_v45  ;;  %1959 = vmatpush.msra.mxu1 %v1153_v18  ;;  %v1346_v18 = vunpack.c.h.bf16 %v8388_v57  ;;  %v1314_v57 = vunpack.c.h.bf16 %v8433_v8  ;;  %v994_v8 = vunpack.c.h.bf16 %v8510_v33 }
  0x62   :  { %v8698_v5 = vld [vmem:[%s14275_s3 + $0xd80] sm:$0xff]  ;;  %v1441_v15 = vunpack.c.l.bf16 %v8691_v49  ;;  %1979 = vmatpush.msra.mxu2 %v1457_v56  ;;  %v1330_v56 = vunpack.c.h.bf16 %v8412_v1  ;;  %v1026_v1 = vunpack.c.h.bf16 %v8467_v19 }
  0x63   :  { %v8704_v0 = vld [vmem:[%s14275_s3 + $0x840] sm:$0xff]  ;;  %v1761_v28 = vunpack.c.l.bf16 %v8698_v5  ;;  %2036 = vmatpush.msrb.mxu1 %v1394_v53  ;;  %2014 = vmatpush.msrb.mxu3 %v1122_v29  ;;  %v1074_v53 = vunpack.c.h.bf16 %v8406_v63  ;;  %v1634_v29 = vunpack.c.h.bf16 %v8427_v6  ;;  %v1042_v63 = vunpack.c.h.bf16 %v8449_v13 }
  0x64   :  { %v8712_v22 = vld [vmem:[%s14275_s3 + $0xd40] sm:$0xff]  ;;  %v1425_v34 = vunpack.c.l.bf16 %v8704_v0  ;;  %1998 = vmatpush.msra.mxu0 %v1777_v11  ;;  %1980 = vmatpush.msra.mxu2 %v1441_v15  ;;  %v14323_v11 = vmov 0   ;;  %v1010_v6 = vunpack.c.h.bf16 %v8492_v27  ;;  %v978_v13 = vunpack.c.h.bf16 %v8536_v44 }
  0x65   :  { %v8718_v25 = vld [vmem:[%s14275_s3 + $0x800] sm:$0xff]  ;;  %v1745_v47 = vunpack.c.l.bf16 %v8712_v22  ;;  %2037 = vmatpush.msrb.mxu1 %v1378_v38  ;;  %2015 = vmatpush.msrb.mxu3 %v1106_v37  ;;  %v1266_v27 = vunpack.c.h.bf16 %v8504_v62  ;;  %v1618_v38 = vunpack.c.h.bf16 %v8455_v16  ;;  %v946_v15 = vunpack.c.h.bf16 %v8584_v4 }
  0x66   :  { %v1409_v45 = vunpack.c.l.bf16 %v8718_v25  ;;  %1999 = vmatpush.msra.mxu0 %v1761_v28  ;;  %1981 = vmatpush.msra.mxu2 %v1425_v34  ;;  %v8745_v17 = vld [vmem:[%s14275_s3 + $0xd00] sm:$0xff]  ;;  %v1250_v37 = vunpack.c.h.bf16 %v8523_v40  ;;  %v930_v28 = vunpack.c.h.bf16 %v8608_v20  ;;  %v1586_v40 = vunpack.c.h.bf16 %v8498_v30 }
  0x67   :  { %2038 = vmatpush.msrb.mxu1 %v1362_v42  ;;  %2016 = vmatpush.msrb.mxu3 %v1090_v32  ;;  %v1729_v19 = vunpack.c.l.bf16 %v8745_v17  ;;  %v8754_v33 = vld [vmem:[%s14275_s3 + $0xcc0] sm:$0xff]  ;;  %v1234_v42 = vunpack.c.h.bf16 %v8548_v9  ;;  %v914_v34 = vunpack.c.h.bf16 %v8632_v36  ;;  %v1218_v32 = vunpack.c.h.bf16 %v8572_v61 }
  0x68   :  { %2000 = vmatpush.msra.mxu0 %v1745_v47  ;;  %1982 = vmatpush.msra.mxu2 %v1409_v45  ;;  %v1713_v44 = vunpack.c.l.bf16 %v8754_v33  ;;  %v8763_v16 = vld [vmem:[%s14275_s3 + $0xc80] sm:$0xff]  ;;  %v1570_v9 = vunpack.c.h.bf16 %v8516_v35  ;;  %v898_v47 = vunpack.c.h.bf16 %v8656_v59  ;;  %v1554_v61 = vunpack.c.h.bf16 %v8542_v46 }
  0x69   :  { %2039 = vmatpush.msrb.mxu1 %v1346_v18  ;;  %2017 = vmatpush.msrb.mxu3 %v1074_v53  ;;  %v1697_v62 = vunpack.c.l.bf16 %v8763_v16  ;;  %v8772_v21 = vld [vmem:[%s14275_s3 + $0xc40] sm:$0xff]  ;;  %v1202_v18 = vunpack.c.h.bf16 %v8597_v14  ;;  %v1906_v36 = vunpack.c.h.bf16 %v8438_v10  ;;  %v1186_v35 = vunpack.c.h.bf16 %v8621_v31 }
  0x6a   :  { %2059 = vmatpush.msrb.mxu2 %v1650_v48  ;;  %7416 = vset.pattern.permute.xlu1 %v14323_v11  ;;  %v1681_v4 = vunpack.c.l.bf16 %v8772_v21  ;;  %v8781_v30 = vld [vmem:[%s14275_s3 + $0xc00] sm:$0xff]  ;;  %v1538_v45 = vunpack.c.h.bf16 %v8565_v54  ;;  %v1890_v53 = vunpack.c.h.bf16 %v8486_v26  ;;  %v1170_v59 = vunpack.c.h.bf16 %v8645_v50 }
  0x6b   :  { %2040 = vmatpush.msrb.mxu1 %v1330_v56  ;;  %2018 = vmatpush.msrb.mxu3 %v1058_v55  ;;  %v1665_v20 = vunpack.c.l.bf16 %v8781_v30  ;;  %v1522_v14 = vunpack.c.h.bf16 %v8590_v7  ;;  %v1874_v46 = vunpack.c.h.bf16 %v8529_v43  ;;  %v1154_v10 = vunpack.c.h.bf16 %v8669_v60  ;;  %v14324_v43 = vld [vmem:[#allocation9_spill] sm:$0xff]  ;;  %v14325_v48 = vld [vmem:[#allocation6_spill] sm:$0xff]  ;;  %v14326_v56 = vld [vmem:[#allocation7_spill] sm:$0xff] }
  0x6c   :  { %2060 = vmatpush.msrb.mxu2 %v1634_v29  ;;  %7415 = vset.pattern.permute.xlu2 %v14323_v11  ;;  %v1506_v31 = vunpack.c.h.bf16 %v8614_v23  ;;  %v1858_v54 = vunpack.c.h.bf16 %v8554_v51  ;;  %v1490_v26 = vunpack.c.h.bf16 %v8638_v41  ;;  %v1842_v50 = vunpack.c.h.bf16 %v8578_v2  ;;  %v14327_v41 = vld [vmem:[#allocation8_spill] sm:$0xff] }
  0x6d   :  { %2041 = vmatpush.msrb.mxu1 %v1314_v57  ;;  %2019 = vmatpush.msrb.mxu3 %v1042_v63  ;;  %v1474_v7 = vunpack.c.h.bf16 %v14324_v43  ;;  %v1826_v60 = vunpack.c.h.bf16 %v14325_v48  ;;  %v1458_v23 = vunpack.c.h.bf16 %v8676_v12  ;;  %v1810_v51 = vunpack.c.h.bf16 %v14326_v56 }
  0x6e   :  { %2001 = vmatpush.msra.mxu0 %v1729_v19  ;;  %2061 = vmatpush.msrb.mxu2 %v1618_v38  ;;  %v1442_v55 = vunpack.c.h.bf16 %v8691_v49  ;;  %v1794_v29 = vunpack.c.h.bf16 %v14327_v41  ;;  %v1426_v2 = vunpack.c.h.bf16 %v8704_v0  ;;  %v1778_v57 = vunpack.c.h.bf16 %v8684_v39  ;;  %v8825_v19 = vld [vmem:[%s14275_s3 + $0x388] sm:$0xff] }
  0x6f   :  { %2042 = vmatpush.msrb.mxu1 %v1298_v58  ;;  %2020 = vmatpush.msrb.mxu3 %v1026_v1  ;;  %v1410_v63 = vunpack.c.h.bf16 %v8718_v25  ;;  %v1762_v12 = vunpack.c.h.bf16 %v8698_v5  ;;  %v1746_v11 = vunpack.c.h.bf16 %v8712_v22  ;;  %v1730_v49 = vunpack.c.h.bf16 %v8745_v17  ;;  %v8818_v5 = vld [vmem:[%s14275_s3 + $0x3c8] sm:$0xff] }
  0x70   :  { %2002 = vmatpush.msra.mxu0 %v1713_v44  ;;  %2062 = vmatpush.msrb.mxu2 %v1602_v52  ;;  %v1714_v39 = vunpack.c.h.bf16 %v8754_v33  ;;  %v1698_v22 = vunpack.c.h.bf16 %v8763_v16  ;;  %v1666_v52 = vunpack.c.h.bf16 %v8781_v30  ;;  %v1123_v16 = vunpack.c.l.bf16 %v8825_v19  ;;  %v8864_v30 = vld [vmem:[%s14275_s3 + $0x748] sm:$0xff] }
  0x71   :  { %2043 = vmatpush.msrb.mxu1 %v1282_v3  ;;  %2021 = vmatpush.msrb.mxu3 %v1010_v6  ;;  %v8919_v41 = vld [vmem:[%s14275_s3 + $0x648] sm:$0xff] }
  0x72   :  { %2003 = vmatpush.msra.mxu0 %v1697_v62  ;;  %2063 = vmatpush.msrb.mxu2 %v1586_v40  ;;  %v8849_v40 = vld [vmem:[%s14275_s3 + $0x308] sm:$0xff] }
  0x73   :  { %2022 = vmatpush.msrb.mxu3 %v994_v8  ;;  %2044 = vmatpush.msrb.mxu1 %v1266_v27  ;;  %v1139_v27 = vunpack.c.l.bf16 %v8818_v5 }
  0x74   :  { %2004 = vmatpush.msra.mxu0 %v1681_v4  ;;  %2064 = vmatpush.msrb.mxu2 %v1570_v9 }
  0x75   :  { %2023 = vmatpush.msrb.mxu3 %v978_v13  ;;  %2045 = vmatpush.msrb.mxu1 %v1250_v37  ;;  %v8839_v37 = vld [vmem:[%s14275_s3 + $0x7c8] sm:$0xff] }
  0x76   :  { %2005 = vmatpush.msra.mxu0 %v1665_v20  ;;  %2065 = vmatpush.msrb.mxu2 %v1554_v61  ;;  %v1091_v61 = vunpack.c.l.bf16 %v8849_v40 }
  0x77   :  { %2024 = vmatpush.msrb.mxu3 %v962_v24  ;;  %2046 = vmatpush.msrb.mxu1 %v1234_v42  ;;  %v1682_v24 = vunpack.c.h.bf16 %v8772_v21  ;;  %v8854_v21 = vld [vmem:[%s14275_s3 + $0x788] sm:$0xff] }
  0x78   :  { %2082 = vmatpush.msrb.mxu0 %v1906_v36  ;;  %2066 = vmatpush.msrb.mxu2 %v1538_v45  ;;  %v8870_v36 = vld [vmem:[%s14275_s3 + $0x2c8] sm:$0xff] }
  0x79   :  { %2025 = vmatpush.msrb.mxu3 %v946_v15  ;;  %2047 = vmatpush.msrb.mxu1 %v1218_v32  ;;  %v8834_v15 = vld [vmem:[%s14275_s3 + $0x348] sm:$0xff]  ;;  %v1395_v32 = vunpack.c.l.bf16 %v8839_v37 }
  0x7a   :  { %2083 = vmatpush.msrb.mxu0 %v1890_v53  ;;  %2067 = vmatpush.msrb.mxu2 %v1522_v14  ;;  %v8878_v53 = vld [vmem:[%s14275_s3 + $0x708] sm:$0xff] }
  0x7b   :  { %2026 = vmatpush.msrb.mxu3 %v930_v28  ;;  %2048 = vmatpush.msrb.mxu1 %v1202_v18  ;;  %v8883_v14 = vld [vmem:[%s14275_s3 + $0x288] sm:$0xff]  ;;  %v1347_v43 = vunpack.c.l.bf16 %v8878_v53 }
  0x7c   :  { %2084 = vmatpush.msrb.mxu0 %v1874_v46  ;;  %2068 = vmatpush.msrb.mxu2 %v1506_v31  ;;  %v1363_v46 = vunpack.c.l.bf16 %v8864_v30  ;;  %v1075_v31 = vunpack.c.l.bf16 %v8870_v36  ;;  %v1059_v48 = vunpack.c.l.bf16 %v8883_v14 }
  0x7d   :  { %2027 = vmatpush.msrb.mxu3 %v914_v34  ;;  %2049 = vmatpush.msrb.mxu1 %v1186_v35  ;;  %v1107_v34 = vunpack.c.l.bf16 %v8834_v15  ;;  %v1379_v35 = vunpack.c.l.bf16 %v8854_v21 }
  0x7e   :  { %2085 = vmatpush.msrb.mxu0 %v1858_v54  ;;  %2069 = vmatpush.msrb.mxu2 %v1490_v26  ;;  %v8890_v54 = vld [vmem:[%s14275_s3 + $0x6c8] sm:$0xff] }
  0x7f   :  { %2028 = vmatpush.msrb.mxu3 %v898_v47  ;;  %2050 = vmatpush.msrb.mxu1 %v1170_v59  ;;  %v1331_v56 = vunpack.c.l.bf16 %v8890_v54 }
  0x80   :  { %2086 = vmatpush.msrb.mxu0 %v1842_v50  ;;  %2070 = vmatpush.msrb.mxu2 %v1474_v7  ;;  %v8897_v50 = vld [vmem:[%s14275_s3 + $0x248] sm:$0xff] }
  0x81   :  { %2051 = vmatpush.msrb.mxu1 %v1154_v10 }
  0x82   :  { %2087 = vmatpush.msrb.mxu0 %v1826_v60  ;;  %2071 = vmatpush.msrb.mxu2 %v1458_v23  ;;  %v8904_v60 = vld [vmem:[%s14275_s3 + $0x688] sm:$0xff] }
  0x83   :  { %v8910_v23 = vld [vmem:[%s14275_s3 + $0x208] sm:$0xff] }
  0x84   :  { %2088 = vmatpush.msrb.mxu0 %v1810_v51  ;;  %2072 = vmatpush.msrb.mxu2 %v1442_v55  ;;  %v1043_v55 = vunpack.c.l.bf16 %v8897_v50 }
  0x86   :  { %2089 = vmatpush.msrb.mxu0 %v1794_v29  ;;  %2073 = vmatpush.msrb.mxu2 %v1426_v2  ;;  %v8924_v2 = vld [vmem:[%s14275_s3 + $0x1c8] sm:$0xff] }
  0x88   :  { %2090 = vmatpush.msrb.mxu0 %v1778_v57  ;;  %2074 = vmatpush.msrb.mxu2 %v1410_v63  ;;  %v1315_v57 = vunpack.c.l.bf16 %v8904_v60 }
  0x8a   :  { %2091 = vmatpush.msrb.mxu0 %v1762_v12  ;;  %v1027_v12 = vunpack.c.l.bf16 %v8910_v23 }
  0x8c   :  { %2092 = vmatpush.msrb.mxu0 %v1746_v11 }
  0x8e   :  { %2093 = vmatpush.msrb.mxu0 %v1730_v49  ;;  %v8938_v49 = vld [vmem:[%s14275_s3 + $0x188] sm:$0xff] }
  0x90   :  { %2094 = vmatpush.msrb.mxu0 %v1714_v39  ;;  %v1011_v39 = vunpack.c.l.bf16 %v8924_v2 }
  0x92   :  { %2095 = vmatpush.msrb.mxu0 %v1698_v22 }
  0x94   :  { %2096 = vmatpush.msrb.mxu0 %v1682_v24  ;;  %v8962_v24 = vld [vmem:[%s14275_s3 + $0xb88] sm:$0xff] }
  0x96   :  { %2097 = vmatpush.msrb.mxu0 %v1666_v52 }
  0xa0   :  { %v194_v58 = vpop.f32.mrf.mxu0 }
  0xa3   :  { %v217_v3 = vpop.f32.mrf.mxu1 }
  0xa4   :  { %v8811_v1 = vpop.permute.xlu0 %162  ;;  %v263_v6 = vpop.f32.mrf.mxu3 }
  0xa5   :  { %v195_v0 = vadd.f32 %v194_v58, %v8811_v1  ;;  %v8933_v58 = vld [vmem:[%s14275_s3 + $0x608] sm:$0xff] }
  0xa6   :  { %v1283_v22 = vunpack.c.l.bf16 %v8933_v58 }
  0xa7   :  { %v218_v25 = vadd.f32 %v217_v3, %v195_v0  ;;  %v240_v8 = vpop.f32.mrf.mxu2  ;;  %v1299_v3 = vunpack.c.l.bf16 %v8919_v41 }
  0xa8   :  { %v241_v17 = vadd.f32 %v240_v8, %v8811_v1  ;;  %v8956_v8 = vld [vmem:[%s14275_s3 + $0x5c8] sm:$0xff] }
  0xa9   :  { %v361_v13 = vmul.f32 0.2, %v218_v25 }
  0xaa   :  { %v264_v33 = vadd.f32 %v263_v6, %v241_v17  ;;  %v197_v44 = vpop.f32.mrf.mxu0  ;;  %v8945_v6 = vld [vmem:[%s14275_s3 + $0xbc8] sm:$0xff]  ;;  %v995_v17 = vunpack.c.l.bf16 %v8938_v49 }
  0xab   :  { %v8829_v38 = vmax.f32 %v218_v25, %v361_v13  ;;  %v8950_v25 = vld [vmem:[%s14275_s3 + $0x148] sm:$0xff] }
  0xac   :  { %v362_v62 = vmul.f32 0.2, %v264_v33  ;;  %v8843_v28 = vpop.permute.xlu0 %167  ;;  %v220_v42 = vpop.f32.mrf.mxu1 }
  0xad   :  { %14328 = vst [vmem:[#allocation9_spill] sm:$0xff] %v8829_v38  ;;  %1937 = vmatmul.f32.vlgmr.msra.gmra.mxu3 %v8829_v38  ;;  %v198_v4 = vadd.f32 %v197_v44, %v8843_v28  ;;  %v8974_v44 = vld [vmem:[%s14275_s3 + $0x588] sm:$0xff] }
  0xae   :  { %2105 = vmatpush.msra.mxu3 %v1139_v27  ;;  %v8859_v9 = vmax.f32 %v264_v33, %v362_v62  ;;  %v266_v47 = vpop.f32.mrf.mxu3  ;;  %v1651_v27 = vunpack.c.l.bf16 %v8945_v6  ;;  %v8969_v33 = vld [vmem:[%s14275_s3 + $0x108] sm:$0xff]  ;;  %v1267_v62 = vunpack.c.l.bf16 %v8956_v8 }
  0xaf   :  { %v221_v20 = vadd.f32 %v220_v42, %v198_v4  ;;  %v8983_v42 = vld [vmem:[%s14275_s3 + $0xb48] sm:$0xff] }
  0xb0   :  { %2106 = vmatpush.msra.mxu3 %v1123_v16  ;;  %v243_v18 = vpop.f32.mrf.mxu2  ;;  %1960 = vmatmul.f32.vlgmr.msra.gmra.mxu1 %v8859_v9  ;;  %v979_v16 = vunpack.c.l.bf16 %v8950_v25 }
  0xb1   :  { %v244_v45 = vadd.f32 %v243_v18, %v8843_v28  ;;  %v365_v59 = vmul.f32 0.2, %v221_v20  ;;  %2128 = vmatpush.msra.mxu1 %v1395_v32  ;;  %v8989_v32 = vld [vmem:[%s14275_s3 + $0xc8] sm:$0xff]  ;;  %v963_v18 = vunpack.c.l.bf16 %v8969_v33 }
  0xb2   :  { %2107 = vmatpush.msra.mxu3 %v1107_v34  ;;  %v1635_v34 = vunpack.c.l.bf16 %v8962_v24 }
  0xb3   :  { %v267_v10 = vadd.f32 %v266_v47, %v244_v45  ;;  %v8892_v26 = vmax.f32 %v221_v20, %v365_v59  ;;  %2129 = vmatpush.msra.mxu1 %v1379_v35  ;;  %v8994_v20 = vld [vmem:[%s14275_s3 + $0x548] sm:$0xff]  ;;  %v1619_v59 = vunpack.c.l.bf16 %v8983_v42 }
  0xb4   :  { %2108 = vmatpush.msra.mxu3 %v1091_v61  ;;  %v1251_v61 = vunpack.c.l.bf16 %v8974_v44  ;;  %v9003_v35 = vld [vmem:[%s14275_s3 + $0xb08] sm:$0xff] }
  0xb5   :  { %v366_v7 = vmul.f32 0.2, %v267_v10  ;;  %1940 = vmatmul.f32.gmra.mxu3 %v8892_v26  ;;  %2130 = vmatpush.msra.mxu1 %v1363_v46  ;;  %v9010_v46 = vld [vmem:[%s14275_s3 + $0x88] sm:$0xff] }
  0xb6   :  { %2109 = vmatpush.msra.mxu3 %v1075_v31  ;;  %v947_v31 = vunpack.c.l.bf16 %v8989_v32 }
  0xb7   :  { %v8913_v51 = vmax.f32 %v267_v10, %v366_v7  ;;  %2131 = vmatpush.msra.mxu1 %v1347_v43  ;;  %v1235_v43 = vunpack.c.l.bf16 %v8994_v20  ;;  %v9017_v7 = vld [vmem:[%s14275_s3 + $0xac8] sm:$0xff] }
  0xb8   :  { %v286_v29 = vpop.f32.mrf.mxu1  ;;  %2110 = vmatpush.msra.mxu3 %v1059_v48  ;;  %v9022_v48 = vld [vmem:[%s14275_s3 + $0x508] sm:$0xff] }
  0xb9   :  { %v287_v63 = vadd.f32 %v286_v29, %v8811_v1  ;;  %1963 = vmatmul.f32.gmra.mxu1 %v8913_v51  ;;  %v309_v11 = vpop.f32.mrf.mxu3  ;;  %v9028_v29 = vld [vmem:[%s14275_s3 + $0x48] sm:$0xff] }
  0xba   :  { %2132 = vmatpush.msra.mxu1 %v1331_v56  ;;  %2111 = vmatpush.msra.mxu3 %v1043_v55  ;;  %v1603_v55 = vunpack.c.l.bf16 %v9003_v35 }
  0xbb   :  { %v310_v0 = vadd.f32 %v309_v11, %v287_v63  ;;  %v9035_v11 = vld [vmem:[%s14275_s3 + $0xa88] sm:$0xff] }
  0xbc   :  { %2133 = vmatpush.msra.mxu1 %v1315_v57  ;;  %2112 = vmatpush.msra.mxu3 %v1027_v12  ;;  %v931_v12 = vunpack.c.l.bf16 %v9010_v46 }
  0xbd   :  { %v363_v13 = vmul.f32 0.2, %v310_v0  ;;  %2029 = vmatmul.f32.vlgmr.msrb.gmra.mxu3 %v8829_v38 }
  0xbe   :  { %2134 = vmatpush.msra.mxu1 %v1299_v3  ;;  %2113 = vmatpush.msra.mxu3 %v1011_v39  ;;  %v9040_v3 = vld [vmem:[%s14275_s3 + $0x4c8] sm:$0xff]  ;;  %v1219_v39 = vunpack.c.l.bf16 %v9022_v48 }
  0xbf   :  { %v8976_v52 = vmax.f32 %v310_v0, %v363_v13 }
  0xc0   :  { %v289_v4 = vpop.f32.mrf.mxu1  ;;  %2135 = vmatpush.msra.mxu1 %v1283_v22  ;;  %2114 = vmatpush.msra.mxu3 %v995_v17  ;;  %v9048_v22 = vld [vmem:[%s14275_s3 + $0x8] sm:$0xff] }
  0xc1   :  { %v290_v47 = vadd.f32 %v289_v4, %v8843_v28  ;;  %1983 = vmatmul.f32.vlgmr.msra.gmra.mxu2 %v8976_v52  ;;  %v312_v45 = vpop.f32.mrf.mxu3  ;;  %2052 = vmatmul.f32.vlgmr.msrb.gmra.mxu1 %v8859_v9  ;;  %v1571_v4 = vunpack.c.l.bf16 %v9035_v11 }
  0xc2   :  { %2151 = vmatpush.msra.mxu2 %v1651_v27  ;;  %2115 = vmatpush.msra.mxu3 %v979_v16  ;;  %v915_v27 = vunpack.c.l.bf16 %v9028_v29  ;;  %v9056_v16 = vld [vmem:[%s14275_s3 + $0xa48] sm:$0xff] }
  0xc3   :  { %v313_v10 = vadd.f32 %v312_v45, %v290_v47  ;;  %2136 = vmatpush.msra.mxu1 %v1267_v62  ;;  %v9061_v62 = vld [vmem:[%s14275_s3 + $0xfc8] sm:$0xff] }
  0xc4   :  { %2152 = vmatpush.msra.mxu2 %v1635_v34  ;;  %v332_v56 = vpop.f32.mrf.mxu0  ;;  %2116 = vmatpush.msra.mxu3 %v963_v18  ;;  %v1203_v34 = vunpack.c.l.bf16 %v9040_v3  ;;  %v9068_v47 = vld [vmem:[%s14275_s3 + $0x488] sm:$0xff] }
  0xc5   :  { %v367_v57 = vmul.f32 0.2, %v313_v10  ;;  %v333_v63 = vadd.f32 %v332_v56, %v8811_v1  ;;  %2137 = vmatpush.msra.mxu1 %v1251_v61  ;;  %2032 = vmatmul.f32.gmra.mxu3 %v8892_v26  ;;  %v1587_v1 = vunpack.c.l.bf16 %v9017_v7  ;;  %v899_v61 = vunpack.c.l.bf16 %v9048_v22  ;;  %v9075_v45 = vld [vmem:[%s14275_s3 + $0xa08] sm:$0xff] }
  0xc6   :  { %2153 = vmatpush.msra.mxu2 %v1619_v59  ;;  %v355_v0 = vpop.f32.mrf.mxu2  ;;  %2117 = vmatpush.msra.mxu3 %v947_v31  ;;  %v1555_v59 = vunpack.c.l.bf16 %v9056_v16  ;;  %v9082_v31 = vld [vmem:[%s14275_s3 + $0xf88] sm:$0xff]  ;;  %v1140_v56 = vunpack.c.h.bf16 %v8818_v5 }
  0xc7   :  { %v9050_v13 = vmax.f32 %v313_v10, %v367_v57  ;;  %v356_v17 = vadd.f32 %v355_v0, %v333_v63  ;;  %2138 = vmatpush.msra.mxu1 %v1235_v43  ;;  %v1907_v10 = vunpack.c.l.bf16 %v9061_v62  ;;  %14329 = vst [vmem:[#allocation6_spill] sm:$0xff] %v9082_v31  ;;  %v9092_v57 = vld [vmem:[%s14275_s3 + $0x448] sm:$0xff] }
  0xc8   :  { %2154 = vmatpush.msra.mxu2 %v1603_v55  ;;  %2118 = vmatpush.msra.mxu3 %v931_v12  ;;  %v1187_v55 = vunpack.c.l.bf16 %v9068_v47  ;;  %14330 = vst [vmem:[#allocation7_spill] sm:$0xff] %v9092_v57  ;;  %v1539_v12 = vunpack.c.l.bf16 %v9075_v45  ;;  %v9098_v0 = vld [vmem:[%s14275_s3 + $0x9c8] sm:$0xff] }
  0xc9   :  { %v364_v18 = vmul.f32 0.2, %v356_v17  ;;  %1986 = vmatmul.f32.gmra.mxu2 %v9050_v13  ;;  %2139 = vmatpush.msra.mxu1 %v1219_v39  ;;  %v9103_v5 = vld [vmem:[%s14275_s3 + $0xf48] sm:$0xff]  ;;  %v1891_v39 = vunpack.c.l.bf16 %v9082_v31 }
  0xca   :  { %2155 = vmatpush.msra.mxu2 %v1587_v1  ;;  %2119 = vmatpush.msra.mxu3 %v915_v27  ;;  %v9112_v27 = vld [vmem:[%s14275_s3 + $0x408] sm:$0xff] }
  0xcb   :  { %v9084_v43 = vmax.f32 %v356_v17, %v364_v18  ;;  %2055 = vmatmul.f32.gmra.mxu1 %v8913_v51  ;;  %v1124_v17 = vunpack.c.h.bf16 %v8825_v19  ;;  %v9123_v18 = vld [vmem:[%s14275_s3 + $0xf08] sm:$0xff] }
  0xcc   :  { %2156 = vmatpush.msra.mxu2 %v1571_v4  ;;  %v335_v63 = vpop.f32.mrf.mxu0  ;;  %2140 = vmatpush.msra.mxu1 %v1203_v34  ;;  %v1171_v34 = vunpack.c.l.bf16 %v9092_v57 }
  0xcd   :  { %v336_v1 = vadd.f32 %v335_v63, %v8843_v28  ;;  %2120 = vmatpush.msra.mxu3 %v899_v61  ;;  %2006 = vmatmul.f32.vlgmr.msra.gmra.mxu0 %v9084_v43  ;;  %v9118_v28 = vld [vmem:[%s14275_s3 + $0x988] sm:$0xff]  ;;  %v1523_v61 = vunpack.c.l.bf16 %v9098_v0  ;;  %v1155_v63 = vunpack.c.l.bf16 %v9112_v27 }
  0xce   :  { %2157 = vmatpush.msra.mxu2 %v1555_v59  ;;  %2174 = vmatpush.msra.mxu0 %v1907_v10  ;;  %v358_v4 = vpop.f32.mrf.mxu2  ;;  %v1875_v59 = vunpack.c.l.bf16 %v9103_v5  ;;  %v1108_v10 = vunpack.c.h.bf16 %v8834_v15  ;;  %v1507_v31 = vunpack.c.l.bf16 %v9118_v28  ;;  %v1092_v15 = vunpack.c.h.bf16 %v8849_v40  ;;  %v9157_v40 = vld [vmem:[%s14275_s3 + $0xe88] sm:$0xff] }
  0xcf   :  { %2197 = vmatpush.msrb.mxu3 %v1140_v56  ;;  %v359_v19 = vadd.f32 %v358_v4, %v336_v1  ;;  %2141 = vmatpush.msra.mxu1 %v1187_v55  ;;  %v1859_v56 = vunpack.c.l.bf16 %v9123_v18  ;;  %v9135_v55 = vld [vmem:[%s14275_s3 + $0x948] sm:$0xff]  ;;  %v1396_v1 = vunpack.c.h.bf16 %v8839_v37  ;;  %v1076_v37 = vunpack.c.h.bf16 %v8870_v36 }
  0xd0   :  { %2121 = vmatmul.f32.vlgmr.msra.gmra.mxu3 %v8829_v38  ;;  %2158 = vmatpush.msra.mxu2 %v1539_v12  ;;  %v9140_v12 = vld [vmem:[%s14275_s3 + $0xec8] sm:$0xff]  ;;  %v1491_v4 = vunpack.c.l.bf16 %v9135_v55  ;;  %v1060_v36 = vunpack.c.h.bf16 %v8883_v14 }
  0xd1   :  { %v368_v57 = vmul.f32 0.2, %v359_v19  ;;  %2175 = vmatpush.msra.mxu0 %v1891_v39  ;;  %2198 = vmatpush.msrb.mxu3 %v1124_v17  ;;  %v9150_v17 = vld [vmem:[%s14275_s3 + $0x908] sm:$0xff] }
  0xd2   :  { %2142 = vmatpush.msra.mxu1 %v1171_v34  ;;  %2075 = vmatmul.f32.vlgmr.msrb.gmra.mxu2 %v8976_v52  ;;  %v1843_v34 = vunpack.c.l.bf16 %v9140_v12 }
  0xd3   :  { %v9145_v39 = vmax.f32 %v359_v19, %v368_v57  ;;  %2159 = vmatpush.msra.mxu2 %v1523_v61  ;;  %2176 = vmatpush.msra.mxu0 %v1875_v59  ;;  %v1380_v57 = vunpack.c.h.bf16 %v8854_v21  ;;  %v1475_v19 = vunpack.c.l.bf16 %v9150_v17  ;;  %v9165_v61 = vld [vmem:[%s14275_s3 + $0x8c8] sm:$0xff]  ;;  %v1827_v21 = vunpack.c.l.bf16 %v9157_v40 }
  0xd4   :  { %2199 = vmatpush.msrb.mxu3 %v1108_v10  ;;  %2143 = vmatpush.msra.mxu1 %v1155_v63  ;;  %v9170_v59 = vld [vmem:[%s14275_s3 + $0xe48] sm:$0xff] }
  0xd5   :  { %2160 = vmatpush.msra.mxu2 %v1507_v31  ;;  %2177 = vmatpush.msra.mxu0 %v1859_v56  ;;  %v1364_v31 = vunpack.c.h.bf16 %v8864_v30  ;;  %v9180_v10 = vld [vmem:[%s14275_s3 + $0x888] sm:$0xff]  ;;  %v1459_v56 = vunpack.c.l.bf16 %v9165_v61  ;;  %v1811_v14 = vunpack.c.l.bf16 %v9170_v59  ;;  %v1044_v30 = vunpack.c.h.bf16 %v8897_v50 }
  0xd6   :  { %2200 = vmatpush.msrb.mxu3 %v1092_v15  ;;  %2220 = vmatpush.msrb.mxu1 %v1396_v1  ;;  %v9185_v63 = vld [vmem:[%s14275_s3 + $0xe08] sm:$0xff]  ;;  %v1348_v15 = vunpack.c.h.bf16 %v8878_v53  ;;  %v1443_v1 = vunpack.c.l.bf16 %v9180_v10  ;;  %v1028_v53 = vunpack.c.h.bf16 %v8910_v23  ;;  %v1332_v50 = vunpack.c.h.bf16 %v8890_v54 }
  0xd7   :  { %2144 = vmatmul.f32.vlgmr.msra.gmra.mxu1 %v8859_v9  ;;  %2009 = vmatmul.f32.gmra.mxu0 %v9145_v39  ;;  %v1012_v54 = vunpack.c.h.bf16 %v8924_v2  ;;  %v1300_v2 = vunpack.c.h.bf16 %v8919_v41  ;;  %v1636_v41 = vunpack.c.h.bf16 %v8962_v24  ;;  %v9256_v24 = vld [vmem:[%s14275_s3 + $0xc88] sm:$0xff] }
  0xd8   :  { %2161 = vmatpush.msra.mxu2 %v1491_v4  ;;  %2178 = vmatpush.msra.mxu0 %v1843_v34  ;;  %v1795_v4 = vunpack.c.l.bf16 %v9185_v63  ;;  %v9197_v34 = vld [vmem:[%s14275_s3 + $0x848] sm:$0xff] }
  0xd9   :  { %2201 = vmatpush.msrb.mxu3 %v1076_v37  ;;  %2221 = vmatpush.msrb.mxu1 %v1380_v57  ;;  %v9202_v37 = vld [vmem:[%s14275_s3 + $0xdc8] sm:$0xff] }
  0xda   :  { %2124 = vmatmul.f32.gmra.mxu3 %v8892_v26  ;;  %2162 = vmatpush.msra.mxu2 %v1475_v19  ;;  %v9210_v57 = vld [vmem:[%s14275_s3 + $0x808] sm:$0xff]  ;;  %v1779_v23 = vunpack.c.l.bf16 %v9202_v37 }
  0xdb   :  { %2179 = vmatpush.msra.mxu0 %v1827_v21  ;;  %2202 = vmatpush.msrb.mxu3 %v1060_v36  ;;  %v9215_v19 = vld [vmem:[%s14275_s3 + $0xd88] sm:$0xff]  ;;  %v1427_v21 = vunpack.c.l.bf16 %v9197_v34  ;;  %v1316_v36 = vunpack.c.h.bf16 %v8904_v60  ;;  %v1652_v60 = vunpack.c.h.bf16 %v8945_v6 }
  0xdc   :  { %2222 = vmatpush.msrb.mxu1 %v1364_v31  ;;  %2078 = vmatmul.f32.gmra.mxu2 %v9050_v13  ;;  %v9224_v31 = vld [vmem:[%s14275_s3 + $0xd48] sm:$0xff] }
  0xdd   :  { %2163 = vmatpush.msra.mxu2 %v1459_v56  ;;  %2180 = vmatpush.msra.mxu0 %v1811_v14  ;;  %v1411_v56 = vunpack.c.l.bf16 %v9210_v57  ;;  %v1763_v14 = vunpack.c.l.bf16 %v9215_v19 }
  0xde   :  { %2203 = vmatpush.msrb.mxu3 %v1044_v30  ;;  %2223 = vmatpush.msrb.mxu1 %v1348_v15  ;;  %v996_v30 = vunpack.c.h.bf16 %v8938_v49  ;;  %v1747_v15 = vunpack.c.l.bf16 %v9224_v31  ;;  %v1284_v49 = vunpack.c.h.bf16 %v8933_v58  ;;  %v948_v58 = vunpack.c.h.bf16 %v8989_v32  ;;  %v9265_v32 = vld [vmem:[%s14275_s3 + $0xc48] sm:$0xff] }
  0xdf   :  { %2164 = vmatpush.msra.mxu2 %v1443_v1  ;;  %2181 = vmatpush.msra.mxu0 %v1795_v4  ;;  %v9237_v1 = vld [vmem:[%s14275_s3 + $0xd08] sm:$0xff]  ;;  %v980_v4 = vunpack.c.h.bf16 %v8950_v25  ;;  %v1268_v25 = vunpack.c.h.bf16 %v8956_v8  ;;  %v1604_v8 = vunpack.c.h.bf16 %v9003_v35  ;;  %v916_v35 = vunpack.c.h.bf16 %v9028_v29 }
  0xe0   :  { %2204 = vmatpush.msrb.mxu3 %v1028_v53  ;;  %2224 = vmatpush.msrb.mxu1 %v1332_v50  ;;  %v1731_v6 = vunpack.c.l.bf16 %v9237_v1  ;;  %v964_v53 = vunpack.c.h.bf16 %v8969_v33  ;;  %v9247_v50 = vld [vmem:[%s14275_s3 + $0xcc8] sm:$0xff]  ;;  %v900_v29 = vunpack.c.h.bf16 %v9048_v22  ;;  %v9294_v22 = vld [vmem:[%s14275_s3 + $0x390] sm:$0xff] }
  0xe1   :  { %2147 = vmatmul.f32.gmra.mxu1 %v8913_v51  ;;  %2098 = vmatmul.f32.vlgmr.msrb.gmra.mxu0 %v9084_v43  ;;  %v1715_v33 = vunpack.c.l.bf16 %v9247_v50 }
  0xe2   :  { %2165 = vmatpush.msra.mxu2 %v1427_v21  ;;  %2182 = vmatpush.msra.mxu0 %v1779_v23  ;;  %v1620_v21 = vunpack.c.h.bf16 %v8983_v42  ;;  %v1252_v23 = vunpack.c.h.bf16 %v8974_v44  ;;  %v932_v42 = vunpack.c.h.bf16 %v9010_v46  ;;  %v1588_v44 = vunpack.c.h.bf16 %v9017_v7  ;;  %v9275_v46 = vld [vmem:[%s14275_s3 + $0xc08] sm:$0xff] }
  0xe3   :  { %2205 = vmatpush.msrb.mxu3 %v1012_v54  ;;  %2225 = vmatpush.msrb.mxu1 %v1316_v36  ;;  %v1699_v54 = vunpack.c.l.bf16 %v9256_v24  ;;  %v1236_v36 = vunpack.c.h.bf16 %v8994_v20  ;;  %v1220_v20 = vunpack.c.h.bf16 %v9022_v48  ;;  %v1667_v7 = vunpack.c.l.bf16 %v9275_v46 }
  0xe4   :  { %2166 = vmatpush.msra.mxu2 %v1411_v56  ;;  %2183 = vmatpush.msra.mxu0 %v1763_v14  ;;  %v1683_v56 = vunpack.c.l.bf16 %v9265_v32  ;;  %v1572_v14 = vunpack.c.h.bf16 %v9035_v11  ;;  %v1556_v48 = vunpack.c.h.bf16 %v9056_v16  ;;  %v1908_v11 = vunpack.c.h.bf16 %v9061_v62  ;;  %v9302_v16 = vld [vmem:[%s14275_s3 + $0x350] sm:$0xff]  ;;  %v14331_v62 = vld [vmem:[#allocation6_spill] sm:$0xff] }
  0xe5   :  { %2206 = vmatpush.msrb.mxu3 %v996_v30  ;;  %2226 = vmatpush.msrb.mxu1 %v1300_v2  ;;  %v9285_v30 = vld [vmem:[%s14275_s3 + $0x3d0] sm:$0xff]  ;;  %v1204_v2 = vunpack.c.h.bf16 %v9040_v3  ;;  %v1188_v3 = vunpack.c.h.bf16 %v9068_v47  ;;  %v1524_v47 = vunpack.c.h.bf16 %v9098_v0  ;;  %v1156_v0 = vunpack.c.h.bf16 %v9112_v27 }
  0xe6   :  { %2243 = vmatpush.msrb.mxu2 %v1652_v60  ;;  %2184 = vmatpush.msra.mxu0 %v1747_v15  ;;  %v1141_v60 = vunpack.c.l.bf16 %v9285_v30  ;;  %v1540_v15 = vunpack.c.h.bf16 %v9075_v45  ;;  %v1876_v45 = vunpack.c.h.bf16 %v9103_v5  ;;  %v1860_v5 = vunpack.c.h.bf16 %v9123_v18  ;;  %v9335_v27 = vld [vmem:[%s14275_s3 + $0x790] sm:$0xff] }
  0xe7   :  { %2167 = vmatmul.f32.vlgmr.msra.gmra.mxu2 %v8976_v52  ;;  %2207 = vmatpush.msrb.mxu3 %v980_v4  ;;  %v1892_v4 = vunpack.c.h.bf16 %v14331_v62  ;;  %v1844_v18 = vunpack.c.h.bf16 %v9140_v12  ;;  %v1476_v12 = vunpack.c.h.bf16 %v9150_v17  ;;  %v1460_v17 = vunpack.c.h.bf16 %v9165_v61  ;;  %v9400_v62 = vld [vmem:[%s14275_s3 + $0x190] sm:$0xff] }
  0xe8   :  { %2227 = vmatpush.msrb.mxu1 %v1284_v49  ;;  %2244 = vmatpush.msrb.mxu2 %v1636_v41  ;;  %v1125_v49 = vunpack.c.l.bf16 %v9294_v22  ;;  %v14332_v41 = vld [vmem:[#allocation7_spill] sm:$0xff]  ;;  %v1444_v61 = vunpack.c.h.bf16 %v9180_v10 }
  0xe9   :  { %2185 = vmatpush.msra.mxu0 %v1731_v6  ;;  %2208 = vmatpush.msrb.mxu3 %v964_v53  ;;  %v1172_v6 = vunpack.c.h.bf16 %v14332_v41  ;;  %v1109_v53 = vunpack.c.l.bf16 %v9302_v16  ;;  %v1412_v41 = vunpack.c.h.bf16 %v9210_v57  ;;  %v9427_v57 = vld [vmem:[%s14275_s3 + $0x610] sm:$0xff] }
  0xea   :  { %2228 = vmatpush.msrb.mxu1 %v1268_v25  ;;  %2245 = vmatpush.msrb.mxu2 %v1620_v21  ;;  %v9315_v25 = vld [vmem:[%s14275_s3 + $0x310] sm:$0xff] }
  0xeb   :  { %2101 = vmatmul.f32.gmra.mxu0 %v9145_v39  ;;  %2209 = vmatpush.msrb.mxu3 %v948_v58  ;;  %v9320_v21 = vld [vmem:[%s14275_s3 + $0x7d0] sm:$0xff]  ;;  %v1508_v58 = vunpack.c.h.bf16 %v9118_v28  ;;  %v1492_v28 = vunpack.c.h.bf16 %v9135_v55  ;;  %v1381_v55 = vunpack.c.l.bf16 %v9335_v27 }
  0xec   :  { %2186 = vmatpush.msra.mxu0 %v1715_v33  ;;  %2229 = vmatpush.msrb.mxu1 %v1252_v23  ;;  %v9328_v33 = vld [vmem:[%s14275_s3 + $0x2d0] sm:$0xff]  ;;  %v1093_v23 = vunpack.c.l.bf16 %v9315_v25 }
  0xed   :  { %2246 = vmatpush.msrb.mxu2 %v1604_v8  ;;  %2210 = vmatpush.msrb.mxu3 %v932_v42  ;;  %v1397_v8 = vunpack.c.l.bf16 %v9320_v21  ;;  %v1077_v42 = vunpack.c.l.bf16 %v9328_v33 }
  0xee   :  { %2187 = vmatpush.msra.mxu0 %v1699_v54  ;;  %2230 = vmatpush.msrb.mxu1 %v1236_v36  ;;  %v9343_v54 = vld [vmem:[%s14275_s3 + $0x290] sm:$0xff] }
  0xef   :  { %2247 = vmatpush.msrb.mxu2 %v1588_v44  ;;  %2211 = vmatpush.msrb.mxu3 %v916_v35  ;;  %v9348_v36 = vld [vmem:[%s14275_s3 + $0x750] sm:$0xff]  ;;  %v1828_v44 = vunpack.c.h.bf16 %v9157_v40  ;;  %v1812_v40 = vunpack.c.h.bf16 %v9170_v59 }
  0xf0   :  { %2170 = vmatmul.f32.gmra.mxu2 %v9050_v13  ;;  %2188 = vmatpush.msra.mxu0 %v1683_v56  ;;  %v9357_v35 = vld [vmem:[%s14275_s3 + $0x250] sm:$0xff] }
  0xf1   :  { %2231 = vmatpush.msrb.mxu1 %v1220_v20  ;;  %2248 = vmatpush.msrb.mxu2 %v1572_v14  ;;  %v9362_v56 = vld [vmem:[%s14275_s3 + $0x710] sm:$0xff]  ;;  %v1061_v20 = vunpack.c.l.bf16 %v9343_v54  ;;  %v1365_v14 = vunpack.c.l.bf16 %v9348_v36 }
  0xf2   :  { %2189 = vmatpush.msra.mxu0 %v1667_v7  ;;  %2212 = vmatpush.msrb.mxu3 %v900_v29  ;;  %v9372_v7 = vld [vmem:[%s14275_s3 + $0x210] sm:$0xff]  ;;  %v1045_v29 = vunpack.c.l.bf16 %v9357_v35 }
  0xf3   :  { %2232 = vmatpush.msrb.mxu1 %v1204_v2  ;;  %2213 = vmatmul.f32.vlgmr.msrb.gmra.mxu3 %v8829_v38  ;;  %v1349_v2 = vunpack.c.l.bf16 %v9362_v56  ;;  %v9386_v59 = vld [vmem:[%s14275_s3 + $0x1d0] sm:$0xff] }
  0xf4   :  { %2249 = vmatpush.msrb.mxu2 %v1556_v48  ;;  %2266 = vmatpush.msrb.mxu0 %v1908_v11  ;;  %v9380_v48 = vld [vmem:[%s14275_s3 + $0x6d0] sm:$0xff]  ;;  %v1796_v11 = vunpack.c.h.bf16 %v9185_v63  ;;  %v1780_v63 = vunpack.c.h.bf16 %v9202_v37  ;;  %v1764_v37 = vunpack.c.h.bf16 %v9215_v19 }
  0xf5   :  { %2289 = vmatpush.msra.mxu3 %v1141_v60  ;;  %2190 = vmatmul.f32.vlgmr.msra.gmra.mxu0 %v9084_v43  ;;  %v1029_v60 = vunpack.c.l.bf16 %v9372_v7  ;;  %v1333_v10 = vunpack.c.l.bf16 %v9380_v48  ;;  %v9433_v19 = vld [vmem:[%s14275_s3 + $0xb90] sm:$0xff] }
  0xf6   :  { %2233 = vmatpush.msrb.mxu1 %v1188_v3  ;;  %2250 = vmatpush.msrb.mxu2 %v1540_v15  ;;  %v9393_v3 = vld [vmem:[%s14275_s3 + $0x690] sm:$0xff]  ;;  %v1428_v15 = vunpack.c.h.bf16 %v9197_v34 }
  0xf7   :  { %2267 = vmatpush.msrb.mxu0 %v1892_v4  ;;  %2290 = vmatpush.msra.mxu3 %v1125_v49  ;;  %v1013_v4 = vunpack.c.l.bf16 %v9386_v59  ;;  %v9407_v49 = vld [vmem:[%s14275_s3 + $0x650] sm:$0xff]  ;;  %v1317_v34 = vunpack.c.l.bf16 %v9393_v3 }
  0xf8   :  { %2234 = vmatpush.msrb.mxu1 %v1172_v6  ;;  %2251 = vmatpush.msrb.mxu2 %v1524_v47  ;;  %v9415_v6 = vld [vmem:[%s14275_s3 + $0xbd0] sm:$0xff]  ;;  %v997_v47 = vunpack.c.l.bf16 %v9400_v62 }
  0xf9   :  { %2268 = vmatpush.msrb.mxu0 %v1876_v45  ;;  %2291 = vmatpush.msra.mxu3 %v1109_v53  ;;  %v9422_v45 = vld [vmem:[%s14275_s3 + $0x150] sm:$0xff]  ;;  %v1301_v53 = vunpack.c.l.bf16 %v9407_v49 }
  0xfa   :  { %2235 = vmatpush.msrb.mxu1 %v1156_v0  ;;  %2252 = vmatpush.msrb.mxu2 %v1508_v58  ;;  %v1653_v0 = vunpack.c.l.bf16 %v9415_v6  ;;  %v1748_v58 = vunpack.c.h.bf16 %v9224_v31  ;;  %v9452_v31 = vld [vmem:[%s14275_s3 + $0xb50] sm:$0xff] }
  0xfb   :  { %2236 = vmatmul.f32.vlgmr.msrb.gmra.mxu1 %v8859_v9  ;;  %2269 = vmatpush.msrb.mxu0 %v1860_v5  ;;  %v9440_v5 = vld [vmem:[%s14275_s3 + $0x110] sm:$0xff] }
  0xfc   :  { %2292 = vmatpush.msra.mxu3 %v1093_v23  ;;  %2312 = vmatpush.msra.mxu1 %v1397_v8  ;;  %v9445_v23 = vld [vmem:[%s14275_s3 + $0x5d0] sm:$0xff]  ;;  %v981_v8 = vunpack.c.l.bf16 %v9422_v45 }
  0xfd   :  { %2216 = vmatmul.f32.gmra.mxu3 %v8892_v26  ;;  %2253 = vmatpush.msrb.mxu2 %v1492_v28  ;;  %v1285_v28 = vunpack.c.l.bf16 %v9427_v57 }
  0xfe   :  { %2270 = vmatpush.msrb.mxu0 %v1844_v18  ;;  %2293 = vmatpush.msra.mxu3 %v1077_v42  ;;  %v1637_v18 = vunpack.c.l.bf16 %v9433_v19  ;;  %v1732_v42 = vunpack.c.h.bf16 %v9237_v1  ;;  %v9472_v1 = vld [vmem:[%s14275_s3 + $0xb10] sm:$0xff] }
  0xff   :  { %2313 = vmatpush.msra.mxu1 %v1381_v55  ;;  %2193 = vmatmul.f32.gmra.mxu0 %v9145_v39  ;;  %v9459_v55 = vld [vmem:[%s14275_s3 + $0xd0] sm:$0xff] }
 0x100   :  { %2254 = vmatpush.msrb.mxu2 %v1476_v12  ;;  %2271 = vmatpush.msrb.mxu0 %v1828_v44  ;;  %v9464_v12 = vld [vmem:[%s14275_s3 + $0x590] sm:$0xff]  ;;  %v965_v44 = vunpack.c.l.bf16 %v9440_v5 }
 0x101   :  { %2294 = vmatpush.msra.mxu3 %v1061_v20  ;;  %2314 = vmatpush.msra.mxu1 %v1365_v14  ;;  %v1269_v20 = vunpack.c.l.bf16 %v9445_v23  ;;  %v1621_v14 = vunpack.c.l.bf16 %v9452_v31 }
 0x102   :  { %2255 = vmatpush.msrb.mxu2 %v1460_v17  ;;  %2272 = vmatpush.msrb.mxu0 %v1812_v40  ;;  %v1716_v17 = vunpack.c.h.bf16 %v9247_v50  ;;  %v9479_v40 = vld [vmem:[%s14275_s3 + $0x90] sm:$0xff]  ;;  %v1605_v50 = vunpack.c.l.bf16 %v9472_v1 }
 0x103   :  { %2295 = vmatpush.msra.mxu3 %v1045_v29  ;;  %2315 = vmatpush.msra.mxu1 %v1349_v2  ;;  %v9484_v29 = vld [vmem:[%s14275_s3 + $0x550] sm:$0xff]  ;;  %v949_v2 = vunpack.c.l.bf16 %v9459_v55 }
 0x104   :  { %2239 = vmatmul.f32.gmra.mxu1 %v8913_v51  ;;  %2256 = vmatpush.msrb.mxu2 %v1444_v61  ;;  %v1253_v61 = vunpack.c.l.bf16 %v9464_v12 }
 0x105   :  { %2273 = vmatpush.msrb.mxu0 %v1796_v11  ;;  %2296 = vmatpush.msra.mxu3 %v1029_v60  ;;  %v1700_v11 = vunpack.c.h.bf16 %v9256_v24  ;;  %v9493_v60 = vld [vmem:[%s14275_s3 + $0xad0] sm:$0xff] }
 0x106   :  { %2316 = vmatpush.msra.mxu1 %v1333_v10  ;;  %2257 = vmatpush.msrb.mxu2 %v1428_v15  ;;  %v9498_v10 = vld [vmem:[%s14275_s3 + $0x50] sm:$0xff]  ;;  %v933_v15 = vunpack.c.l.bf16 %v9479_v40 }
 0x107   :  { %2274 = vmatpush.msrb.mxu0 %v1780_v63  ;;  %2297 = vmatpush.msra.mxu3 %v1013_v4  ;;  %v1237_v63 = vunpack.c.l.bf16 %v9484_v29  ;;  %v9505_v24 = vld [vmem:[%s14275_s3 + $0x510] sm:$0xff]  ;;  %v1684_v4 = vunpack.c.h.bf16 %v9265_v32 }
 0x108   :  { %2317 = vmatpush.msra.mxu1 %v1317_v34  ;;  %2258 = vmatpush.msrb.mxu2 %v1412_v41  ;;  %v9511_v34 = vld [vmem:[%s14275_s3 + $0xa90] sm:$0xff] }
 0x109   :  { %2275 = vmatpush.msrb.mxu0 %v1764_v37  ;;  %2298 = vmatpush.msra.mxu3 %v997_v47  ;;  %v9516_v41 = vld [vmem:[%s14275_s3 + $0x10] sm:$0xff]  ;;  %v1589_v37 = vunpack.c.l.bf16 %v9493_v60  ;;  %v917_v47 = vunpack.c.l.bf16 %v9498_v10 }
 0x10a   :  { %2318 = vmatpush.msra.mxu1 %v1301_v53  ;;  %2259 = vmatmul.f32.vlgmr.msrb.gmra.mxu2 %v8976_v52  ;;  %v9523_v32 = vld [vmem:[%s14275_s3 + $0x4d0] sm:$0xff]  ;;  %v1221_v53 = vunpack.c.l.bf16 %v9505_v24 }
 0x10b   :  { %2335 = vmatpush.msra.mxu2 %v1653_v0  ;;  %2276 = vmatpush.msrb.mxu0 %v1748_v58  ;;  %v1668_v0 = vunpack.c.h.bf16 %v9275_v46  ;;  %v9530_v58 = vld [vmem:[%s14275_s3 + $0xa50] sm:$0xff]  ;;  %v1205_v46 = vunpack.c.l.bf16 %v9523_v32 }
 0x10c   :  { %2299 = vmatpush.msra.mxu3 %v981_v8  ;;  %2319 = vmatpush.msra.mxu1 %v1285_v28  ;;  %v1573_v8 = vunpack.c.l.bf16 %v9511_v34  ;;  %v901_v28 = vunpack.c.l.bf16 %v9516_v41 }
 0x10d   :  { %2336 = vmatpush.msra.mxu2 %v1637_v18  ;;  %2277 = vmatpush.msrb.mxu0 %v1732_v42  ;;  %v9537_v18 = vld [vmem:[%s14275_s3 + $0xfd0] sm:$0xff] }
 0x10e   :  { %2300 = vmatpush.msra.mxu3 %v965_v44  ;;  %2320 = vmatpush.msra.mxu1 %v1269_v20  ;;  %v9544_v42 = vld [vmem:[%s14275_s3 + $0x490] sm:$0xff]  ;;  %v1557_v20 = vunpack.c.l.bf16 %v9530_v58 }
 0x10f   :  { %2337 = vmatpush.msra.mxu2 %v1621_v14  ;;  %2278 = vmatpush.msrb.mxu0 %v1716_v17  ;;  %v9549_v44 = vld [vmem:[%s14275_s3 + $0xa10] sm:$0xff]  ;;  %v1909_v17 = vunpack.c.l.bf16 %v9537_v18 }
 0x110   :  { %2301 = vmatpush.msra.mxu3 %v949_v2  ;;  %2321 = vmatpush.msra.mxu1 %v1253_v61  ;;  %v9555_v14 = vld [vmem:[%s14275_s3 + $0xf90] sm:$0xff]  ;;  %v1142_v2 = vunpack.c.h.bf16 %v9285_v30 }
 0x111   :  { %2338 = vmatpush.msra.mxu2 %v1605_v50  ;;  %2279 = vmatpush.msrb.mxu0 %v1700_v11  ;;  %v9562_v61 = vld [vmem:[%s14275_s3 + $0x450] sm:$0xff]  ;;  %v1189_v11 = vunpack.c.l.bf16 %v9544_v42 }
 0x112   :  { %2302 = vmatpush.msra.mxu3 %v933_v15  ;;  %2322 = vmatpush.msra.mxu1 %v1237_v63  ;;  %14333 = vst [vmem:[#allocation8_spill] sm:$0xff] %v9562_v61  ;;  %v9567_v50 = vld [vmem:[%s14275_s3 + $0x9d0] sm:$0xff]  ;;  %v1541_v15 = vunpack.c.l.bf16 %v9549_v44  ;;  %v1893_v63 = vunpack.c.l.bf16 %v9555_v14 }
 0x113   :  { %2262 = vmatmul.f32.gmra.mxu2 %v9050_v13  ;;  %2280 = vmatpush.msrb.mxu0 %v1684_v4  ;;  %14334 = vst [vmem:[#allocation6_spill] sm:$0xff] %v9567_v50  ;;  %v9574_v30 = vld [vmem:[%s14275_s3 + $0xf50] sm:$0xff]  ;;  %v1126_v4 = vunpack.c.h.bf16 %v9294_v22 }
 0x114   :  { %2339 = vmatpush.msra.mxu2 %v1589_v37  ;;  %2303 = vmatpush.msra.mxu3 %v917_v47  ;;  %v9582_v37 = vld [vmem:[%s14275_s3 + $0x410] sm:$0xff] }
 0x115   :  { %2323 = vmatpush.msra.mxu1 %v1221_v53  ;;  %2281 = vmatpush.msrb.mxu0 %v1668_v0  ;;  %v9587_v47 = vld [vmem:[%s14275_s3 + $0x990] sm:$0xff]  ;;  %v1173_v53 = vunpack.c.l.bf16 %v9562_v61  ;;  %v1525_v0 = vunpack.c.l.bf16 %v9567_v50 }
 0x116   :  { %2340 = vmatpush.msra.mxu2 %v1573_v8  ;;  %2304 = vmatpush.msra.mxu3 %v901_v28  ;;  %v9595_v22 = vld [vmem:[%s14275_s3 + $0xf10] sm:$0xff]  ;;  %v1877_v8 = vunpack.c.l.bf16 %v9574_v30  ;;  %v1110_v28 = vunpack.c.h.bf16 %v9302_v16  ;;  %v1094_v16 = vunpack.c.h.bf16 %v9315_v25 }
 0x117   :  { %2324 = vmatpush.msra.mxu1 %v1205_v46  ;;  %2282 = vmatmul.f32.vlgmr.msrb.gmra.mxu0 %v9084_v43  ;;  %v1157_v46 = vunpack.c.l.bf16 %v9582_v37  ;;  %v1861_v50 = vunpack.c.l.bf16 %v9595_v22  ;;  %v9605_v61 = vld [vmem:[%s14275_s3 + $0x950] sm:$0xff] }
 0x118   :  { %2305 = vmatmul.f32.vlgmr.msra.gmra.mxu3 %v8829_v38  ;;  %2341 = vmatpush.msra.mxu2 %v1557_v20  ;;  %v1509_v20 = vunpack.c.l.bf16 %v9587_v47 }
 0x119   :  { %2358 = vmatpush.msra.mxu0 %v1909_v17  ;;  %2381 = vmatpush.msrb.mxu3 %v1142_v2  ;;  %v9610_v17 = vld [vmem:[%s14275_s3 + $0xed0] sm:$0xff]  ;;  %v1398_v2 = vunpack.c.h.bf16 %v9320_v21  ;;  %v1078_v21 = vunpack.c.h.bf16 %v9328_v33  ;;  %v1062_v33 = vunpack.c.h.bf16 %v9343_v54  ;;  %v1046_v54 = vunpack.c.h.bf16 %v9357_v35 }
 0x11a   :  { %2325 = vmatpush.msra.mxu1 %v1189_v11  ;;  %2342 = vmatpush.msra.mxu2 %v1541_v15  ;;  %v9617_v11 = vld [vmem:[%s14275_s3 + $0x910] sm:$0xff]  ;;  %v1845_v25 = vunpack.c.l.bf16 %v9610_v17 }
 0x11b   :  { %2359 = vmatpush.msra.mxu0 %v1893_v63  ;;  %2382 = vmatpush.msrb.mxu3 %v1126_v4  ;;  %v9622_v15 = vld [vmem:[%s14275_s3 + $0xe90] sm:$0xff]  ;;  %v1493_v63 = vunpack.c.l.bf16 %v9605_v61  ;;  %v1382_v4 = vunpack.c.h.bf16 %v9335_v27  ;;  %v1366_v27 = vunpack.c.h.bf16 %v9348_v36  ;;  %v1350_v36 = vunpack.c.h.bf16 %v9362_v56 }
 0x11c   :  { %2326 = vmatpush.msra.mxu1 %v1173_v53  ;;  %2343 = vmatpush.msra.mxu2 %v1525_v0  ;;  %v9632_v53 = vld [vmem:[%s14275_s3 + $0x8d0] sm:$0xff]  ;;  %v1030_v56 = vunpack.c.h.bf16 %v9372_v7 }
 0x11d   :  { %2360 = vmatpush.msra.mxu0 %v1877_v8  ;;  %2383 = vmatpush.msrb.mxu3 %v1110_v28  ;;  %v9637_v0 = vld [vmem:[%s14275_s3 + $0xe50] sm:$0xff]  ;;  %v1477_v8 = vunpack.c.l.bf16 %v9617_v11 }
 0x11e   :  { %2327 = vmatpush.msra.mxu1 %v1157_v46  ;;  %2344 = vmatpush.msra.mxu2 %v1509_v20  ;;  %v9648_v28 = vld [vmem:[%s14275_s3 + $0x890] sm:$0xff]  ;;  %v1461_v46 = vunpack.c.l.bf16 %v9632_v53  ;;  %v1813_v20 = vunpack.c.l.bf16 %v9637_v0 }
 0x11f   :  { %2328 = vmatmul.f32.vlgmr.msra.gmra.mxu1 %v8859_v9  ;;  %2361 = vmatpush.msra.mxu0 %v1861_v50  ;;  %v1829_v50 = vunpack.c.l.bf16 %v9622_v15 }
 0x120   :  { %2384 = vmatpush.msrb.mxu3 %v1094_v16  ;;  %2404 = vmatpush.msrb.mxu1 %v1398_v2  ;;  %v9655_v16 = vld [vmem:[%s14275_s3 + $0xe10] sm:$0xff] }
 0x121   :  { %2285 = vmatmul.f32.gmra.mxu0 %v9145_v39  ;;  %2308 = vmatmul.f32.gmra.mxu3 %v8892_v26  ;;  %v9662_v2 = vld [vmem:[%s14275_s3 + $0x850] sm:$0xff]  ;;  %v1797_v35 = vunpack.c.l.bf16 %v9655_v16 }
 0x122   :  { %2345 = vmatpush.msra.mxu2 %v1493_v63  ;;  %2362 = vmatpush.msra.mxu0 %v1845_v25  ;;  %v1445_v63 = vunpack.c.l.bf16 %v9648_v28  ;;  %v9668_v25 = vld [vmem:[%s14275_s3 + $0xdd0] sm:$0xff] }
 0x123   :  { %2385 = vmatpush.msrb.mxu3 %v1078_v21  ;;  %2405 = vmatpush.msrb.mxu1 %v1382_v4  ;;  %v9675_v21 = vld [vmem:[%s14275_s3 + $0x810] sm:$0xff]  ;;  %v1334_v4 = vunpack.c.h.bf16 %v9380_v48  ;;  %v1781_v7 = vunpack.c.l.bf16 %v9668_v25 }
 0x124   :  { %2346 = vmatpush.msra.mxu2 %v1477_v8  ;;  %2363 = vmatpush.msra.mxu0 %v1829_v50  ;;  %v1429_v8 = vunpack.c.l.bf16 %v9662_v2  ;;  %v9682_v50 = vld [vmem:[%s14275_s3 + $0xd90] sm:$0xff]  ;;  %v1413_v48 = vunpack.c.l.bf16 %v9675_v21 }
 0x125   :  { %2386 = vmatpush.msrb.mxu3 %v1062_v33  ;;  %2406 = vmatpush.msrb.mxu1 %v1366_v27  ;;  %v1014_v33 = vunpack.c.h.bf16 %v9386_v59  ;;  %v1318_v27 = vunpack.c.h.bf16 %v9393_v3  ;;  %v1302_v59 = vunpack.c.h.bf16 %v9407_v49  ;;  %v9700_v3 = vld [vmem:[%s14275_s3 + $0xd10] sm:$0xff] }
 0x126   :  { %2347 = vmatpush.msra.mxu2 %v1461_v46  ;;  %2364 = vmatpush.msra.mxu0 %v1813_v20  ;;  %v9692_v46 = vld [vmem:[%s14275_s3 + $0xd50] sm:$0xff]  ;;  %v1765_v20 = vunpack.c.l.bf16 %v9682_v50 }
 0x127   :  { %2387 = vmatpush.msrb.mxu3 %v1046_v54  ;;  %2407 = vmatpush.msrb.mxu1 %v1350_v36  ;;  %v998_v54 = vunpack.c.h.bf16 %v9400_v62  ;;  %v1654_v36 = vunpack.c.h.bf16 %v9415_v6  ;;  %v1286_v62 = vunpack.c.h.bf16 %v9427_v57  ;;  %v9709_v49 = vld [vmem:[%s14275_s3 + $0xcd0] sm:$0xff]  ;;  %v966_v6 = vunpack.c.h.bf16 %v9440_v5 }
 0x128   :  { %2331 = vmatmul.f32.gmra.mxu1 %v8913_v51  ;;  %2348 = vmatpush.msra.mxu2 %v1445_v63  ;;  %v1749_v63 = vunpack.c.l.bf16 %v9692_v46  ;;  %v9719_v57 = vld [vmem:[%s14275_s3 + $0xc90] sm:$0xff] }
 0x129   :  { %2365 = vmatpush.msra.mxu0 %v1797_v35  ;;  %2388 = vmatpush.msrb.mxu3 %v1030_v56  ;;  %v982_v35 = vunpack.c.h.bf16 %v9422_v45  ;;  %v1638_v56 = vunpack.c.h.bf16 %v9433_v19  ;;  %v1270_v45 = vunpack.c.h.bf16 %v9445_v23  ;;  %v1717_v19 = vunpack.c.l.bf16 %v9709_v49  ;;  %v9728_v5 = vld [vmem:[%s14275_s3 + $0xc50] sm:$0xff] }
 0x12a   :  { %2408 = vmatpush.msrb.mxu1 %v1334_v4  ;;  %2349 = vmatpush.msra.mxu2 %v1429_v8  ;;  %v1733_v4 = vunpack.c.l.bf16 %v9700_v3  ;;  %v1622_v8 = vunpack.c.h.bf16 %v9452_v31  ;;  %v1606_v23 = vunpack.c.h.bf16 %v9472_v1  ;;  %v934_v31 = vunpack.c.h.bf16 %v9479_v40 }
 0x12b   :  { %2366 = vmatpush.msra.mxu0 %v1781_v7  ;;  %2389 = vmatpush.msrb.mxu3 %v1014_v33  ;;  %v950_v7 = vunpack.c.h.bf16 %v9459_v55  ;;  %v1254_v33 = vunpack.c.h.bf16 %v9464_v12  ;;  %v9737_v55 = vld [vmem:[%s14275_s3 + $0xc10] sm:$0xff]  ;;  %v1685_v12 = vunpack.c.l.bf16 %v9728_v5  ;;  %v1590_v1 = vunpack.c.h.bf16 %v9493_v60 }
 0x12c   :  { %2409 = vmatpush.msrb.mxu1 %v1318_v27  ;;  %2350 = vmatpush.msra.mxu2 %v1413_v48  ;;  %v1701_v27 = vunpack.c.l.bf16 %v9719_v57  ;;  %v1238_v48 = vunpack.c.h.bf16 %v9484_v29  ;;  %v1222_v40 = vunpack.c.h.bf16 %v9505_v24  ;;  %v1669_v29 = vunpack.c.l.bf16 %v9737_v55  ;;  %v9757_v24 = vld [vmem:[%s14275_s3 + $0x398] sm:$0xff] }
 0x12d   :  { %2367 = vmatpush.msra.mxu0 %v1765_v20  ;;  %2390 = vmatpush.msrb.mxu3 %v998_v54  ;;  %v918_v20 = vunpack.c.h.bf16 %v9498_v10  ;;  %v1574_v54 = vunpack.c.h.bf16 %v9511_v34  ;;  %v1206_v60 = vunpack.c.h.bf16 %v9523_v32  ;;  %v1558_v10 = vunpack.c.h.bf16 %v9530_v58  ;;  %v9766_v58 = vld [vmem:[%s14275_s3 + $0x358] sm:$0xff] }
 0x12e   :  { %2410 = vmatpush.msrb.mxu1 %v1302_v59  ;;  %2351 = vmatmul.f32.vlgmr.msra.gmra.mxu2 %v8976_v52  ;;  %v902_v59 = vunpack.c.h.bf16 %v9516_v41  ;;  %v1910_v34 = vunpack.c.h.bf16 %v9537_v18  ;;  %v1542_v32 = vunpack.c.h.bf16 %v9549_v44  ;;  %v1127_v18 = vunpack.c.l.bf16 %v9757_v24 }
 0x12f   :  { %2427 = vmatpush.msrb.mxu2 %v1654_v36  ;;  %2368 = vmatpush.msra.mxu0 %v1749_v63  ;;  %v9749_v36 = vld [vmem:[%s14275_s3 + $0x3d8] sm:$0xff]  ;;  %v1190_v63 = vunpack.c.h.bf16 %v9544_v42  ;;  %v14336_v42 = vld [vmem:[#allocation6_spill] sm:$0xff]  ;;  %v1878_v44 = vunpack.c.h.bf16 %v9574_v30  ;;  %v1862_v30 = vunpack.c.h.bf16 %v9595_v22  ;;  %v1846_v22 = vunpack.c.h.bf16 %v9610_v17 }
 0x130   :  { %2391 = vmatpush.msrb.mxu3 %v982_v35  ;;  %2411 = vmatpush.msrb.mxu1 %v1286_v62  ;;  %v1143_v41 = vunpack.c.l.bf16 %v9749_v36  ;;  %v1894_v35 = vunpack.c.h.bf16 %v9555_v14  ;;  %v14335_v62 = vld [vmem:[#allocation8_spill] sm:$0xff]  ;;  %v1830_v17 = vunpack.c.h.bf16 %v9622_v15  ;;  %v1462_v15 = vunpack.c.h.bf16 %v9632_v53 }
 0x131   :  { %2428 = vmatpush.msrb.mxu2 %v1638_v56  ;;  %2369 = vmatpush.msra.mxu0 %v1733_v4  ;;  %v1174_v56 = vunpack.c.h.bf16 %v14335_v62  ;;  %v1526_v4 = vunpack.c.h.bf16 %v14336_v42  ;;  %v9784_v14 = vld [vmem:[%s14275_s3 + $0x7d8] sm:$0xff]  ;;  %v1446_v53 = vunpack.c.h.bf16 %v9648_v28 }
 0x132   :  { %2392 = vmatpush.msrb.mxu3 %v966_v6  ;;  %2412 = vmatpush.msrb.mxu1 %v1270_v45  ;;  %v1111_v6 = vunpack.c.l.bf16 %v9766_v58  ;;  %v9779_v45 = vld [vmem:[%s14275_s3 + $0x318] sm:$0xff] }
 0x133   :  { %2429 = vmatpush.msrb.mxu2 %v1622_v8  ;;  %2370 = vmatpush.msra.mxu0 %v1717_v19  ;;  %v1158_v8 = vunpack.c.h.bf16 %v9582_v37  ;;  %v1510_v19 = vunpack.c.h.bf16 %v9587_v47  ;;  %v9799_v37 = vld [vmem:[%s14275_s3 + $0x798] sm:$0xff]  ;;  %v1494_v47 = vunpack.c.h.bf16 %v9605_v61  ;;  %v1478_v61 = vunpack.c.h.bf16 %v9617_v11 }
 0x134   :  { %2393 = vmatpush.msrb.mxu3 %v950_v7  ;;  %2413 = vmatpush.msrb.mxu1 %v1254_v33  ;;  %v1095_v7 = vunpack.c.l.bf16 %v9779_v45  ;;  %v1399_v33 = vunpack.c.l.bf16 %v9784_v14  ;;  %v9871_v62 = vld [vmem:[%s14275_s3 + $0x658] sm:$0xff] }
 0x135   :  { %2430 = vmatpush.msrb.mxu2 %v1606_v23  ;;  %2371 = vmatpush.msra.mxu0 %v1701_v27  ;;  %v9794_v23 = vld [vmem:[%s14275_s3 + $0x2d8] sm:$0xff] }
 0x136   :  { %2394 = vmatpush.msrb.mxu3 %v934_v31  ;;  %2414 = vmatpush.msrb.mxu1 %v1238_v48  ;;  %v9806_v27 = vld [vmem:[%s14275_s3 + $0x298] sm:$0xff]  ;;  %v1079_v48 = vunpack.c.l.bf16 %v9794_v23 }
 0x137   :  { %2354 = vmatmul.f32.gmra.mxu2 %v9050_v13  ;;  %2372 = vmatpush.msra.mxu0 %v1685_v12  ;;  %v9811_v31 = vld [vmem:[%s14275_s3 + $0x758] sm:$0xff]  ;;  %v1383_v12 = vunpack.c.l.bf16 %v9799_v37 }
 0x138   :  { %2431 = vmatpush.msrb.mxu2 %v1590_v1  ;;  %2395 = vmatpush.msrb.mxu3 %v918_v20  ;;  %v9821_v1 = vld [vmem:[%s14275_s3 + $0x258] sm:$0xff]  ;;  %v1367_v11 = vunpack.c.l.bf16 %v9811_v31 }
 0x139   :  { %2415 = vmatpush.msrb.mxu1 %v1222_v40  ;;  %2373 = vmatpush.msra.mxu0 %v1669_v29  ;;  %v9826_v20 = vld [vmem:[%s14275_s3 + $0x718] sm:$0xff]  ;;  %v1063_v40 = vunpack.c.l.bf16 %v9806_v27  ;;  %v1814_v29 = vunpack.c.h.bf16 %v9637_v0 }
 0x13a   :  { %2432 = vmatpush.msrb.mxu2 %v1574_v54  ;;  %2396 = vmatpush.msrb.mxu3 %v902_v59  ;;  %v9837_v54 = vld [vmem:[%s14275_s3 + $0x218] sm:$0xff]  ;;  %v1047_v59 = vunpack.c.l.bf16 %v9821_v1 }
 0x13b   :  { %2416 = vmatpush.msrb.mxu1 %v1206_v60  ;;  %2374 = vmatmul.f32.vlgmr.msra.gmra.mxu0 %v9084_v43  ;;  %v1351_v60 = vunpack.c.l.bf16 %v9826_v20  ;;  %v9850_v0 = vld [vmem:[%s14275_s3 + $0x1d8] sm:$0xff] }
 0x13c   :  { %2397 = vmatmul.f32.vlgmr.msrb.gmra.mxu3 %v8829_v38  ;;  %2433 = vmatpush.msrb.mxu2 %v1558_v10  ;;  %v9844_v10 = vld [vmem:[%s14275_s3 + $0x6d8] sm:$0xff] }
 0x13d   :  { %2450 = vmatpush.msrb.mxu0 %v1910_v34  ;;  %2473 = vmatpush.msra.mxu3 %v1143_v41  ;;  %v1798_v34 = vunpack.c.h.bf16 %v9655_v16  ;;  %v1031_v41 = vunpack.c.l.bf16 %v9837_v54  ;;  %v1335_v28 = vunpack.c.l.bf16 %v9844_v10  ;;  %v1782_v16 = vunpack.c.h.bf16 %v9668_v25  ;;  %v9879_v42 = vld [vmem:[%s14275_s3 + $0xbd8] sm:$0xff] }
 0x13e   :  { %2417 = vmatpush.msrb.mxu1 %v1190_v63  ;;  %2434 = vmatpush.msrb.mxu2 %v1542_v32  ;;  %v9857_v63 = vld [vmem:[%s14275_s3 + $0x698] sm:$0xff]  ;;  %v1430_v32 = vunpack.c.h.bf16 %v9662_v2  ;;  %v1766_v25 = vunpack.c.h.bf16 %v9682_v50 }
 0x13f   :  { %2451 = vmatpush.msrb.mxu0 %v1894_v35  ;;  %2474 = vmatpush.msra.mxu3 %v1127_v18  ;;  %v9864_v35 = vld [vmem:[%s14275_s3 + $0x198] sm:$0xff]  ;;  %v1015_v18 = vunpack.c.l.bf16 %v9850_v0  ;;  %v1319_v2 = vunpack.c.l.bf16 %v9857_v63 }
 0x140   :  { %2418 = vmatpush.msrb.mxu1 %v1174_v56  ;;  %2435 = vmatpush.msrb.mxu2 %v1526_v4  ;;  %v1414_v56 = vunpack.c.h.bf16 %v9675_v21  ;;  %v999_v4 = vunpack.c.l.bf16 %v9864_v35  ;;  %v9891_v21 = vld [vmem:[%s14275_s3 + $0x618] sm:$0xff] }
 0x141   :  { %2452 = vmatpush.msrb.mxu0 %v1878_v44  ;;  %2475 = vmatpush.msra.mxu3 %v1111_v6  ;;  %v9886_v44 = vld [vmem:[%s14275_s3 + $0x158] sm:$0xff]  ;;  %v1303_v6 = vunpack.c.l.bf16 %v9871_v62 }
 0x142   :  { %2419 = vmatpush.msrb.mxu1 %v1158_v8  ;;  %2436 = vmatpush.msrb.mxu2 %v1510_v19  ;;  %v9897_v50 = vld [vmem:[%s14275_s3 + $0xb98] sm:$0xff]  ;;  %v1655_v8 = vunpack.c.l.bf16 %v9879_v42  ;;  %v1750_v19 = vunpack.c.h.bf16 %v9692_v46 }
 0x143   :  { %2420 = vmatmul.f32.vlgmr.msrb.gmra.mxu1 %v8859_v9  ;;  %2453 = vmatpush.msrb.mxu0 %v1862_v30  ;;  %v9904_v30 = vld [vmem:[%s14275_s3 + $0x118] sm:$0xff] }
 0x144   :  { %2476 = vmatpush.msra.mxu3 %v1095_v7  ;;  %2496 = vmatpush.msra.mxu1 %v1399_v33  ;;  %v9909_v7 = vld [vmem:[%s14275_s3 + $0x5d8] sm:$0xff]  ;;  %v983_v33 = vunpack.c.l.bf16 %v9886_v44 }
 0x145   :  { %2377 = vmatmul.f32.gmra.mxu0 %v9145_v39  ;;  %2400 = vmatmul.f32.gmra.mxu3 %v8892_v26  ;;  %v9916_v46 = vld [vmem:[%s14275_s3 + $0xb58] sm:$0xff] }
 0x146   :  { %2437 = vmatpush.msrb.mxu2 %v1494_v47  ;;  %2454 = vmatpush.msrb.mxu0 %v1846_v22  ;;  %v1287_v47 = vunpack.c.l.bf16 %v9891_v21  ;;  %v1639_v22 = vunpack.c.l.bf16 %v9897_v50 }
 0x147   :  { %2477 = vmatpush.msra.mxu3 %v1079_v48  ;;  %2497 = vmatpush.msra.mxu1 %v1383_v12  ;;  %v1734_v48 = vunpack.c.h.bf16 %v9700_v3  ;;  %v9923_v12 = vld [vmem:[%s14275_s3 + $0xd8] sm:$0xff] }
 0x148   :  { %2438 = vmatpush.msrb.mxu2 %v1478_v61  ;;  %2455 = vmatpush.msrb.mxu0 %v1830_v17  ;;  %v9928_v61 = vld [vmem:[%s14275_s3 + $0x598] sm:$0xff]  ;;  %v967_v17 = vunpack.c.l.bf16 %v9904_v30 }
 0x149   :  { %2478 = vmatpush.msra.mxu3 %v1063_v40  ;;  %2498 = vmatpush.msra.mxu1 %v1367_v11  ;;  %v1271_v40 = vunpack.c.l.bf16 %v9909_v7  ;;  %v9936_v3 = vld [vmem:[%s14275_s3 + $0xb18] sm:$0xff]  ;;  %v1623_v11 = vunpack.c.l.bf16 %v9916_v46 }
 0x14a   :  { %2439 = vmatpush.msrb.mxu2 %v1462_v15  ;;  %2456 = vmatpush.msrb.mxu0 %v1814_v29  ;;  %v1718_v15 = vunpack.c.h.bf16 %v9709_v49  ;;  %v9943_v29 = vld [vmem:[%s14275_s3 + $0x98] sm:$0xff]  ;;  %v1607_v49 = vunpack.c.l.bf16 %v9936_v3 }
 0x14b   :  { %2479 = vmatpush.msra.mxu3 %v1047_v59  ;;  %2499 = vmatpush.msra.mxu1 %v1351_v60  ;;  %v9948_v59 = vld [vmem:[%s14275_s3 + $0x558] sm:$0xff]  ;;  %v951_v60 = vunpack.c.l.bf16 %v9923_v12 }
 0x14c   :  { %2423 = vmatmul.f32.gmra.mxu1 %v8913_v51  ;;  %2440 = vmatpush.msrb.mxu2 %v1446_v53  ;;  %v1255_v53 = vunpack.c.l.bf16 %v9928_v61 }
 0x14d   :  { %2457 = vmatpush.msrb.mxu0 %v1798_v34  ;;  %2480 = vmatpush.msra.mxu3 %v1031_v41  ;;  %v1702_v34 = vunpack.c.h.bf16 %v9719_v57  ;;  %v9957_v41 = vld [vmem:[%s14275_s3 + $0xad8] sm:$0xff] }
 0x14e   :  { %2500 = vmatpush.msra.mxu1 %v1335_v28  ;;  %2441 = vmatpush.msrb.mxu2 %v1430_v32  ;;  %v9962_v28 = vld [vmem:[%s14275_s3 + $0x58] sm:$0xff]  ;;  %v935_v32 = vunpack.c.l.bf16 %v9943_v29 }
 0x14f   :  { %2458 = vmatpush.msrb.mxu0 %v1782_v16  ;;  %2481 = vmatpush.msra.mxu3 %v1015_v18  ;;  %v1239_v16 = vunpack.c.l.bf16 %v9948_v59  ;;  %v9969_v57 = vld [vmem:[%s14275_s3 + $0x518] sm:$0xff]  ;;  %v1686_v18 = vunpack.c.h.bf16 %v9728_v5 }
 0x150   :  { %2501 = vmatpush.msra.mxu1 %v1319_v2  ;;  %2442 = vmatpush.msrb.mxu2 %v1414_v56  ;;  %v9975_v2 = vld [vmem:[%s14275_s3 + $0xa98] sm:$0xff] }
 0x151   :  { %2459 = vmatpush.msrb.mxu0 %v1766_v25  ;;  %2482 = vmatpush.msra.mxu3 %v999_v4  ;;  %v9980_v56 = vld [vmem:[%s14275_s3 + $0x18] sm:$0xff]  ;;  %v1591_v25 = vunpack.c.l.bf16 %v9957_v41  ;;  %v919_v4 = vunpack.c.l.bf16 %v9962_v28 }
 0x152   :  { %2502 = vmatpush.msra.mxu1 %v1303_v6  ;;  %2443 = vmatmul.f32.vlgmr.msrb.gmra.mxu2 %v8976_v52  ;;  %v9987_v5 = vld [vmem:[%s14275_s3 + $0x4d8] sm:$0xff]  ;;  %v1223_v6 = vunpack.c.l.bf16 %v9969_v57 }
 0x153   :  { %2519 = vmatpush.msra.mxu2 %v1655_v8  ;;  %2460 = vmatpush.msrb.mxu0 %v1750_v19  ;;  %v1670_v8 = vunpack.c.h.bf16 %v9737_v55  ;;  %v9994_v19 = vld [vmem:[%s14275_s3 + $0xa58] sm:$0xff]  ;;  %v1207_v55 = vunpack.c.l.bf16 %v9987_v5 }
 0x154   :  { %2483 = vmatpush.msra.mxu3 %v983_v33  ;;  %2503 = vmatpush.msra.mxu1 %v1287_v47  ;;  %v1575_v33 = vunpack.c.l.bf16 %v9975_v2  ;;  %v903_v47 = vunpack.c.l.bf16 %v9980_v56 }
 0x155   :  { %2520 = vmatpush.msra.mxu2 %v1639_v22  ;;  %2461 = vmatpush.msrb.mxu0 %v1734_v48  ;;  %v10001_v22 = vld [vmem:[%s14275_s3 + $0xfd8] sm:$0xff] }
 0x156   :  { %2484 = vmatpush.msra.mxu3 %v967_v17  ;;  %2504 = vmatpush.msra.mxu1 %v1271_v40  ;;  %v10008_v48 = vld [vmem:[%s14275_s3 + $0x498] sm:$0xff]  ;;  %v1559_v40 = vunpack.c.l.bf16 %v9994_v19 }
 0x157   :  { %2521 = vmatpush.msra.mxu2 %v1623_v11  ;;  %2462 = vmatpush.msrb.mxu0 %v1718_v15  ;;  %v10013_v17 = vld [vmem:[%s14275_s3 + $0xa18] sm:$0xff]  ;;  %v1911_v15 = vunpack.c.l.bf16 %v10001_v22 }
 0x158   :  { %2485 = vmatpush.msra.mxu3 %v951_v60  ;;  %2505 = vmatpush.msra.mxu1 %v1255_v53  ;;  %v10019_v11 = vld [vmem:[%s14275_s3 + $0xf98] sm:$0xff]  ;;  %v1144_v60 = vunpack.c.h.bf16 %v9749_v36 }
 0x159   :  { %2522 = vmatpush.msra.mxu2 %v1607_v49  ;;  %2463 = vmatpush.msrb.mxu0 %v1702_v34  ;;  %v10026_v53 = vld [vmem:[%s14275_s3 + $0x458] sm:$0xff]  ;;  %v1191_v34 = vunpack.c.l.bf16 %v10008_v48 }
 0x15a   :  { %2486 = vmatpush.msra.mxu3 %v935_v32  ;;  %2506 = vmatpush.msra.mxu1 %v1239_v16  ;;  %14337 = vst [vmem:[#allocation7_spill] sm:$0xff] %v10026_v53  ;;  %v10031_v49 = vld [vmem:[%s14275_s3 + $0x9d8] sm:$0xff]  ;;  %v1543_v32 = vunpack.c.l.bf16 %v10013_v17  ;;  %v1895_v16 = vunpack.c.l.bf16 %v10019_v11 }
 0x15b   :  { %2446 = vmatmul.f32.gmra.mxu2 %v9050_v13  ;;  %2464 = vmatpush.msrb.mxu0 %v1686_v18  ;;  %14338 = vst [vmem:[#allocation8_spill] sm:$0xff] %v10031_v49  ;;  %v10038_v36 = vld [vmem:[%s14275_s3 + $0xf58] sm:$0xff]  ;;  %v1128_v18 = vunpack.c.h.bf16 %v9757_v24 }
 0x15c   :  { %2523 = vmatpush.msra.mxu2 %v1591_v25  ;;  %2487 = vmatpush.msra.mxu3 %v919_v4  ;;  %v10046_v25 = vld [vmem:[%s14275_s3 + $0x418] sm:$0xff] }
 0x15d   :  { %2507 = vmatpush.msra.mxu1 %v1223_v6  ;;  %2465 = vmatpush.msrb.mxu0 %v1670_v8  ;;  %v10051_v4 = vld [vmem:[%s14275_s3 + $0x998] sm:$0xff]  ;;  %v1175_v6 = vunpack.c.l.bf16 %v10026_v53  ;;  %v1527_v8 = vunpack.c.l.bf16 %v10031_v49 }
 0x15e   :  { %2524 = vmatpush.msra.mxu2 %v1575_v33  ;;  %2488 = vmatpush.msra.mxu3 %v903_v47  ;;  %v10059_v24 = vld [vmem:[%s14275_s3 + $0xf18] sm:$0xff]  ;;  %v1879_v33 = vunpack.c.l.bf16 %v10038_v36  ;;  %v1112_v47 = vunpack.c.h.bf16 %v9766_v58  ;;  %v1096_v58 = vunpack.c.h.bf16 %v9779_v45 }
 0x15f   :  { %2508 = vmatpush.msra.mxu1 %v1207_v55  ;;  %2466 = vmatmul.f32.vlgmr.msrb.gmra.mxu0 %v9084_v43  ;;  %v1159_v55 = vunpack.c.l.bf16 %v10046_v25  ;;  %v1863_v49 = vunpack.c.l.bf16 %v10059_v24  ;;  %v10069_v53 = vld [vmem:[%s14275_s3 + $0x958] sm:$0xff] }
 0x160   :  { %2489 = vmatmul.f32.vlgmr.msra.gmra.mxu3 %v8829_v38  ;;  %2525 = vmatpush.msra.mxu2 %v1559_v40  ;;  %v1511_v40 = vunpack.c.l.bf16 %v10051_v4 }
 0x161   :  { %2542 = vmatpush.msra.mxu0 %v1911_v15  ;;  %2565 = vmatpush.msrb.mxu3 %v1144_v60  ;;  %v10074_v15 = vld [vmem:[%s14275_s3 + $0xed8] sm:$0xff]  ;;  %v1400_v60 = vunpack.c.h.bf16 %v9784_v14  ;;  %v1080_v14 = vunpack.c.h.bf16 %v9794_v23  ;;  %v1064_v23 = vunpack.c.h.bf16 %v9806_v27  ;;  %v1048_v27 = vunpack.c.h.bf16 %v9821_v1 }
 0x162   :  { %2509 = vmatpush.msra.mxu1 %v1191_v34  ;;  %2526 = vmatpush.msra.mxu2 %v1543_v32  ;;  %v10081_v34 = vld [vmem:[%s14275_s3 + $0x918] sm:$0xff]  ;;  %v1847_v45 = vunpack.c.l.bf16 %v10074_v15 }
 0x163   :  { %2543 = vmatpush.msra.mxu0 %v1895_v16  ;;  %2566 = vmatpush.msrb.mxu3 %v1128_v18  ;;  %v10086_v32 = vld [vmem:[%s14275_s3 + $0xe98] sm:$0xff]  ;;  %v1495_v16 = vunpack.c.l.bf16 %v10069_v53  ;;  %v1384_v18 = vunpack.c.h.bf16 %v9799_v37  ;;  %v1368_v37 = vunpack.c.h.bf16 %v9811_v31  ;;  %v1352_v31 = vunpack.c.h.bf16 %v9826_v20 }
 0x164   :  { %2510 = vmatpush.msra.mxu1 %v1175_v6  ;;  %2527 = vmatpush.msra.mxu2 %v1527_v8  ;;  %v10096_v6 = vld [vmem:[%s14275_s3 + $0x8d8] sm:$0xff]  ;;  %v1032_v20 = vunpack.c.h.bf16 %v9837_v54 }
 0x165   :  { %2544 = vmatpush.msra.mxu0 %v1879_v33  ;;  %2567 = vmatpush.msrb.mxu3 %v1112_v47  ;;  %v10101_v8 = vld [vmem:[%s14275_s3 + $0xe58] sm:$0xff]  ;;  %v1479_v33 = vunpack.c.l.bf16 %v10081_v34 }
 0x166   :  { %2511 = vmatpush.msra.mxu1 %v1159_v55  ;;  %2528 = vmatpush.msra.mxu2 %v1511_v40  ;;  %v10112_v47 = vld [vmem:[%s14275_s3 + $0x898] sm:$0xff]  ;;  %v1463_v55 = vunpack.c.l.bf16 %v10096_v6  ;;  %v1815_v40 = vunpack.c.l.bf16 %v10101_v8 }
 0x167   :  { %2512 = vmatmul.f32.vlgmr.msra.gmra.mxu1 %v8859_v9  ;;  %2545 = vmatpush.msra.mxu0 %v1863_v49  ;;  %v1831_v49 = vunpack.c.l.bf16 %v10086_v32 }
 0x168   :  { %2568 = vmatpush.msrb.mxu3 %v1096_v58  ;;  %2588 = vmatpush.msrb.mxu1 %v1400_v60  ;;  %v10119_v58 = vld [vmem:[%s14275_s3 + $0xe18] sm:$0xff] }
 0x169   :  { %2469 = vmatmul.f32.gmra.mxu0 %v9145_v39  ;;  %2492 = vmatmul.f32.gmra.mxu3 %v8892_v26  ;;  %v10126_v60 = vld [vmem:[%s14275_s3 + $0x858] sm:$0xff]  ;;  %v1799_v1 = vunpack.c.l.bf16 %v10119_v58 }
 0x16a   :  { %2529 = vmatpush.msra.mxu2 %v1495_v16  ;;  %2546 = vmatpush.msra.mxu0 %v1847_v45  ;;  %v1447_v16 = vunpack.c.l.bf16 %v10112_v47  ;;  %v10132_v45 = vld [vmem:[%s14275_s3 + $0xdd8] sm:$0xff] }
 0x16b   :  { %2569 = vmatpush.msrb.mxu3 %v1080_v14  ;;  %2589 = vmatpush.msrb.mxu1 %v1384_v18  ;;  %v10139_v14 = vld [vmem:[%s14275_s3 + $0x818] sm:$0xff]  ;;  %v1336_v18 = vunpack.c.h.bf16 %v9844_v10  ;;  %v1783_v54 = vunpack.c.l.bf16 %v10132_v45 }
 0x16c   :  { %2530 = vmatpush.msra.mxu2 %v1479_v33  ;;  %2547 = vmatpush.msra.mxu0 %v1831_v49  ;;  %v1431_v33 = vunpack.c.l.bf16 %v10126_v60  ;;  %v10146_v49 = vld [vmem:[%s14275_s3 + $0xd98] sm:$0xff]  ;;  %v1415_v10 = vunpack.c.l.bf16 %v10139_v14 }
 0x16d   :  { %2570 = vmatpush.msrb.mxu3 %v1064_v23  ;;  %2590 = vmatpush.msrb.mxu1 %v1368_v37  ;;  %v1016_v23 = vunpack.c.h.bf16 %v9850_v0  ;;  %v1320_v37 = vunpack.c.h.bf16 %v9857_v63  ;;  %v1304_v0 = vunpack.c.h.bf16 %v9871_v62  ;;  %v10164_v63 = vld [vmem:[%s14275_s3 + $0xd18] sm:$0xff] }
 0x16e   :  { %2531 = vmatpush.msra.mxu2 %v1463_v55  ;;  %2548 = vmatpush.msra.mxu0 %v1815_v40  ;;  %v10156_v55 = vld [vmem:[%s14275_s3 + $0xd58] sm:$0xff]  ;;  %v1767_v40 = vunpack.c.l.bf16 %v10146_v49 }
 0x16f   :  { %2571 = vmatpush.msrb.mxu3 %v1048_v27  ;;  %2591 = vmatpush.msrb.mxu1 %v1352_v31  ;;  %v1000_v27 = vunpack.c.h.bf16 %v9864_v35  ;;  %v1656_v31 = vunpack.c.h.bf16 %v9879_v42  ;;  %v1288_v35 = vunpack.c.h.bf16 %v9891_v21  ;;  %v10173_v62 = vld [vmem:[%s14275_s3 + $0xcd8] sm:$0xff]  ;;  %v968_v42 = vunpack.c.h.bf16 %v9904_v30 }
 0x170   :  { %2515 = vmatmul.f32.gmra.mxu1 %v8913_v51  ;;  %2532 = vmatpush.msra.mxu2 %v1447_v16  ;;  %v1751_v16 = vunpack.c.l.bf16 %v10156_v55  ;;  %v10183_v21 = vld [vmem:[%s14275_s3 + $0xc98] sm:$0xff] }
 0x171   :  { %2549 = vmatpush.msra.mxu0 %v1799_v1  ;;  %2572 = vmatpush.msrb.mxu3 %v1032_v20  ;;  %v984_v1 = vunpack.c.h.bf16 %v9886_v44  ;;  %v1640_v20 = vunpack.c.h.bf16 %v9897_v50  ;;  %v1272_v44 = vunpack.c.h.bf16 %v9909_v7  ;;  %v1719_v50 = vunpack.c.l.bf16 %v10173_v62  ;;  %v10192_v30 = vld [vmem:[%s14275_s3 + $0xc58] sm:$0xff] }
 0x172   :  { %2592 = vmatpush.msrb.mxu1 %v1336_v18  ;;  %2533 = vmatpush.msra.mxu2 %v1431_v33  ;;  %v1735_v18 = vunpack.c.l.bf16 %v10164_v63  ;;  %v1624_v33 = vunpack.c.h.bf16 %v9916_v46  ;;  %v1608_v7 = vunpack.c.h.bf16 %v9936_v3  ;;  %v936_v46 = vunpack.c.h.bf16 %v9943_v29 }
 0x173   :  { %2550 = vmatpush.msra.mxu0 %v1783_v54  ;;  %2573 = vmatpush.msrb.mxu3 %v1016_v23  ;;  %v952_v54 = vunpack.c.h.bf16 %v9923_v12  ;;  %v1256_v23 = vunpack.c.h.bf16 %v9928_v61  ;;  %v10201_v12 = vld [vmem:[%s14275_s3 + $0xc18] sm:$0xff]  ;;  %v1687_v61 = vunpack.c.l.bf16 %v10192_v30  ;;  %v1592_v3 = vunpack.c.h.bf16 %v9957_v41 }
 0x174   :  { %2593 = vmatpush.msrb.mxu1 %v1320_v37  ;;  %2534 = vmatpush.msra.mxu2 %v1415_v10  ;;  %v1703_v37 = vunpack.c.l.bf16 %v10183_v21  ;;  %v1240_v10 = vunpack.c.h.bf16 %v9948_v59  ;;  %v1224_v29 = vunpack.c.h.bf16 %v9969_v57  ;;  %v1671_v59 = vunpack.c.l.bf16 %v10201_v12  ;;  %v10221_v57 = vld [vmem:[%s14275_s3 + $0x3a0] sm:$0xff] }
 0x175   :  { %2551 = vmatpush.msra.mxu0 %v1767_v40  ;;  %2574 = vmatpush.msrb.mxu3 %v1000_v27  ;;  %v920_v40 = vunpack.c.h.bf16 %v9962_v28  ;;  %v1576_v27 = vunpack.c.h.bf16 %v9975_v2  ;;  %v1208_v41 = vunpack.c.h.bf16 %v9987_v5  ;;  %v1560_v28 = vunpack.c.h.bf16 %v9994_v19  ;;  %v10230_v19 = vld [vmem:[%s14275_s3 + $0x360] sm:$0xff] }
 0x176   :  { %2594 = vmatpush.msrb.mxu1 %v1304_v0  ;;  %2535 = vmatmul.f32.vlgmr.msra.gmra.mxu2 %v8976_v52  ;;  %v904_v0 = vunpack.c.h.bf16 %v9980_v56  ;;  %v1912_v2 = vunpack.c.h.bf16 %v10001_v22  ;;  %v1544_v5 = vunpack.c.h.bf16 %v10013_v17  ;;  %v1129_v22 = vunpack.c.l.bf16 %v10221_v57 }
 0x177   :  { %2611 = vmatpush.msrb.mxu2 %v1656_v31  ;;  %2552 = vmatpush.msra.mxu0 %v1751_v16  ;;  %v10213_v31 = vld [vmem:[%s14275_s3 + $0x3e0] sm:$0xff]  ;;  %v1192_v16 = vunpack.c.h.bf16 %v10008_v48  ;;  %v14340_v48 = vld [vmem:[#allocation8_spill] sm:$0xff]  ;;  %v1880_v17 = vunpack.c.h.bf16 %v10038_v36  ;;  %v1864_v36 = vunpack.c.h.bf16 %v10059_v24  ;;  %v1848_v24 = vunpack.c.h.bf16 %v10074_v15 }
 0x178   :  { %2575 = vmatpush.msrb.mxu3 %v984_v1  ;;  %2595 = vmatpush.msrb.mxu1 %v1288_v35  ;;  %v1145_v56 = vunpack.c.l.bf16 %v10213_v31  ;;  %v1896_v1 = vunpack.c.h.bf16 %v10019_v11  ;;  %v14339_v35 = vld [vmem:[#allocation7_spill] sm:$0xff]  ;;  %v10248_v11 = vld [vmem:[%s14275_s3 + $0x7e0] sm:$0xff]  ;;  %v1832_v15 = vunpack.c.h.bf16 %v10086_v32  ;;  %v1464_v32 = vunpack.c.h.bf16 %v10096_v6 }
 0x179   :  { %2612 = vmatpush.msrb.mxu2 %v1640_v20  ;;  %2553 = vmatpush.msra.mxu0 %v1735_v18  ;;  %v1176_v20 = vunpack.c.h.bf16 %v14339_v35  ;;  %v1528_v18 = vunpack.c.h.bf16 %v14340_v48  ;;  %v1448_v6 = vunpack.c.h.bf16 %v10112_v47  ;;  %v10335_v35 = vld [vmem:[%s14275_s3 + $0x660] sm:$0xff] }
 0x17a   :  { %2576 = vmatpush.msrb.mxu3 %v968_v42  ;;  %2596 = vmatpush.msrb.mxu1 %v1272_v44  ;;  %v1113_v42 = vunpack.c.l.bf16 %v10230_v19  ;;  %v10243_v44 = vld [vmem:[%s14275_s3 + $0x320] sm:$0xff] }
 0x17b   :  { %2613 = vmatpush.msrb.mxu2 %v1624_v33  ;;  %2554 = vmatpush.msra.mxu0 %v1719_v50  ;;  %v1160_v33 = vunpack.c.h.bf16 %v10046_v25  ;;  %v1512_v50 = vunpack.c.h.bf16 %v10051_v4  ;;  %v10263_v25 = vld [vmem:[%s14275_s3 + $0x7a0] sm:$0xff]  ;;  %v1496_v4 = vunpack.c.h.bf16 %v10069_v53  ;;  %v1480_v53 = vunpack.c.h.bf16 %v10081_v34 }
 0x17c   :  { %2577 = vmatpush.msrb.mxu3 %v952_v54  ;;  %2597 = vmatpush.msrb.mxu1 %v1256_v23  ;;  %v1097_v54 = vunpack.c.l.bf16 %v10243_v44  ;;  %v1401_v23 = vunpack.c.l.bf16 %v10248_v11  ;;  %v10343_v48 = vld [vmem:[%s14275_s3 + $0xbe0] sm:$0xff] }
 0x17d   :  { %2614 = vmatpush.msrb.mxu2 %v1608_v7  ;;  %2555 = vmatpush.msra.mxu0 %v1703_v37  ;;  %v10258_v7 = vld [vmem:[%s14275_s3 + $0x2e0] sm:$0xff] }
 0x17e   :  { %2578 = vmatpush.msrb.mxu3 %v936_v46  ;;  %2598 = vmatpush.msrb.mxu1 %v1240_v10  ;;  %v10270_v37 = vld [vmem:[%s14275_s3 + $0x2a0] sm:$0xff]  ;;  %v1081_v10 = vunpack.c.l.bf16 %v10258_v7 }
 0x17f   :  { %2538 = vmatmul.f32.gmra.mxu2 %v9050_v13  ;;  %2556 = vmatpush.msra.mxu0 %v1687_v61  ;;  %v10275_v46 = vld [vmem:[%s14275_s3 + $0x760] sm:$0xff]  ;;  %v1385_v61 = vunpack.c.l.bf16 %v10263_v25 }
 0x180   :  { %2615 = vmatpush.msrb.mxu2 %v1592_v3  ;;  %2579 = vmatpush.msrb.mxu3 %v920_v40  ;;  %v10285_v3 = vld [vmem:[%s14275_s3 + $0x260] sm:$0xff]  ;;  %v1369_v34 = vunpack.c.l.bf16 %v10275_v46 }
 0x181   :  { %2599 = vmatpush.msrb.mxu1 %v1224_v29  ;;  %2557 = vmatpush.msra.mxu0 %v1671_v59  ;;  %v10290_v40 = vld [vmem:[%s14275_s3 + $0x720] sm:$0xff]  ;;  %v1065_v29 = vunpack.c.l.bf16 %v10270_v37  ;;  %v1816_v59 = vunpack.c.h.bf16 %v10101_v8 }
 0x182   :  { %2616 = vmatpush.msrb.mxu2 %v1576_v27  ;;  %2580 = vmatpush.msrb.mxu3 %v904_v0  ;;  %v10301_v27 = vld [vmem:[%s14275_s3 + $0x220] sm:$0xff]  ;;  %v1049_v0 = vunpack.c.l.bf16 %v10285_v3 }
 0x183   :  { %2600 = vmatpush.msrb.mxu1 %v1208_v41  ;;  %2558 = vmatmul.f32.vlgmr.msra.gmra.mxu0 %v9084_v43  ;;  %v1353_v41 = vunpack.c.l.bf16 %v10290_v40  ;;  %v10314_v8 = vld [vmem:[%s14275_s3 + $0x1e0] sm:$0xff] }
 0x184   :  { %2581 = vmatmul.f32.vlgmr.msrb.gmra.mxu3 %v8829_v38  ;;  %2617 = vmatpush.msrb.mxu2 %v1560_v28  ;;  %v10308_v28 = vld [vmem:[%s14275_s3 + $0x6e0] sm:$0xff] }
 0x185   :  { %2634 = vmatpush.msrb.mxu0 %v1912_v2  ;;  %2657 = vmatpush.msra.mxu3 %v1145_v56  ;;  %v1800_v2 = vunpack.c.h.bf16 %v10119_v58  ;;  %v1033_v56 = vunpack.c.l.bf16 %v10301_v27  ;;  %v1337_v47 = vunpack.c.l.bf16 %v10308_v28  ;;  %v1784_v58 = vunpack.c.h.bf16 %v10132_v45 }
 0x186   :  { %2601 = vmatpush.msrb.mxu1 %v1192_v16  ;;  %2618 = vmatpush.msrb.mxu2 %v1544_v5  ;;  %v10321_v16 = vld [vmem:[%s14275_s3 + $0x6a0] sm:$0xff]  ;;  %v1432_v5 = vunpack.c.h.bf16 %v10126_v60  ;;  %v1768_v45 = vunpack.c.h.bf16 %v10146_v49 }
 0x187   :  { %2635 = vmatpush.msrb.mxu0 %v1896_v1  ;;  %2658 = vmatpush.msra.mxu3 %v1129_v22  ;;  %v10328_v1 = vld [vmem:[%s14275_s3 + $0x1a0] sm:$0xff]  ;;  %v1017_v22 = vunpack.c.l.bf16 %v10314_v8  ;;  %v1321_v60 = vunpack.c.l.bf16 %v10321_v16 }
 0x188   :  { %2602 = vmatpush.msrb.mxu1 %v1176_v20  ;;  %2619 = vmatpush.msrb.mxu2 %v1528_v18  ;;  %v1416_v20 = vunpack.c.h.bf16 %v10139_v14  ;;  %v1001_v18 = vunpack.c.l.bf16 %v10328_v1  ;;  %v10355_v14 = vld [vmem:[%s14275_s3 + $0x620] sm:$0xff] }
 0x189   :  { %2636 = vmatpush.msrb.mxu0 %v1880_v17  ;;  %2659 = vmatpush.msra.mxu3 %v1113_v42  ;;  %v10350_v17 = vld [vmem:[%s14275_s3 + $0x160] sm:$0xff]  ;;  %v1305_v42 = vunpack.c.l.bf16 %v10335_v35 }
 0x18a   :  { %2603 = vmatpush.msrb.mxu1 %v1160_v33  ;;  %2620 = vmatpush.msrb.mxu2 %v1512_v50  ;;  %v10361_v49 = vld [vmem:[%s14275_s3 + $0xba0] sm:$0xff]  ;;  %v1657_v33 = vunpack.c.l.bf16 %v10343_v48  ;;  %v1752_v50 = vunpack.c.h.bf16 %v10156_v55 }
 0x18b   :  { %2604 = vmatmul.f32.vlgmr.msrb.gmra.mxu1 %v8859_v9  ;;  %2637 = vmatpush.msrb.mxu0 %v1864_v36  ;;  %v10368_v36 = vld [vmem:[%s14275_s3 + $0x120] sm:$0xff] }
 0x18c   :  { %2660 = vmatpush.msra.mxu3 %v1097_v54  ;;  %2680 = vmatpush.msra.mxu1 %v1401_v23  ;;  %v10373_v54 = vld [vmem:[%s14275_s3 + $0x5e0] sm:$0xff]  ;;  %v985_v23 = vunpack.c.l.bf16 %v10350_v17 }
 0x18d   :  { %2561 = vmatmul.f32.gmra.mxu0 %v9145_v39  ;;  %2584 = vmatmul.f32.gmra.mxu3 %v8892_v26  ;;  %v10380_v55 = vld [vmem:[%s14275_s3 + $0xb60] sm:$0xff] }
 0x18e   :  { %2621 = vmatpush.msrb.mxu2 %v1496_v4  ;;  %2638 = vmatpush.msrb.mxu0 %v1848_v24  ;;  %v1289_v4 = vunpack.c.l.bf16 %v10355_v14  ;;  %v1641_v24 = vunpack.c.l.bf16 %v10361_v49 }
 0x18f   :  { %2661 = vmatpush.msra.mxu3 %v1081_v10  ;;  %2681 = vmatpush.msra.mxu1 %v1385_v61  ;;  %v1736_v10 = vunpack.c.h.bf16 %v10164_v63  ;;  %v10387_v61 = vld [vmem:[%s14275_s3 + $0xe0] sm:$0xff] }
 0x190   :  { %2622 = vmatpush.msrb.mxu2 %v1480_v53  ;;  %2639 = vmatpush.msrb.mxu0 %v1832_v15  ;;  %v10392_v53 = vld [vmem:[%s14275_s3 + $0x5a0] sm:$0xff]  ;;  %v969_v15 = vunpack.c.l.bf16 %v10368_v36 }
 0x191   :  { %2662 = vmatpush.msra.mxu3 %v1065_v29  ;;  %2682 = vmatpush.msra.mxu1 %v1369_v34  ;;  %v1273_v29 = vunpack.c.l.bf16 %v10373_v54  ;;  %v10400_v63 = vld [vmem:[%s14275_s3 + $0xb20] sm:$0xff]  ;;  %v1625_v34 = vunpack.c.l.bf16 %v10380_v55 }
 0x192   :  { %2623 = vmatpush.msrb.mxu2 %v1464_v32  ;;  %2640 = vmatpush.msrb.mxu0 %v1816_v59  ;;  %v1720_v32 = vunpack.c.h.bf16 %v10173_v62  ;;  %v10407_v59 = vld [vmem:[%s14275_s3 + $0xa0] sm:$0xff]  ;;  %v1609_v62 = vunpack.c.l.bf16 %v10400_v63 }
 0x193   :  { %2663 = vmatpush.msra.mxu3 %v1049_v0  ;;  %2683 = vmatpush.msra.mxu1 %v1353_v41  ;;  %v10412_v0 = vld [vmem:[%s14275_s3 + $0x560] sm:$0xff]  ;;  %v953_v41 = vunpack.c.l.bf16 %v10387_v61 }
 0x194   :  { %2607 = vmatmul.f32.gmra.mxu1 %v8913_v51  ;;  %2624 = vmatpush.msrb.mxu2 %v1448_v6  ;;  %v1257_v6 = vunpack.c.l.bf16 %v10392_v53 }
 0x195   :  { %2641 = vmatpush.msrb.mxu0 %v1800_v2  ;;  %2664 = vmatpush.msra.mxu3 %v1033_v56  ;;  %v1704_v2 = vunpack.c.h.bf16 %v10183_v21  ;;  %v10421_v56 = vld [vmem:[%s14275_s3 + $0xae0] sm:$0xff] }
 0x196   :  { %2684 = vmatpush.msra.mxu1 %v1337_v47  ;;  %2625 = vmatpush.msrb.mxu2 %v1432_v5  ;;  %v10426_v47 = vld [vmem:[%s14275_s3 + $0x60] sm:$0xff]  ;;  %v937_v5 = vunpack.c.l.bf16 %v10407_v59 }
 0x197   :  { %2642 = vmatpush.msrb.mxu0 %v1784_v58  ;;  %2665 = vmatpush.msra.mxu3 %v1017_v22  ;;  %v1241_v58 = vunpack.c.l.bf16 %v10412_v0  ;;  %v10433_v21 = vld [vmem:[%s14275_s3 + $0x520] sm:$0xff]  ;;  %v1688_v22 = vunpack.c.h.bf16 %v10192_v30 }
 0x198   :  { %2685 = vmatpush.msra.mxu1 %v1321_v60  ;;  %2626 = vmatpush.msrb.mxu2 %v1416_v20  ;;  %v10439_v60 = vld [vmem:[%s14275_s3 + $0xaa0] sm:$0xff] }
 0x199   :  { %2643 = vmatpush.msrb.mxu0 %v1768_v45  ;;  %2666 = vmatpush.msra.mxu3 %v1001_v18  ;;  %v10444_v20 = vld [vmem:[%s14275_s3 + $0x20] sm:$0xff]  ;;  %v1593_v45 = vunpack.c.l.bf16 %v10421_v56  ;;  %v921_v18 = vunpack.c.l.bf16 %v10426_v47 }
 0x19a   :  { %2686 = vmatpush.msra.mxu1 %v1305_v42  ;;  %2627 = vmatmul.f32.vlgmr.msrb.gmra.mxu2 %v8976_v52  ;;  %v10451_v30 = vld [vmem:[%s14275_s3 + $0x4e0] sm:$0xff]  ;;  %v1225_v42 = vunpack.c.l.bf16 %v10433_v21 }
 0x19b   :  { %2703 = vmatpush.msra.mxu2 %v1657_v33  ;;  %2644 = vmatpush.msrb.mxu0 %v1752_v50  ;;  %v1672_v33 = vunpack.c.h.bf16 %v10201_v12  ;;  %v10458_v50 = vld [vmem:[%s14275_s3 + $0xa60] sm:$0xff]  ;;  %v1209_v12 = vunpack.c.l.bf16 %v10451_v30 }
 0x19c   :  { %2667 = vmatpush.msra.mxu3 %v985_v23  ;;  %2687 = vmatpush.msra.mxu1 %v1289_v4  ;;  %v1577_v23 = vunpack.c.l.bf16 %v10439_v60  ;;  %v905_v4 = vunpack.c.l.bf16 %v10444_v20 }
 0x19d   :  { %2704 = vmatpush.msra.mxu2 %v1641_v24  ;;  %2645 = vmatpush.msrb.mxu0 %v1736_v10  ;;  %v10465_v24 = vld [vmem:[%s14275_s3 + $0xfe0] sm:$0xff] }
 0x19e   :  { %2668 = vmatpush.msra.mxu3 %v969_v15  ;;  %2688 = vmatpush.msra.mxu1 %v1273_v29  ;;  %v10472_v10 = vld [vmem:[%s14275_s3 + $0x4a0] sm:$0xff]  ;;  %v1561_v29 = vunpack.c.l.bf16 %v10458_v50 }
 0x19f   :  { %2705 = vmatpush.msra.mxu2 %v1625_v34  ;;  %2646 = vmatpush.msrb.mxu0 %v1720_v32  ;;  %v10477_v15 = vld [vmem:[%s14275_s3 + $0xa20] sm:$0xff]  ;;  %v1913_v32 = vunpack.c.l.bf16 %v10465_v24 }
 0x1a0   :  { %2669 = vmatpush.msra.mxu3 %v953_v41  ;;  %2689 = vmatpush.msra.mxu1 %v1257_v6  ;;  %v10483_v34 = vld [vmem:[%s14275_s3 + $0xfa0] sm:$0xff]  ;;  %v1146_v41 = vunpack.c.h.bf16 %v10213_v31 }
 0x1a1   :  { %2706 = vmatpush.msra.mxu2 %v1609_v62  ;;  %2647 = vmatpush.msrb.mxu0 %v1704_v2  ;;  %v10490_v6 = vld [vmem:[%s14275_s3 + $0x460] sm:$0xff]  ;;  %v1193_v2 = vunpack.c.l.bf16 %v10472_v10 }
 0x1a2   :  { %2670 = vmatpush.msra.mxu3 %v937_v5  ;;  %2690 = vmatpush.msra.mxu1 %v1241_v58  ;;  %14341 = vst [vmem:[#allocation6_spill] sm:$0xff] %v10490_v6  ;;  %v10495_v62 = vld [vmem:[%s14275_s3 + $0x9e0] sm:$0xff]  ;;  %v1545_v5 = vunpack.c.l.bf16 %v10477_v15  ;;  %v1897_v58 = vunpack.c.l.bf16 %v10483_v34 }
 0x1a3   :  { %2630 = vmatmul.f32.gmra.mxu2 %v9050_v13  ;;  %2648 = vmatpush.msrb.mxu0 %v1688_v22  ;;  %14342 = vst [vmem:[#allocation7_spill] sm:$0xff] %v10495_v62  ;;  %v10502_v31 = vld [vmem:[%s14275_s3 + $0xf60] sm:$0xff]  ;;  %v1130_v22 = vunpack.c.h.bf16 %v10221_v57 }
 0x1a4   :  { %2707 = vmatpush.msra.mxu2 %v1593_v45  ;;  %2671 = vmatpush.msra.mxu3 %v921_v18  ;;  %v10510_v45 = vld [vmem:[%s14275_s3 + $0x420] sm:$0xff] }
 0x1a5   :  { %2691 = vmatpush.msra.mxu1 %v1225_v42  ;;  %2649 = vmatpush.msrb.mxu0 %v1672_v33  ;;  %v10515_v18 = vld [vmem:[%s14275_s3 + $0x9a0] sm:$0xff]  ;;  %v1177_v42 = vunpack.c.l.bf16 %v10490_v6  ;;  %v1529_v33 = vunpack.c.l.bf16 %v10495_v62 }
 0x1a6   :  { %2708 = vmatpush.msra.mxu2 %v1577_v23  ;;  %2672 = vmatpush.msra.mxu3 %v905_v4  ;;  %v10523_v57 = vld [vmem:[%s14275_s3 + $0xf20] sm:$0xff]  ;;  %v1881_v23 = vunpack.c.l.bf16 %v10502_v31  ;;  %v1114_v4 = vunpack.c.h.bf16 %v10230_v19  ;;  %v1098_v19 = vunpack.c.h.bf16 %v10243_v44 }
 0x1a7   :  { %2692 = vmatpush.msra.mxu1 %v1209_v12  ;;  %2650 = vmatmul.f32.vlgmr.msrb.gmra.mxu0 %v9084_v43  ;;  %v1161_v12 = vunpack.c.l.bf16 %v10510_v45  ;;  %v1865_v62 = vunpack.c.l.bf16 %v10523_v57  ;;  %v10533_v6 = vld [vmem:[%s14275_s3 + $0x960] sm:$0xff] }
 0x1a8   :  { %2673 = vmatmul.f32.vlgmr.msra.gmra.mxu3 %v8829_v38  ;;  %2709 = vmatpush.msra.mxu2 %v1561_v29  ;;  %v1513_v29 = vunpack.c.l.bf16 %v10515_v18 }
 0x1a9   :  { %2726 = vmatpush.msra.mxu0 %v1913_v32  ;;  %2749 = vmatpush.msrb.mxu3 %v1146_v41  ;;  %v10538_v32 = vld [vmem:[%s14275_s3 + $0xee0] sm:$0xff]  ;;  %v1402_v41 = vunpack.c.h.bf16 %v10248_v11  ;;  %v1082_v11 = vunpack.c.h.bf16 %v10258_v7  ;;  %v1066_v7 = vunpack.c.h.bf16 %v10270_v37  ;;  %v1050_v37 = vunpack.c.h.bf16 %v10285_v3 }
 0x1aa   :  { %2693 = vmatpush.msra.mxu1 %v1193_v2  ;;  %2710 = vmatpush.msra.mxu2 %v1545_v5  ;;  %v10545_v2 = vld [vmem:[%s14275_s3 + $0x920] sm:$0xff]  ;;  %v1849_v44 = vunpack.c.l.bf16 %v10538_v32 }
 0x1ab   :  { %2727 = vmatpush.msra.mxu0 %v1897_v58  ;;  %2750 = vmatpush.msrb.mxu3 %v1130_v22  ;;  %v10550_v5 = vld [vmem:[%s14275_s3 + $0xea0] sm:$0xff]  ;;  %v1497_v58 = vunpack.c.l.bf16 %v10533_v6  ;;  %v1386_v22 = vunpack.c.h.bf16 %v10263_v25  ;;  %v1370_v25 = vunpack.c.h.bf16 %v10275_v46  ;;  %v1354_v46 = vunpack.c.h.bf16 %v10290_v40 }
 0x1ac   :  { %2694 = vmatpush.msra.mxu1 %v1177_v42  ;;  %2711 = vmatpush.msra.mxu2 %v1529_v33  ;;  %v10560_v42 = vld [vmem:[%s14275_s3 + $0x8e0] sm:$0xff]  ;;  %v1034_v40 = vunpack.c.h.bf16 %v10301_v27 }
 0x1ad   :  { %2728 = vmatpush.msra.mxu0 %v1881_v23  ;;  %2751 = vmatpush.msrb.mxu3 %v1114_v4  ;;  %v10565_v33 = vld [vmem:[%s14275_s3 + $0xe60] sm:$0xff]  ;;  %v1481_v23 = vunpack.c.l.bf16 %v10545_v2 }
 0x1ae   :  { %2695 = vmatpush.msra.mxu1 %v1161_v12  ;;  %2712 = vmatpush.msra.mxu2 %v1513_v29  ;;  %v10576_v4 = vld [vmem:[%s14275_s3 + $0x8a0] sm:$0xff]  ;;  %v1465_v12 = vunpack.c.l.bf16 %v10560_v42  ;;  %v1817_v29 = vunpack.c.l.bf16 %v10565_v33 }
 0x1af   :  { %2696 = vmatmul.f32.vlgmr.msra.gmra.mxu1 %v8859_v9  ;;  %2729 = vmatpush.msra.mxu0 %v1865_v62  ;;  %v1833_v62 = vunpack.c.l.bf16 %v10550_v5 }
 0x1b0   :  { %2752 = vmatpush.msrb.mxu3 %v1098_v19  ;;  %2772 = vmatpush.msrb.mxu1 %v1402_v41  ;;  %v10583_v19 = vld [vmem:[%s14275_s3 + $0xe20] sm:$0xff] }
 0x1b1   :  { %2653 = vmatmul.f32.gmra.mxu0 %v9145_v39  ;;  %2676 = vmatmul.f32.gmra.mxu3 %v8892_v26  ;;  %v10590_v41 = vld [vmem:[%s14275_s3 + $0x860] sm:$0xff]  ;;  %v1801_v3 = vunpack.c.l.bf16 %v10583_v19 }
 0x1b2   :  { %2713 = vmatpush.msra.mxu2 %v1497_v58  ;;  %2730 = vmatpush.msra.mxu0 %v1849_v44  ;;  %v1449_v58 = vunpack.c.l.bf16 %v10576_v4  ;;  %v10596_v44 = vld [vmem:[%s14275_s3 + $0xde0] sm:$0xff] }
 0x1b3   :  { %2753 = vmatpush.msrb.mxu3 %v1082_v11  ;;  %2773 = vmatpush.msrb.mxu1 %v1386_v22  ;;  %v10603_v11 = vld [vmem:[%s14275_s3 + $0x820] sm:$0xff]  ;;  %v1338_v22 = vunpack.c.h.bf16 %v10308_v28  ;;  %v1785_v27 = vunpack.c.l.bf16 %v10596_v44 }
 0x1b4   :  { %2714 = vmatpush.msra.mxu2 %v1481_v23  ;;  %2731 = vmatpush.msra.mxu0 %v1833_v62  ;;  %v1433_v23 = vunpack.c.l.bf16 %v10590_v41  ;;  %v10610_v62 = vld [vmem:[%s14275_s3 + $0xda0] sm:$0xff]  ;;  %v1417_v28 = vunpack.c.l.bf16 %v10603_v11 }
 0x1b5   :  { %2754 = vmatpush.msrb.mxu3 %v1066_v7  ;;  %2774 = vmatpush.msrb.mxu1 %v1370_v25  ;;  %v1018_v7 = vunpack.c.h.bf16 %v10314_v8  ;;  %v1322_v25 = vunpack.c.h.bf16 %v10321_v16  ;;  %v1306_v8 = vunpack.c.h.bf16 %v10335_v35  ;;  %v10628_v16 = vld [vmem:[%s14275_s3 + $0xd20] sm:$0xff] }
 0x1b6   :  { %2715 = vmatpush.msra.mxu2 %v1465_v12  ;;  %2732 = vmatpush.msra.mxu0 %v1817_v29  ;;  %v10620_v12 = vld [vmem:[%s14275_s3 + $0xd60] sm:$0xff]  ;;  %v1769_v29 = vunpack.c.l.bf16 %v10610_v62 }
 0x1b7   :  { %2755 = vmatpush.msrb.mxu3 %v1050_v37  ;;  %2775 = vmatpush.msrb.mxu1 %v1354_v46  ;;  %v1002_v37 = vunpack.c.h.bf16 %v10328_v1  ;;  %v1658_v46 = vunpack.c.h.bf16 %v10343_v48  ;;  %v1290_v1 = vunpack.c.h.bf16 %v10355_v14  ;;  %v10637_v35 = vld [vmem:[%s14275_s3 + $0xce0] sm:$0xff]  ;;  %v970_v48 = vunpack.c.h.bf16 %v10368_v36 }
 0x1b8   :  { %2699 = vmatmul.f32.gmra.mxu1 %v8913_v51  ;;  %2716 = vmatpush.msra.mxu2 %v1449_v58  ;;  %v1753_v58 = vunpack.c.l.bf16 %v10620_v12  ;;  %v10647_v14 = vld [vmem:[%s14275_s3 + $0xca0] sm:$0xff] }
 0x1b9   :  { %2733 = vmatpush.msra.mxu0 %v1801_v3  ;;  %2756 = vmatpush.msrb.mxu3 %v1034_v40  ;;  %v986_v3 = vunpack.c.h.bf16 %v10350_v17  ;;  %v1642_v40 = vunpack.c.h.bf16 %v10361_v49  ;;  %v1274_v17 = vunpack.c.h.bf16 %v10373_v54  ;;  %v1721_v49 = vunpack.c.l.bf16 %v10637_v35  ;;  %v10656_v36 = vld [vmem:[%s14275_s3 + $0xc60] sm:$0xff] }
 0x1ba   :  { %2776 = vmatpush.msrb.mxu1 %v1338_v22  ;;  %2717 = vmatpush.msra.mxu2 %v1433_v23  ;;  %v1737_v22 = vunpack.c.l.bf16 %v10628_v16  ;;  %v1626_v23 = vunpack.c.h.bf16 %v10380_v55  ;;  %v1610_v54 = vunpack.c.h.bf16 %v10400_v63  ;;  %v938_v55 = vunpack.c.h.bf16 %v10407_v59 }
 0x1bb   :  { %2734 = vmatpush.msra.mxu0 %v1785_v27  ;;  %2757 = vmatpush.msrb.mxu3 %v1018_v7  ;;  %v954_v27 = vunpack.c.h.bf16 %v10387_v61  ;;  %v1258_v7 = vunpack.c.h.bf16 %v10392_v53  ;;  %v10665_v61 = vld [vmem:[%s14275_s3 + $0xc20] sm:$0xff]  ;;  %v1689_v53 = vunpack.c.l.bf16 %v10656_v36  ;;  %v1594_v63 = vunpack.c.h.bf16 %v10421_v56 }
 0x1bc   :  { %2777 = vmatpush.msrb.mxu1 %v1322_v25  ;;  %2718 = vmatpush.msra.mxu2 %v1417_v28  ;;  %v1705_v25 = vunpack.c.l.bf16 %v10647_v14  ;;  %v1242_v28 = vunpack.c.h.bf16 %v10412_v0  ;;  %v1226_v59 = vunpack.c.h.bf16 %v10433_v21  ;;  %v1673_v0 = vunpack.c.l.bf16 %v10665_v61  ;;  %v10685_v21 = vld [vmem:[%s14275_s3 + $0x3a8] sm:$0xff] }
 0x1bd   :  { %2735 = vmatpush.msra.mxu0 %v1769_v29  ;;  %2758 = vmatpush.msrb.mxu3 %v1002_v37  ;;  %v922_v29 = vunpack.c.h.bf16 %v10426_v47  ;;  %v1578_v37 = vunpack.c.h.bf16 %v10439_v60  ;;  %v1210_v56 = vunpack.c.h.bf16 %v10451_v30  ;;  %v1562_v47 = vunpack.c.h.bf16 %v10458_v50  ;;  %v10694_v50 = vld [vmem:[%s14275_s3 + $0x368] sm:$0xff] }
 0x1be   :  { %2778 = vmatpush.msrb.mxu1 %v1306_v8  ;;  %2719 = vmatmul.f32.vlgmr.msra.gmra.mxu2 %v8976_v52  ;;  %v906_v8 = vunpack.c.h.bf16 %v10444_v20  ;;  %v1914_v60 = vunpack.c.h.bf16 %v10465_v24  ;;  %v1546_v30 = vunpack.c.h.bf16 %v10477_v15  ;;  %v1131_v24 = vunpack.c.l.bf16 %v10685_v21 }
 0x1bf   :  { %2795 = vmatpush.msrb.mxu2 %v1658_v46  ;;  %2736 = vmatpush.msra.mxu0 %v1753_v58  ;;  %v10677_v46 = vld [vmem:[%s14275_s3 + $0x3e8] sm:$0xff]  ;;  %v1194_v58 = vunpack.c.h.bf16 %v10472_v10  ;;  %v1882_v15 = vunpack.c.h.bf16 %v10502_v31  ;;  %v1866_v31 = vunpack.c.h.bf16 %v10523_v57  ;;  %v1850_v57 = vunpack.c.h.bf16 %v10538_v32 }
 0x1c0   :  { %2759 = vmatpush.msrb.mxu3 %v986_v3  ;;  %2779 = vmatpush.msrb.mxu1 %v1290_v1  ;;  %v1147_v20 = vunpack.c.l.bf16 %v10677_v46  ;;  %v1898_v3 = vunpack.c.h.bf16 %v10483_v34  ;;  %v14343_v1 = vld [vmem:[#allocation6_spill] sm:$0xff]  ;;  %v14344_v10 = vld [vmem:[#allocation7_spill] sm:$0xff]  ;;  %v1834_v32 = vunpack.c.h.bf16 %v10550_v5  ;;  %v1466_v5 = vunpack.c.h.bf16 %v10560_v42 }
 0x1c1   :  { %2796 = vmatpush.msrb.mxu2 %v1642_v40  ;;  %2737 = vmatpush.msra.mxu0 %v1737_v22  ;;  %v1178_v40 = vunpack.c.h.bf16 %v14343_v1  ;;  %v1530_v22 = vunpack.c.h.bf16 %v14344_v10  ;;  %v10712_v34 = vld [vmem:[%s14275_s3 + $0x7e8] sm:$0xff]  ;;  %v1450_v42 = vunpack.c.h.bf16 %v10576_v4 }
 0x1c2   :  { %2760 = vmatpush.msrb.mxu3 %v970_v48  ;;  %2780 = vmatpush.msrb.mxu1 %v1274_v17  ;;  %v1115_v48 = vunpack.c.l.bf16 %v10694_v50  ;;  %v10707_v17 = vld [vmem:[%s14275_s3 + $0x328] sm:$0xff] }
 0x1c3   :  { %2797 = vmatpush.msrb.mxu2 %v1626_v23  ;;  %2738 = vmatpush.msra.mxu0 %v1721_v49  ;;  %v1162_v23 = vunpack.c.h.bf16 %v10510_v45  ;;  %v1514_v49 = vunpack.c.h.bf16 %v10515_v18  ;;  %v10727_v45 = vld [vmem:[%s14275_s3 + $0x7a8] sm:$0xff]  ;;  %v1498_v18 = vunpack.c.h.bf16 %v10533_v6  ;;  %v1482_v6 = vunpack.c.h.bf16 %v10545_v2 }
 0x1c4   :  { %2761 = vmatpush.msrb.mxu3 %v954_v27  ;;  %2781 = vmatpush.msrb.mxu1 %v1258_v7  ;;  %v1099_v27 = vunpack.c.l.bf16 %v10707_v17  ;;  %v1403_v7 = vunpack.c.l.bf16 %v10712_v34  ;;  %v10799_v1 = vld [vmem:[%s14275_s3 + $0x668] sm:$0xff] }
 0x1c5   :  { %2798 = vmatpush.msrb.mxu2 %v1610_v54  ;;  %2739 = vmatpush.msra.mxu0 %v1705_v25  ;;  %v10722_v54 = vld [vmem:[%s14275_s3 + $0x2e8] sm:$0xff] }
 0x1c6   :  { %2762 = vmatpush.msrb.mxu3 %v938_v55  ;;  %2782 = vmatpush.msrb.mxu1 %v1242_v28  ;;  %v10734_v25 = vld [vmem:[%s14275_s3 + $0x2a8] sm:$0xff]  ;;  %v1083_v28 = vunpack.c.l.bf16 %v10722_v54 }
 0x1c7   :  { %2722 = vmatmul.f32.gmra.mxu2 %v9050_v13  ;;  %2740 = vmatpush.msra.mxu0 %v1689_v53  ;;  %v10739_v55 = vld [vmem:[%s14275_s3 + $0x768] sm:$0xff]  ;;  %v1387_v53 = vunpack.c.l.bf16 %v10727_v45 }
 0x1c8   :  { %2799 = vmatpush.msrb.mxu2 %v1594_v63  ;;  %2763 = vmatpush.msrb.mxu3 %v922_v29  ;;  %v10749_v63 = vld [vmem:[%s14275_s3 + $0x268] sm:$0xff]  ;;  %v1371_v2 = vunpack.c.l.bf16 %v10739_v55 }
 0x1c9   :  { %2783 = vmatpush.msrb.mxu1 %v1226_v59  ;;  %2741 = vmatpush.msra.mxu0 %v1673_v0  ;;  %v10754_v29 = vld [vmem:[%s14275_s3 + $0x728] sm:$0xff]  ;;  %v1067_v59 = vunpack.c.l.bf16 %v10734_v25  ;;  %v1818_v0 = vunpack.c.h.bf16 %v10565_v33 }
 0x1ca   :  { %2800 = vmatpush.msrb.mxu2 %v1578_v37  ;;  %2764 = vmatpush.msrb.mxu3 %v906_v8  ;;  %v10765_v37 = vld [vmem:[%s14275_s3 + $0x228] sm:$0xff]  ;;  %v1051_v8 = vunpack.c.l.bf16 %v10749_v63 }
 0x1cb   :  { %2784 = vmatpush.msrb.mxu1 %v1210_v56  ;;  %2742 = vmatmul.f32.vlgmr.msra.gmra.mxu0 %v9084_v43  ;;  %v1355_v56 = vunpack.c.l.bf16 %v10754_v29  ;;  %v10778_v33 = vld [vmem:[%s14275_s3 + $0x1e8] sm:$0xff] }
 0x1cc   :  { %2765 = vmatmul.f32.vlgmr.msrb.gmra.mxu3 %v8829_v38  ;;  %2801 = vmatpush.msrb.mxu2 %v1562_v47  ;;  %v10772_v47 = vld [vmem:[%s14275_s3 + $0x6e8] sm:$0xff] }
 0x1cd   :  { %2818 = vmatpush.msrb.mxu0 %v1914_v60  ;;  %2841 = vmatpush.msra.mxu3 %v1147_v20  ;;  %v1802_v60 = vunpack.c.h.bf16 %v10583_v19  ;;  %v1035_v20 = vunpack.c.l.bf16 %v10765_v37  ;;  %v1339_v4 = vunpack.c.l.bf16 %v10772_v47  ;;  %v1786_v19 = vunpack.c.h.bf16 %v10596_v44  ;;  %v10807_v10 = vld [vmem:[%s14275_s3 + $0xbe8] sm:$0xff] }
 0x1ce   :  { %2785 = vmatpush.msrb.mxu1 %v1194_v58  ;;  %2802 = vmatpush.msrb.mxu2 %v1546_v30  ;;  %v10785_v58 = vld [vmem:[%s14275_s3 + $0x6a8] sm:$0xff]  ;;  %v1434_v30 = vunpack.c.h.bf16 %v10590_v41  ;;  %v1770_v44 = vunpack.c.h.bf16 %v10610_v62 }
 0x1cf   :  { %2819 = vmatpush.msrb.mxu0 %v1898_v3  ;;  %2842 = vmatpush.msra.mxu3 %v1131_v24  ;;  %v10792_v3 = vld [vmem:[%s14275_s3 + $0x1a8] sm:$0xff]  ;;  %v1019_v24 = vunpack.c.l.bf16 %v10778_v33  ;;  %v1323_v41 = vunpack.c.l.bf16 %v10785_v58 }
 0x1d0   :  { %2786 = vmatpush.msrb.mxu1 %v1178_v40  ;;  %2803 = vmatpush.msrb.mxu2 %v1530_v22  ;;  %v1418_v40 = vunpack.c.h.bf16 %v10603_v11  ;;  %v1003_v22 = vunpack.c.l.bf16 %v10792_v3  ;;  %v10819_v11 = vld [vmem:[%s14275_s3 + $0x628] sm:$0xff] }
 0x1d1   :  { %2820 = vmatpush.msrb.mxu0 %v1882_v15  ;;  %2843 = vmatpush.msra.mxu3 %v1115_v48  ;;  %v10814_v15 = vld [vmem:[%s14275_s3 + $0x168] sm:$0xff]  ;;  %v1307_v48 = vunpack.c.l.bf16 %v10799_v1 }
 0x1d2   :  { %2787 = vmatpush.msrb.mxu1 %v1162_v23  ;;  %2804 = vmatpush.msrb.mxu2 %v1514_v49  ;;  %v10825_v62 = vld [vmem:[%s14275_s3 + $0xba8] sm:$0xff]  ;;  %v1659_v23 = vunpack.c.l.bf16 %v10807_v10  ;;  %v1754_v49 = vunpack.c.h.bf16 %v10620_v12 }
 0x1d3   :  { %2788 = vmatmul.f32.vlgmr.msrb.gmra.mxu1 %v8859_v9  ;;  %2821 = vmatpush.msrb.mxu0 %v1866_v31  ;;  %v10832_v31 = vld [vmem:[%s14275_s3 + $0x128] sm:$0xff] }
 0x1d4   :  { %2844 = vmatpush.msra.mxu3 %v1099_v27  ;;  %2864 = vmatpush.msra.mxu1 %v1403_v7  ;;  %v10837_v27 = vld [vmem:[%s14275_s3 + $0x5e8] sm:$0xff]  ;;  %v987_v7 = vunpack.c.l.bf16 %v10814_v15 }
 0x1d5   :  { %2745 = vmatmul.f32.gmra.mxu0 %v9145_v39  ;;  %2768 = vmatmul.f32.gmra.mxu3 %v8892_v26  ;;  %v10844_v12 = vld [vmem:[%s14275_s3 + $0xb68] sm:$0xff] }
 0x1d6   :  { %2805 = vmatpush.msrb.mxu2 %v1498_v18  ;;  %2822 = vmatpush.msrb.mxu0 %v1850_v57  ;;  %v1291_v18 = vunpack.c.l.bf16 %v10819_v11  ;;  %v1643_v57 = vunpack.c.l.bf16 %v10825_v62 }
 0x1d7   :  { %2845 = vmatpush.msra.mxu3 %v1083_v28  ;;  %2865 = vmatpush.msra.mxu1 %v1387_v53  ;;  %v1738_v28 = vunpack.c.h.bf16 %v10628_v16  ;;  %v10851_v53 = vld [vmem:[%s14275_s3 + $0xe8] sm:$0xff] }
 0x1d8   :  { %2806 = vmatpush.msrb.mxu2 %v1482_v6  ;;  %2823 = vmatpush.msrb.mxu0 %v1834_v32  ;;  %v10856_v6 = vld [vmem:[%s14275_s3 + $0x5a8] sm:$0xff]  ;;  %v971_v32 = vunpack.c.l.bf16 %v10832_v31 }
 0x1d9   :  { %2846 = vmatpush.msra.mxu3 %v1067_v59  ;;  %2866 = vmatpush.msra.mxu1 %v1371_v2  ;;  %v1275_v59 = vunpack.c.l.bf16 %v10837_v27  ;;  %v10864_v16 = vld [vmem:[%s14275_s3 + $0xb28] sm:$0xff]  ;;  %v1627_v2 = vunpack.c.l.bf16 %v10844_v12 }
 0x1da   :  { %2807 = vmatpush.msrb.mxu2 %v1466_v5  ;;  %2824 = vmatpush.msrb.mxu0 %v1818_v0  ;;  %v1722_v5 = vunpack.c.h.bf16 %v10637_v35  ;;  %v10871_v0 = vld [vmem:[%s14275_s3 + $0xa8] sm:$0xff]  ;;  %v1611_v35 = vunpack.c.l.bf16 %v10864_v16 }
 0x1db   :  { %2847 = vmatpush.msra.mxu3 %v1051_v8  ;;  %2867 = vmatpush.msra.mxu1 %v1355_v56  ;;  %v10876_v8 = vld [vmem:[%s14275_s3 + $0x568] sm:$0xff]  ;;  %v955_v56 = vunpack.c.l.bf16 %v10851_v53 }
 0x1dc   :  { %2791 = vmatmul.f32.gmra.mxu1 %v8913_v51  ;;  %2808 = vmatpush.msrb.mxu2 %v1450_v42  ;;  %v1259_v42 = vunpack.c.l.bf16 %v10856_v6 }
 0x1dd   :  { %2825 = vmatpush.msrb.mxu0 %v1802_v60  ;;  %2848 = vmatpush.msra.mxu3 %v1035_v20  ;;  %v1706_v60 = vunpack.c.h.bf16 %v10647_v14  ;;  %v10885_v20 = vld [vmem:[%s14275_s3 + $0xae8] sm:$0xff] }
 0x1de   :  { %2868 = vmatpush.msra.mxu1 %v1339_v4  ;;  %2809 = vmatpush.msrb.mxu2 %v1434_v30  ;;  %v10890_v4 = vld [vmem:[%s14275_s3 + $0x68] sm:$0xff]  ;;  %v939_v30 = vunpack.c.l.bf16 %v10871_v0 }
 0x1df   :  { %2826 = vmatpush.msrb.mxu0 %v1786_v19  ;;  %2849 = vmatpush.msra.mxu3 %v1019_v24  ;;  %v1243_v19 = vunpack.c.l.bf16 %v10876_v8  ;;  %v10897_v14 = vld [vmem:[%s14275_s3 + $0x528] sm:$0xff]  ;;  %v1690_v24 = vunpack.c.h.bf16 %v10656_v36 }
 0x1e0   :  { %2869 = vmatpush.msra.mxu1 %v1323_v41  ;;  %2810 = vmatpush.msrb.mxu2 %v1418_v40  ;;  %v10903_v41 = vld [vmem:[%s14275_s3 + $0xaa8] sm:$0xff] }
 0x1e1   :  { %2827 = vmatpush.msrb.mxu0 %v1770_v44  ;;  %2850 = vmatpush.msra.mxu3 %v1003_v22  ;;  %v10908_v40 = vld [vmem:[%s14275_s3 + $0x28] sm:$0xff]  ;;  %v1595_v44 = vunpack.c.l.bf16 %v10885_v20  ;;  %v923_v22 = vunpack.c.l.bf16 %v10890_v4 }
 0x1e2   :  { %2870 = vmatpush.msra.mxu1 %v1307_v48  ;;  %2811 = vmatmul.f32.vlgmr.msrb.gmra.mxu2 %v8976_v52  ;;  %v10915_v36 = vld [vmem:[%s14275_s3 + $0x4e8] sm:$0xff]  ;;  %v1227_v48 = vunpack.c.l.bf16 %v10897_v14 }
 0x1e3   :  { %2887 = vmatpush.msra.mxu2 %v1659_v23  ;;  %2828 = vmatpush.msrb.mxu0 %v1754_v49  ;;  %v1674_v23 = vunpack.c.h.bf16 %v10665_v61  ;;  %v10922_v49 = vld [vmem:[%s14275_s3 + $0xa68] sm:$0xff]  ;;  %v1211_v61 = vunpack.c.l.bf16 %v10915_v36 }
 0x1e4   :  { %2851 = vmatpush.msra.mxu3 %v987_v7  ;;  %2871 = vmatpush.msra.mxu1 %v1291_v18  ;;  %v1579_v7 = vunpack.c.l.bf16 %v10903_v41  ;;  %v907_v18 = vunpack.c.l.bf16 %v10908_v40 }
 0x1e5   :  { %2888 = vmatpush.msra.mxu2 %v1643_v57  ;;  %2829 = vmatpush.msrb.mxu0 %v1738_v28  ;;  %v10929_v57 = vld [vmem:[%s14275_s3 + $0xfe8] sm:$0xff] }
 0x1e6   :  { %2852 = vmatpush.msra.mxu3 %v971_v32  ;;  %2872 = vmatpush.msra.mxu1 %v1275_v59  ;;  %v10936_v28 = vld [vmem:[%s14275_s3 + $0x4a8] sm:$0xff]  ;;  %v1563_v59 = vunpack.c.l.bf16 %v10922_v49 }
 0x1e7   :  { %2889 = vmatpush.msra.mxu2 %v1627_v2  ;;  %2830 = vmatpush.msrb.mxu0 %v1722_v5  ;;  %v10941_v32 = vld [vmem:[%s14275_s3 + $0xa28] sm:$0xff]  ;;  %v1915_v5 = vunpack.c.l.bf16 %v10929_v57 }
 0x1e8   :  { %2853 = vmatpush.msra.mxu3 %v955_v56  ;;  %2873 = vmatpush.msra.mxu1 %v1259_v42  ;;  %v10947_v2 = vld [vmem:[%s14275_s3 + $0xfa8] sm:$0xff]  ;;  %v1148_v56 = vunpack.c.h.bf16 %v10677_v46 }
 0x1e9   :  { %2890 = vmatpush.msra.mxu2 %v1611_v35  ;;  %2831 = vmatpush.msrb.mxu0 %v1706_v60  ;;  %v10954_v42 = vld [vmem:[%s14275_s3 + $0x468] sm:$0xff]  ;;  %v1195_v60 = vunpack.c.l.bf16 %v10936_v28 }
 0x1ea   :  { %2854 = vmatpush.msra.mxu3 %v939_v30  ;;  %2874 = vmatpush.msra.mxu1 %v1243_v19  ;;  %14345 = vst [vmem:[#allocation8_spill] sm:$0xff] %v10954_v42  ;;  %v10959_v35 = vld [vmem:[%s14275_s3 + $0x9e8] sm:$0xff]  ;;  %v1547_v30 = vunpack.c.l.bf16 %v10941_v32  ;;  %v1899_v19 = vunpack.c.l.bf16 %v10947_v2 }
 0x1eb   :  { %2814 = vmatmul.f32.gmra.mxu2 %v9050_v13  ;;  %2832 = vmatpush.msrb.mxu0 %v1690_v24  ;;  %14346 = vst [vmem:[#allocation6_spill] sm:$0xff] %v10959_v35  ;;  %v10966_v46 = vld [vmem:[%s14275_s3 + $0xf68] sm:$0xff]  ;;  %v1132_v24 = vunpack.c.h.bf16 %v10685_v21 }
 0x1ec   :  { %2891 = vmatpush.msra.mxu2 %v1595_v44  ;;  %2855 = vmatpush.msra.mxu3 %v923_v22  ;;  %v10974_v44 = vld [vmem:[%s14275_s3 + $0x428] sm:$0xff] }
 0x1ed   :  { %2875 = vmatpush.msra.mxu1 %v1227_v48  ;;  %2833 = vmatpush.msrb.mxu0 %v1674_v23  ;;  %v10979_v22 = vld [vmem:[%s14275_s3 + $0x9a8] sm:$0xff]  ;;  %v1179_v48 = vunpack.c.l.bf16 %v10954_v42  ;;  %v1531_v23 = vunpack.c.l.bf16 %v10959_v35 }
 0x1ee   :  { %2892 = vmatpush.msra.mxu2 %v1579_v7  ;;  %2856 = vmatpush.msra.mxu3 %v907_v18  ;;  %v10987_v21 = vld [vmem:[%s14275_s3 + $0xf28] sm:$0xff]  ;;  %v1883_v7 = vunpack.c.l.bf16 %v10966_v46  ;;  %v1116_v18 = vunpack.c.h.bf16 %v10694_v50  ;;  %v1100_v50 = vunpack.c.h.bf16 %v10707_v17 }
 0x1ef   :  { %2876 = vmatpush.msra.mxu1 %v1211_v61  ;;  %2834 = vmatmul.f32.vlgmr.msrb.gmra.mxu0 %v9084_v43  ;;  %v1163_v61 = vunpack.c.l.bf16 %v10974_v44  ;;  %v1867_v35 = vunpack.c.l.bf16 %v10987_v21  ;;  %v10997_v42 = vld [vmem:[%s14275_s3 + $0x968] sm:$0xff] }
 0x1f0   :  { %2857 = vmatmul.f32.vlgmr.msra.gmra.mxu3 %v8829_v38  ;;  %2893 = vmatpush.msra.mxu2 %v1563_v59  ;;  %v1515_v59 = vunpack.c.l.bf16 %v10979_v22 }
 0x1f1   :  { %2910 = vmatpush.msra.mxu0 %v1915_v5  ;;  %2933 = vmatpush.msrb.mxu3 %v1148_v56  ;;  %v11002_v5 = vld [vmem:[%s14275_s3 + $0xee8] sm:$0xff]  ;;  %v1404_v56 = vunpack.c.h.bf16 %v10712_v34  ;;  %v1084_v34 = vunpack.c.h.bf16 %v10722_v54  ;;  %v1068_v54 = vunpack.c.h.bf16 %v10734_v25  ;;  %v1052_v25 = vunpack.c.h.bf16 %v10749_v63 }
 0x1f2   :  { %2877 = vmatpush.msra.mxu1 %v1195_v60  ;;  %2894 = vmatpush.msra.mxu2 %v1547_v30  ;;  %v11009_v60 = vld [vmem:[%s14275_s3 + $0x928] sm:$0xff]  ;;  %v1851_v17 = vunpack.c.l.bf16 %v11002_v5 }
 0x1f3   :  { %2911 = vmatpush.msra.mxu0 %v1899_v19  ;;  %2934 = vmatpush.msrb.mxu3 %v1132_v24  ;;  %v11014_v30 = vld [vmem:[%s14275_s3 + $0xea8] sm:$0xff]  ;;  %v1499_v19 = vunpack.c.l.bf16 %v10997_v42  ;;  %v1388_v24 = vunpack.c.h.bf16 %v10727_v45  ;;  %v1372_v45 = vunpack.c.h.bf16 %v10739_v55  ;;  %v1356_v55 = vunpack.c.h.bf16 %v10754_v29 }
 0x1f4   :  { %2878 = vmatpush.msra.mxu1 %v1179_v48  ;;  %2895 = vmatpush.msra.mxu2 %v1531_v23  ;;  %v11024_v48 = vld [vmem:[%s14275_s3 + $0x8e8] sm:$0xff]  ;;  %v1036_v29 = vunpack.c.h.bf16 %v10765_v37 }
 0x1f5   :  { %2912 = vmatpush.msra.mxu0 %v1883_v7  ;;  %2935 = vmatpush.msrb.mxu3 %v1116_v18  ;;  %v11029_v23 = vld [vmem:[%s14275_s3 + $0xe68] sm:$0xff]  ;;  %v1483_v7 = vunpack.c.l.bf16 %v11009_v60 }
 0x1f6   :  { %2879 = vmatpush.msra.mxu1 %v1163_v61  ;;  %2896 = vmatpush.msra.mxu2 %v1515_v59  ;;  %v11040_v18 = vld [vmem:[%s14275_s3 + $0x8a8] sm:$0xff]  ;;  %v1467_v61 = vunpack.c.l.bf16 %v11024_v48  ;;  %v1819_v59 = vunpack.c.l.bf16 %v11029_v23 }
 0x1f7   :  { %2880 = vmatmul.f32.vlgmr.msra.gmra.mxu1 %v8859_v9  ;;  %2913 = vmatpush.msra.mxu0 %v1867_v35  ;;  %v1835_v35 = vunpack.c.l.bf16 %v11014_v30 }
 0x1f8   :  { %2936 = vmatpush.msrb.mxu3 %v1100_v50  ;;  %2956 = vmatpush.msrb.mxu1 %v1404_v56  ;;  %v11047_v50 = vld [vmem:[%s14275_s3 + $0xe28] sm:$0xff] }
 0x1f9   :  { %2837 = vmatmul.f32.gmra.mxu0 %v9145_v39  ;;  %2860 = vmatmul.f32.gmra.mxu3 %v8892_v26  ;;  %14347 = vst [vmem:[#allocation7_spill] sm:$0xff] %v11047_v50  ;;  %v11054_v56 = vld [vmem:[%s14275_s3 + $0x868] sm:$0xff]  ;;  %v1803_v63 = vunpack.c.l.bf16 %v11047_v50  ;;  %v1020_v50 = vunpack.c.h.bf16 %v10778_v33  ;;  %v1004_v33 = vunpack.c.h.bf16 %v10792_v3  ;;  %v1292_v3 = vunpack.c.h.bf16 %v10819_v11 }
 0x1fa   :  { %2897 = vmatpush.msra.mxu2 %v1499_v19  ;;  %2914 = vmatpush.msra.mxu0 %v1851_v17  ;;  %v1451_v19 = vunpack.c.l.bf16 %v11040_v18  ;;  %v11060_v17 = vld [vmem:[%s14275_s3 + $0xde8] sm:$0xff]  ;;  %v1276_v11 = vunpack.c.h.bf16 %v10837_v27 }
 0x1fb   :  { %2937 = vmatpush.msrb.mxu3 %v1084_v34  ;;  %2957 = vmatpush.msrb.mxu1 %v1388_v24  ;;  %v11067_v34 = vld [vmem:[%s14275_s3 + $0x828] sm:$0xff]  ;;  %v11069_v24 = vpop.f32.mrf.mxu3  ;;  %v1787_v37 = vunpack.c.l.bf16 %v11060_v17 }
 0x1fc   :  { %2898 = vmatpush.msra.mxu2 %v1483_v7  ;;  %2915 = vmatpush.msra.mxu0 %v1835_v35  ;;  %14348 = vst [vmem:[#allocation10_spill] sm:$0xff] %v11069_v24  ;;  %v1340_v7 = vunpack.c.h.bf16 %v10772_v47  ;;  %v1435_v35 = vunpack.c.l.bf16 %v11054_v56  ;;  %v1324_v47 = vunpack.c.h.bf16 %v10785_v58  ;;  %v11090_v24 = vpop.f32.mrf.mxu2  ;;  %v11098_v58 = vld [vmem:[%s14275_s3 + $0xd28] sm:$0xff] }
 0x1fd   :  { %2938 = vmatpush.msrb.mxu3 %v1068_v54  ;;  %2958 = vmatpush.msrb.mxu1 %v1372_v45  ;;  %v11076_v54 = vld [vmem:[%s14275_s3 + $0xda8] sm:$0xff]  ;;  %v11078_v45 = vpop.f32.mrf.mxu1  ;;  %14350 = vst [vmem:[#allocation12_spill] sm:$0xff] %v11090_v24 }
 0x1fe   :  { %2899 = vmatpush.msra.mxu2 %v1467_v61  ;;  %2916 = vmatpush.msra.mxu0 %v1819_v59  ;;  %14349 = vst [vmem:[#allocation11_spill] sm:$0xff] %v11078_v45  ;;  %v1419_v61 = vunpack.c.l.bf16 %v11067_v34  ;;  %v11088_v59 = vld [vmem:[%s14275_s3 + $0xd68] sm:$0xff] }
 0x1ff   :  { %2939 = vmatpush.msrb.mxu3 %v1052_v25  ;;  %2959 = vmatpush.msrb.mxu1 %v1356_v55  ;;  %v1771_v25 = vunpack.c.l.bf16 %v11076_v54  ;;  %v1308_v55 = vunpack.c.h.bf16 %v10799_v1  ;;  %v11107_v1 = vld [vmem:[%s14275_s3 + $0xce8] sm:$0xff] }
 0x200   :  { %2883 = vmatmul.f32.gmra.mxu1 %v8913_v51  ;;  %2900 = vmatpush.msra.mxu2 %v1451_v19  ;;  %v1660_v19 = vunpack.c.h.bf16 %v10807_v10  ;;  %v1739_v10 = vunpack.c.l.bf16 %v11098_v58  ;;  %v11130_v27 = vld [vmem:[%s14275_s3 + $0xc68] sm:$0xff] }
 0x201   :  { %2917 = vmatpush.msra.mxu0 %v1803_v63  ;;  %2940 = vmatpush.msrb.mxu3 %v1036_v29  ;;  %v1755_v63 = vunpack.c.l.bf16 %v11088_v59  ;;  %v988_v29 = vunpack.c.h.bf16 %v10814_v15  ;;  %v972_v15 = vunpack.c.h.bf16 %v10832_v31  ;;  %v1260_v31 = vunpack.c.h.bf16 %v10856_v6  ;;  %v11141_v6 = vld [vmem:[%s14275_s3 + $0xc28] sm:$0xff] }
 0x202   :  { %2960 = vmatpush.msrb.mxu1 %v1340_v7  ;;  %2901 = vmatpush.msra.mxu2 %v1435_v35  ;;  %v11109_v7 = vpop.f32.mrf.mxu0  ;;  %v11119_v35 = vld [vmem:[%s14275_s3 + $0xca8] sm:$0xff] }
 0x203   :  { %2918 = vmatpush.msra.mxu0 %v1787_v37  ;;  %2941 = vmatpush.msrb.mxu3 %v1020_v50  ;;  %14351 = vst [vmem:[#allocation13_spill] sm:$0xff] %v11109_v7  ;;  %v1644_v50 = vunpack.c.h.bf16 %v10825_v62  ;;  %v1628_v37 = vunpack.c.h.bf16 %v10844_v12  ;;  %v1723_v62 = vunpack.c.l.bf16 %v11107_v1  ;;  %v1612_v12 = vunpack.c.h.bf16 %v10864_v16 }
 0x204   :  { %2961 = vmatpush.msrb.mxu1 %v1324_v47  ;;  %2902 = vmatpush.msra.mxu2 %v1419_v61  ;;  %v11123_v47 = vpop.f32.mrf.mxu3  ;;  %v956_v61 = vunpack.c.h.bf16 %v10851_v53  ;;  %v1244_v53 = vunpack.c.h.bf16 %v10876_v8  ;;  %v1596_v16 = vunpack.c.h.bf16 %v10885_v20  ;;  %v1675_v8 = vunpack.c.l.bf16 %v11141_v6 }
 0x205   :  { %2919 = vmatpush.msra.mxu0 %v1771_v25  ;;  %2942 = vmatpush.msrb.mxu3 %v1004_v33  ;;  %14352 = vst [vmem:[#allocation14_spill] sm:$0xff] %v11123_v47  ;;  %v11132_v25 = vpop.f32.mrf.mxu1  ;;  %v1707_v33 = vunpack.c.l.bf16 %v11119_v35  ;;  %v1724_v7 = vunpack.c.h.bf16 %v11107_v1  ;;  %v11391_v1 = vld [vmem:[%s14275_s3 + $0x570] sm:$0xff]  ;;  %v1676_v47 = vunpack.c.h.bf16 %v11141_v6 }
 0x206   :  { %2962 = vmatpush.msrb.mxu1 %v1308_v55  ;;  %2903 = vmatmul.f32.vlgmr.msra.gmra.mxu2 %v8976_v52  ;;  %14353 = vst [vmem:[#allocation15_spill] sm:$0xff] %v11132_v25  ;;  %v940_v55 = vunpack.c.h.bf16 %v10871_v0  ;;  %v1228_v0 = vunpack.c.h.bf16 %v10897_v14  ;;  %v1564_v14 = vunpack.c.h.bf16 %v10922_v49  ;;  %v11176_v49 = vld [vmem:[%s14275_s3 + $0x370] sm:$0xff]  ;;  %v1692_v25 = vunpack.c.h.bf16 %v11130_v27 }
 0x207   :  { %2979 = vmatpush.msrb.mxu2 %v1660_v19  ;;  %2920 = vmatpush.msra.mxu0 %v1755_v63  ;;  %v11143_v19 = vpop.f32.mrf.mxu2  ;;  %v1691_v63 = vunpack.c.l.bf16 %v11130_v27 }
 0x208   :  { %2943 = vmatpush.msrb.mxu3 %v988_v29  ;;  %2963 = vmatpush.msrb.mxu1 %v1292_v3  ;;  %14354 = vst [vmem:[#allocation16_spill] sm:$0xff] %v11143_v19  ;;  %v924_v29 = vunpack.c.h.bf16 %v10890_v4  ;;  %v1580_v3 = vunpack.c.h.bf16 %v10903_v41  ;;  %v1212_v4 = vunpack.c.h.bf16 %v10915_v36  ;;  %v11165_v41 = vld [vmem:[%s14275_s3 + $0x3b0] sm:$0xff]  ;;  %v1196_v36 = vunpack.c.h.bf16 %v10936_v28 }
 0x209   :  { %2980 = vmatpush.msrb.mxu2 %v1644_v50  ;;  %2921 = vmatpush.msra.mxu0 %v1739_v10  ;;  %v908_v50 = vunpack.c.h.bf16 %v10908_v40  ;;  %v11155_v10 = vld [vmem:[%s14275_s3 + $0x3f0] sm:$0xff]  ;;  %v1916_v40 = vunpack.c.h.bf16 %v10929_v57  ;;  %v1900_v57 = vunpack.c.h.bf16 %v10947_v2 }
 0x20a   :  { %2944 = vmatpush.msrb.mxu3 %v972_v15  ;;  %2964 = vmatpush.msrb.mxu1 %v1276_v11  ;;  %v11157_v20 = vpop.f32.mrf.mxu0  ;;  %v1149_v15 = vunpack.c.l.bf16 %v11155_v10  ;;  %v14358_v28 = vld [vmem:[#allocation8_spill] sm:$0xff] }
 0x20b   :  { %2981 = vmatpush.msrb.mxu2 %v1628_v37  ;;  %2922 = vmatpush.msra.mxu0 %v1723_v62  ;;  %14355 = vst [vmem:[#allocation17_spill] sm:$0xff] %v11157_v20  ;;  %v1548_v37 = vunpack.c.h.bf16 %v10941_v32  ;;  %v14359_v32 = vld [vmem:[#allocation6_spill] sm:$0xff]  ;;  %v11193_v2 = vld [vmem:[%s14275_s3 + $0x330] sm:$0xff] }
 0x20c   :  { %2945 = vmatpush.msrb.mxu3 %v956_v61  ;;  %2965 = vmatpush.msrb.mxu1 %v1260_v31  ;;  %v11169_v11 = vpop.f32.mrf.mxu3  ;;  %v1133_v61 = vunpack.c.l.bf16 %v11165_v41  ;;  %v1180_v31 = vunpack.c.h.bf16 %v14358_v28  ;;  %v11254_v28 = vld [vmem:[%s14275_s3 + $0x730] sm:$0xff] }
 0x20d   :  { %2982 = vmatpush.msrb.mxu2 %v1612_v12  ;;  %2923 = vmatpush.msra.mxu0 %v1707_v33  ;;  %14356 = vst [vmem:[#allocation18_spill] sm:$0xff] %v11169_v11  ;;  %v11178_v62 = vpop.f32.mrf.mxu1  ;;  %v1532_v12 = vunpack.c.h.bf16 %v14359_v32  ;;  %v1468_v32 = vunpack.c.h.bf16 %v11024_v48  ;;  %v1357_v48 = vunpack.c.l.bf16 %v11254_v28  ;;  %v11377_v20 = vld [vmem:[%s14275_s3 + $0xb30] sm:$0xff] }
 0x20e   :  { %2946 = vmatpush.msrb.mxu3 %v940_v55  ;;  %2966 = vmatpush.msrb.mxu1 %v1244_v53  ;;  %14357 = vst [vmem:[#allocation19_spill] sm:$0xff] %v11178_v62  ;;  %v1884_v55 = vunpack.c.h.bf16 %v10966_v46  ;;  %v1117_v53 = vunpack.c.l.bf16 %v11176_v49  ;;  %v1868_v46 = vunpack.c.h.bf16 %v10987_v21  ;;  %v1500_v21 = vunpack.c.h.bf16 %v10997_v42  ;;  %v11518_v62 = vld [vmem:[%s14275_s3 + $0x430] sm:$0xff] }
 0x20f   :  { %2906 = vmatmul.f32.gmra.mxu2 %v9050_v13  ;;  %2924 = vmatpush.msra.mxu0 %v1691_v63  ;;  %v11186_v33 = vpop.f32.mrf.mxu2  ;;  %v11198_v63 = vld [vmem:[%s14275_s3 + $0x7f0] sm:$0xff] }
 0x210   :  { %2983 = vmatpush.msrb.mxu2 %v1596_v16  ;;  %2947 = vmatpush.msrb.mxu3 %v924_v29  ;;  %14360 = vst [vmem:[#allocation8_spill] sm:$0xff] %v11186_v33  ;;  %v1164_v16 = vunpack.c.h.bf16 %v10974_v44  ;;  %v1516_v29 = vunpack.c.h.bf16 %v10979_v22  ;;  %v11213_v44 = vld [vmem:[%s14275_s3 + $0x7b0] sm:$0xff] }
 0x211   :  { %2967 = vmatpush.msrb.mxu1 %v1228_v0  ;;  %2925 = vmatpush.msra.mxu0 %v1675_v8  ;;  %v1101_v0 = vunpack.c.l.bf16 %v11193_v2  ;;  %v1405_v8 = vunpack.c.l.bf16 %v11198_v63 }
 0x212   :  { %2984 = vmatpush.msrb.mxu2 %v1580_v3  ;;  %2948 = vmatpush.msrb.mxu3 %v908_v50  ;;  %v11208_v3 = vld [vmem:[%s14275_s3 + $0x2f0] sm:$0xff]  ;;  %v11215_v22 = vpop.f32.mrf.mxu0  ;;  %v1852_v50 = vunpack.c.h.bf16 %v11002_v5  ;;  %v1484_v5 = vunpack.c.h.bf16 %v11009_v60 }
 0x213   :  { %2968 = vmatpush.msrb.mxu1 %v1212_v4  ;;  %2926 = vmatmul.f32.vlgmr.msra.gmra.mxu0 %v9084_v43  ;;  %14361 = vst [vmem:[#allocation6_spill] sm:$0xff] %v11215_v22  ;;  %v11222_v4 = vld [vmem:[%s14275_s3 + $0x2b0] sm:$0xff] }
 0x214   :  { %2949 = vmatmul.f32.vlgmr.msrb.gmra.mxu3 %v8829_v38  ;;  %2985 = vmatpush.msrb.mxu2 %v1564_v14  ;;  %v1085_v14 = vunpack.c.l.bf16 %v11208_v3  ;;  %v11232_v42 = vpop.f32.mrf.mxu3  ;;  %v1069_v60 = vunpack.c.l.bf16 %v11222_v4  ;;  %v11450_v22 = vld [vmem:[%s14275_s3 + $0xa70] sm:$0xff] }
 0x215   :  { %3002 = vmatpush.msrb.mxu0 %v1916_v40  ;;  %3025 = vmatpush.msra.mxu3 %v1149_v15  ;;  %v1389_v40 = vunpack.c.l.bf16 %v11213_v44  ;;  %v11230_v15 = vld [vmem:[%s14275_s3 + $0x770] sm:$0xff]  ;;  %14362 = vst [vmem:[#allocation20_spill] sm:$0xff] %v11232_v42 }
 0x216   :  { %2969 = vmatpush.msrb.mxu1 %v1196_v36  ;;  %2986 = vmatpush.msrb.mxu2 %v1548_v37  ;;  %v11238_v36 = vld [vmem:[%s14275_s3 + $0x270] sm:$0xff]  ;;  %v11240_v37 = vpop.f32.mrf.mxu1 }
 0x217   :  { %3003 = vmatpush.msrb.mxu0 %v1900_v57  ;;  %3026 = vmatpush.msra.mxu3 %v1133_v61  ;;  %14363 = vst [vmem:[#allocation21_spill] sm:$0xff] %v11240_v37  ;;  %v11247_v57 = vld [vmem:[%s14276_s4] sm:$0xff]  ;;  %v1836_v61 = vunpack.c.h.bf16 %v11014_v30  ;;  %v1053_v30 = vunpack.c.l.bf16 %v11238_v36  ;;  %v11527_v42 = vld [vmem:[%s14275_s3 + $0x9b0] sm:$0xff] }
 0x218   :  { %2970 = vmatpush.msrb.mxu1 %v1180_v31  ;;  %2987 = vmatpush.msrb.mxu2 %v1532_v12  ;;  %v1373_v31 = vunpack.c.l.bf16 %v11230_v15  ;;  %v11258_v12 = vpop.f32.mrf.mxu2 }
 0x219   :  { %3004 = vmatpush.msrb.mxu0 %v1884_v55  ;;  %3027 = vmatpush.msra.mxu3 %v1117_v53  ;;  %14364 = vst [vmem:[#allocation22_spill] sm:$0xff] %v11258_v12  ;;  %v1820_v55 = vunpack.c.h.bf16 %v11029_v23  ;;  %v11265_v53 = vld [vmem:[%s14275_s3 + $0x230] sm:$0xff]  ;;  %v1452_v23 = vunpack.c.h.bf16 %v11040_v18  ;;  %v1150_v12 = vunpack.c.h.bf16 %v11155_v10 }
 0x21a   :  { %2971 = vmatpush.msrb.mxu1 %v1164_v16  ;;  %2988 = vmatpush.msrb.mxu2 %v1516_v29  ;;  %v11270_v16 = vld [vmem:[%s14275_s3 + $0x6f0] sm:$0xff] }
 0x21b   :  { %2972 = vmatmul.f32.vlgmr.msrb.gmra.mxu1 %v8859_v9  ;;  %3005 = vmatpush.msrb.mxu0 %v1868_v46  ;;  %v14365_v29 = vld [vmem:[#allocation7_spill] sm:$0xff]  ;;  %v1341_v18 = vunpack.c.l.bf16 %v11270_v16 }
 0x21c   :  { %3028 = vmatpush.msra.mxu3 %v1101_v0  ;;  %3048 = vmatpush.msra.mxu1 %v1405_v8  ;;  %v1804_v46 = vunpack.c.h.bf16 %v14365_v29  ;;  %v11280_v0 = vld [vmem:[%s14275_s3 + $0x1f0] sm:$0xff] }
 0x21d   :  { %2929 = vmatmul.f32.gmra.mxu0 %v9145_v39  ;;  %2952 = vmatmul.f32.gmra.mxu3 %v8892_v26  ;;  %v11285_v8 = vld [vmem:[%s14275_s3 + $0x6b0] sm:$0xff] }
 0x21e   :  { %2989 = vmatpush.msrb.mxu2 %v1500_v21  ;;  %3006 = vmatpush.msrb.mxu0 %v1852_v50  ;;  %v1037_v21 = vunpack.c.l.bf16 %v11265_v53  ;;  %v11289_v50 = vpop.f32.mrf.mxu0  ;;  %v11487_v10 = vld [vmem:[%s14275_s3 + $0x470] sm:$0xff] }
 0x21f   :  { %3029 = vmatpush.msra.mxu3 %v1085_v14  ;;  %3049 = vmatpush.msra.mxu1 %v1389_v40  ;;  %14366 = vst [vmem:[#allocation7_spill] sm:$0xff] %v11289_v50  ;;  %v1436_v14 = vunpack.c.h.bf16 %v11054_v56  ;;  %v1788_v40 = vunpack.c.h.bf16 %v11060_v17  ;;  %v1420_v56 = vunpack.c.h.bf16 %v11067_v34  ;;  %v11310_v17 = vld [vmem:[%s14275_s3 + $0xbf0] sm:$0xff]  ;;  %v1181_v37 = vunpack.c.l.bf16 %v11487_v10 }
 0x220   :  { %3397 = vrot.lane.b32.xlu1 %v11247_v57, %s7900_s0  ;;  %2990 = vmatpush.msrb.mxu2 %v1484_v5  ;;  %v11296_v5 = vld [vmem:[%s14275_s3 + $0x1b0] sm:$0xff]  ;;  %14377 = vst [vmem:[#allocation33_spill] sm:$0xff] %v11487_v10  ;;  %v1102_v10 = vunpack.c.h.bf16 %v11193_v2 }
 0x221   :  { %3007 = vmatpush.msrb.mxu0 %v1836_v61  ;;  %3030 = vmatpush.msra.mxu3 %v1069_v60  ;;  %v1021_v61 = vunpack.c.l.bf16 %v11280_v0  ;;  %v1325_v60 = vunpack.c.l.bf16 %v11285_v8  ;;  %v11324_v34 = vld [vmem:[%s14275_s3 + $0x630] sm:$0xff] }
 0x222   :  { %3050 = vmatpush.msra.mxu1 %v1373_v31  ;;  %2991 = vmatpush.msrb.mxu2 %v1468_v32  ;;  %v11303_v31 = vld [vmem:[%s14275_s3 + $0x670] sm:$0xff]  ;;  %v11312_v32 = vpop.f32.mrf.mxu3 }
 0x223   :  { %3008 = vmatpush.msrb.mxu0 %v1820_v55  ;;  %3031 = vmatpush.msra.mxu3 %v1053_v30  ;;  %14367 = vst [vmem:[#allocation23_spill] sm:$0xff] %v11312_v32  ;;  %v1772_v55 = vunpack.c.h.bf16 %v11076_v54  ;;  %v1005_v30 = vunpack.c.l.bf16 %v11296_v5  ;;  %v1309_v29 = vunpack.c.l.bf16 %v11303_v31  ;;  %v11332_v54 = vld [vmem:[%s14275_s3 + $0xbb0] sm:$0xff] }
 0x224   :  { %3051 = vmatpush.msra.mxu1 %v1357_v48  ;;  %2992 = vmatpush.msrb.mxu2 %v1452_v23  ;;  %v11319_v48 = vld [vmem:[%s14275_s3 + $0x170] sm:$0xff]  ;;  %v11326_v23 = vpop.f32.mrf.mxu1 }
 0x225   :  { %2975 = vmatmul.f32.gmra.mxu1 %v8913_v51  ;;  %3009 = vmatpush.msrb.mxu0 %v1804_v46  ;;  %14368 = vst [vmem:[#allocation24_spill] sm:$0xff] %v11326_v23  ;;  %v1661_v46 = vunpack.c.l.bf16 %v11310_v17  ;;  %v1645_v23 = vunpack.c.l.bf16 %v11332_v54  ;;  %v11362_v32 = vld [vmem:[%s14275_s3 + $0xf0] sm:$0xff] }
 0x226   :  { %3032 = vmatpush.msra.mxu3 %v1037_v21  ;;  %3052 = vmatpush.msra.mxu1 %v1341_v18  ;;  %v1756_v21 = vunpack.c.h.bf16 %v11088_v59  ;;  %v11339_v18 = vld [vmem:[%s14275_s3 + $0x130] sm:$0xff]  ;;  %v1293_v59 = vunpack.c.l.bf16 %v11324_v34  ;;  %v11379_v24 = vpop.f32.mrf.mxu0 }
 0x227   :  { %2993 = vmatpush.msrb.mxu2 %v1436_v14  ;;  %3010 = vmatpush.msrb.mxu0 %v1788_v40  ;;  %v11344_v14 = vld [vmem:[%s14275_s3 + $0x5f0] sm:$0xff]  ;;  %v11346_v40 = vpop.f32.mrf.mxu2  ;;  %14370 = vst [vmem:[#allocation26_spill] sm:$0xff] %v11379_v24 }
 0x228   :  { %3033 = vmatpush.msra.mxu3 %v1021_v61  ;;  %3053 = vmatpush.msra.mxu1 %v1325_v60  ;;  %14369 = vst [vmem:[#allocation25_spill] sm:$0xff] %v11346_v40  ;;  %v989_v61 = vunpack.c.l.bf16 %v11319_v48  ;;  %v11355_v60 = vld [vmem:[%s14275_s3 + $0xb70] sm:$0xff]  ;;  %v1740_v40 = vunpack.c.h.bf16 %v11098_v58 }
 0x229   :  { %3480 = vrot.lane.b32.xlu1 %v11247_v57, %s7901_s24  ;;  %2994 = vmatpush.msrb.mxu2 %v1420_v56  ;;  %v11367_v56 = vld [vmem:[%s14275_s3 + $0x5b0] sm:$0xff]  ;;  %v1629_v58 = vunpack.c.l.bf16 %v11355_v60 }
 0x22a   :  { %3011 = vmatpush.msrb.mxu0 %v1772_v55  ;;  %3034 = vmatpush.msra.mxu3 %v1005_v30  ;;  %v973_v55 = vunpack.c.l.bf16 %v11339_v18  ;;  %v1277_v30 = vunpack.c.l.bf16 %v11344_v14  ;;  %v1261_v19 = vunpack.c.l.bf16 %v11367_v56  ;;  %v11403_v24 = vld [vmem:[%s14275_s3 + $0xaf0] sm:$0xff] }
 0x22b   :  { %3054 = vmatpush.msra.mxu1 %v1309_v29  ;;  %2995 = vmatmul.f32.vlgmr.msrb.gmra.mxu2 %v8976_v52  ;;  %v957_v29 = vunpack.c.l.bf16 %v11362_v32 }
 0x22c   :  { %3071 = vmatpush.msra.mxu2 %v1661_v46  ;;  %3012 = vmatpush.msrb.mxu0 %v1756_v21  ;;  %v11386_v46 = vld [vmem:[%s14275_s3 + $0xb0] sm:$0xff]  ;;  %v11396_v21 = vld [vmem:[%s14276_s4 + $0x20] sm:$0xff]  ;;  %v11419_v45 = vpop.f32.mrf.mxu1 }
 0x22d   :  { %3035 = vmatpush.msra.mxu3 %v989_v61  ;;  %3055 = vmatpush.msra.mxu1 %v1293_v59  ;;  %v1613_v61 = vunpack.c.l.bf16 %v11377_v20  ;;  %v1708_v59 = vunpack.c.h.bf16 %v11119_v35  ;;  %v11417_v35 = vld [vmem:[%s14275_s3 + $0x530] sm:$0xff]  ;;  %14372 = vst [vmem:[#allocation28_spill] sm:$0xff] %v11419_v45 }
 0x22e   :  { %3072 = vmatpush.msra.mxu2 %v1645_v23  ;;  %3013 = vmatpush.msrb.mxu0 %v1740_v40  ;;  %v11408_v23 = vld [vmem:[%s14275_s3 + $0x70] sm:$0xff]  ;;  %v11410_v40 = vpop.f32.mrf.mxu3 }
 0x22f   :  { %3036 = vmatpush.msra.mxu3 %v973_v55  ;;  %3056 = vmatpush.msra.mxu1 %v1277_v30  ;;  %14371 = vst [vmem:[#allocation27_spill] sm:$0xff] %v11410_v40  ;;  %v941_v55 = vunpack.c.l.bf16 %v11386_v46  ;;  %v1245_v30 = vunpack.c.l.bf16 %v11391_v1  ;;  %v925_v27 = vunpack.c.l.bf16 %v11408_v23  ;;  %v11443_v45 = vpop.f32.mrf.mxu2  ;;  %v1229_v40 = vunpack.c.l.bf16 %v11417_v35 }
 0x230   :  { %3073 = vmatpush.msra.mxu2 %v1629_v58  ;;  %3014 = vmatpush.msrb.mxu0 %v1724_v7  ;;  %v11425_v58 = vld [vmem:[%s14275_s3 + $0xab0] sm:$0xff]  ;;  %14373 = vst [vmem:[#allocation29_spill] sm:$0xff] %v11443_v45 }
 0x231   :  { %3037 = vmatpush.msra.mxu3 %v957_v29  ;;  %3057 = vmatpush.msra.mxu1 %v1261_v19  ;;  %v11430_v7 = vld [vmem:[%s14275_s3 + $0x30] sm:$0xff]  ;;  %v1597_v19 = vunpack.c.l.bf16 %v11403_v24  ;;  %v1581_v50 = vunpack.c.l.bf16 %v11425_v58 }
 0x232   :  { %3401 = vrot.lane.b32.xlu1 %v11396_v21, %s7900_s0  ;;  %3529 = vrot.lane.b32.xlu0 %v11247_v57, %s7902_s15  ;;  %v11441_v29 = vld [vmem:[%s14275_s3 + $0x4f0] sm:$0xff]  ;;  %v909_v33 = vunpack.c.l.bf16 %v11430_v7 }
 0x233   :  { %3074 = vmatpush.msra.mxu2 %v1613_v61  ;;  %3015 = vmatpush.msrb.mxu0 %v1708_v59  ;;  %v11457_v61 = vld [vmem:[%s14275_s3 + $0xff0] sm:$0xff]  ;;  %v1213_v6 = vunpack.c.l.bf16 %v11441_v29 }
 0x234   :  { %3038 = vmatpush.msra.mxu3 %v941_v55  ;;  %3058 = vmatpush.msra.mxu1 %v1245_v30  ;;  %v11464_v59 = vld [vmem:[%s14275_s3 + $0x4b0] sm:$0xff]  ;;  %v1565_v55 = vunpack.c.l.bf16 %v11450_v22  ;;  %v11467_v30 = vpop.f32.mrf.mxu0  ;;  %v1917_v45 = vunpack.c.l.bf16 %v11457_v61 }
 0x235   :  { %2998 = vmatmul.f32.gmra.mxu2 %v9050_v13  ;;  %3016 = vmatpush.msrb.mxu0 %v1692_v25  ;;  %14374 = vst [vmem:[#allocation30_spill] sm:$0xff] %v11467_v30  ;;  %v11474_v25 = vld [vmem:[%s14275_s3 + $0xa30] sm:$0xff] }
 0x236   :  { %3075 = vmatpush.msra.mxu2 %v1597_v19  ;;  %3039 = vmatpush.msra.mxu3 %v925_v27  ;;  %v11479_v19 = vld [vmem:[%s14275_s3 + $0xfb0] sm:$0xff]  ;;  %v11481_v27 = vpop.f32.mrf.mxu3 }
 0x237   :  { %3059 = vmatpush.msra.mxu1 %v1229_v40  ;;  %3017 = vmatpush.msrb.mxu0 %v1676_v47  ;;  %14375 = vst [vmem:[#allocation31_spill] sm:$0xff] %v11479_v19  ;;  %v1197_v47 = vunpack.c.l.bf16 %v11464_v59  ;;  %v11489_v40 = vpop.f32.mrf.mxu1  ;;  %v11495_v30 = vld [vmem:[%s14276_s4 + $0x10] sm:$0xff]  ;;  %v11520_v11 = vpop.f32.mrf.mxu2 }
 0x238   :  { %14376 = vst [vmem:[#allocation32_spill] sm:$0xff] %v11481_v27  ;;  %3076 = vmatpush.msra.mxu2 %v1581_v50  ;;  %3040 = vmatpush.msra.mxu3 %v909_v33  ;;  %v11500_v33 = vld [vmem:[%s14275_s3 + $0x9f0] sm:$0xff]  ;;  %v1901_v27 = vunpack.c.l.bf16 %v11479_v19 }
 0x239   :  { %14378 = vst [vmem:[#allocation34_spill] sm:$0xff] %v11489_v40  ;;  %3060 = vmatpush.msra.mxu1 %v1213_v6  ;;  %3018 = vmatmul.f32.vlgmr.msrb.gmra.mxu0 %v9084_v43  ;;  %v11505_v50 = vld [vmem:[%s14275_s3 + $0xf70] sm:$0xff]  ;;  %v1549_v40 = vunpack.c.l.bf16 %v11474_v25 }
 0x23a   :  { %14379 = vst [vmem:[#allocation35_spill] sm:$0xff] %v11500_v33  ;;  %3041 = vmatmul.f32.vlgmr.msra.gmra.mxu3 %v8829_v38  ;;  %3077 = vmatpush.msra.mxu2 %v1565_v55  ;;  %v11511_v6 = vld [vmem:[%s14276_s4 + $0x30] sm:$0xff]  ;;  %v1134_v55 = vunpack.c.h.bf16 %v11165_v41  ;;  %v1533_v38 = vunpack.c.l.bf16 %v11500_v33  ;;  %v1885_v19 = vunpack.c.l.bf16 %v11505_v50  ;;  %v1118_v41 = vunpack.c.h.bf16 %v11176_v49 }
 0x23b   :  { %14380 = vst [vmem:[#allocation36_spill] sm:$0xff] %v11505_v50  ;;  %3094 = vmatpush.msra.mxu0 %v1917_v45  ;;  %3117 = vmatpush.msrb.mxu3 %v1150_v12  ;;  %v11536_v45 = vld [vmem:[%s14275_s3 + $0xf30] sm:$0xff]  ;;  %v1165_v12 = vunpack.c.l.bf16 %v11518_v62 }
 0x23c   :  { %14381 = vst [vmem:[#allocation37_spill] sm:$0xff] %v11520_v11  ;;  %3061 = vmatpush.msra.mxu1 %v1197_v47  ;;  %3399 = vrot.lane.b32.xlu2 %v11495_v30, %s7900_s0  ;;  %v1517_v47 = vunpack.c.l.bf16 %v11527_v42  ;;  %v11548_v11 = vld [vmem:[%s14275_s3 + $0x970] sm:$0xff]  ;;  %v11550_v50 = vpop.f32.mrf.mxu0  ;;  %v1869_v33 = vunpack.c.l.bf16 %v11536_v45 }
 0x23d   :  { %3403 = vrot.lane.b32.xlu1 %v11511_v6, %s7900_s0  ;;  %3531 = vrot.lane.b32.xlu0 %v11495_v30, %s7902_s15  ;;  %14382 = vst [vmem:[#allocation38_spill] sm:$0xff] %v11550_v50  ;;  %v11557_v49 = vld [vmem:[%s14275_s3 + $0xef0] sm:$0xff] }
 0x23e   :  { %3078 = vmatpush.msra.mxu2 %v1549_v40  ;;  %3095 = vmatpush.msra.mxu0 %v1901_v27  ;;  %v1406_v27 = vunpack.c.h.bf16 %v11198_v63  ;;  %v1501_v40 = vunpack.c.l.bf16 %v11548_v11  ;;  %v11561_v50 = vpop.f32.mrf.mxu3  ;;  %v1853_v2 = vunpack.c.l.bf16 %v11557_v49  ;;  %v11574_v63 = vld [vmem:[%s14275_s3 + $0xeb0] sm:$0xff] }
 0x23f   :  { %3118 = vmatpush.msrb.mxu3 %v1134_v55  ;;  %3062 = vmatpush.msra.mxu1 %v1181_v37  ;;  %14383 = vst [vmem:[#allocation39_spill] sm:$0xff] %v11561_v50  ;;  %v1086_v37 = vunpack.c.h.bf16 %v11208_v3  ;;  %v1390_v55 = vunpack.c.h.bf16 %v11213_v44  ;;  %v11583_v3 = vld [vmem:[%s14275_s3 + $0x8f0] sm:$0xff] }
 0x240   :  { %3079 = vmatpush.msra.mxu2 %v1533_v38  ;;  %3096 = vmatpush.msra.mxu0 %v1885_v19  ;;  %v11569_v38 = vld [vmem:[%s14275_s3 + $0x930] sm:$0xff]  ;;  %v11576_v19 = vpop.f32.mrf.mxu1  ;;  %14385 = vst [vmem:[#allocation41_spill] sm:$0xff] %v11583_v3 }
 0x241   :  { %3119 = vmatpush.msrb.mxu3 %v1118_v41  ;;  %3063 = vmatpush.msra.mxu1 %v1165_v12  ;;  %14384 = vst [vmem:[#allocation40_spill] sm:$0xff] %v11576_v19  ;;  %v11588_v41 = vld [vmem:[%s14275_s3 + $0xe70] sm:$0xff]  ;;  %v11590_v12 = vpop.f32.mrf.mxu2  ;;  %v1485_v44 = vunpack.c.l.bf16 %v11569_v38 }
 0x242   :  { %3064 = vmatmul.f32.vlgmr.msra.gmra.mxu1 %v8859_v9  ;;  %3080 = vmatpush.msra.mxu2 %v1517_v47  ;;  %14386 = vst [vmem:[#allocation42_spill] sm:$0xff] %v11588_v41  ;;  %v1374_v47 = vunpack.c.h.bf16 %v11230_v15  ;;  %v1358_v15 = vunpack.c.h.bf16 %v11254_v28  ;;  %v11628_v50 = vld [vmem:[%s14275_s3 + $0xdf0] sm:$0xff]  ;;  %v1038_v28 = vunpack.c.h.bf16 %v11265_v53 }
 0x243   :  { %3097 = vmatpush.msra.mxu0 %v1869_v33  ;;  %3120 = vmatpush.msrb.mxu3 %v1102_v10  ;;  %14387 = vst [vmem:[#allocation43_spill] sm:$0xff] %v11590_v12  ;;  %v1837_v10 = vunpack.c.l.bf16 %v11574_v63  ;;  %v1070_v33 = vunpack.c.h.bf16 %v11222_v4  ;;  %v1821_v12 = vunpack.c.l.bf16 %v11588_v41  ;;  %v1054_v4 = vunpack.c.h.bf16 %v11238_v36  ;;  %v11648_v53 = vld [vmem:[%s14275_s3 + $0xdb0] sm:$0xff] }
 0x244   :  { %3140 = vmatpush.msrb.mxu1 %v1406_v27  ;;  %3021 = vmatmul.f32.gmra.mxu0 %v9145_v39  ;;  %v11600_v27 = vld [vmem:[%s14275_s3 + $0x8b0] sm:$0xff] }
 0x245   :  { %3044 = vmatmul.f32.gmra.mxu3 %v8892_v26  ;;  %3081 = vmatpush.msra.mxu2 %v1501_v40  ;;  %v1469_v40 = vunpack.c.l.bf16 %v11583_v3  ;;  %v1453_v19 = vunpack.c.l.bf16 %v11600_v27 }
 0x246   :  { %3098 = vmatpush.msra.mxu0 %v1853_v2  ;;  %3121 = vmatpush.msrb.mxu3 %v1086_v37  ;;  %v11609_v2 = vld [vmem:[%s14275_s3 + $0xe30] sm:$0xff]  ;;  %v11630_v41 = vpop.f32.mrf.mxu3 }
 0x247   :  { %3141 = vmatpush.msrb.mxu1 %v1390_v55  ;;  %3482 = vrot.lane.b32.xlu2 %v11495_v30, %s7901_s24  ;;  %v11620_v37 = vld [vmem:[%s14275_s3 + $0x870] sm:$0xff]  ;;  %v11622_v55 = vpop.f32.mrf.mxu0  ;;  %14389 = vst [vmem:[#allocation45_spill] sm:$0xff] %v11630_v41  ;;  %v1805_v36 = vunpack.c.l.bf16 %v11609_v2  ;;  %v1022_v41 = vunpack.c.h.bf16 %v11280_v0 }
 0x248   :  { %3578 = vrot.lane.b32.xlu1 %v11247_v57, %s7903_s23  ;;  %3533 = vrot.lane.b32.xlu0 %v11396_v21, %s7902_s15  ;;  %14388 = vst [vmem:[#allocation44_spill] sm:$0xff] %v11622_v55  ;;  %v11634_v3 = vpop.f32.mrf.mxu1  ;;  %v1789_v55 = vunpack.c.l.bf16 %v11628_v50  ;;  %v11657_v0 = vld [vmem:[%s14275_s3 + $0xd70] sm:$0xff] }
 0x249   :  { %3082 = vmatpush.msra.mxu2 %v1485_v44  ;;  %3099 = vmatpush.msra.mxu0 %v1837_v10  ;;  %14390 = vst [vmem:[#allocation46_spill] sm:$0xff] %v11634_v3  ;;  %v1342_v44 = vunpack.c.h.bf16 %v11270_v16  ;;  %v1437_v10 = vunpack.c.l.bf16 %v11620_v37  ;;  %v1326_v16 = vunpack.c.h.bf16 %v11285_v8  ;;  %v11666_v8 = vld [vmem:[%s14275_s3 + $0xd30] sm:$0xff] }
 0x24a   :  { %3122 = vmatpush.msrb.mxu3 %v1070_v33  ;;  %3142 = vmatpush.msrb.mxu1 %v1374_v47  ;;  %v11643_v33 = vld [vmem:[%s14275_s3 + $0x830] sm:$0xff] }
 0x24b   :  { %3083 = vmatpush.msra.mxu2 %v1469_v40  ;;  %3100 = vmatpush.msra.mxu0 %v1821_v12  ;;  %v11650_v12 = vpop.f32.mrf.mxu2  ;;  %v1421_v47 = vunpack.c.l.bf16 %v11643_v33  ;;  %v1773_v40 = vunpack.c.l.bf16 %v11648_v53 }
 0x24c   :  { %3123 = vmatpush.msrb.mxu3 %v1054_v4  ;;  %3143 = vmatpush.msrb.mxu1 %v1358_v15  ;;  %14391 = vst [vmem:[#allocation47_spill] sm:$0xff] %v11650_v12  ;;  %v1006_v4 = vunpack.c.h.bf16 %v11296_v5  ;;  %v1662_v5 = vunpack.c.h.bf16 %v11310_v17  ;;  %v974_v17 = vunpack.c.h.bf16 %v11339_v18 }
 0x24d   :  { %3067 = vmatmul.f32.gmra.mxu1 %v8913_v51  ;;  %3084 = vmatpush.msra.mxu2 %v1453_v19  ;;  %v1310_v19 = vunpack.c.h.bf16 %v11303_v31  ;;  %v990_v31 = vunpack.c.h.bf16 %v11319_v48 }
 0x24e   :  { %3101 = vmatpush.msra.mxu0 %v1805_v36  ;;  %3124 = vmatpush.msrb.mxu3 %v1038_v28  ;;  %v1757_v36 = vunpack.c.l.bf16 %v11657_v0  ;;  %v1741_v28 = vunpack.c.l.bf16 %v11666_v8 }
 0x24f   :  { %3144 = vmatpush.msrb.mxu1 %v1342_v44  ;;  %3085 = vmatpush.msra.mxu2 %v1437_v10  ;;  %v11668_v15 = vpop.f32.mrf.mxu0  ;;  %v11686_v44 = vpop.f32.mrf.mxu3  ;;  %v1646_v10 = vunpack.c.h.bf16 %v11332_v54  ;;  %v11700_v54 = vld [vmem:[%s14275_s3 + $0xcb0] sm:$0xff] }
 0x250   :  { %3102 = vmatpush.msra.mxu0 %v1789_v55  ;;  %3125 = vmatpush.msrb.mxu3 %v1022_v41  ;;  %14392 = vst [vmem:[#allocation48_spill] sm:$0xff] %v11668_v15  ;;  %v11682_v41 = vld [vmem:[%s14275_s3 + $0xcf0] sm:$0xff]  ;;  %v1294_v55 = vunpack.c.h.bf16 %v11324_v34  ;;  %v11690_v48 = vpop.f32.mrf.mxu1  ;;  %v1630_v34 = vunpack.c.h.bf16 %v11355_v60 }
 0x251   :  { %3145 = vmatpush.msrb.mxu1 %v1326_v16  ;;  %3484 = vrot.lane.b32.xlu2 %v11396_v21, %s7901_s24  ;;  %14393 = vst [vmem:[#allocation49_spill] sm:$0xff] %v11690_v48  ;;  %v1278_v16 = vunpack.c.h.bf16 %v11344_v14  ;;  %v1614_v14 = vunpack.c.h.bf16 %v11377_v20  ;;  %v11709_v60 = vld [vmem:[%s14275_s3 + $0xc70] sm:$0xff] }
 0x252   :  { %3580 = vrot.lane.b32.xlu1 %v11495_v30, %s7903_s23  ;;  %3676 = vrot.lane.b32.xlu0 %v11247_v57, %s7904_s21 }
 0x253   :  { %3086 = vmatpush.msra.mxu2 %v1421_v47  ;;  %3103 = vmatpush.msra.mxu0 %v1773_v40  ;;  %v1725_v47 = vunpack.c.l.bf16 %v11682_v41  ;;  %v958_v40 = vunpack.c.h.bf16 %v11362_v32  ;;  %v11702_v18 = vpop.f32.mrf.mxu2  ;;  %v1709_v32 = vunpack.c.l.bf16 %v11700_v54 }
 0x254   :  { %3126 = vmatpush.msrb.mxu3 %v1006_v4  ;;  %3146 = vmatpush.msrb.mxu1 %v1310_v19  ;;  %14394 = vst [vmem:[#allocation50_spill] sm:$0xff] %v11702_v18  ;;  %v1262_v4 = vunpack.c.h.bf16 %v11367_v56  ;;  %v942_v19 = vunpack.c.h.bf16 %v11386_v46  ;;  %v11717_v56 = vld [vmem:[%s14275_s3 + $0xc30] sm:$0xff]  ;;  %v1598_v46 = vunpack.c.h.bf16 %v11403_v24  ;;  %v11741_v24 = vld [vmem:[%s14275_s3 + $0x3f8] sm:$0xff] }
 0x255   :  { %3087 = vmatmul.f32.vlgmr.msra.gmra.mxu2 %v8976_v52  ;;  %3104 = vmatpush.msra.mxu0 %v1757_v36  ;;  %v1246_v36 = vunpack.c.h.bf16 %v11391_v1  ;;  %v926_v1 = vunpack.c.h.bf16 %v11408_v23  ;;  %v1152_v18 = vunpack.c.h.bf16 %v11741_v24 }
 0x256   :  { %3163 = vmatpush.msrb.mxu2 %v1662_v5  ;;  %3127 = vmatpush.msrb.mxu3 %v990_v31  ;;  %v1693_v5 = vunpack.c.l.bf16 %v11709_v60 }
 0x257   :  { %3147 = vmatpush.msrb.mxu1 %v1294_v55  ;;  %3105 = vmatpush.msra.mxu0 %v1741_v28  ;;  %v11719_v20 = vpop.f32.mrf.mxu0  ;;  %v11724_v31 = vpop.f32.mrf.mxu3  ;;  %v1230_v28 = vunpack.c.h.bf16 %v11417_v35  ;;  %v1214_v35 = vunpack.c.h.bf16 %v11441_v29  ;;  %v1550_v29 = vunpack.c.h.bf16 %v11474_v25 }
 0x258   :  { %3164 = vmatpush.msrb.mxu2 %v1646_v10  ;;  %3128 = vmatpush.msrb.mxu3 %v974_v17  ;;  %14395 = vst [vmem:[#allocation51_spill] sm:$0xff] %v11719_v20  ;;  %v11730_v55 = vpop.f32.mrf.mxu1  ;;  %v1677_v10 = vunpack.c.l.bf16 %v11717_v56  ;;  %v1582_v17 = vunpack.c.h.bf16 %v11425_v58  ;;  %v11751_v58 = vld [vmem:[%s14275_s3 + $0x3b8] sm:$0xff] }
 0x259   :  { %3148 = vmatpush.msrb.mxu1 %v1278_v16  ;;  %3106 = vmatpush.msra.mxu0 %v1725_v47  ;;  %14396 = vst [vmem:[#allocation52_spill] sm:$0xff] %v11724_v31  ;;  %v910_v16 = vunpack.c.h.bf16 %v11430_v7  ;;  %v1566_v47 = vunpack.c.h.bf16 %v11450_v22  ;;  %v1918_v7 = vunpack.c.h.bf16 %v11457_v61  ;;  %v14400_v22 = vld [vmem:[#allocation31_spill] sm:$0xff]  ;;  %v11766_v61 = vld [vmem:[%s14275_s3 + $0x378] sm:$0xff] }
 0x25a   :  { %3165 = vmatpush.msrb.mxu2 %v1630_v34  ;;  %3129 = vmatpush.msrb.mxu3 %v958_v40  ;;  %14397 = vst [vmem:[#allocation53_spill] sm:$0xff] %v11730_v55  ;;  %v1151_v34 = vunpack.c.l.bf16 %v11741_v24  ;;  %v1198_v40 = vunpack.c.h.bf16 %v11464_v59  ;;  %v14402_v59 = vld [vmem:[#allocation33_spill] sm:$0xff]  ;;  %v1136_v24 = vunpack.c.h.bf16 %v11751_v58 }
 0x25b   :  { %3149 = vmatpush.msrb.mxu1 %v1262_v4  ;;  %3486 = vrot.lane.b32.xlu2 %v11511_v6, %s7901_s24  ;;  %v11743_v23 = vpop.f32.mrf.mxu2  ;;  %v1182_v25 = vunpack.c.h.bf16 %v14402_v59 }
 0x25c   :  { %3166 = vmatpush.msrb.mxu2 %v1614_v14  ;;  %3725 = vrot.lane.b32.xlu1 %v11247_v57, %s7905_s30  ;;  %14398 = vst [vmem:[#allocation54_spill] sm:$0xff] %v11743_v23  ;;  %v1902_v14 = vunpack.c.h.bf16 %v14400_v22  ;;  %v11807_v22 = vld [vmem:[%s14275_s3 + $0x7b8] sm:$0xff] }
 0x25d   :  { %3678 = vrot.lane.b32.xlu0 %v11495_v30, %s7904_s21  ;;  %3107 = vmatpush.msra.mxu0 %v1709_v32  ;;  %v1135_v32 = vunpack.c.l.bf16 %v11751_v58  ;;  %v11980_v23 = vld [vmem:[%s14275_s3 + $0xb8] sm:$0xff] }
 0x25e   :  { %3130 = vmatpush.msrb.mxu3 %v942_v19  ;;  %3150 = vmatpush.msrb.mxu1 %v1246_v36  ;;  %v14401_v19 = vld [vmem:[#allocation9_spill] sm:$0xff] }
 0x25f   :  { %3090 = vmatmul.f32.gmra.mxu2 %v9050_v13  ;;  %3108 = vmatpush.msra.mxu0 %v1693_v5  ;;  %v11757_v4 = vpop.f32.mrf.mxu0  ;;  %v11769_v36 = vpop.f32.mrf.mxu3  ;;  %v14404_v5 = vld [vmem:[#allocation35_spill] sm:$0xff]  ;;  %v12116_v58 = vld [vmem:[%s14275_s3 + $0x9b8] sm:$0xff] }
 0x260   :  { %3167 = vmatpush.msrb.mxu2 %v1598_v46  ;;  %3131 = vmatpush.msrb.mxu3 %v926_v1  ;;  %14399 = vst [vmem:[#allocation55_spill] sm:$0xff] %v11757_v4  ;;  %v1534_v46 = vunpack.c.h.bf16 %v14404_v5  ;;  %v14405_v1 = vld [vmem:[#allocation36_spill] sm:$0xff] }
 0x261   :  { %3151 = vmatpush.msrb.mxu1 %v1230_v28  ;;  %3109 = vmatpush.msra.mxu0 %v1677_v10  ;;  %14403 = vst [vmem:[#allocation31_spill] sm:$0xff] %v11769_v36  ;;  %v1886_v28 = vunpack.c.h.bf16 %v14405_v1  ;;  %v11776_v10 = vld [vmem:[%s14275_s3 + $0x338] sm:$0xff] }
 0x262   :  { %3168 = vmatpush.msrb.mxu2 %v1582_v17  ;;  %3132 = vmatpush.msrb.mxu3 %v910_v16  ;;  %v11778_v17 = vpop.f32.mrf.mxu1  ;;  %v1119_v16 = vunpack.c.l.bf16 %v11766_v61 }
 0x263   :  { %3152 = vmatpush.msrb.mxu1 %v1214_v35  ;;  %3110 = vmatmul.f32.vlgmr.msra.gmra.mxu0 %v9084_v43  ;;  %14406 = vst [vmem:[#allocation9_spill] sm:$0xff] %v11778_v17  ;;  %v1166_v35 = vunpack.c.h.bf16 %v11518_v62  ;;  %v1870_v62 = vunpack.c.h.bf16 %v11536_v45  ;;  %v1502_v45 = vunpack.c.h.bf16 %v11548_v11  ;;  %v1391_v11 = vunpack.c.l.bf16 %v11807_v22 }
 0x264   :  { %3133 = vmatmul.f32.vlgmr.msrb.gmra.mxu3 %v14401_v19  ;;  %3169 = vmatpush.msrb.mxu2 %v1566_v47  ;;  %v11785_v47 = vld [vmem:[%s14275_s3 + $0x7f8] sm:$0xff]  ;;  %v1710_v17 = vunpack.c.h.bf16 %v11700_v54 }
 0x265   :  { %3186 = vmatpush.msrb.mxu0 %v1918_v7  ;;  %3209 = vmatpush.msra.mxu3 %v1151_v34  ;;  %v1518_v7 = vunpack.c.h.bf16 %v11527_v42  ;;  %v11792_v34 = vpop.f32.mrf.mxu2  ;;  %v1407_v42 = vunpack.c.l.bf16 %v11785_v47  ;;  %v12008_v54 = vld [vmem:[%s14275_s3 + $0x78] sm:$0xff] }
 0x266   :  { %3153 = vmatpush.msrb.mxu1 %v1198_v40  ;;  %3170 = vmatpush.msrb.mxu2 %v1550_v29  ;;  %14407 = vst [vmem:[#allocation33_spill] sm:$0xff] %v11792_v34  ;;  %v1103_v40 = vunpack.c.l.bf16 %v11776_v10  ;;  %v11801_v29 = vld [vmem:[%s14275_s3 + $0x2f8] sm:$0xff] }
 0x267   :  { %3187 = vmatpush.msrb.mxu0 %v1902_v14  ;;  %3210 = vmatpush.msra.mxu3 %v1135_v32  ;;  %v11813_v14 = vld [vmem:[%s14275_s3 + $0x2b8] sm:$0xff]  ;;  %v1854_v32 = vunpack.c.h.bf16 %v11557_v49  ;;  %v1087_v59 = vunpack.c.l.bf16 %v11801_v29  ;;  %v11823_v5 = vpop.f32.mrf.mxu0  ;;  %v11827_v1 = vpop.f32.mrf.mxu3  ;;  %v1838_v49 = vunpack.c.h.bf16 %v11574_v63 }
 0x268   :  { %3535 = vrot.lane.b32.xlu2 %v11511_v6, %s7902_s15  ;;  %3680 = vrot.lane.b32.xlu1 %v11396_v21, %s7904_s21  ;;  %14408 = vst [vmem:[#allocation35_spill] sm:$0xff] %v11823_v5  ;;  %v1726_v5 = vunpack.c.h.bf16 %v11682_v41  ;;  %v11989_v41 = vld [vmem:[%s14275_s3 + $0x578] sm:$0xff] }
 0x269   :  { %3629 = vrot.lane.b32.xlu0 %v11495_v30, %s7906_s26  ;;  %3154 = vmatpush.msrb.mxu1 %v1182_v25  ;;  %v11821_v25 = vld [vmem:[%s14275_s3 + $0x778] sm:$0xff]  ;;  %14409 = vst [vmem:[#allocation36_spill] sm:$0xff] %v11827_v1  ;;  %v1247_v36 = vunpack.c.l.bf16 %v11989_v41 }
 0x26a   :  { %3171 = vmatpush.msrb.mxu2 %v1534_v46  ;;  %3188 = vmatpush.msrb.mxu0 %v1886_v28  ;;  %v1486_v46 = vunpack.c.h.bf16 %v11569_v38  ;;  %v1071_v28 = vunpack.c.l.bf16 %v11813_v14  ;;  %v11839_v38 = vld [vmem:[%s14275_s3 + $0x278] sm:$0xff] }
 0x26b   :  { %3211 = vmatpush.msra.mxu3 %v1119_v16  ;;  %3155 = vmatpush.msrb.mxu1 %v1166_v35  ;;  %v11832_v16 = vpop.f32.mrf.mxu1  ;;  %v1375_v35 = vunpack.c.l.bf16 %v11821_v25  ;;  %v1055_v1 = vunpack.c.l.bf16 %v11839_v38 }
 0x26c   :  { %3156 = vmatmul.f32.vlgmr.msrb.gmra.mxu1 %v8859_v9  ;;  %3172 = vmatpush.msrb.mxu2 %v1518_v7  ;;  %14410 = vst [vmem:[#allocation56_spill] sm:$0xff] %v11832_v16  ;;  %v11844_v7 = vld [vmem:[%s14275_s3 + $0x738] sm:$0xff] }
 0x26d   :  { %3189 = vmatpush.msrb.mxu0 %v1870_v62  ;;  %3212 = vmatpush.msra.mxu3 %v1103_v40  ;;  %v11846_v63 = vpop.f32.mrf.mxu2  ;;  %v14412_v62 = vld [vmem:[#allocation41_spill] sm:$0xff] }
 0x26e   :  { %3232 = vmatpush.msra.mxu1 %v1407_v42  ;;  %3113 = vmatmul.f32.gmra.mxu0 %v9145_v39  ;;  %14411 = vst [vmem:[#allocation57_spill] sm:$0xff] %v11846_v63  ;;  %v1470_v40 = vunpack.c.h.bf16 %v14412_v62  ;;  %v14413_v42 = vld [vmem:[#allocation42_spill] sm:$0xff]  ;;  %v11853_v16 = vld [vmem:[%s14275_s3 + $0x238] sm:$0xff]  ;;  %v1438_v62 = vunpack.c.h.bf16 %v11620_v37 }
 0x26f   :  { %3136 = vmatmul.f32.gmra.mxu3 %v8892_v26  ;;  %3173 = vmatpush.msrb.mxu2 %v1502_v45  ;;  %v1822_v45 = vunpack.c.h.bf16 %v14413_v42  ;;  %v11888_v42 = vld [vmem:[%s14275_s3 + $0x1b8] sm:$0xff] }
 0x270   :  { %3190 = vmatpush.msrb.mxu0 %v1854_v32  ;;  %3213 = vmatpush.msra.mxu3 %v1087_v59  ;;  %v1359_v32 = vunpack.c.l.bf16 %v11844_v7  ;;  %v11860_v59 = vld [vmem:[%s14275_s3 + $0x6f8] sm:$0xff] }
 0x271   :  { %3233 = vmatpush.msra.mxu1 %v1391_v11  ;;  %3174 = vmatpush.msrb.mxu2 %v1486_v46  ;;  %v1454_v11 = vunpack.c.h.bf16 %v11600_v27  ;;  %v11868_v46 = vld [vmem:[%s14275_s3 + $0x1f8] sm:$0xff]  ;;  %v11881_v27 = vpop.f32.mrf.mxu0 }
 0x272   :  { %3191 = vmatpush.msrb.mxu0 %v1838_v49  ;;  %3214 = vmatpush.msra.mxu3 %v1071_v28  ;;  %v1806_v49 = vunpack.c.h.bf16 %v11609_v2  ;;  %v1039_v28 = vunpack.c.l.bf16 %v11853_v16  ;;  %14414 = vst [vmem:[#allocation41_spill] sm:$0xff] %v11881_v27  ;;  %v1790_v2 = vunpack.c.h.bf16 %v11628_v50  ;;  %v1023_v63 = vunpack.c.l.bf16 %v11868_v46  ;;  %v11900_v27 = vpop.f32.mrf.mxu3 }
 0x273   :  { %3234 = vmatpush.msra.mxu1 %v1375_v35  ;;  %3627 = vrot.lane.b32.xlu2 %v11247_v57, %s7906_s26  ;;  %v11879_v57 = vld [vmem:[%s14275_s3 + $0x6b8] sm:$0xff]  ;;  %v1343_v35 = vunpack.c.l.bf16 %v11860_v59  ;;  %14415 = vst [vmem:[#allocation42_spill] sm:$0xff] %v11900_v27  ;;  %v1774_v50 = vunpack.c.h.bf16 %v11648_v53 }
 0x274   :  { %3631 = vrot.lane.b32.xlu1 %v11396_v21, %s7906_s26  ;;  %3584 = vrot.lane.b32.xlu0 %v11511_v6, %s7903_s23  ;;  %v1327_v37 = vunpack.c.l.bf16 %v11879_v57  ;;  %v11920_v53 = vld [vmem:[%s14275_s3 + $0x638] sm:$0xff] }
 0x275   :  { %3175 = vmatpush.msrb.mxu2 %v1470_v40  ;;  %3192 = vmatpush.msrb.mxu0 %v1822_v45  ;;  %v11895_v40 = vld [vmem:[%s14275_s3 + $0x678] sm:$0xff]  ;;  %v1422_v45 = vunpack.c.h.bf16 %v11643_v33 }
 0x276   :  { %3215 = vmatpush.msra.mxu3 %v1055_v1  ;;  %3235 = vmatpush.msra.mxu1 %v1359_v32  ;;  %v1007_v1 = vunpack.c.l.bf16 %v11888_v42  ;;  %v11904_v32 = vpop.f32.mrf.mxu1  ;;  %v1311_v4 = vunpack.c.l.bf16 %v11895_v40  ;;  %v11915_v33 = vld [vmem:[%s14275_s3 + $0x178] sm:$0xff] }
 0x277   :  { %3159 = vmatmul.f32.gmra.mxu1 %v8913_v51  ;;  %3176 = vmatpush.msrb.mxu2 %v1454_v11  ;;  %14416 = vst [vmem:[#allocation58_spill] sm:$0xff] %v11904_v32  ;;  %v11910_v11 = vld [vmem:[%s14275_s3 + $0xbf8] sm:$0xff] }
 0x278   :  { %3193 = vmatpush.msrb.mxu0 %v1806_v49  ;;  %3216 = vmatpush.msra.mxu3 %v1039_v28  ;;  %v11922_v49 = vpop.f32.mrf.mxu2  ;;  %v1758_v28 = vunpack.c.h.bf16 %v11657_v0  ;;  %v11940_v0 = vld [vmem:[%s14275_s3 + $0x5f8] sm:$0xff] }
 0x279   :  { %3236 = vmatpush.msra.mxu1 %v1343_v35  ;;  %3177 = vmatpush.msrb.mxu2 %v1438_v62  ;;  %14417 = vst [vmem:[#allocation59_spill] sm:$0xff] %v11922_v49  ;;  %v11928_v35 = vld [vmem:[%s14275_s3 + $0xbb8] sm:$0xff]  ;;  %v1663_v62 = vunpack.c.l.bf16 %v11910_v11  ;;  %v11967_v32 = vpop.f32.mrf.mxu0  ;;  %v1279_v27 = vunpack.c.l.bf16 %v11940_v0 }
 0x27a   :  { %3194 = vmatpush.msrb.mxu0 %v1790_v2  ;;  %3217 = vmatpush.msra.mxu3 %v1023_v63  ;;  %v11933_v63 = vld [vmem:[%s14275_s3 + $0x138] sm:$0xff]  ;;  %v991_v2 = vunpack.c.l.bf16 %v11915_v33  ;;  %14418 = vst [vmem:[#allocation60_spill] sm:$0xff] %v11967_v32  ;;  %v11982_v34 = vpop.f32.mrf.mxu3 }
 0x27b   :  { %3237 = vmatpush.msra.mxu1 %v1327_v37  ;;  %3178 = vmatpush.msrb.mxu2 %v1422_v45  ;;  %v1295_v37 = vunpack.c.l.bf16 %v11920_v53  ;;  %v1742_v45 = vunpack.c.h.bf16 %v11666_v8  ;;  %v975_v8 = vunpack.c.l.bf16 %v11933_v63  ;;  %v11965_v49 = vld [vmem:[%s14275_s3 + $0x5b8] sm:$0xff]  ;;  %14419 = vst [vmem:[#allocation61_spill] sm:$0xff] %v11982_v34 }
 0x27c   :  { %3195 = vmatpush.msrb.mxu0 %v1774_v50  ;;  %3218 = vmatpush.msra.mxu3 %v1007_v1  ;;  %v11949_v50 = vld [vmem:[%s14275_s3 + $0xb78] sm:$0xff]  ;;  %v1263_v31 = vunpack.c.l.bf16 %v11965_v49 }
 0x27d   :  { %3238 = vmatpush.msra.mxu1 %v1311_v4  ;;  %3582 = vrot.lane.b32.xlu2 %v11396_v21, %s7903_s23  ;;  %v11954_v1 = vld [vmem:[%s14275_s3 + $0xf8] sm:$0xff]  ;;  %v1647_v4 = vunpack.c.l.bf16 %v11928_v35 }
 0x27e   :  { %3633 = vrot.lane.b32.xlu1 %v11511_v6, %s7906_s26  ;;  %3729 = vrot.lane.b32.xlu0 %v11396_v21, %s7905_s30  ;;  %v11975_v21 = vld [vmem:[%s14275_s3 + $0xb38] sm:$0xff]  ;;  %v959_v32 = vunpack.c.l.bf16 %v11954_v1  ;;  %v11991_v55 = vpop.f32.mrf.mxu1 }
 0x27f   :  { %3179 = vmatmul.f32.vlgmr.msrb.gmra.mxu2 %v8976_v52  ;;  %3196 = vmatpush.msrb.mxu0 %v1758_v28  ;;  %v1631_v28 = vunpack.c.l.bf16 %v11949_v50  ;;  %14420 = vst [vmem:[#allocation62_spill] sm:$0xff] %v11991_v55  ;;  %v12070_v55 = vld [vmem:[%s14275_s3 + $0xa38] sm:$0xff] }
 0x280   :  { %3255 = vmatpush.msra.mxu2 %v1663_v62  ;;  %3219 = vmatpush.msra.mxu3 %v991_v2  ;;  %v1615_v62 = vunpack.c.l.bf16 %v11975_v21  ;;  %v943_v2 = vunpack.c.l.bf16 %v11980_v23  ;;  %v11997_v34 = vpop.f32.mrf.mxu2 }
 0x281   :  { %3239 = vmatpush.msra.mxu1 %v1295_v37  ;;  %3197 = vmatpush.msrb.mxu0 %v1742_v45  ;;  %14421 = vst [vmem:[#allocation63_spill] sm:$0xff] %v11997_v34  ;;  %v12003_v37 = vld [vmem:[%s14275_s3 + $0xaf8] sm:$0xff] }
 0x282   :  { %3256 = vmatpush.msra.mxu2 %v1647_v4  ;;  %3220 = vmatpush.msra.mxu3 %v975_v8  ;;  %v12013_v45 = vld [vmem:[%s14275_s3 + $0x538] sm:$0xff]  ;;  %v12038_v8 = vpop.f32.mrf.mxu0  ;;  %v12072_v15 = vpop.f32.mrf.mxu3 }
 0x283   :  { %3240 = vmatpush.msra.mxu1 %v1279_v27  ;;  %3198 = vmatpush.msrb.mxu0 %v1726_v5  ;;  %v12018_v5 = vld [vmem:[%s14276_s4 + $0x8] sm:$0xff]  ;;  %v1694_v27 = vunpack.c.h.bf16 %v11709_v60  ;;  %v12024_v4 = vld [vmem:[%s14275_s3 + $0xab8] sm:$0xff]  ;;  %14422 = vst [vmem:[#allocation64_spill] sm:$0xff] %v12038_v8 }
 0x284   :  { %3257 = vmatpush.msra.mxu2 %v1631_v28  ;;  %3221 = vmatpush.msra.mxu3 %v959_v32  ;;  %v12029_v32 = vld [vmem:[%s14275_s3 + $0x38] sm:$0xff]  ;;  %v1231_v28 = vunpack.c.l.bf16 %v12013_v45  ;;  %14423 = vst [vmem:[#allocation65_spill] sm:$0xff] %v12072_v15  ;;  %v1551_v15 = vunpack.c.l.bf16 %v12070_v55 }
 0x285   :  { %3241 = vmatpush.msra.mxu1 %v1263_v31  ;;  %3199 = vmatpush.msrb.mxu0 %v1710_v17  ;;  %v1599_v31 = vunpack.c.l.bf16 %v12003_v37  ;;  %v927_v17 = vunpack.c.l.bf16 %v12008_v54  ;;  %v12036_v60 = vld [vmem:[%s14275_s3 + $0x4f8] sm:$0xff]  ;;  %v911_v8 = vunpack.c.l.bf16 %v12029_v32 }
 0x286   :  { %3258 = vmatpush.msra.mxu2 %v1615_v62  ;;  %3222 = vmatpush.msra.mxu3 %v943_v2  ;;  %v1678_v62 = vunpack.c.h.bf16 %v11717_v56  ;;  %v12047_v2 = vld [vmem:[%s14275_s3 + $0xa78] sm:$0xff]  ;;  %v1215_v56 = vunpack.c.l.bf16 %v12036_v60  ;;  %v12080_v20 = vpop.f32.mrf.mxu1 }
 0x287   :  { %3242 = vmatpush.msra.mxu1 %v1247_v36  ;;  %3727 = vrot.lane.b32.xlu2 %v11495_v30, %s7905_s30  ;;  %v1583_v36 = vunpack.c.l.bf16 %v12024_v4  ;;  %v12058_v30 = vld [vmem:[%s14275_s3 + $0xff8] sm:$0xff]  ;;  %v1567_v12 = vunpack.c.l.bf16 %v12047_v2  ;;  %14424 = vst [vmem:[#allocation66_spill] sm:$0xff] %v12080_v20 }
 0x288   :  { %3819 = vrot.lane.b32.xlu1 %v12018_v5, %s7900_s0  ;;  %3868 = vrot.lane.b32.xlu0 %v12018_v5, %s7901_s24  ;;  %v12065_v34 = vld [vmem:[%s14275_s3 + $0x4b8] sm:$0xff]  ;;  %v1919_v3 = vunpack.c.l.bf16 %v12058_v30  ;;  %v12091_v48 = vpop.f32.mrf.mxu2 }
 0x289   :  { %3182 = vmatmul.f32.gmra.mxu2 %v9050_v13  ;;  %3200 = vmatpush.msrb.mxu0 %v1694_v27  ;;  %v12078_v27 = vld [vmem:[%s14275_s3 + $0xfb8] sm:$0xff]  ;;  %14426 = vst [vmem:[#allocation68_spill] sm:$0xff] %v12091_v48 }
 0x28a   :  { %3259 = vmatpush.msra.mxu2 %v1599_v31  ;;  %3223 = vmatpush.msra.mxu3 %v927_v17  ;;  %v12087_v31 = vld [vmem:[%s14275_s3 + $0x478] sm:$0xff]  ;;  %v1199_v17 = vunpack.c.l.bf16 %v12065_v34 }
 0x28b   :  { %3243 = vmatpush.msra.mxu1 %v1231_v28  ;;  %3201 = vmatpush.msrb.mxu0 %v1678_v62  ;;  %14425 = vst [vmem:[#allocation67_spill] sm:$0xff] %v12087_v31  ;;  %v1903_v28 = vunpack.c.l.bf16 %v12078_v27  ;;  %v12099_v62 = vld [vmem:[%s14275_s3 + $0x9f8] sm:$0xff] }
 0x28c   :  { %3260 = vmatpush.msra.mxu2 %v1583_v36  ;;  %3224 = vmatpush.msra.mxu3 %v911_v8  ;;  %14427 = vst [vmem:[#allocation69_spill] sm:$0xff] %v12099_v62  ;;  %v12104_v8 = vld [vmem:[%s14275_s3 + $0xf78] sm:$0xff]  ;;  %v1183_v36 = vunpack.c.l.bf16 %v12087_v31  ;;  %v1535_v48 = vunpack.c.l.bf16 %v12099_v62  ;;  %v12134_v31 = vpop.f32.mrf.mxu3 }
 0x28d   :  { %3244 = vmatpush.msra.mxu1 %v1215_v56  ;;  %3202 = vmatmul.f32.vlgmr.msrb.gmra.mxu0 %v9084_v43  ;;  %14428 = vst [vmem:[#allocation70_spill] sm:$0xff] %v12104_v8  ;;  %v12111_v56 = vld [vmem:[%s14275_s3 + $0x438] sm:$0xff]  ;;  %v1887_v20 = vunpack.c.l.bf16 %v12104_v8  ;;  %v1519_v8 = vunpack.c.l.bf16 %v12116_v58 }
 0x28e   :  { %3225 = vmatmul.f32.vlgmr.msra.gmra.mxu3 %v14401_v19  ;;  %3261 = vmatpush.msra.mxu2 %v1567_v12  ;;  %v12121_v12 = vld [vmem:[%s14276_s4 + $0x18] sm:$0xff]  ;;  %14431 = vst [vmem:[#allocation73_spill] sm:$0xff] %v12134_v31 }
 0x28f   :  { %3278 = vmatpush.msra.mxu0 %v1919_v3  ;;  %3301 = vmatpush.msrb.mxu3 %v1152_v18  ;;  %v12128_v3 = vld [vmem:[%s14275_s3 + $0xf38] sm:$0xff]  ;;  %v12130_v18 = vpop.f32.mrf.mxu0 }
 0x290   :  { %3245 = vmatpush.msra.mxu1 %v1199_v17  ;;  %3262 = vmatpush.msra.mxu2 %v1551_v15  ;;  %14429 = vst [vmem:[#allocation71_spill] sm:$0xff] %v12128_v3  ;;  %v1120_v15 = vunpack.c.h.bf16 %v11766_v61  ;;  %v1167_v17 = vunpack.c.l.bf16 %v12111_v56  ;;  %v12142_v62 = vld [vmem:[%s14275_s3 + $0x978] sm:$0xff]  ;;  %v1871_v61 = vunpack.c.l.bf16 %v12128_v3  ;;  %v12163_v31 = vpop.f32.mrf.mxu2 }
 0x291   :  { %14430 = vst [vmem:[#allocation72_spill] sm:$0xff] %v12130_v18  ;;  %3279 = vmatpush.msra.mxu0 %v1903_v28  ;;  %3302 = vmatpush.msrb.mxu3 %v1136_v24  ;;  %v12144_v18 = vpop.f32.mrf.mxu1  ;;  %v1104_v28 = vunpack.c.h.bf16 %v11776_v10  ;;  %v12155_v24 = vld [vmem:[%s14275_s3 + $0xef8] sm:$0xff]  ;;  %v1503_v10 = vunpack.c.l.bf16 %v12142_v62 }
 0x292   :  { %3246 = vmatpush.msra.mxu1 %v1183_v36  ;;  %3682 = vrot.lane.b32.xlu2 %v11511_v6, %s7904_s21  ;;  %14432 = vst [vmem:[#allocation74_spill] sm:$0xff] %v12144_v18  ;;  %v1408_v36 = vunpack.c.h.bf16 %v11785_v47  ;;  %v12161_v18 = vld [vmem:[%s14275_s3 + $0x938] sm:$0xff]  ;;  %v1392_v47 = vunpack.c.h.bf16 %v11807_v22 }
 0x293   :  { %3821 = vrot.lane.b32.xlu1 %v12121_v12, %s7900_s0  ;;  %3917 = vrot.lane.b32.xlu0 %v12018_v5, %s7902_s15  ;;  %14433 = vst [vmem:[#allocation75_spill] sm:$0xff] %v12163_v31  ;;  %v12169_v3 = vld [vmem:[%s14275_s3 + $0xeb8] sm:$0xff]  ;;  %v1072_v31 = vunpack.c.h.bf16 %v11813_v14 }
 0x294   :  { %3263 = vmatpush.msra.mxu2 %v1535_v48  ;;  %3280 = vmatpush.msra.mxu0 %v1887_v20  ;;  %v1855_v48 = vunpack.c.l.bf16 %v12155_v24  ;;  %v1088_v20 = vunpack.c.h.bf16 %v11801_v29  ;;  %v12187_v29 = vld [vmem:[%s14275_s3 + $0xe78] sm:$0xff] }
 0x295   :  { %3303 = vmatpush.msrb.mxu3 %v1120_v15  ;;  %3247 = vmatpush.msra.mxu1 %v1167_v17  ;;  %v1487_v15 = vunpack.c.l.bf16 %v12161_v18  ;;  %v1839_v17 = vunpack.c.l.bf16 %v12169_v3  ;;  %14434 = vst [vmem:[#allocation76_spill] sm:$0xff] %v12187_v29  ;;  %v12196_v14 = vld [vmem:[%s14275_s3 + $0x8b8] sm:$0xff] }
 0x296   :  { %3248 = vmatmul.f32.vlgmr.msra.gmra.mxu1 %v8859_v9  ;;  %3264 = vmatpush.msra.mxu2 %v1519_v8  ;;  %v12182_v8 = vld [vmem:[%s14275_s3 + $0x8f8] sm:$0xff]  ;;  %14436 = vst [vmem:[#allocation78_spill] sm:$0xff] %v12196_v14 }
 0x297   :  { %3281 = vmatpush.msra.mxu0 %v1871_v61  ;;  %3304 = vmatpush.msrb.mxu3 %v1104_v28  ;;  %v12189_v22 = vpop.f32.mrf.mxu0  ;;  %v1376_v61 = vunpack.c.h.bf16 %v11821_v25  ;;  %v12198_v28 = vpop.permute.xlu1 %3397  ;;  %v1823_v25 = vunpack.c.l.bf16 %v12187_v29  ;;  %v1455_v29 = vunpack.c.l.bf16 %v12196_v14 }
 0x298   :  { %3324 = vmatpush.msrb.mxu1 %v1408_v36  ;;  %3205 = vmatmul.f32.gmra.mxu0 %v9145_v39  ;;  %14435 = vst [vmem:[#allocation77_spill] sm:$0xff] %v12189_v22  ;;  %v12203_v36 = vld [vmem:[%s14276_s4 + $0x28] sm:$0xff]  ;;  %v12219_v22 = vld [vmem:[%s14275_s3 + $0x878] sm:$0xff]  ;;  %v12253_v14 = vpop.permute.xlu2 %3399 }
 0x299   :  { %3228 = vmatmul.f32.gmra.mxu3 %v8892_v26  ;;  %3265 = vmatpush.msra.mxu2 %v1503_v10  ;;  %14437 = vst [vmem:[#allocation79_spill] sm:$0xff] %v12198_v28  ;;  %v1471_v10 = vunpack.c.l.bf16 %v12182_v8  ;;  %v12221_v28 = vpop.f32.mrf.mxu1 }
 0x29a   :  { %3282 = vmatpush.msra.mxu0 %v1855_v48  ;;  %3305 = vmatpush.msrb.mxu3 %v1088_v20  ;;  %v12210_v48 = vld [vmem:[%s14275_s3 + $0xe38] sm:$0xff]  ;;  %v12212_v20 = vpop.f32.mrf.mxu3  ;;  %14440 = vst [vmem:[#allocation82_spill] sm:$0xff] %v12221_v28  ;;  %v1439_v28 = vunpack.c.l.bf16 %v12219_v22 }
 0x29b   :  { %3325 = vmatpush.msrb.mxu1 %v1392_v47  ;;  %3266 = vmatpush.msra.mxu2 %v1487_v15  ;;  %14438 = vst [vmem:[#allocation80_spill] sm:$0xff] %v12210_v48  ;;  %v1056_v47 = vunpack.c.h.bf16 %v11839_v38  ;;  %v1360_v15 = vunpack.c.h.bf16 %v11844_v7  ;;  %v1807_v38 = vunpack.c.l.bf16 %v12210_v48  ;;  %v1040_v7 = vunpack.c.h.bf16 %v11853_v16 }
 0x29c   :  { %14439 = vst [vmem:[#allocation81_spill] sm:$0xff] %v12212_v20  ;;  %3283 = vmatpush.msra.mxu0 %v1839_v17  ;;  %3306 = vmatpush.msrb.mxu3 %v1072_v31  ;;  %v12229_v31 = vld [vmem:[%s14275_s3 + $0xdf8] sm:$0xff]  ;;  %v12242_v17 = vpop.f32.mrf.mxu2  ;;  %v1024_v48 = vunpack.c.h.bf16 %v11868_v46  ;;  %v1312_v46 = vunpack.c.h.bf16 %v11895_v40 }
 0x29d   :  { %3326 = vmatpush.msrb.mxu1 %v1376_v61  ;;  %3731 = vrot.lane.b32.xlu2 %v11511_v6, %s7905_s30  ;;  %v12240_v6 = vld [vmem:[%s14275_s3 + $0x838] sm:$0xff]  ;;  %v1344_v61 = vunpack.c.h.bf16 %v11860_v59  ;;  %v1791_v16 = vunpack.c.l.bf16 %v12229_v31  ;;  %14441 = vst [vmem:[#allocation83_spill] sm:$0xff] %v12253_v14  ;;  %v1328_v59 = vunpack.c.h.bf16 %v11879_v57 }
 0x29e   :  { %3823 = vrot.lane.b32.xlu1 %v12203_v36, %s7900_s0  ;;  %3919 = vrot.lane.b32.xlu0 %v12121_v12, %s7902_s15  ;;  %v12249_v20 = vld [vmem:[%s14275_s3 + $0xdb8] sm:$0xff] }
 0x29f   :  { %3267 = vmatpush.msra.mxu2 %v1471_v10  ;;  %3284 = vmatpush.msra.mxu0 %v1823_v25  ;;  %v1423_v10 = vunpack.c.l.bf16 %v12240_v6  ;;  %v1775_v25 = vunpack.c.l.bf16 %v12249_v20  ;;  %v12278_v40 = vld [vmem:[%s14275_s3 + $0xd38] sm:$0xff] }
 0x2a0   :  { %3307 = vmatpush.msrb.mxu3 %v1056_v47  ;;  %3327 = vmatpush.msrb.mxu1 %v1360_v15  ;;  %v1008_v47 = vunpack.c.h.bf16 %v11888_v42  ;;  %v12260_v15 = vpop.f32.mrf.mxu0 }
 0x2a1   :  { %3251 = vmatmul.f32.gmra.mxu1 %v8913_v51  ;;  %3268 = vmatpush.msra.mxu2 %v1455_v29  ;;  %v12266_v29 = vld [vmem:[%s14275_s3 + $0xd78] sm:$0xff]  ;;  %v12273_v42 = vpop.f32.mrf.mxu1 }
 0x2a2   :  { %3285 = vmatpush.msra.mxu0 %v1807_v38  ;;  %3308 = vmatpush.msrb.mxu3 %v1040_v7  ;;  %v12268_v57 = vpop.f32.mrf.mxu3  ;;  %v1664_v38 = vunpack.c.h.bf16 %v11910_v11  ;;  %v12271_v7 = vpop.permute.xlu1 %3480  ;;  %v1759_v11 = vunpack.c.l.bf16 %v12266_v29 }
 0x2a3   :  { %3328 = vmatpush.msrb.mxu1 %v1344_v61  ;;  %3269 = vmatpush.msra.mxu2 %v1439_v28  ;;  %14442 = vst [vmem:[#allocation84_spill] sm:$0xff] %v12271_v7  ;;  %v12283_v28 = vld [vmem:[%s14276_s4 + $0x38] sm:$0xff] }
 0x2a4   :  { %3286 = vmatpush.msra.mxu0 %v1791_v16  ;;  %3309 = vmatpush.msrb.mxu3 %v1024_v48  ;;  %v992_v48 = vunpack.c.h.bf16 %v11915_v33  ;;  %v12287_v61 = vpop.f32.mrf.mxu2  ;;  %v1296_v16 = vunpack.c.h.bf16 %v11920_v53  ;;  %v1743_v33 = vunpack.c.l.bf16 %v12278_v40  ;;  %v1280_v53 = vunpack.c.h.bf16 %v11940_v0 }
 0x2a5   :  { %3329 = vmatpush.msrb.mxu1 %v1328_v59  ;;  %3270 = vmatpush.msra.mxu2 %v1423_v10  ;;  %v1648_v59 = vunpack.c.h.bf16 %v11928_v35  ;;  %v12295_v10 = vld [vmem:[%s14275_s3 + $0xcf8] sm:$0xff]  ;;  %v1632_v35 = vunpack.c.h.bf16 %v11949_v50  ;;  %v1264_v0 = vunpack.c.h.bf16 %v11965_v49  ;;  %v1616_v50 = vunpack.c.h.bf16 %v11975_v21 }
 0x2a6   :  { %3287 = vmatpush.msra.mxu0 %v1775_v25  ;;  %3310 = vmatpush.msrb.mxu3 %v1008_v47  ;;  %v976_v25 = vunpack.c.h.bf16 %v11933_v63  ;;  %v12310_v47 = vld [vmem:[%s14275_s3 + $0xcb8] sm:$0xff]  ;;  %v960_v63 = vunpack.c.h.bf16 %v11954_v1  ;;  %v1248_v1 = vunpack.c.h.bf16 %v11989_v41  ;;  %v1600_v49 = vunpack.c.h.bf16 %v12003_v37  ;;  %v12340_v41 = vpop.permute.xlu0 %3529 }
 0x2a7   :  { %3330 = vmatpush.msrb.mxu1 %v1312_v46  ;;  %3271 = vmatmul.f32.vlgmr.msra.gmra.mxu2 %v8976_v52  ;;  %v1727_v46 = vunpack.c.l.bf16 %v12295_v10  ;;  %v1711_v14 = vunpack.c.l.bf16 %v12310_v47  ;;  %14444 = vst [vmem:[#allocation86_spill] sm:$0xff] %v12340_v41 }
 0x2a8   :  { %3347 = vmatpush.msrb.mxu2 %v1664_v38  ;;  %3870 = vrot.lane.b32.xlu2 %v12121_v12, %s7901_s24  ;;  %v12314_v38 = vpop.permute.xlu2 %3482  ;;  %v12316_v7 = vpop.f32.mrf.mxu0 }
 0x2a9   :  { %3825 = vrot.lane.b32.xlu1 %v12283_v28, %s7900_s0  ;;  %3921 = vrot.lane.b32.xlu0 %v12203_v36, %s7902_s15  ;;  %14443 = vst [vmem:[#allocation85_spill] sm:$0xff] %v12314_v38  ;;  %v14451_v38 = vld [vmem:[#allocation49_spill] sm:$0xff] }
 0x2aa   :  { %3288 = vmatpush.msra.mxu0 %v1759_v11  ;;  %3311 = vmatpush.msrb.mxu3 %v992_v48  ;;  %v944_v11 = vunpack.c.h.bf16 %v11980_v23  ;;  %v12326_v48 = vld [vmem:[%s14275_s3 + $0xc78] sm:$0xff]  ;;  %v12331_v21 = vpop.permute.xlu1 %3401 }
 0x2ab   :  { %3331 = vmatpush.msrb.mxu1 %v1296_v16  ;;  %3348 = vmatpush.msrb.mxu2 %v1648_v59  ;;  %v12328_v16 = vpop.f32.mrf.mxu3  ;;  %v12333_v59 = vpop.f32.mrf.mxu1  ;;  %v12338_v23 = vld [vmem:[%s14275_s3 + $0xc38] sm:$0xff]  ;;  %s7912_s3 = smov 106  }
 0x2ac   :  { %3289 = vmatpush.msra.mxu0 %v1743_v33  ;;  %3312 = vmatpush.msrb.mxu3 %v976_v25  ;;  %v1695_v33 = vunpack.c.l.bf16 %v12326_v48  ;;  %v928_v25 = vunpack.c.h.bf16 %v12008_v54  ;;  %v12344_v37 = vpop.f32.mrf.mxu2 }
 0x2ad   :  { %3332 = vmatpush.msrb.mxu1 %v1280_v53  ;;  %3349 = vmatpush.msrb.mxu2 %v1632_v35  ;;  %v1232_v53 = vunpack.c.h.bf16 %v12013_v45  ;;  %v1584_v35 = vunpack.c.h.bf16 %v12024_v4  ;;  %v1216_v45 = vunpack.c.h.bf16 %v12036_v60  ;;  %v1568_v4 = vunpack.c.h.bf16 %v12047_v2 }
 0x2ae   :  { %3290 = vmatpush.msra.mxu0 %v1727_v46  ;;  %3313 = vmatpush.msrb.mxu3 %v960_v63  ;;  %v912_v46 = vunpack.c.h.bf16 %v12029_v32  ;;  %v14445_v63 = vld [vmem:[#allocation20_spill] sm:$0xff]  ;;  %v2333_v60 = vadd.f32 %v14451_v38, %v11686_v44  ;;  %v1200_v2 = vunpack.c.h.bf16 %v12065_v34  ;;  %v14454_v44 = vld [vmem:[#allocation50_spill] sm:$0xff]  ;;  %v14455_v34 = vld [vmem:[#allocation67_spill] sm:$0xff] }
 0x2af   :  { %3333 = vmatpush.msrb.mxu1 %v1264_v0  ;;  %3350 = vmatpush.msrb.mxu2 %v1616_v50  ;;  %v14446_v0 = vld [vmem:[#allocation21_spill] sm:$0xff] }
 0x2b0   :  { %3291 = vmatpush.msra.mxu0 %v1711_v14  ;;  %3314 = vmatpush.msrb.mxu3 %v944_v11  ;;  %v1679_v14 = vunpack.c.l.bf16 %v12338_v23  ;;  %v2057_v54 = vadd.f32 %v14446_v0, %v14445_v63  ;;  %v12361_v50 = vpop.permute.xlu2 %3484  ;;  %v14448_v11 = vld [vmem:[#allocation18_spill] sm:$0xff]  ;;  %v12366_v63 = vpop.f32.mrf.mxu0  ;;  %v1920_v0 = vunpack.c.h.bf16 %v12058_v30  ;;  %v1904_v30 = vunpack.c.h.bf16 %v12078_v27 }
 0x2b1   :  { %3334 = vmatpush.msrb.mxu1 %v1248_v1  ;;  %3274 = vmatmul.f32.gmra.mxu2 %v9050_v13  ;;  %14447 = vst [vmem:[#allocation20_spill] sm:$0xff] %v12361_v50  ;;  %v14449_v1 = vld [vmem:[#allocation19_spill] sm:$0xff]  ;;  %v2356_v38 = vadd.f32 %v14454_v44, %v2333_v60  ;;  %v12391_v27 = vpop.permute.xlu0 %3531  ;;  %v14460_v60 = vld [vmem:[#allocation45_spill] sm:$0xff] }
 0x2b2   :  { %3351 = vmatpush.msrb.mxu2 %v1600_v49  ;;  %3872 = vrot.lane.b32.xlu2 %v12203_v36, %s7901_s24  ;;  %v2054_v32 = vadd.f32 %v14449_v1, %v14448_v11  ;;  %v14450_v49 = vld [vmem:[#allocation22_spill] sm:$0xff]  ;;  %v14453_v11 = vld [vmem:[#allocation7_spill] sm:$0xff]  ;;  %14459 = vst [vmem:[#allocation21_spill] sm:$0xff] %v12391_v27 }
 0x2b3   :  { %4064 = vrot.lane.b32.xlu1 %v12018_v5, %s7904_s21  ;;  %3923 = vrot.lane.b32.xlu0 %v12283_v28, %s7902_s15  ;;  %v2080_v41 = vadd.f32 %v14450_v49, %v2057_v54  ;;  %v12375_v54 = vpop.f32.mrf.mxu3  ;;  %v12377_v49 = vpop.f32.mrf.mxu1  ;;  %s7913_s15 = smov 122  }
 0x2b4   :  { %3292 = vmatpush.msra.mxu0 %v1695_v33  ;;  %3315 = vmatpush.msrb.mxu3 %v928_v25  ;;  %v1552_v33 = vunpack.c.h.bf16 %v12070_v55  ;;  %v14452_v25 = vld [vmem:[#allocation8_spill] sm:$0xff]  ;;  %v1184_v55 = vunpack.c.h.bf16 %v14455_v34  ;;  %v14463_v34 = vld [vmem:[#allocation14_spill] sm:$0xff] }
 0x2b5   :  { %3335 = vmatpush.msrb.mxu1 %v1232_v53  ;;  %3352 = vmatpush.msrb.mxu2 %v1584_v35  ;;  %v2077_v50 = vadd.f32 %v14452_v25, %v2054_v32  ;;  %v2103_v1 = vadd.f32 %v14453_v11, %v2080_v41  ;;  %v12384_v53 = vpop.permute.xlu1 %3403  ;;  %v14456_v35 = vld [vmem:[#allocation6_spill] sm:$0xff] }
 0x2b6   :  { %3293 = vmatpush.msra.mxu0 %v1679_v14  ;;  %3316 = vmatpush.msrb.mxu3 %v912_v46  ;;  %v12387_v14 = vpop.f32.mrf.mxu2  ;;  %v14457_v46 = vld [vmem:[#allocation69_spill] sm:$0xff]  ;;  %v14458_v32 = vld [vmem:[#allocation70_spill] sm:$0xff] }
 0x2b7   :  { %3336 = vmatpush.msrb.mxu1 %v1216_v45  ;;  %3294 = vmatmul.f32.vlgmr.msra.gmra.mxu0 %v9084_v43  ;;  %v2100_v41 = vadd.f32 %v14456_v35, %v2077_v50  ;;  %v1536_v45 = vunpack.c.h.bf16 %v14457_v46  ;;  %v1888_v25 = vunpack.c.h.bf16 %v14458_v32  ;;  %v14461_v11 = vld [vmem:[#allocation46_spill] sm:$0xff]  ;;  %v1168_v50 = vunpack.c.h.bf16 %v12111_v56  ;;  %v14465_v35 = vld [vmem:[#allocation47_spill] sm:$0xff] }
 0x2b8   :  { %3317 = vmatmul.f32.vlgmr.msrb.gmra.mxu3 %v14401_v19  ;;  %3353 = vmatpush.msrb.mxu2 %v1568_v4  ;;  %v2330_v19 = vadd.f32 %v14461_v11, %v14460_v60  ;;  %v14462_v4 = vld [vmem:[#allocation51_spill] sm:$0xff]  ;;  %v12400_v32 = vpop.f32.mrf.mxu0  ;;  %v1520_v60 = vunpack.c.h.bf16 %v12116_v58  ;;  %v14469_v11 = vld [vmem:[#allocation16_spill] sm:$0xff] }
 0x2b9   :  { %3370 = vmatpush.msrb.mxu0 %v1920_v0  ;;  %3428 = vmatpush.msra.mxu3 %v2103_v1  ;;  %v2379_v44 = vadd.f32 %v14462_v4, %v2356_v38  ;;  %v14464_v0 = vld [vmem:[#allocation15_spill] sm:$0xff]  ;;  %v14470_v4 = vld [vmem:[#allocation48_spill] sm:$0xff] }
 0x2ba   :  { %3337 = vmatpush.msrb.mxu1 %v1200_v2  ;;  %3354 = vmatpush.msrb.mxu2 %v1552_v33  ;;  %v1965_v1 = vadd.f32 %v14464_v0, %v14463_v34  ;;  %v2353_v46 = vadd.f32 %v14465_v35, %v2330_v19  ;;  %v14466_v38 = vld [vmem:[#allocation71_spill] sm:$0xff]  ;;  %v14467_v33 = vld [vmem:[#allocation10_spill] sm:$0xff]  ;;  %v1504_v19 = vunpack.c.h.bf16 %v12142_v62  ;;  %v14474_v0 = vld [vmem:[#allocation17_spill] sm:$0xff]  ;;  %v1856_v35 = vunpack.c.h.bf16 %v12155_v24 }
 0x2bb   :  { %3371 = vmatpush.msrb.mxu0 %v1904_v30  ;;  %3429 = vmatpush.msra.mxu3 %v2100_v41  ;;  %v1872_v2 = vunpack.c.h.bf16 %v14466_v38  ;;  %v14468_v30 = vld [vmem:[#allocation11_spill] sm:$0xff]  ;;  %v14476_v38 = vld [vmem:[#allocation53_spill] sm:$0xff]  ;;  %v1488_v62 = vunpack.c.h.bf16 %v12161_v18  ;;  %v1472_v18 = vunpack.c.h.bf16 %v12182_v8  ;;  %v14486_v8 = vld [vmem:[#allocation82_spill] sm:$0xff] }
 0x2bc   :  { %3338 = vmatpush.msrb.mxu1 %v1184_v55  ;;  %3355 = vmatpush.msrb.mxu2 %v1536_v45  ;;  %v1962_v41 = vadd.f32 %v14468_v30, %v14467_v33  ;;  %v1988_v56 = vadd.f32 %v14469_v11, %v1965_v1  ;;  %v2376_v27 = vadd.f32 %v14470_v4, %v2353_v46  ;;  %v12412_v55 = vpop.permute.xlu2 %3486  ;;  %v14471_v45 = vld [vmem:[#allocation31_spill] sm:$0xff]  ;;  %v14475_v46 = vld [vmem:[#allocation52_spill] sm:$0xff]  ;;  %v14477_v30 = vld [vmem:[#allocation33_spill] sm:$0xff]  ;;  %v12426_v4 = vpop.f32.mrf.mxu3 }
 0x2bd   :  { %3608 = vmatpush.msrb.mxu3 %v2379_v44  ;;  %3372 = vmatpush.msrb.mxu0 %v1888_v25  ;;  %v14472_v25 = vld [vmem:[#allocation9_spill] sm:$0xff]  ;;  %v14473_v44 = vld [vmem:[#allocation12_spill] sm:$0xff]  ;;  %v2422_v33 = vadd.f32 %v14476_v38, %v14475_v46  ;;  %v12434_v24 = vpop.permute.xlu1 %3578 }
 0x2be   :  { %3874 = vrot.lane.b32.xlu2 %v12283_v28, %s7901_s24  ;;  %4066 = vrot.lane.b32.xlu1 %v12121_v12, %s7904_s21  ;;  %v2425_v58 = vadd.f32 %v14472_v25, %v14471_v45  ;;  %v1985_v34 = vadd.f32 %v14473_v44, %v1962_v41  ;;  %v2011_v1 = vadd.f32 %v14474_v0, %v1988_v56  ;;  %v12428_v45 = vpop.f32.mrf.mxu1  ;;  %v14480_v25 = vld [vmem:[#allocation35_spill] sm:$0xff]  ;;  %v12438_v44 = vpop.f32.mrf.mxu2  ;;  %v14485_v38 = vld [vmem:[#allocation81_spill] sm:$0xff] }
 0x2bf   :  { %4015 = vrot.lane.b32.xlu0 %v12018_v5, %s7906_s26  ;;  %3339 = vmatpush.msrb.mxu1 %v1168_v50  ;;  %v14478_v50 = vld [vmem:[#allocation13_spill] sm:$0xff] }
 0x2c0   :  { %3609 = vmatpush.msrb.mxu3 %v2376_v27  ;;  %3340 = vmatmul.f32.vlgmr.msrb.gmra.mxu1 %v8859_v9  ;;  %v2448_v11 = vadd.f32 %v14477_v30, %v2425_v58  ;;  %v2008_v41 = vadd.f32 %v14478_v50, %v1985_v34  ;;  %v1840_v9 = vunpack.c.h.bf16 %v12169_v3  ;;  %v14479_v27 = vld [vmem:[#allocation54_spill] sm:$0xff]  ;;  %v14482_v3 = vld [vmem:[#allocation55_spill] sm:$0xff]  ;;  %v12452_v30 = vpop.f32.mrf.mxu0  ;;  %v14487_v50 = vld [vmem:[#allocation73_spill] sm:$0xff] }
 0x2c1   :  { %3356 = vmatpush.msrb.mxu2 %v1520_v60  ;;  %3373 = vmatpush.msrb.mxu0 %v1872_v2  ;;  %v2445_v56 = vadd.f32 %v14479_v27, %v2422_v33  ;;  %v12442_v60 = vpop.permute.xlu0 %3533  ;;  %v14481_v2 = vld [vmem:[#allocation76_spill] sm:$0xff]  ;;  %v2701_v33 = vadd.f32 %v14486_v8, %v14485_v38  ;;  %v14495_v8 = vld [vmem:[#allocation29_spill] sm:$0xff] }
 0x2c2   :  { %3465 = vmatpush.msra.mxu1 %v2011_v1  ;;  %3297 = vmatmul.f32.gmra.mxu0 %v9145_v39  ;;  %v2471_v58 = vadd.f32 %v14480_v25, %v2448_v11  ;;  %v1824_v34 = vunpack.c.h.bf16 %v14481_v2  ;;  %v14483_v1 = vld [vmem:[#allocation78_spill] sm:$0xff]  ;;  %v1792_v11 = vunpack.c.h.bf16 %v12229_v31  ;;  %v1776_v2 = vunpack.c.h.bf16 %v12249_v20 }
 0x2c3   :  { %3320 = vmatmul.f32.gmra.mxu3 %v8892_v26  ;;  %3357 = vmatpush.msrb.mxu2 %v1504_v19  ;;  %v2468_v0 = vadd.f32 %v14482_v3, %v2445_v56  ;;  %v1456_v46 = vunpack.c.h.bf16 %v14483_v1  ;;  %v14484_v26 = vld [vmem:[#allocation80_spill] sm:$0xff]  ;;  %v2724_v27 = vadd.f32 %v12242_v17, %v2701_v33  ;;  %v14496_v20 = vld [vmem:[#allocation42_spill] sm:$0xff] }
 0x2c4   :  { %3374 = vmatpush.msrb.mxu0 %v1856_v35  ;;  %3466 = vmatpush.msra.mxu1 %v2008_v41  ;;  %v1808_v19 = vunpack.c.h.bf16 %v14484_v26  ;;  %v1440_v35 = vunpack.c.h.bf16 %v12219_v22  ;;  %v14488_v41 = vld [vmem:[#allocation74_spill] sm:$0xff]  ;;  %v12463_v56 = vpop.f32.mrf.mxu3  ;;  %v14489_v22 = vld [vmem:[#allocation27_spill] sm:$0xff] }
 0x2c5   :  { %3358 = vmatpush.msrb.mxu2 %v1488_v62  ;;  %v12458_v62 = vpop.permute.xlu2 %3535  ;;  %v2747_v3 = vadd.f32 %v12260_v15, %v2724_v27  ;;  %v14493_v26 = vld [vmem:[#allocation23_spill] sm:$0xff]  ;;  %v14498_v15 = vld [vmem:[#allocation77_spill] sm:$0xff] }
 0x2c6   :  { %3657 = vmatpush.msrb.mxu1 %v2471_v58  ;;  %3375 = vmatpush.msrb.mxu0 %v1840_v9  ;;  %v2698_v9 = vadd.f32 %v14488_v41, %v14487_v50  ;;  %v12465_v25 = vpop.f32.mrf.mxu1  ;;  %v14490_v58 = vld [vmem:[#allocation28_spill] sm:$0xff]  ;;  %v12478_v1 = vpop.f32.mrf.mxu2  ;;  %v14499_v27 = vld [vmem:[#allocation25_spill] sm:$0xff] }
 0x2c7   :  { %3966 = vrot.lane.b32.xlu2 %v12018_v5, %s7903_s23  ;;  %3359 = vmatpush.msrb.mxu2 %v1472_v18  ;;  %v2149_v31 = vadd.f32 %v14490_v58, %v14489_v22  ;;  %v1424_v18 = vunpack.c.h.bf16 %v12240_v6  ;;  %v1760_v6 = vunpack.c.h.bf16 %v12266_v29  ;;  %v14500_v58 = vld [vmem:[#allocation30_spill] sm:$0xff]  ;;  %v1744_v29 = vunpack.c.h.bf16 %v12278_v40 }
 0x2c8   :  { %3658 = vmatpush.msrb.mxu1 %v2468_v0  ;;  %3376 = vmatpush.msrb.mxu0 %v1824_v34  ;;  %v14491_v34 = vld [vmem:[#allocation75_spill] sm:$0xff]  ;;  %v1728_v40 = vunpack.c.h.bf16 %v12295_v10  ;;  %v14507_v10 = vld [vmem:[#allocation41_spill] sm:$0xff] }
 0x2c9   :  { %4017 = vrot.lane.b32.xlu1 %v12121_v12, %s7906_s26  ;;  %3970 = vrot.lane.b32.xlu0 %v12203_v36, %s7903_s23  ;;  %v2721_v17 = vadd.f32 %v14491_v34, %v2698_v9  ;;  %v14492_v0 = vld [vmem:[#allocation79_spill] sm:$0xff]  ;;  %v2172_v33 = vadd.f32 %v14495_v8, %v2149_v31  ;;  %v12489_v9 = vpop.permute.xlu0 %3676  ;;  %v14502_v31 = vld [vmem:[#allocation56_spill] sm:$0xff]  ;;  %v2790_v8 = vadd.f32 %v12273_v42, %v12268_v57  ;;  %v1712_v42 = vunpack.c.h.bf16 %v12310_v47 }
 0x2ca   :  { %3343 = vmatmul.f32.gmra.mxu1 %v8913_v51  ;;  %3360 = vmatpush.msrb.mxu2 %v1456_v46  ;;  %v14494_v51 = vld [vmem:[#allocation24_spill] sm:$0xff]  ;;  %v12484_v46 = vpop.permute.xlu1 %3580  ;;  %v1696_v47 = vunpack.c.h.bf16 %v12326_v48 }
 0x2cb   :  { %3377 = vmatpush.msrb.mxu0 %v1808_v19  ;;  %7164 = vmatmul.msk.f32.vlgmr.msra.gmra.mxu3 %vm3405_vm1, %v14492_v0  ;;  %v2146_v38 = vadd.f32 %v14494_v51, %v14493_v26  ;;  %v14497_v19 = vld [vmem:[#allocation58_spill] sm:$0xff]  ;;  %v2744_v41 = vadd.f32 %v14498_v15, %v2721_v17  ;;  %v2195_v34 = vadd.f32 %v14500_v58, %v2172_v33  ;;  %v14503_v26 = vld [vmem:[#allocation59_spill] sm:$0xff]  ;;  %v12500_v17 = vpop.f32.mrf.mxu0  ;;  %v1680_v58 = vunpack.c.h.bf16 %v12338_v23  ;;  %v14511_v48 = vld [vmem:[#allocation32_spill] sm:$0xff] }
 0x2cc   :  { %3361 = vmatpush.msrb.mxu2 %v1440_v35  ;;  %v2517_v50 = vadd.f32 %v14497_v19, %v14496_v20  ;;  %3800 = vmatpush.msra.mxu3 %v2747_v3  ;;  %v2793_v35 = vadd.f32 %v12333_v59, %v12328_v16  ;;  %v14504_v3 = vld [vmem:[#allocation26_spill] sm:$0xff]  ;;  %v14505_v59 = vld [vmem:[#allocation57_spill] sm:$0xff]  ;;  %v12519_v20 = vpop.f32.mrf.mxu3 }
 0x2cd   :  { %3378 = vmatpush.msrb.mxu0 %v1792_v11  ;;  %v2169_v22 = vadd.f32 %v14499_v27, %v2146_v38  ;;  %v14501_v11 = vld [vmem:[#allocation36_spill] sm:$0xff] }
 0x2ce   :  { %3362 = vmatpush.msrb.mxu2 %v1424_v18  ;;  %v2514_v0 = vadd.f32 %v14502_v31, %v14501_v11  ;;  %v2540_v51 = vadd.f32 %v14503_v26, %v2517_v50  ;;  %3801 = vmatpush.msra.mxu3 %v2744_v41  ;;  %v2816_v16 = vadd.f32 %v12344_v37, %v2793_v35  ;;  %v12516_v37 = vpop.permute.xlu2 %3627  ;;  %v12521_v19 = vpop.f32.mrf.mxu1  ;;  %v7869_v50 = vld [vmem:[%s14276_s4] sm:$0xff]  ;;  %v14509_v41 = vld [vmem:[#allocation39_spill] sm:$0xff]  ;;  %v14510_v27 = vld [vmem:[#allocation40_spill] sm:$0xff] }
 0x2cf   :  { %3379 = vmatpush.msrb.mxu0 %v1776_v2  ;;  %3363 = vmatmul.f32.vlgmr.msrb.gmra.mxu2 %v8976_v52  ;;  %v2192_v38 = vadd.f32 %v14504_v3, %v2169_v22  ;;  %v14506_v2 = vld [vmem:[#allocation60_spill] sm:$0xff]  ;;  %v2813_v52 = vadd.f32 %v12287_v61, %v2790_v8  ;;  %v2999_v15 = vpop.f32.mrf.mxu2  ;;  %v2241_v22 = vadd.f32 %v14510_v27, %v14509_v41  ;;  %v14512_v35 = vld [vmem:[#allocation34_spill] sm:$0xff]  ;;  %v14513_v11 = vld [vmem:[#allocation43_spill] sm:$0xff] }
 0x2d0   :  { %3510 = vmatpush.msra.mxu2 %v2195_v34  ;;  %v2537_v18 = vadd.f32 %v14505_v59, %v2514_v0  ;;  %v2563_v33 = vadd.f32 %v14506_v2, %v2540_v51  ;;  %3968 = vrot.lane.b32.xlu2 %v12121_v12, %s7903_s23  ;;  %v2839_v57 = vadd.f32 %v12366_v63, %v2816_v16  ;;  %v14508_v63 = vld [vmem:[#allocation83_spill] sm:$0xff]  ;;  %v14514_v0 = vld [vmem:[#allocation65_spill] sm:$0xff]  ;;  %v14515_v26 = vld [vmem:[#allocation66_spill] sm:$0xff] }
 0x2d1   :  { %3380 = vmatpush.msrb.mxu0 %v1760_v6  ;;  %3972 = vrot.lane.b32.xlu1 %v12283_v28, %s7903_s23  ;;  %v2836_v61 = vadd.f32 %v12316_v7, %v2813_v52  ;;  %v12539_v7 = vpop.permute.xlu0 %3678  ;;  %v2264_v31 = vadd.f32 %v14513_v11, %v2241_v22  ;;  %v2609_v51 = vadd.f32 %v14515_v26, %v14514_v0  ;;  %v14519_v59 = vld [vmem:[#allocation62_spill] sm:$0xff]  ;;  %v14520_v2 = vld [vmem:[#allocation68_spill] sm:$0xff] }
 0x2d2   :  { %3511 = vmatpush.msra.mxu2 %v2192_v38  ;;  %v2560_v6 = vadd.f32 %v14507_v10, %v2537_v18  ;;  %7168 = vmatmul.msk.f32.vlgmr.msra.gmra.mxu1 %vm3405_vm1, %v7869_v50  ;;  %v12534_v34 = vpop.permute.xlu1 %3725  ;;  %v14517_v38 = vld [vmem:[#allocation44_spill] sm:$0xff]  ;;  %v2885_v16 = vadd.f32 %v12428_v45, %v12426_v4  ;;  %v14521_v10 = vld [vmem:[#allocation38_spill] sm:$0xff]  ;;  %v2882_v4 = vadd.f32 %v12377_v49, %v12375_v54 }
 0x2d3   :  { %3381 = vmatpush.msrb.mxu0 %v1744_v29  ;;  %3849 = vmatpush.msra.mxu1 %v2839_v57  ;;  %v2238_v29 = vadd.f32 %v14512_v35, %v14511_v48  ;;  %v3022_v23 = vpop.f32.mrf.mxu0  ;;  %v2287_v8 = vadd.f32 %v14517_v38, %v2264_v31  ;;  %v7870_v52 = vld [vmem:[%s14276_s4 + $0x10] sm:$0xff]  ;;  %v14526_v31 = vld [vmem:[#allocation85_spill] sm:$0xff]  ;;  %v2974_v0 = vadd.f32 %v12465_v25, %v12463_v56  ;;  %v14527_v38 = vld [vmem:[#allocation86_spill] sm:$0xff] }
 0x2d4   :  { %3706 = vmatpush.msrb.mxu2 %v2563_v33  ;;  %7165 = vmatmul.msk.f32.gmra.mxu3 %vm3405_vm1, %v14508_v63  ;;  %v2632_v33 = vadd.f32 %v14520_v2, %v2609_v51  ;;  %v3042_v57 = vpop.f32.mrf.mxu3  ;;  %v2908_v45 = vadd.f32 %v12438_v44, %v2885_v16  ;;  %v2905_v27 = vadd.f32 %v12387_v14, %v2882_v4  ;;  %v14525_v49 = vld [vmem:[#allocation84_spill] sm:$0xff] }
 0x2d5   :  { %3382 = vmatpush.msrb.mxu0 %v1728_v40  ;;  %3850 = vmatpush.msra.mxu1 %v2836_v61  ;;  %v14518_v40 = vld [vmem:[#allocation61_spill] sm:$0xff]  ;;  %v14522_v61 = vld [vmem:[#allocation63_spill] sm:$0xff] }
 0x2d6   :  { %3707 = vmatpush.msrb.mxu2 %v2560_v6  ;;  %4115 = vrot.lane.b32.xlu0 %v12121_v12, %s7905_s30  ;;  %v2606_v18 = vadd.f32 %v14519_v59, %v14518_v40  ;;  %v2931_v22 = vadd.f32 %v12452_v30, %v2908_v45  ;;  %v2928_v44 = vadd.f32 %v12400_v32, %v2905_v27  ;;  %v7871_v30 = vld [vmem:[%s14276_s4 + $0x20] sm:$0xff]  ;;  %v7872_v56 = vld [vmem:[%s14276_s4 + $0x30] sm:$0xff]  ;;  %s7920_s4 = smov 100  }
 0x2d7   :  { %3383 = vmatpush.msrb.mxu0 %v1712_v42  ;;  %3366 = vmatmul.f32.gmra.mxu2 %v9050_v13  ;;  %v14516_v13 = vld [vmem:[#allocation37_spill] sm:$0xff]  ;;  %v3065_v42 = vpop.f32.mrf.mxu1  ;;  %v12566_v50 = vpop.permute.xlu2 %3582  ;;  %v14528_v40 = vld [vmem:[#allocation20_spill] sm:$0xff] }
 0x2d8   :  { %4113 = vrot.lane.b32.xlu2 %v12018_v5, %s7905_s30  ;;  %v2261_v3 = vadd.f32 %v14516_v13, %v2238_v29  ;;  %v3088_v41 = vpop.f32.mrf.mxu2  ;;  %v2977_v29 = vadd.f32 %v12521_v19, %v12519_v20  ;;  %v3066_v20 = vadd.f32 %v3065_v42, %v3042_v57 }
 0x2d9   :  { %3384 = vmatpush.msrb.mxu0 %v1696_v47  ;;  %4117 = vrot.lane.b32.xlu1 %v12203_v36, %s7905_s30  ;;  %v14523_v47 = vld [vmem:[#allocation72_spill] sm:$0xff] }
 0x2da   :  { %7169 = vmatmul.msk.f32.gmra.mxu1 %vm3405_vm1, %v7870_v52  ;;  %v2284_v6 = vadd.f32 %v14521_v10, %v2261_v3  ;;  %v2655_v63 = vadd.f32 %v14523_v47, %v2632_v33  ;;  %v12580_v48 = vpop.permute.xlu1 %3680  ;;  %v3000_v26 = vadd.f32 %v2999_v15, %v2977_v29  ;;  %v3089_v16 = vadd.f32 %v3088_v41, %v3066_v20 }
 0x2db   :  { %3385 = vmatpush.msrb.mxu0 %v1680_v58  ;;  %v14524_v58 = vld [vmem:[#allocation64_spill] sm:$0xff] }
 0x2dc   :  { %3386 = vmatmul.f32.vlgmr.msrb.gmra.mxu0 %v9084_v43  ;;  %v2629_v43 = vadd.f32 %v14522_v61, %v2606_v18  ;;  %7166 = vmatmul.msk.f32.gmra.mxu3 %vm3405_vm1, %v12331_v21  ;;  %v3630_v21 = vpop.permute.xlu0 %3629  ;;  %v3045_v32 = vpop.f32.mrf.mxu3  ;;  %v3023_v19 = vadd.f32 %v3022_v23, %v3000_v26  ;;  %v14529_v18 = vld [vmem:[#allocation21_spill] sm:$0xff] }
 0x2dd   :  { %3559 = vmatpush.msra.mxu0 %v2287_v8 }
 0x2de   :  { %v2652_v54 = vadd.f32 %v14524_v58, %v2629_v43  ;;  %4070 = vrot.lane.b32.xlu0 %v12283_v28, %s7904_s21 }
 0x2df   :  { %3560 = vmatpush.msra.mxu0 %v2284_v6  ;;  %7172 = vmatmul.msk.f32.vlgmr.msra.gmra.mxu2 %vm3405_vm1, %v14525_v49  ;;  %v3068_v35 = vpop.f32.mrf.mxu1 }
 0x2e0   :  { %3898 = vmatpush.msra.mxu2 %v2931_v22  ;;  %4068 = vrot.lane.b32.xlu2 %v12203_v36, %s7904_s21  ;;  %v3111_v14 = vpop.f32.mrf.mxu0  ;;  %v3069_v51 = vadd.f32 %v3068_v35, %v3045_v32 }
 0x2e1   :  { %3755 = vmatpush.msrb.mxu0 %v2655_v63  ;;  %v12593_v11 = vpop.permute.xlu2 %3727  ;;  %v3112_v23 = vadd.f32 %v3111_v14, %v3089_v16 }
 0x2e2   :  { %3899 = vmatpush.msra.mxu2 %v2928_v44  ;;  %7170 = vmatmul.msk.f32.gmra.mxu1 %vm3405_vm1, %v7871_v30 }
 0x2e3   :  { %3756 = vmatpush.msrb.mxu0 %v2652_v54 }
 0x2e4   :  { %3389 = vmatmul.f32.gmra.mxu0 %v9145_v39  ;;  %7167 = vmatmul.msk.f32.gmra.mxu3 %vm3405_vm1, %v12384_v53  ;;  %v3091_v39 = vpop.f32.mrf.mxu2  ;;  %v2997_v53 = vadd.f32 %v12478_v1, %v2974_v0 }
 0x2e5   :  { %v3092_v3 = vadd.f32 %v3091_v39, %v3069_v51 }
 0x2e6   :  { %4119 = vrot.lane.b32.xlu0 %v12283_v28, %s7905_s30  ;;  %v3632_v13 = vpop.permute.xlu1 %3631  ;;  %v3585_v25 = vpop.permute.xlu0 %3584  ;;  %v3020_v8 = vadd.f32 %v12500_v17, %v2997_v53  ;;  %s7921_s30 = smov 98  }
 0x2e7   :  { %7173 = vmatmul.msk.f32.gmra.mxu2 %vm3405_vm1, %v14526_v31 }
 0x2e8   :  { %4019 = vrot.lane.b32.xlu2 %v12203_v36, %s7906_s26 }
 0x2e9   :  { %v3157_v52 = vpop.f32.mrf.mxu1 }
 0x2ea   :  { %7171 = vmatmul.msk.f32.gmra.mxu1 %vm3405_vm1, %v7872_v56 }
 0x2eb   :  { %v3114_v15 = vpop.f32.mrf.mxu0 }
 0x2ec   :  { %7176 = vmatmul.msk.f32.vlgmr.msra.gmra.mxu0 %vm3405_vm1, %v14527_v38  ;;  %v3115_v1 = vadd.f32 %v3114_v15, %v3092_v3  ;;  %7180 = vmatmul.msk.f32.vlgmr.msrb.gmra.mxu3 %vm3405_vm1, %v12434_v24  ;;  %v3683_v59 = vpop.permute.xlu2 %3682 }
 0x2ed   :  { %3947 = vmatpush.msra.mxu0 %v3023_v19 }
 0x2ee   :  { %3996 = vmatpush.msrb.mxu3 %v3115_v1 }
 0x2ef   :  { %3948 = vmatpush.msra.mxu0 %v3020_v8  ;;  %7174 = vmatmul.msk.f32.gmra.mxu2 %vm3405_vm1, %v14528_v40 }
 0x2f0   :  { %3997 = vmatpush.msrb.mxu3 %v3112_v23  ;;  %4021 = vrot.lane.b32.xlu2 %v12283_v28, %s7906_s26  ;;  %v3634_v17 = vpop.permute.xlu1 %3633  ;;  %v3730_v24 = vpop.permute.xlu0 %3729  ;;  %s7147_s26 = sshll.u32 %s14286_s14, 4  ;;  %s7148_s26 = int_to_ptr.hbm [resolvable:$true] %s7147_s26 }
 0x2f2   :  { %7184 = vmatmul.msk.f32.vlgmr.msrb.gmra.mxu1 %vm3405_vm1, %v12516_v37 }
 0x2f4   :  { %7177 = vmatmul.msk.f32.gmra.mxu0 %vm3405_vm1, %v14529_v18  ;;  %7181 = vmatmul.msk.f32.gmra.mxu3 %vm3405_vm1, %v12484_v46  ;;  %v3134_v46 = vpop.f32.mrf.mxu3  ;;  %v3160_v6 = vpop.f32.mrf.mxu1 }
 0x2f7   :  { %7175 = vmatmul.msk.f32.gmra.mxu2 %vm3405_vm1, %v12412_v55  ;;  %v3732_v2 = vpop.permute.xlu2 %3731 }
 0x2fa   :  { %7185 = vmatmul.msk.f32.gmra.mxu1 %vm3405_vm1, %v3630_v21  ;;  %v3820_v33 = vpop.permute.xlu1 %3819  ;;  %v3869_v37 = vpop.permute.xlu0 %3868 }
 0x2fc   :  { %7178 = vmatmul.msk.f32.gmra.mxu0 %vm3405_vm1, %v12442_v60  ;;  %7182 = vmatmul.msk.f32.gmra.mxu3 %vm3405_vm1, %v12566_v50  ;;  %v3137_v10 = vpop.f32.mrf.mxu3  ;;  %v3158_v50 = vadd.f32 %v3157_v52, %v3134_v46 }
 0x2ff   :  { %7188 = vmatmul.msk.f32.vlgmr.msrb.gmra.mxu2 %vm3405_vm1, %v12489_v9 }
 0x302   :  { %7186 = vmatmul.msk.f32.gmra.mxu1 %vm3405_vm1, %v3632_v13  ;;  %v3871_v55 = vpop.permute.xlu2 %3870  ;;  %v3180_v60 = vpop.f32.mrf.mxu2 }
 0x303   :  { %v3181_v43 = vadd.f32 %v3180_v60, %v3158_v50 }
 0x304   :  { %7179 = vmatmul.msk.f32.gmra.mxu0 %vm3405_vm1, %v12458_v62  ;;  %7183 = vmatmul.msk.f32.gmra.mxu3 %vm3405_vm1, %v3585_v25 }
 0x305   :  { %v3822_v57 = vpop.permute.xlu1 %3821  ;;  %v3918_v42 = vpop.permute.xlu0 %3917 }
 0x307   :  { %7189 = vmatmul.msk.f32.gmra.mxu2 %vm3405_vm1, %v12539_v7  ;;  %v3161_v7 = vadd.f32 %v3160_v6, %v3137_v10 }
 0x30a   :  { %7187 = vmatmul.msk.f32.gmra.mxu1 %vm3405_vm1, %v3634_v17  ;;  %v3203_v9 = vpop.f32.mrf.mxu0 }
 0x30b   :  { %v3204_v63 = vadd.f32 %v3203_v9, %v3181_v43 }
 0x30c   :  { %7192 = vmatmul.msk.f32.vlgmr.msrb.gmra.mxu0 %vm3405_vm1, %v12534_v34  ;;  %7196 = vmatmul.msk.f32.vlgmr.msra.gmra.mxu3 %vm3405_vm1, %v12018_v5  ;;  %v3873_v62 = vpop.permute.xlu2 %3872  ;;  %v3183_v4 = vpop.f32.mrf.mxu2 }
 0x30d   :  { %v3184_v61 = vadd.f32 %v3183_v4, %v3161_v7 }
 0x30f   :  { %7190 = vmatmul.msk.f32.gmra.mxu2 %vm3405_vm1, %v12580_v48 }
 0x310   :  { %v3824_v45 = vpop.permute.xlu1 %3823  ;;  %v3920_v34 = vpop.permute.xlu0 %3919 }
 0x312   :  { %7200 = vmatmul.msk.f32.vlgmr.msra.gmra.mxu1 %vm3405_vm1, %v3820_v33 }
 0x313   :  { %v3249_v44 = vpop.f32.mrf.mxu1 }
 0x314   :  { %7193 = vmatmul.msk.f32.gmra.mxu0 %vm3405_vm1, %v12593_v11  ;;  %7197 = vmatmul.msk.f32.gmra.mxu3 %vm3405_vm1, %v12121_v12 }
 0x315   :  { %v3206_v5 = vpop.f32.mrf.mxu0 }
 0x316   :  { %v3207_v47 = vadd.f32 %v3206_v5, %v3184_v61 }
 0x317   :  { %7191 = vmatmul.msk.f32.gmra.mxu2 %vm3405_vm1, %v3683_v59 }
 0x318   :  { %v3875_v41 = vpop.permute.xlu2 %3874  ;;  %4045 = vmatpush.msrb.mxu1 %v3207_v47 }
 0x31a   :  { %4046 = vmatpush.msrb.mxu1 %v3204_v63 }
 0x31b   :  { %7201 = vmatmul.msk.f32.gmra.mxu1 %vm3405_vm1, %v3822_v57  ;;  %v3826_v27 = vpop.permute.xlu1 %3825  ;;  %v3922_v22 = vpop.permute.xlu0 %3921 }
 0x31c   :  { %7194 = vmatmul.msk.f32.gmra.mxu0 %vm3405_vm1, %v3730_v24  ;;  %7198 = vmatmul.msk.f32.gmra.mxu3 %vm3405_vm1, %v12203_v36  ;;  %v3226_v36 = vpop.f32.mrf.mxu3 }
 0x31d   :  { %v3250_v26 = vadd.f32 %v3249_v44, %v3226_v36 }
 0x31e   :  { %v3252_v35 = vpop.f32.mrf.mxu1 }
 0x31f   :  { %7204 = vmatmul.msk.f32.vlgmr.msra.gmra.mxu2 %vm3405_vm1, %v3869_v37 }
 0x321   :  { %v3967_v12 = vpop.permute.xlu2 %3966 }
 0x323   :  { %7202 = vmatmul.msk.f32.gmra.mxu1 %vm3405_vm1, %v3824_v45 }
 0x324   :  { %7195 = vmatmul.msk.f32.gmra.mxu0 %vm3405_vm1, %v3732_v2  ;;  %7199 = vmatmul.msk.f32.gmra.mxu3 %vm3405_vm1, %v12283_v28  ;;  %v3229_v32 = vpop.f32.mrf.mxu3 }
 0x325   :  { %v4065_v58 = vpop.permute.xlu1 %4064  ;;  %v3924_v54 = vpop.permute.xlu0 %3923  ;;  %v3253_v0 = vadd.f32 %v3252_v35, %v3229_v32 }
 0x327   :  { %7205 = vmatmul.msk.f32.gmra.mxu2 %vm3405_vm1, %v3871_v55 }
 0x32a   :  { %v3969_v49 = vpop.permute.xlu2 %3968  ;;  %v3272_v21 = vpop.f32.mrf.mxu2 }
 0x32b   :  { %7203 = vmatmul.msk.f32.gmra.mxu1 %vm3405_vm1, %v3826_v27  ;;  %v3273_v20 = vadd.f32 %v3272_v21, %v3250_v26 }
 0x32c   :  { %7208 = vmatmul.msk.f32.vlgmr.msra.gmra.mxu0 %vm3405_vm1, %v3918_v42  ;;  %7212 = vmatmul.msk.f32.vlgmr.msrb.gmra.mxu3 %vm3405_vm1, %v3967_v12 }
 0x32f   :  { %7206 = vmatmul.msk.f32.gmra.mxu2 %vm3405_vm1, %v3873_v62 }
 0x330   :  { %v4067_v48 = vpop.permute.xlu1 %4066 }
 0x331   :  { %v4016_v14 = vpop.permute.xlu0 %4015 }
 0x332   :  { %v4114_v30 = vpop.permute.xlu2 %4113 }
 0x333   :  { %7216 = vmatmul.msk.f32.vlgmr.msrb.gmra.mxu1 %vm3405_vm1, %v4016_v14 }
 0x334   :  { %7209 = vmatmul.msk.f32.gmra.mxu0 %vm3405_vm1, %v3920_v34  ;;  %7213 = vmatmul.msk.f32.gmra.mxu3 %vm3405_vm1, %v3969_v49  ;;  %v3295_v28 = vpop.f32.mrf.mxu0  ;;  %v3275_v11 = vpop.f32.mrf.mxu2 }
 0x335   :  { %v3276_v51 = vadd.f32 %v3275_v11, %v3253_v0  ;;  %v3296_v13 = vadd.f32 %v3295_v28, %v3273_v20 }
 0x337   :  { %7207 = vmatmul.msk.f32.gmra.mxu2 %vm3405_vm1, %v3875_v41 }
 0x33a   :  { %v4069_v31 = vpop.permute.xlu2 %4068 }
 0x33b   :  { %v4018_v29 = vpop.permute.xlu1 %4017  ;;  %v3971_v39 = vpop.permute.xlu0 %3970 }
 0x33c   :  { %7210 = vmatmul.msk.f32.gmra.mxu0 %vm3405_vm1, %v3922_v22  ;;  %7217 = vmatmul.msk.f32.gmra.mxu1 %vm3405_vm1, %v4018_v29  ;;  %v3318_v56 = vpop.f32.mrf.mxu3 }
 0x33d   :  { %7214 = vmatmul.msk.f32.gmra.mxu3 %vm3405_vm1, %v3971_v39  ;;  %v3341_v15 = vpop.f32.mrf.mxu1 }
 0x33e   :  { %v3342_v2 = vadd.f32 %v3341_v15, %v3318_v56 }
 0x33f   :  { %v3298_v53 = vpop.f32.mrf.mxu0 }
 0x340   :  { %v3299_v19 = vadd.f32 %v3298_v53, %v3276_v51 }
 0x342   :  { %4094 = vmatpush.msrb.mxu2 %v3299_v19  ;;  %v4020_v3 = vpop.permute.xlu2 %4019 }
 0x343   :  { %v3973_v38 = vpop.permute.xlu1 %3972 }
 0x344   :  { %7211 = vmatmul.msk.f32.gmra.mxu0 %vm3405_vm1, %v3924_v54  ;;  %7218 = vmatmul.msk.f32.gmra.mxu1 %vm3405_vm1, %v4020_v3 }
 0x345   :  { %4095 = vmatpush.msrb.mxu2 %v3296_v13  ;;  %7215 = vmatmul.msk.f32.gmra.mxu3 %vm3405_vm1, %v3973_v38 }
 0x346   :  { %7220 = vmatmul.msk.f32.vlgmr.msrb.gmra.mxu2 %vm3405_vm1, %v4065_v58  ;;  %v3321_v16 = vpop.f32.mrf.mxu3 }
 0x347   :  { %v3344_v23 = vpop.f32.mrf.mxu1 }
 0x348   :  { %v4116_v8 = vpop.permute.xlu0 %4115  ;;  %v3345_v24 = vadd.f32 %v3344_v23, %v3321_v16 }
 0x34a   :  { %v4022_v25 = vpop.permute.xlu2 %4021 }
 0x34b   :  { %v4118_v7 = vpop.permute.xlu1 %4117 }
 0x34c   :  { %7219 = vmatmul.msk.f32.gmra.mxu1 %vm3405_vm1, %v4022_v25 }
 0x34e   :  { %7221 = vmatmul.msk.f32.gmra.mxu2 %vm3405_vm1, %v4067_v48  ;;  %v3431_v17 = vpop.f32.mrf.mxu3 }
 0x34f   :  { %v3468_v33 = vpop.f32.mrf.mxu1 }
 0x350   :  { %v4071_v18 = vpop.permute.xlu0 %4070  ;;  %v3469_v26 = vadd.f32 %v3468_v33, %v3431_v17 }
 0x352   :  { %v3364_v1 = vpop.f32.mrf.mxu2 }
 0x353   :  { %v3365_v46 = vadd.f32 %v3364_v1, %v3342_v2 }
 0x356   :  { %7222 = vmatmul.msk.f32.gmra.mxu2 %vm3405_vm1, %v4069_v31 }
 0x357   :  { %v3434_v42 = vpop.f32.mrf.mxu3  ;;  %v3471_v9 = vpop.f32.mrf.mxu1 }
 0x358   :  { %v4120_v61 = vpop.permute.xlu0 %4119  ;;  %v3472_v38 = vadd.f32 %v3471_v9, %v3434_v42 }
 0x359   :  { %v3387_v40 = vpop.f32.mrf.mxu0 }
 0x35a   :  { %v3367_v59 = vpop.f32.mrf.mxu2  ;;  %v3388_v60 = vadd.f32 %v3387_v40, %v3365_v46 }
 0x35b   :  { %v3368_v37 = vadd.f32 %v3367_v59, %v3345_v24 }
 0x35e   :  { %7223 = vmatmul.msk.f32.gmra.mxu2 %vm3405_vm1, %v4071_v18 }
 0x35f   :  { %v3437_v6 = vpop.f32.mrf.mxu3  ;;  %v3474_v4 = vpop.f32.mrf.mxu1 }
 0x360   :  { %v3475_v1 = vadd.f32 %v3474_v4, %v3437_v6 }
 0x361   :  { %v3390_v55 = vpop.f32.mrf.mxu0 }
 0x362   :  { %v3391_v52 = vadd.f32 %v3390_v55, %v3368_v37  ;;  %v3513_v57 = vpop.f32.mrf.mxu2 }
 0x363   :  { %v3525_v19 = vadd.f32 %v3513_v57, %v3469_v26 }
 0x364   :  { %4143 = vmatpush.msrb.mxu0 %v3391_v52 }
 0x366   :  { %4144 = vmatpush.msrb.mxu0 %v3388_v60 }
 0x367   :  { %7224 = vmatmul.msk.f32.vlgmr.msrb.gmra.mxu0 %vm3405_vm1, %v4114_v30  ;;  %v3440_v50 = vpop.f32.mrf.mxu3  ;;  %v3477_v5 = vpop.f32.mrf.mxu1 }
 0x368   :  { %v3478_v52 = vadd.f32 %v3477_v5, %v3440_v50 }
 0x369   :  { %v3562_v62 = vpop.f32.mrf.mxu0 }
 0x36a   :  { %v3516_v10 = vpop.f32.mrf.mxu2  ;;  %v3574_v3 = vadd.f32 %v3562_v62, %v3525_v19 }
 0x36b   :  { %v3526_v16 = vadd.f32 %v3516_v10, %v3472_v38 }
 0x36f   :  { %7225 = vmatmul.msk.f32.gmra.mxu0 %vm3405_vm1, %v4116_v8  ;;  %v3611_v63 = vpop.f32.mrf.mxu3  ;;  %v3660_v41 = vpop.f32.mrf.mxu1 }
 0x370   :  { %v3623_v15 = vadd.f32 %v3611_v63, %v3574_v3 }
 0x371   :  { %v3565_v45 = vpop.f32.mrf.mxu0 }
 0x372   :  { %v3519_v34 = vpop.f32.mrf.mxu2  ;;  %v3672_v23 = vadd.f32 %v3660_v41, %v3623_v15  ;;  %v3575_v59 = vadd.f32 %v3565_v45, %v3526_v16 }
 0x373   :  { %v3527_v24 = vadd.f32 %v3519_v34, %v3475_v1 }
 0x377   :  { %7226 = vmatmul.msk.f32.gmra.mxu0 %vm3405_vm1, %v4118_v7  ;;  %v3614_v12 = vpop.f32.mrf.mxu3  ;;  %v3663_v58 = vpop.f32.mrf.mxu1 }
 0x378   :  { %v3624_v2 = vadd.f32 %v3614_v12, %v3575_v59 }
 0x379   :  { %v3568_v43 = vpop.f32.mrf.mxu0 }
 0x37a   :  { %v3522_v47 = vpop.f32.mrf.mxu2  ;;  %v3576_v60 = vadd.f32 %v3568_v43, %v3527_v24  ;;  %v3673_v57 = vadd.f32 %v3663_v58, %v3624_v2 }
 0x37b   :  { %v3528_v7 = vadd.f32 %v3522_v47, %v3478_v52  ;;  %v4167_v52 = vld [vmem:[%s14278_s6 + $0x8] sm:$0xff] }
 0x37f   :  { %7227 = vmatmul.msk.f32.gmra.mxu0 %vm3405_vm1, %v4120_v61  ;;  %v3617_v36 = vpop.f32.mrf.mxu3  ;;  %v3666_v44 = vpop.f32.mrf.mxu1 }
 0x380   :  { %v3625_v10 = vadd.f32 %v3617_v36, %v3576_v60  ;;  %v4162_v60 = vld [vmem:[%s14277_s5] sm:$0xff] }
 0x381   :  { %v3571_v27 = vpop.f32.mrf.mxu0 }
 0x382   :  { %v3709_v22 = vpop.f32.mrf.mxu2  ;;  %v3577_v41 = vadd.f32 %v3571_v27, %v3528_v7 }
 0x383   :  { %v3721_v18 = vadd.f32 %v3709_v22, %v3672_v23  ;;  %v3674_v22 = vadd.f32 %v3666_v44, %v3625_v10 }
 0x387   :  { %v3620_v14 = vpop.f32.mrf.mxu3  ;;  %v12684_v30 = vpop.f32.mrf.mxu1 }
 0x388   :  { %v3626_v50 = vadd.f32 %v3620_v14, %v3577_v41 }
 0x389   :  { %v3758_v54 = vpop.f32.mrf.mxu0 }
 0x38a   :  { %v3712_v49 = vpop.f32.mrf.mxu2  ;;  %v3770_v17 = vadd.f32 %v3758_v54, %v3721_v18 }
 0x38b   :  { %v3722_v42 = vadd.f32 %v3712_v49, %v3673_v57  ;;  %v7907_v57 = vmov 128.0  }
 0x38c   :  { %7837 = vrcp.f32 %v7907_v57  ;;  %v4364_v57 = vld [vmem:[%s14279_s7 + $0x98] sm:$0xff] }
 0x38f   :  { %v3803_v35 = vpop.f32.mrf.mxu3  ;;  %v3852_v29 = vpop.f32.mrf.mxu1 }
 0x390   :  { %v3815_v55 = vadd.f32 %v3803_v35, %v3770_v17 }
 0x391   :  { %v3761_v48 = vpop.f32.mrf.mxu0 }
 0x392   :  { %v3715_v21 = vpop.f32.mrf.mxu2  ;;  %v3864_v9 = vadd.f32 %v3852_v29, %v3815_v55  ;;  %v3771_v6 = vadd.f32 %v3761_v48, %v3722_v42  ;;  %v7838_v42 = vpop.eup %7837 }
 0x393   :  { %v3723_v35 = vadd.f32 %v3715_v21, %v3674_v22  ;;  %vm4183_vm2 = vweird.f32 %v7838_v42 }
 0x397   :  { %v3806_v39 = vpop.f32.mrf.mxu3 }
 0x398   :  { %v3855_v0 = vpop.f32.mrf.mxu1  ;;  %v3816_v45 = vadd.f32 %v3806_v39, %v3771_v6  ;;  %v3675_v39 = vadd.f32 %v12684_v30, %v3626_v50 }
 0x399   :  { %v3764_v28 = vpop.f32.mrf.mxu0 }
 0x39a   :  { %v12686_v32 = vpop.f32.mrf.mxu2  ;;  %v3865_v26 = vadd.f32 %v3855_v0, %v3816_v45  ;;  %v3772_v5 = vadd.f32 %v3764_v28, %v3723_v35 }
 0x39b   :  { %v3724_v27 = vadd.f32 %v12686_v32, %v3675_v39  ;;  %v4376_v39 = vld [vmem:[%s14279_s7 + $0xf8] sm:$0xff] }
 0x39f   :  { %v3809_v20 = vpop.f32.mrf.mxu3 }
 0x3a0   :  { %v3858_v13 = vpop.f32.mrf.mxu1  ;;  %v3817_v29 = vadd.f32 %v3809_v20, %v3772_v5 }
 0x3a1   :  { %v12688_v11 = vpop.f32.mrf.mxu0 }
 0x3a2   :  { %v3901_v31 = vpop.f32.mrf.mxu2  ;;  %v3866_v44 = vadd.f32 %v3858_v13, %v3817_v29  ;;  %v3773_v14 = vadd.f32 %v12688_v11, %v3724_v27  ;;  %v4164_v29 = vld [vmem:[%s14277_s5 + $0x10] sm:$0xff]  ;;  %v4439_v27 = vunpack.c.l.bf16 %v4376_v39 }
 0x3a3   :  { %v3913_v4 = vadd.f32 %v3901_v31, %v3864_v9  ;;  %v4179_v9 = vmul.f32 128.0, %v7838_v42 }
 0x3a4   :  { %4499 = vmatpush.msra.mxu2 %v4439_v27 }
 0x3a7   :  { %v3812_v8 = vpop.f32.mrf.mxu3 }
 0x3a8   :  { %v3861_v40 = vpop.f32.mrf.mxu1 }
 0x3a9   :  { %v3950_v51 = vpop.f32.mrf.mxu0 }
 0x3aa   :  { %v3904_v53 = vpop.f32.mrf.mxu2  ;;  %v3962_v63 = vadd.f32 %v3950_v51, %v3913_v4 }
 0x3ab   :  { %v3914_v43 = vadd.f32 %v3904_v53, %v3865_v26  ;;  %v3818_v53 = vadd.f32 %v3812_v8, %v3773_v14  ;;  %v4374_v14 = vld [vmem:[%s14279_s7 + $0xe8] sm:$0xff] }
 0x3ad   :  { %v3867_v30 = vadd.f32 %v3861_v40, %v3818_v53  ;;  %v4163_v40 = vld [vmem:[%s14277_s5 + $0x8] sm:$0xff]  ;;  %v4435_v53 = vunpack.c.l.bf16 %v4374_v14 }
 0x3af   :  { %v3999_v46 = vpop.f32.mrf.mxu3  ;;  %4500 = vmatpush.msra.mxu2 %v4435_v53 }
 0x3b0   :  { %v4048_v62 = vpop.f32.mrf.mxu1  ;;  %v4011_v12 = vadd.f32 %v3999_v46, %v3962_v63 }
 0x3b1   :  { %v3953_v56 = vpop.f32.mrf.mxu0 }
 0x3b2   :  { %v3907_v25 = vpop.f32.mrf.mxu2  ;;  %v4060_v58 = vadd.f32 %v4048_v62, %v4011_v12  ;;  %v3963_v47 = vadd.f32 %v3953_v56, %v3914_v43  ;;  %v4180_v62 = vsub.f32 1.0, %v4179_v9 }
 0x3b3   :  { %v3915_v28 = vadd.f32 %v3907_v25, %v3866_v44  ;;  %v4440_v44 = vunpack.c.h.bf16 %v4376_v39  ;;  %v4355_v39 = vld [vmem:[%s14279_s7 + $0x50] sm:$0xff] }
 0x3b4   :  { %v4181_v7 = vmul.f32 %v7838_v42, %v4180_v62  ;;  %v4415_v62 = vunpack.c.l.bf16 %v4364_v57  ;;  %v4398_v27 = vunpack.c.h.bf16 %v4355_v39 }
 0x3b5   :  { %4528 = vmatpush.msra.mxu0 %v4440_v44 }
 0x3b6   :  { %v4182_v10 = vadd.f32 %v7838_v42, %v4181_v7  ;;  %v4416_v7 = vunpack.c.h.bf16 %v4364_v57 }
 0x3b7   :  { %v4002_v54 = vpop.f32.mrf.mxu3 }
 0x3b8   :  { %v4012_v51 = vadd.f32 %v4002_v54, %v3963_v47  ;;  %v12705_v6 = vsel %vm4183_vm2, %v7838_v42, %v4182_v10  ;;  %v4165_v47 = vld [vmem:[%s14277_s5 + $0x18] sm:$0xff]  ;;  %v4361_v10 = vld [vmem:[%s14279_s7 + $0x80] sm:$0xff] }
 0x3b9   :  { %v3956_v33 = vpop.f32.mrf.mxu0  ;;  %v4051_v49 = vpop.f32.mrf.mxu1 }
 0x3ba   :  { %v3910_v37 = vpop.f32.mrf.mxu2  ;;  %v4061_v0 = vadd.f32 %v4051_v49, %v4012_v51  ;;  %v3964_v3 = vadd.f32 %v3956_v33, %v3915_v28 }
 0x3bb   :  { %v3916_v23 = vadd.f32 %v3910_v37, %v3867_v30  ;;  %v4166_v37 = vld [vmem:[%s14278_s6] sm:$0xff] }
 0x3bc   :  { %v4369_v30 = vld [vmem:[%s14279_s7 + $0xc0] sm:$0xff] }
 0x3c0   :  { %v4005_v21 = vpop.f32.mrf.mxu3 }
 0x3c1   :  { %v3959_v34 = vpop.f32.mrf.mxu0  ;;  %v4054_v38 = vpop.f32.mrf.mxu1  ;;  %v4013_v15 = vadd.f32 %v4005_v21, %v3964_v3  ;;  %v4373_v21 = vld [vmem:[%s14279_s7 + $0xe0] sm:$0xff]  ;;  %v4436_v3 = vunpack.c.h.bf16 %v4374_v14 }
 0x3c2   :  { %v3965_v13 = vadd.f32 %v3959_v34, %v3916_v23  ;;  %v4433_v28 = vunpack.c.l.bf16 %v4373_v21  ;;  %v4370_v23 = vld [vmem:[%s14279_s7 + $0xc8] sm:$0xff]  ;;  %v4353_v14 = vld [vmem:[%s14279_s7 + $0x40] sm:$0xff] }
 0x3c3   :  { %v4062_v59 = vadd.f32 %v4054_v38, %v4013_v15  ;;  %v4372_v38 = vld [vmem:[%s14279_s7 + $0xd8] sm:$0xff]  ;;  %4529 = vmatpush.msra.mxu0 %v4436_v3  ;;  %v4393_v53 = vunpack.c.l.bf16 %v4353_v14  ;;  %v4394_v3 = vunpack.c.h.bf16 %v4353_v14 }
 0x3c8   :  { %v4008_v32 = vpop.f32.mrf.mxu3 }
 0x3c9   :  { %v4097_v61 = vpop.f32.mrf.mxu2  ;;  %v4014_v2 = vadd.f32 %v4008_v32, %v3965_v13  ;;  %v4057_v25 = vpop.f32.mrf.mxu1  ;;  %v4426_v32 = vunpack.c.h.bf16 %v4369_v30  ;;  %v4427_v13 = vunpack.c.l.bf16 %v4370_v23 }
 0x3ca   :  { %v4109_v36 = vadd.f32 %v4097_v61, %v4060_v58 }
 0x3cb   :  { %v4063_v17 = vadd.f32 %v4057_v25, %v4014_v2  ;;  %v4368_v2 = vld [vmem:[%s14279_s7 + $0xb8] sm:$0xff] }
 0x3d1   :  { %v4100_v48 = vpop.f32.mrf.mxu2 }
 0x3d2   :  { %v4110_v20 = vadd.f32 %v4100_v48, %v4061_v0  ;;  %v4168_v48 = vld [vmem:[%s14278_s6 + $0x10] sm:$0xff]  ;;  %v4434_v0 = vunpack.c.h.bf16 %v4373_v21 }
 0x3d9   :  { %v4103_v1 = vpop.f32.mrf.mxu2 }
 0x3da   :  { %v4111_v18 = vadd.f32 %v4103_v1, %v4062_v59  ;;  %v4432_v1 = vunpack.c.h.bf16 %v4372_v38  ;;  %v4425_v59 = vunpack.c.l.bf16 %v4369_v30 }
 0x3dc   :  { %4530 = vmatpush.msra.mxu0 %v4432_v1 }
 0x3e1   :  { %v4106_v8 = vpop.f32.mrf.mxu2 }
 0x3e2   :  { %v4112_v33 = vadd.f32 %v4106_v8, %v4063_v17  ;;  %v4423_v8 = vunpack.c.l.bf16 %v4368_v2  ;;  %v4424_v17 = vunpack.c.h.bf16 %v4368_v2 }
 0x3e4   :  { %v4146_v31 = vpop.f32.mrf.mxu0 }
 0x3e5   :  { %v4158_v19 = vadd.f32 %v4146_v31, %v4109_v36  ;;  %v4169_v36 = vld [vmem:[%s14278_s6 + $0x18] sm:$0xff]  ;;  %v4375_v31 = vld [vmem:[%s14279_s7 + $0xf0] sm:$0xff] }
 0x3e6   :  { %v4437_v51 = vunpack.c.l.bf16 %v4375_v31 }
 0x3e7   :  { %4170 = vadd.xlane.f32.xlu1 %v4158_v19 }
 0x3e8   :  { %4441 = vmatpush.msra.mxu3 %v4437_v51  ;;  %v4356_v51 = vld [vmem:[%s14279_s7 + $0x58] sm:$0xff] }
 0x3e9   :  { %v4399_v44 = vunpack.c.l.bf16 %v4356_v51  ;;  %v4400_v21 = vunpack.c.h.bf16 %v4356_v51 }
 0x3ea   :  { %4442 = vmatpush.msra.mxu3 %v4433_v28  ;;  %v4354_v28 = vld [vmem:[%s14279_s7 + $0x48] sm:$0xff] }
 0x3ec   :  { %v4149_v56 = vpop.f32.mrf.mxu0 }
 0x3ed   :  { %v4159_v16 = vadd.f32 %v4149_v56, %v4110_v20  ;;  %v4371_v20 = vld [vmem:[%s14279_s7 + $0xd0] sm:$0xff] }
 0x3ee   :  { %v4429_v56 = vunpack.c.l.bf16 %v4371_v20  ;;  %v4430_v15 = vunpack.c.h.bf16 %v4371_v20  ;;  %v4395_v20 = vunpack.c.l.bf16 %v4354_v28 }
 0x3ef   :  { %4172 = vadd.xlane.f32.xlu2 %v4159_v16 }
 0x3f0   :  { %4443 = vmatpush.msra.mxu3 %v4429_v56  ;;  %v4351_v56 = vld [vmem:[%s14279_s7 + $0x30] sm:$0xff] }
 0x3f1   :  { %v4390_v1 = vunpack.c.h.bf16 %v4351_v56 }
 0x3f2   :  { %4444 = vmatpush.msra.mxu3 %v4425_v59  ;;  %v4349_v59 = vld [vmem:[%s14279_s7 + $0x20] sm:$0xff] }
 0x3f4   :  { %v4152_v24 = vpop.f32.mrf.mxu0 }
 0x3f5   :  { %v4160_v11 = vadd.f32 %v4152_v24, %v4111_v18  ;;  %v4428_v18 = vunpack.c.h.bf16 %v4370_v23  ;;  %v4367_v24 = vld [vmem:[%s14279_s7 + $0xb0] sm:$0xff] }
 0x3f6   :  { %v4422_v25 = vunpack.c.h.bf16 %v4367_v24 }
 0x3f7   :  { %4174 = vadd.xlane.f32.xlu0 %v4160_v11  ;;  %4531 = vmatpush.msra.mxu0 %v4428_v18  ;;  %v4386_v18 = vunpack.c.h.bf16 %v4349_v59 }
 0x3f9   :  { %4532 = vmatpush.msra.mxu0 %v4424_v17 }
 0x3fc   :  { %v4155_v55 = vpop.f32.mrf.mxu0 }
 0x3fd   :  { %v4161_v46 = vadd.f32 %v4155_v55, %v4112_v33  ;;  %v4365_v33 = vld [vmem:[%s14279_s7 + $0xa0] sm:$0xff]  ;;  %v4366_v55 = vld [vmem:[%s14279_s7 + $0xa8] sm:$0xff] }
 0x3ff   :  { %4176 = vadd.xlane.f32.xlu2 %v4161_v46 }
 0x400   :  { %4264 = vperm.xlu1 %7416, %v4163_v40   ;;  %v4418_v40 = vunpack.c.h.bf16 %v4365_v33 }
 0x40b   :  { %4283 = vperm.xlu0 %7414, %v4166_v37   ;;  %v4419_v37 = vunpack.c.l.bf16 %v4366_v55 }
 0x413   :  { %4288 = vperm.xlu0 %7414, %v4167_v52   ;;  %v4420_v52 = vunpack.c.h.bf16 %v4366_v55 }
 0x415   :  { %4533 = vmatpush.msra.mxu0 %v4420_v52 }
 0x417   :  { %4259 = vperm.xlu2 %7415, %v4162_v60   ;;  %v4363_v60 = vld [vmem:[%s14279_s7 + $0x90] sm:$0xff]  ;;  %4534 = vmatpush.msra.mxu0 %v4416_v7 }
 0x418   :  { %v4413_v42 = vunpack.c.l.bf16 %v4363_v60  ;;  %v4414_v9 = vunpack.c.h.bf16 %v4363_v60 }
 0x45a   :  { %v4171_v4 = vpop.xlane.xlu1 %4170 }
 0x45b   :  { %v4185_v61 = vmul.f32 %v12705_v6, %v4171_v4  ;;  %v4362_v4 = vld [vmem:[%s14279_s7 + $0x88] sm:$0xff] }
 0x45d   :  { %v12708_v45 = vsub.f32 %v4158_v19, %v4185_v61  ;;  %v4438_v19 = vunpack.c.h.bf16 %v4375_v31  ;;  %v4409_v61 = vunpack.c.l.bf16 %v4361_v10 }
 0x45f   :  { %v4193_v63 = vmul.f32 %v12708_v45, %v12708_v45  ;;  %4470 = vmatpush.msra.mxu1 %v4438_v19  ;;  %v4397_v19 = vunpack.c.l.bf16 %v4355_v39 }
 0x461   :  { %4197 = vadd.xlane.f32.xlu1 %v4193_v63  ;;  %4471 = vmatpush.msra.mxu1 %v4434_v0  ;;  %v4410_v63 = vunpack.c.h.bf16 %v4361_v10 }
 0x462   :  { %v4173_v34 = vpop.xlane.xlu2 %4172 }
 0x463   :  { %v4186_v41 = vmul.f32 %v12705_v6, %v4173_v34  ;;  %4472 = vmatpush.msra.mxu1 %v4430_v15  ;;  %v4411_v34 = vunpack.c.l.bf16 %v4362_v4  ;;  %v4352_v15 = vld [vmem:[%s14279_s7 + $0x38] sm:$0xff] }
 0x464   :  { %v4391_v30 = vunpack.c.l.bf16 %v4352_v15  ;;  %v4392_v23 = vunpack.c.h.bf16 %v4352_v15 }
 0x465   :  { %v12713_v22 = vsub.f32 %v4159_v16, %v4186_v41  ;;  %v4431_v16 = vunpack.c.l.bf16 %v4372_v38  ;;  %4473 = vmatpush.msra.mxu1 %v4426_v32  ;;  %v4412_v41 = vunpack.c.h.bf16 %v4362_v4  ;;  %v4396_v38 = vunpack.c.h.bf16 %v4354_v28  ;;  %v4350_v32 = vld [vmem:[%s14279_s7 + $0x28] sm:$0xff] }
 0x466   :  { %v4388_v2 = vunpack.c.h.bf16 %v4350_v32 }
 0x467   :  { %v4194_v12 = vmul.f32 %v12713_v22, %v12713_v22  ;;  %4501 = vmatpush.msra.mxu2 %v4431_v16  ;;  %4474 = vmatpush.msra.mxu1 %v4422_v25  ;;  %v4389_v16 = vunpack.c.l.bf16 %v4351_v56  ;;  %v4348_v25 = vld [vmem:[%s14279_s7 + $0x18] sm:$0xff] }
 0x468   :  { %4535 = vmatpush.msra.mxu0 %v4412_v41  ;;  %v4383_v55 = vunpack.c.l.bf16 %v4348_v25 }
 0x469   :  { %4199 = vadd.xlane.f32.xlu2 %v4194_v12  ;;  %4502 = vmatpush.msra.mxu2 %v4427_v13  ;;  %v4359_v12 = vld [vmem:[%s14279_s7 + $0x70] sm:$0xff]  ;;  %v4385_v13 = vunpack.c.l.bf16 %v4349_v59 }
 0x46a   :  { %v4175_v54 = vpop.xlane.xlu0 %4174  ;;  %4475 = vmatpush.msra.mxu1 %v4418_v40  ;;  %v4345_v40 = vld [vmem:[%s14279_s7] sm:$0xff] }
 0x46b   :  { %v4187_v35 = vmul.f32 %v12705_v6, %v4175_v54  ;;  %4503 = vmatpush.msra.mxu2 %v4423_v8  ;;  %v4360_v54 = vld [vmem:[%s14279_s7 + $0x78] sm:$0xff]  ;;  %v4377_v57 = vunpack.c.l.bf16 %v4345_v40 }
 0x46c   :  { %4476 = vmatpush.msra.mxu1 %v4414_v9 }
 0x46d   :  { %v12718_v26 = vsub.f32 %v4160_v11, %v4187_v35  ;;  %v4421_v11 = vunpack.c.l.bf16 %v4367_v24  ;;  %4504 = vmatpush.msra.mxu2 %v4419_v37  ;;  %v4405_v35 = vunpack.c.l.bf16 %v4359_v12  ;;  %v4387_v24 = vunpack.c.l.bf16 %v4350_v32  ;;  %v4346_v37 = vld [vmem:[%s14279_s7 + $0x8] sm:$0xff] }
 0x46e   :  { %4477 = vmatpush.msra.mxu1 %v4410_v63  ;;  %v4379_v9 = vunpack.c.l.bf16 %v4346_v37 }
 0x46f   :  { %v4195_v50 = vmul.f32 %v12718_v26, %v12718_v26  ;;  %4445 = vmatpush.msra.mxu3 %v4421_v11  ;;  %4505 = vmatpush.msra.mxu2 %v4415_v62  ;;  %v4347_v11 = vld [vmem:[%s14279_s7 + $0x10] sm:$0xff]  ;;  %v4380_v62 = vunpack.c.h.bf16 %v4346_v37 }
 0x470   :  { %v4381_v17 = vunpack.c.l.bf16 %v4347_v11 }
 0x471   :  { %4201 = vadd.xlane.f32.xlu0 %v4195_v50  ;;  %v4406_v50 = vunpack.c.h.bf16 %v4359_v12  ;;  %4506 = vmatpush.msra.mxu2 %v4411_v34 }
 0x472   :  { %v4177_v5 = vpop.xlane.xlu2 %4176  ;;  %v12811_v0 = vpop.permute.xlu1 %4264 }
 0x473   :  { %v4188_v43 = vmul.f32 %v12705_v6, %v4177_v5  ;;  %v4407_v5 = vunpack.c.l.bf16 %v4360_v54  ;;  %4478 = vmatpush.msra.mxu1 %v4406_v50 }
 0x475   :  { %v12723_v58 = vsub.f32 %v4161_v46, %v4188_v43  ;;  %v4417_v46 = vunpack.c.l.bf16 %v4365_v33  ;;  %v4408_v43 = vunpack.c.h.bf16 %v4360_v54  ;;  %4507 = vmatpush.msra.mxu2 %v4407_v5  ;;  %v4382_v33 = vunpack.c.h.bf16 %v4347_v11 }
 0x477   :  { %v4196_v49 = vmul.f32 %v12723_v58, %v12723_v58  ;;  %4446 = vmatpush.msra.mxu3 %v4417_v46  ;;  %4536 = vmatpush.msra.mxu0 %v4408_v43  ;;  %v4384_v46 = vunpack.c.h.bf16 %v4348_v25 }
 0x479   :  { %4203 = vadd.xlane.f32.xlu1 %v4196_v49  ;;  %4447 = vmatpush.msra.mxu3 %v4413_v42  ;;  %v4357_v49 = vld [vmem:[%s14279_s7 + $0x60] sm:$0xff]  ;;  %v4378_v42 = vunpack.c.h.bf16 %v4345_v40 }
 0x47a   :  { %v4260_v52 = vpop.permute.xlu2 %4259 }
 0x47b   :  { %4448 = vmatpush.msra.mxu3 %v4409_v61 }
 0x47d   :  { %4449 = vmatpush.msra.mxu3 %v4405_v35  ;;  %v4284_v8 = vpop.permute.xlu0 %4283 }
 0x481   :  { %4269 = vperm.xlu2 %7415, %v4164_v29   ;;  %v4358_v29 = vld [vmem:[%s14279_s7 + $0x68] sm:$0xff]  ;;  %s7922_s7 = smov 102  }
 0x482   :  { %v4404_v31 = vunpack.c.h.bf16 %v4358_v29 }
 0x484   :  { %4537 = vmatpush.msra.mxu0 %v4404_v31 }
 0x485   :  { %4274 = vperm.xlu0 %7414, %v4165_v47   ;;  %v4401_v47 = vunpack.c.l.bf16 %v4357_v49  ;;  %v4289_v4 = vpop.permute.xlu0 %4288 }
 0x486   :  { %4538 = vmatpush.msra.mxu0 %v4400_v21 }
 0x487   :  { %4450 = vmatpush.msra.mxu3 %v4401_v47 }
 0x488   :  { %4539 = vmatpush.msra.mxu0 %v4396_v38 }
 0x489   :  { %4298 = vperm.xlu2 %7415, %v4169_v36   ;;  %v4402_v36 = vunpack.c.h.bf16 %v4357_v49  ;;  %4451 = vmatpush.msra.mxu3 %v4397_v19 }
 0x48a   :  { %4540 = vmatpush.msra.mxu0 %v4392_v23 }
 0x48b   :  { %4479 = vmatpush.msra.mxu1 %v4402_v36  ;;  %4452 = vmatpush.msra.mxu3 %v4393_v53 }
 0x48c   :  { %4541 = vmatpush.msra.mxu0 %v4388_v2 }
 0x48d   :  { %4480 = vmatpush.msra.mxu1 %v4398_v27  ;;  %4453 = vmatpush.msra.mxu3 %v4389_v16 }
 0x48e   :  { %4542 = vmatpush.msra.mxu0 %v4384_v46 }
 0x48f   :  { %4481 = vmatpush.msra.mxu1 %v4394_v3  ;;  %4454 = vmatpush.msra.mxu3 %v4385_v13 }
 0x490   :  { %4543 = vmatpush.msra.mxu0 %v4380_v62 }
 0x491   :  { %4482 = vmatpush.msra.mxu1 %v4390_v1  ;;  %4455 = vmatpush.msra.mxu3 %v4381_v17  ;;  %v12868_v17 = vld [vmem:[%s14280_s8 + $0x80] sm:$0xff] }
 0x492   :  { %4293 = vperm.xlu1 %7416, %v4168_v48   ;;  %v4403_v48 = vunpack.c.l.bf16 %v4358_v29 }
 0x493   :  { %4483 = vmatpush.msra.mxu1 %v4386_v18  ;;  %4456 = vmatpush.msra.mxu3 %v4377_v57 }
 0x494   :  { %4508 = vmatpush.msra.mxu2 %v4403_v48 }
 0x495   :  { %4484 = vmatpush.msra.mxu1 %v4382_v33  ;;  %v12873_v33 = vld [vmem:[%s14280_s8 + $0xa0] sm:$0xff] }
 0x496   :  { %4509 = vmatpush.msra.mxu2 %v4399_v44 }
 0x497   :  { %4485 = vmatpush.msra.mxu1 %v4378_v42 }
 0x498   :  { %4510 = vmatpush.msra.mxu2 %v4395_v20 }
 0x49a   :  { %4511 = vmatpush.msra.mxu2 %v4391_v30  ;;  %v12851_v30 = vld [vmem:[%s14280_s8 + $0x40] sm:$0xff] }
 0x49b   :  { %4569 = vrot.lane.b32.xlu2 %v12851_v30, %s7901_s24 }
 0x49c   :  { %4512 = vmatpush.msra.mxu2 %v4387_v24 }
 0x49e   :  { %4513 = vmatpush.msra.mxu2 %v4383_v55  ;;  %v12878_v55 = vld [vmem:[%s14280_s8 + $0x60] sm:$0xff] }
 0x4a0   :  { %4514 = vmatpush.msra.mxu2 %v4379_v9 }
 0x4a3   :  { %4575 = vrot.lane.b32.xlu2 %v12873_v33, %s7901_s24 }
 0x4d4   :  { %v4198_v60 = vpop.xlane.xlu1 %4197 }
 0x4d5   :  { %v4205_v7 = vmul.f32 %v4198_v60, %v12705_v6 }
 0x4d7   :  { %v4209_v10 = vadd.f32 1e-05, %v4205_v7 }
 0x4d9   :  { %7839 = vrsqrt.f32 %v4209_v10  ;;  %vm4219_vm4 = vweird.f32 %v4209_v10 }
 0x4dc   :  { %v4200_v61 = vpop.xlane.xlu2 %4199 }
 0x4dd   :  { %v4206_v63 = vmul.f32 %v4200_v61, %v12705_v6 }
 0x4df   :  { %v7840_v34 = vpop.eup %7839  ;;  %v4210_v41 = vadd.f32 1e-05, %v4206_v63 }
 0x4e0   :  { %v4214_v12 = vmul.f32 %v7840_v34, %v4209_v10  ;;  %vm4220_vm3 = vweird.f32 %v7840_v34 }
 0x4e1   :  { %7841 = vrsqrt.f32 %v4210_v41  ;;  %vm4221_vm5 = vmor %vm4219_vm4, %vm4220_vm3  ;;  %vm4229_vm7 = vweird.f32 %v4210_v41 }
 0x4e2   :  { %v4215_v54 = vmul.f32 %v7840_v34, %v4214_v12  ;;  %v12908_v12 = vld [vmem:[%s14280_s8 + $0xc0] sm:$0xff] }
 0x4e4   :  { %v4216_v35 = vmul.f32 0.5, %v4215_v54  ;;  %v4202_v50 = vpop.xlane.xlu0 %4201  ;;  %v4270_v46 = vpop.permute.xlu2 %4269 }
 0x4e5   :  { %v4207_v5 = vmul.f32 %v4202_v50, %v12705_v6 }
 0x4e6   :  { %v4217_v43 = vsub.f32 1.5, %v4216_v35 }
 0x4e7   :  { %v7842_v49 = vpop.eup %7841  ;;  %v4211_v29 = vadd.f32 1e-05, %v4207_v5 }
 0x4e8   :  { %v4218_v47 = vmul.f32 %v7840_v34, %v4217_v43  ;;  %v4224_v36 = vmul.f32 %v7842_v49, %v4210_v41  ;;  %vm4230_vm6 = vweird.f32 %v7842_v49 }
 0x4e9   :  { %7843 = vrsqrt.f32 %v4211_v29  ;;  %vm4231_vm8 = vmor %vm4229_vm7, %vm4230_vm6  ;;  %vm4239_vm10 = vweird.f32 %v4211_v29 }
 0x4ea   :  { %v4222_v48 = vsel %vm4221_vm5, %v7840_v34, %v4218_v47  ;;  %v4225_v31 = vmul.f32 %v7842_v49, %v4224_v36 }
 0x4eb   :  { %v4253_v39 = vmul.f32 %v4222_v48, %v12708_v45 }
 0x4ec   :  { %v4226_v51 = vmul.f32 0.5, %v4225_v31  ;;  %v4204_v19 = vpop.xlane.xlu1 %4203  ;;  %v4299_v61 = vpop.permute.xlu2 %4298  ;;  %v12940_v31 = vld [vmem:[%s14280_s8 + $0x48] sm:$0xff] }
 0x4ed   :  { %v4277_v27 = vmul.f32 %v4260_v52, %v4253_v39  ;;  %v4208_v44 = vmul.f32 %v4204_v19, %v12705_v6  ;;  %v12846_v6 = vld [vmem:[%s14280_s8 + $0x20] sm:$0xff] }
 0x4ee   :  { %v4227_v21 = vsub.f32 1.5, %v4226_v51  ;;  %4567 = vrot.lane.b32.xlu0 %v12846_v6, %s7901_s24  ;;  %4714 = vrot.lane.b32.xlu2 %v12846_v6, %s7903_s23 }
 0x4ef   :  { %v7844_v14 = vpop.eup %7843  ;;  %v4212_v28 = vadd.f32 1e-05, %v4208_v44  ;;  %v4301_v53 = vadd.f32 %v4284_v8, %v4277_v27 }
 0x4f0   :  { %v4228_v3 = vmul.f32 %v7842_v49, %v4227_v21  ;;  %v4234_v20 = vmul.f32 %v7844_v14, %v4211_v29  ;;  %vm4240_vm9 = vweird.f32 %v7844_v14  ;;  %v12965_v21 = vld [vmem:[%s14280_s8 + $0x28] sm:$0xff] }
 0x4f1   :  { %7845 = vrsqrt.f32 %v4212_v28  ;;  %v4305_v38 = vmul.f32 0.2, %v4301_v53  ;;  %vm4241_vm11 = vmor %vm4239_vm10, %vm4240_vm9  ;;  %vm4249_vm13 = vweird.f32 %v4212_v28 }
 0x4f2   :  { %v4232_v56 = vsel %vm4231_vm8, %v7842_v49, %v4228_v3  ;;  %v4235_v15 = vmul.f32 %v7844_v14, %v4234_v20  ;;  %v12988_v3 = vld [vmem:[%s14280_s8 + $0x68] sm:$0xff] }
 0x4f3   :  { %v4254_v45 = vmul.f32 %v4232_v56, %v12713_v22  ;;  %v4309_v16 = vmax.f32 %v4301_v53, %v4305_v38  ;;  %v12857_v22 = vld [vmem:[%s14280_s8] sm:$0xff]  ;;  %v13002_v56 = vld [vmem:[%s14280_s8 + $0x88] sm:$0xff] }
 0x4f4   :  { %v4236_v1 = vmul.f32 0.5, %v4235_v15  ;;  %4565 = vrot.lane.b32.xlu1 %v12857_v22, %s7901_s24 }
 0x4f5   :  { %4457 = vmatmul.f32.vlgmr.msra.gmra.mxu3 %v4309_v16  ;;  %4486 = vmatmul.f32.vlgmr.msra.gmra.mxu1 %v4309_v16  ;;  %v4278_v23 = vmul.f32 %v12811_v0, %v4254_v45  ;;  %v12947_v39 = vpop.permute.xlu2 %4569 }
 0x4f6   :  { %v4237_v59 = vsub.f32 1.5, %v4236_v1  ;;  %4515 = vmatmul.f32.vlgmr.msra.gmra.mxu2 %v4309_v16  ;;  %4544 = vmatmul.f32.vlgmr.msra.gmra.mxu0 %v4309_v16  ;;  %v13016_v16 = vld [vmem:[%s14280_s8 + $0xa8] sm:$0xff] }
 0x4f7   :  { %v7846_v32 = vpop.eup %7845  ;;  %v4302_v13 = vadd.f32 %v4289_v4, %v4278_v23  ;;  %4573 = vrot.lane.b32.xlu0 %v12868_v17, %s7901_s24  ;;  %v4275_v9 = vpop.permute.xlu0 %4274  ;;  %4720 = vrot.lane.b32.xlu2 %v12868_v17, %s7903_s23 }
 0x4f8   :  { %v4238_v18 = vmul.f32 %v7844_v14, %v4237_v59  ;;  %v4244_v24 = vmul.f32 %v7846_v32, %v4212_v28  ;;  %vm4250_vm12 = vweird.f32 %v7846_v32 }
 0x4f9   :  { %v4306_v0 = vmul.f32 0.2, %v4302_v13  ;;  %vm4251_vm14 = vmor %vm4249_vm13, %vm4250_vm12 }
 0x4fa   :  { %v4245_v2 = vmul.f32 %v7846_v32, %v4244_v24  ;;  %v4242_v25 = vsel %vm4241_vm11, %v7844_v14, %v4238_v18  ;;  %v12970_v14 = vld [vmem:[%s14280_s8 + $0x8] sm:$0xff] }
 0x4fb   :  { %v4310_v11 = vmax.f32 %v4302_v13, %v4306_v0  ;;  %v4255_v37 = vmul.f32 %v4242_v25, %v12718_v26  ;;  %v12891_v26 = vld [vmem:[%s14280_s8 + $0xe0] sm:$0xff]  ;;  %v13052_v0 = vld [vmem:[%s14280_s8 + $0xe8] sm:$0xff] }
 0x4fc   :  { %v4246_v8 = vmul.f32 0.5, %v4245_v2  ;;  %4571 = vrot.lane.b32.xlu1 %v12878_v55, %s7901_s24 }
 0x4fd   :  { %4460 = vmatmul.f32.gmra.mxu3 %v4310_v11  ;;  %4489 = vmatmul.f32.gmra.mxu1 %v4310_v11  ;;  %v4279_v57 = vmul.f32 %v4270_v46, %v4255_v37  ;;  %v12958_v27 = vpop.permute.xlu2 %4575 }
 0x4fe   :  { %v4247_v40 = vsub.f32 1.5, %v4246_v8  ;;  %4518 = vmatmul.f32.gmra.mxu2 %v4310_v11  ;;  %4547 = vmatmul.f32.gmra.mxu0 %v4310_v11 }
 0x4ff   :  { %4579 = vrot.lane.b32.xlu0 %v12891_v26, %s7901_s24  ;;  %4805 = vrot.lane.b32.xlu2 %v12857_v22, %s7904_s21 }
 0x500   :  { %v4248_v52 = vmul.f32 %v7846_v32, %v4247_v40 }
 0x502   :  { %v4252_v60 = vsel %vm4251_vm14, %v7846_v32, %v4248_v52  ;;  %v13033_v32 = vld [vmem:[%s14280_s8 + $0xc8] sm:$0xff]  ;;  %v13099_v52 = vld [vmem:[%s14280_s8 + $0x30] sm:$0xff] }
 0x503   :  { %v4256_v42 = vmul.f32 %v4252_v60, %v12723_v58 }
 0x504   :  { %v4294_v62 = vpop.permute.xlu1 %4293  ;;  %4577 = vrot.lane.b32.xlu1 %v12908_v12, %s7901_s24 }
 0x505   :  { %v4280_v7 = vmul.f32 %v4275_v9, %v4256_v42  ;;  %v4303_v10 = vadd.f32 %v4294_v62, %v4279_v57  ;;  %v13117_v9 = vld [vmem:[%s14280_s8 + $0x10] sm:$0xff] }
 0x506   :  { %v13122_v62 = vld [vmem:[%s14280_s8 + $0x50] sm:$0xff] }
 0x507   :  { %v4307_v4 = vmul.f32 0.2, %v4303_v10  ;;  %v4304_v63 = vadd.f32 %v4299_v61, %v4280_v7  ;;  %4712 = vrot.lane.b32.xlu0 %v12857_v22, %s7903_s23 }
 0x509   :  { %v4311_v34 = vmax.f32 %v4303_v10, %v4307_v4  ;;  %v4308_v58 = vmul.f32 0.2, %v4304_v63 }
 0x50b   :  { %4463 = vmatmul.f32.gmra.mxu3 %v4311_v34  ;;  %4492 = vmatmul.f32.gmra.mxu1 %v4311_v34  ;;  %v4312_v41 = vmax.f32 %v4304_v63, %v4308_v58 }
 0x50c   :  { %4521 = vmatmul.f32.gmra.mxu2 %v4311_v34  ;;  %4550 = vmatmul.f32.gmra.mxu0 %v4311_v34 }
 0x50d   :  { %4716 = vrot.lane.b32.xlu1 %v12851_v30, %s7903_s23 }
 0x50f   :  { %4718 = vrot.lane.b32.xlu0 %v12878_v55, %s7903_s23 }
 0x513   :  { %4466 = vmatmul.f32.gmra.mxu3 %v4312_v41  ;;  %4495 = vmatmul.f32.gmra.mxu1 %v4312_v41 }
 0x514   :  { %4524 = vmatmul.f32.gmra.mxu2 %v4312_v41  ;;  %4553 = vmatmul.f32.gmra.mxu0 %v4312_v41 }
 0x515   :  { %4722 = vrot.lane.b32.xlu1 %v12873_v33, %s7903_s23 }
 0x51d   :  { %4807 = vrot.lane.b32.xlu1 %v12846_v6, %s7904_s21 }
 0x548   :  { %v12979_v53 = vpop.permute.xlu2 %4714 }
 0x551   :  { %v12993_v20 = vpop.permute.xlu2 %4720 }
 0x559   :  { %v13011_v45 = vpop.permute.xlu2 %4805 }
 0x560   :  { %v13004_v15 = vpop.permute.xlu0 %4567 }
 0x566   :  { %v12997_v38 = vpop.permute.xlu1 %4565 }
 0x569   :  { %v13024_v23 = vpop.permute.xlu0 %4573 }
 0x56e   :  { %v13022_v1 = vpop.permute.xlu1 %4571 }
 0x571   :  { %v13045_v18 = vpop.permute.xlu0 %4579 }
 0x572   :  { %v12925_v36 = vpop.f32.mrf.mxu1 }
 0x576   :  { %v13043_v13 = vpop.permute.xlu1 %4577 }
 0x578   :  { %v4458_v54 = vpop.f32.mrf.mxu3 }
 0x579   :  { %v4713_v11 = vpop.permute.xlu0 %4712  ;;  %v13070_v25 = vpop.f32.mrf.mxu2 }
 0x57a   :  { %v12935_v48 = vpop.f32.mrf.mxu1 }
 0x57b   :  { %v7457_v19 = vpack.i.bf16 %v12925_v36, %v12935_v48 }
 0x57f   :  { %v13064_v2 = vpop.permute.xlu1 %4716 }
 0x580   :  { %v4461_v35 = vpop.f32.mrf.mxu3 }
 0x581   :  { %v7427_v50 = vpack.i.bf16 %v4458_v54, %v4461_v35  ;;  %v7417_v5 = vpack.i.bf16 %v4461_v35, %v4458_v54  ;;  %v13080_v46 = vpop.permute.xlu0 %4718 }
 0x583   :  { %7428 = vrot.lane.b32.xlu0 %v7427_v50, %s7904_s21  ;;  %7418 = vrot.lane.b32.xlu2 %v7417_v5, %s7901_s24 }
 0x587   :  { %v13078_v8 = vpop.permute.xlu1 %4722 }
 0x588   :  { %v12949_v51 = vpop.f32.mrf.mxu1 }
 0x58b   :  { %7423 = vrot.lane.b32.xlu2 %v7427_v50, %s7903_s23 }
 0x58e   :  { %v4464_v43 = vpop.f32.mrf.mxu3 }
 0x590   :  { %v12960_v44 = vpop.f32.mrf.mxu1 }
 0x591   :  { %v7467_v28 = vpack.i.bf16 %v12949_v51, %v12960_v44 }
 0x593   :  { %4724 = vrot.lane.b32.xlu2 %v12908_v12, %s7903_s23 }
 0x596   :  { %v4467_v49 = vpop.f32.mrf.mxu3 }
 0x597   :  { %4683 = vmatpush.msrb.mxu1 %v4467_v49  ;;  %v7437_v29 = vpack.i.bf16 %v4464_v43, %v4467_v49  ;;  %v7432_v47 = vpack.i.bf16 %v4467_v49, %v4464_v43 }
 0x599   :  { %7438 = vrot.lane.b32.xlu0 %v7437_v29, %s7903_s23  ;;  %7433 = vrot.lane.b32.xlu1 %v7432_v47, %s7901_s24 }
 0x59a   :  { %4684 = vmatpush.msrb.mxu1 %v4464_v43 }
 0x59b   :  { %4813 = vrot.lane.b32.xlu2 %v12868_v17, %s7904_s21 }
 0x59c   :  { %4685 = vmatpush.msrb.mxu1 %v4461_v35 }
 0x59e   :  { %4686 = vmatpush.msrb.mxu1 %v4458_v54 }
 0x59f   :  { %7236 = vmatmul.msk.f32.vlgmr.msrb.gmra.mxu1 %vm4597_vm15, %v12857_v22 }
 0x5a1   :  { %4809 = vrot.lane.b32.xlu0 %v12851_v30, %s7904_s21  ;;  %4726 = vrot.lane.b32.xlu1 %v12891_v26, %s7903_s23 }
 0x5a3   :  { %4819 = vrot.lane.b32.xlu2 %v12891_v26, %s7904_s21 }
 0x5a7   :  { %7237 = vmatmul.msk.f32.gmra.mxu1 %vm4597_vm15, %v12846_v6 }
 0x5a9   :  { %4811 = vrot.lane.b32.xlu0 %v12878_v55, %s7904_s21  ;;  %7443 = vrot.lane.b32.xlu1 %v7437_v29, %s7904_s21  ;;  %v13155_v29 = vld [vmem:[%s14280_s8 + $0x70] sm:$0xff] }
 0x5ab   :  { %4975 = vrot.lane.b32.xlu2 %v12940_v31, %s7901_s24 }
 0x5af   :  { %7238 = vmatmul.msk.f32.gmra.mxu1 %vm4597_vm15, %v12851_v30  ;;  %v13090_v30 = vpop.f32.mrf.mxu2 }
 0x5b0   :  { %v7477_v37 = vpack.i.bf16 %v13070_v25, %v13090_v30 }
 0x5b1   :  { %4817 = vrot.lane.b32.xlu0 %v12908_v12, %s7904_s21  ;;  %4815 = vrot.lane.b32.xlu1 %v12873_v33, %s7904_s21 }
 0x5b3   :  { %7458 = vrot.lane.b32.xlu2 %v7457_v19, %s7903_s23 }
 0x5b7   :  { %7239 = vmatmul.msk.f32.gmra.mxu1 %vm4597_vm15, %v12878_v55  ;;  %v13104_v55 = vpop.permute.xlu1 %4807  ;;  %v4522_v57 = vpop.f32.mrf.mxu2 }
 0x5b9   :  { %4973 = vrot.lane.b32.xlu0 %v12965_v21, %s7901_s24  ;;  %4971 = vrot.lane.b32.xlu1 %v12970_v14, %s7901_s24 }
 0x5bb   :  { %7468 = vrot.lane.b32.xlu2 %v7467_v28, %s7904_s21 }
 0x5bf   :  { %7240 = vmatmul.msk.f32.gmra.mxu1 %vm4597_vm15, %v12868_v17  ;;  %v4525_v63 = vpop.f32.mrf.mxu2 }
 0x5c1   :  { %7453 = vrot.lane.b32.xlu0 %v7467_v28, %s7901_s24  ;;  %7448 = vrot.lane.b32.xlu1 %v7467_v28, %s7903_s23 }
 0x5c3   :  { %5161 = vrot.lane.b32.xlu2 %v12970_v14, %s7904_s21 }
 0x5c7   :  { %7241 = vmatmul.msk.f32.gmra.mxu1 %vm4597_vm15, %v12873_v33  ;;  %v7502_v33 = vpack.i.bf16 %v4522_v57, %v4525_v63 }
 0x5c9   :  { %7463 = vrot.lane.b32.xlu0 %v7457_v19, %s7901_s24  ;;  %5068 = vrot.lane.b32.xlu1 %v12970_v14, %s7903_s23 }
 0x5cb   :  { %5074 = vrot.lane.b32.xlu2 %v12988_v3, %s7903_s23 }
 0x5cf   :  { %7242 = vmatmul.msk.f32.gmra.mxu1 %vm4597_vm15, %v12908_v12 }
 0x5d1   :  { %5070 = vrot.lane.b32.xlu0 %v12965_v21, %s7903_s23  ;;  %7473 = vrot.lane.b32.xlu1 %v7457_v19, %s7904_s21 }
 0x5d3   :  { %5076 = vrot.lane.b32.xlu2 %v13002_v56, %s7903_s23 }
 0x5d7   :  { %7243 = vmatmul.msk.f32.gmra.mxu1 %vm4597_vm15, %v12891_v26  ;;  %v13178_v26 = vld [vmem:[%s14280_s8 + $0x90] sm:$0xff] }
 0x5d9   :  { %5163 = vrot.lane.b32.xlu0 %v12965_v21, %s7904_s21  ;;  %5072 = vrot.lane.b32.xlu1 %v12940_v31, %s7903_s23 }
 0x5db   :  { %5078 = vrot.lane.b32.xlu2 %v13016_v16, %s7903_s23 }
 0x5dd   :  { %v13028_v59 = vpop.permute.xlu2 %7418 }
 0x5de   :  { %v7421_v41 = vunpack.i.h.bf16 %v13028_v59  ;;  %v7420_v35 = vunpack.i.l.bf16 %v13028_v59 }
 0x5e1   :  { %4977 = vrot.lane.b32.xlu0 %v12988_v3, %s7901_s24  ;;  %5165 = vrot.lane.b32.xlu1 %v12940_v31, %s7904_s21 }
 0x5e3   :  { %5080 = vrot.lane.b32.xlu2 %v13033_v32, %s7903_s23 }
 0x5e5   :  { %v13047_v24 = vpop.permute.xlu2 %7423 }
 0x5e6   :  { %v7425_v54 = vunpack.i.l.bf16 %v13047_v24  ;;  %v7426_v50 = vunpack.i.h.bf16 %v13047_v24  ;;  %v13203_v24 = vld [vmem:[%s14280_s8 + $0xb0] sm:$0xff] }
 0x5e9   :  { %4979 = vrot.lane.b32.xlu0 %v13002_v56, %s7901_s24  ;;  %5167 = vrot.lane.b32.xlu1 %v12988_v3, %s7904_s21 }
 0x5eb   :  { %5082 = vrot.lane.b32.xlu2 %v13052_v0, %s7903_s23 }
 0x5ed   :  { %v13062_v22 = vpop.permute.xlu2 %4724 }
 0x5f1   :  { %4981 = vrot.lane.b32.xlu0 %v13016_v16, %s7901_s24  ;;  %5169 = vrot.lane.b32.xlu1 %v13002_v56, %s7904_s21 }
 0x5f3   :  { %4985 = vrot.lane.b32.xlu2 %v13052_v0, %s7901_s24 }
 0x5f5   :  { %v13076_v6 = vpop.permute.xlu2 %4813  ;;  %v13108_v60 = vpop.permute.xlu0 %7428 }
 0x5f9   :  { %4983 = vrot.lane.b32.xlu0 %v13033_v32, %s7901_s24  ;;  %5171 = vrot.lane.b32.xlu1 %v13016_v16, %s7904_s21 }
 0x5fb   :  { %5175 = vrot.lane.b32.xlu2 %v13052_v0, %s7904_s21 }
 0x5fd   :  { %v13092_v40 = vpop.permute.xlu2 %4819 }
 0x601   :  { %7478 = vrot.lane.b32.xlu0 %v7477_v37, %s7903_s23  ;;  %5173 = vrot.lane.b32.xlu1 %v13033_v32, %s7904_s21 }
 0x603   :  { %5426 = vrot.lane.b32.xlu2 %v13099_v52, %s7903_s23 }
 0x605   :  { %v13112_v42 = vpop.permute.xlu2 %4975 }
 0x609   :  { %7483 = vrot.lane.b32.xlu0 %v7477_v37, %s7901_s24  ;;  %5424 = vrot.lane.b32.xlu1 %v13117_v9, %s7903_s23 }
 0x60b   :  { %5428 = vrot.lane.b32.xlu2 %v13122_v62, %s7903_s23  ;;  %v7439_v17 = vpop.permute.xlu0 %7438  ;;  %v7434_v7 = vpop.permute.xlu1 %7433 }
 0x60c   :  { %v7440_v10 = vunpack.i.l.bf16 %v7439_v17  ;;  %v7436_v4 = vunpack.i.h.bf16 %v7434_v7  ;;  %v7441_v34 = vunpack.i.h.bf16 %v7439_v17  ;;  %v7435_v58 = vunpack.i.l.bf16 %v7434_v7  ;;  %v13243_v17 = vld [vmem:[%s14280_s8 + $0xf0] sm:$0xff] }
 0x60d   :  { %v13131_v61 = vpop.permute.xlu2 %7458 }
 0x60e   :  { %4626 = vmatpush.msrb.mxu3 %v7436_v4  ;;  %4768 = vmatpush.msrb.mxu2 %v7440_v10  ;;  %v7460_v7 = vunpack.i.l.bf16 %v13131_v61 }
 0x610   :  { %4627 = vmatpush.msrb.mxu3 %v7435_v58  ;;  %4769 = vmatpush.msrb.mxu2 %v7441_v34 }
 0x611   :  { %7488 = vrot.lane.b32.xlu0 %v7477_v37, %s7904_s21  ;;  %5327 = vrot.lane.b32.xlu1 %v13117_v9, %s7901_s24 }
 0x612   :  { %4628 = vmatpush.msrb.mxu3 %v7421_v41  ;;  %4770 = vmatpush.msrb.mxu2 %v7425_v54 }
 0x613   :  { %7503 = vrot.lane.b32.xlu2 %v7502_v33, %s7904_s21  ;;  %v13141_v5 = vpop.permute.xlu0 %4809  ;;  %v13143_v43 = vpop.permute.xlu1 %4726 }
 0x614   :  { %4629 = vmatpush.msrb.mxu3 %v7420_v35  ;;  %4771 = vmatpush.msrb.mxu2 %v7426_v50 }
 0x615   :  { %v7469_v49 = vpop.permute.xlu2 %7468  ;;  %7228 = vmatmul.msk.f32.vlgmr.msrb.gmra.mxu3 %vm4597_vm15, %v12997_v38  ;;  %7244 = vmatmul.msk.f32.vlgmr.msrb.gmra.mxu2 %vm4597_vm15, %v4713_v11 }
 0x616   :  { %4934 = vmatpush.msra.mxu3 %v12960_v44  ;;  %v7470_v38 = vunpack.i.l.bf16 %v7469_v49  ;;  %v7471_v59 = vunpack.i.h.bf16 %v7469_v49 }
 0x618   :  { %4935 = vmatpush.msra.mxu3 %v12949_v51 }
 0x619   :  { %7493 = vrot.lane.b32.xlu0 %v7502_v33, %s7903_s23  ;;  %5517 = vrot.lane.b32.xlu1 %v13117_v9, %s7904_s21 }
 0x61a   :  { %4936 = vmatpush.msra.mxu3 %v12935_v48  ;;  %v7430_v48 = vunpack.i.l.bf16 %v13108_v60 }
 0x61b   :  { %5430 = vrot.lane.b32.xlu2 %v13155_v29, %s7903_s23  ;;  %v13163_v12 = vpop.permute.xlu0 %4811  ;;  %v7444_v47 = vpop.permute.xlu1 %7443 }
 0x61c   :  { %v7445_v51 = vunpack.i.l.bf16 %v7444_v47  ;;  %4937 = vmatpush.msra.mxu3 %v12925_v36  ;;  %v7446_v44 = vunpack.i.h.bf16 %v7444_v47  ;;  %v7431_v36 = vunpack.i.h.bf16 %v13108_v60 }
 0x61d   :  { %v13168_v19 = vpop.permute.xlu2 %5161  ;;  %7245 = vmatmul.msk.f32.gmra.mxu2 %vm4597_vm15, %v12979_v53  ;;  %7229 = vmatmul.msk.f32.gmra.mxu3 %vm4597_vm15, %v13004_v15 }
 0x61e   :  { %5290 = vmatpush.msrb.mxu3 %v4525_v63  ;;  %4861 = vmatpush.msrb.mxu0 %v7445_v51  ;;  %v13326_v51 = vld [vmem:[%s14280_s8 + $0x18] sm:$0xff] }
 0x620   :  { %5291 = vmatpush.msrb.mxu3 %v4522_v57  ;;  %4862 = vmatpush.msrb.mxu0 %v7446_v44  ;;  %v13331_v44 = vld [vmem:[%s14280_s8 + $0x58] sm:$0xff] }
 0x621   :  { %5329 = vrot.lane.b32.xlu0 %v13099_v52, %s7901_s24  ;;  %7498 = vrot.lane.b32.xlu1 %v7502_v33, %s7901_s24 }
 0x622   :  { %5292 = vmatpush.msrb.mxu3 %v13090_v30  ;;  %4863 = vmatpush.msrb.mxu0 %v7430_v48 }
 0x623   :  { %5432 = vrot.lane.b32.xlu2 %v13178_v26, %s7903_s23  ;;  %v13188_v28 = vpop.permute.xlu0 %4817  ;;  %v13190_v53 = vpop.permute.xlu1 %4815 }
 0x624   :  { %5293 = vmatpush.msrb.mxu3 %v13070_v25  ;;  %4864 = vmatpush.msrb.mxu0 %v7431_v36  ;;  %v13224_v25 = vld [vmem:[%s14280_s8 + $0xd0] sm:$0xff]  ;;  %v13349_v36 = vld [vmem:[%s14280_s8 + $0x78] sm:$0xff] }
 0x625   :  { %v13192_v15 = vpop.permute.xlu2 %5074  ;;  %7246 = vmatmul.msk.f32.gmra.mxu2 %vm4597_vm15, %v13064_v2  ;;  %7252 = vmatmul.msk.f32.vlgmr.msrb.gmra.mxu0 %vm4597_vm15, %v13011_v45 }
 0x626   :  { %7230 = vmatmul.msk.f32.gmra.mxu3 %vm4597_vm15, %v12947_v39  ;;  %5217 = vmatpush.msra.mxu0 %v7470_v38  ;;  %v13219_v39 = vpop.f32.mrf.mxu0  ;;  %v13365_v38 = vld [vmem:[%s14280_s8 + $0x98] sm:$0xff] }
 0x628   :  { %5218 = vmatpush.msra.mxu0 %v7471_v59 }
 0x629   :  { %5331 = vrot.lane.b32.xlu0 %v13122_v62, %s7901_s24  ;;  %5519 = vrot.lane.b32.xlu1 %v13099_v52, %s7904_s21 }
 0x62b   :  { %5434 = vrot.lane.b32.xlu2 %v13203_v24, %s7903_s23  ;;  %v4974_v45 = vpop.permute.xlu0 %4973  ;;  %v4972_v2 = vpop.permute.xlu1 %4971 }
 0x62d   :  { %v13211_v11 = vpop.permute.xlu2 %5076  ;;  %7247 = vmatmul.msk.f32.gmra.mxu2 %vm4597_vm15, %v13080_v46  ;;  %7253 = vmatmul.msk.f32.gmra.mxu0 %vm4597_vm15, %v13104_v55 }
 0x62e   :  { %7231 = vmatmul.msk.f32.gmra.mxu3 %vm4597_vm15, %v13022_v1 }
 0x631   :  { %5333 = vrot.lane.b32.xlu0 %v13155_v29, %s7901_s24  ;;  %5521 = vrot.lane.b32.xlu1 %v13122_v62, %s7904_s21 }
 0x633   :  { %5436 = vrot.lane.b32.xlu2 %v13224_v25, %s7903_s23  ;;  %v7454_v46 = vpop.permute.xlu0 %7453  ;;  %v7449_v30 = vpop.permute.xlu1 %7448 }
 0x634   :  { %v7455_v37 = vunpack.i.l.bf16 %v7454_v46  ;;  %v7450_v1 = vunpack.i.l.bf16 %v7449_v30  ;;  %v7456_v60 = vunpack.i.h.bf16 %v7454_v46  ;;  %v7451_v57 = vunpack.i.h.bf16 %v7449_v30  ;;  %v4688_v46 = vpop.f32.mrf.mxu1  ;;  %v13406_v30 = vld [vmem:[%s14280_s8 + $0xd8] sm:$0xff] }
 0x635   :  { %v13232_v55 = vpop.permute.xlu2 %5078  ;;  %7248 = vmatmul.msk.f32.gmra.mxu2 %vm4597_vm15, %v12993_v20  ;;  %7254 = vmatmul.msk.f32.gmra.mxu0 %vm4597_vm15, %v13141_v5  ;;  %v4548_v20 = vpop.f32.mrf.mxu0 }
 0x636   :  { %7232 = vmatmul.msk.f32.gmra.mxu3 %vm4597_vm15, %v13024_v23  ;;  %5031 = vmatpush.msra.mxu1 %v7455_v37  ;;  %v7461_v23 = vunpack.i.h.bf16 %v13131_v61 }
 0x637   :  { %5124 = vmatpush.msra.mxu2 %v7450_v1 }
 0x638   :  { %5032 = vmatpush.msra.mxu1 %v7456_v60 }
 0x639   :  { %5125 = vmatpush.msra.mxu2 %v7451_v57  ;;  %5335 = vrot.lane.b32.xlu0 %v13178_v26, %s7901_s24 }
 0x63a   :  { %5523 = vrot.lane.b32.xlu1 %v13155_v29, %s7904_s21 }
 0x63b   :  { %5126 = vmatpush.msra.mxu2 %v7460_v7  ;;  %5438 = vrot.lane.b32.xlu2 %v13243_v17, %s7903_s23  ;;  %v7464_v10 = vpop.permute.xlu0 %7463  ;;  %v5069_v4 = vpop.permute.xlu1 %5068  ;;  %v13424_v7 = vld [vmem:[%s14280_s8 + $0xf8] sm:$0xff] }
 0x63c   :  { %v7465_v63 = vunpack.i.l.bf16 %v7464_v10  ;;  %v7466_v61 = vunpack.i.h.bf16 %v7464_v10  ;;  %v4691_v57 = vpop.f32.mrf.mxu1 }
 0x63d   :  { %5127 = vmatpush.msra.mxu2 %v7461_v23  ;;  %v13253_v34 = vpop.permute.xlu2 %5080  ;;  %7255 = vmatmul.msk.f32.gmra.mxu0 %vm4597_vm15, %v13163_v12  ;;  %v4551_v58 = vpop.f32.mrf.mxu0 }
 0x63e   :  { %7233 = vmatmul.msk.f32.gmra.mxu3 %vm4597_vm15, %v12958_v27  ;;  %7249 = vmatmul.msk.f32.gmra.mxu2 %vm4597_vm15, %v13078_v8 }
 0x63f   :  { %5033 = vmatpush.msra.mxu1 %v7465_v63 }
 0x641   :  { %5034 = vmatpush.msra.mxu1 %v7466_v61  ;;  %5337 = vrot.lane.b32.xlu0 %v13203_v24, %s7901_s24 }
 0x642   :  { %5525 = vrot.lane.b32.xlu1 %v13178_v26, %s7904_s21  ;;  %7268 = vmatmul.msk.f32.vlgmr.msra.gmra.mxu1 %vm4597_vm15, %v4972_v2  ;;  %v13384_v2 = vld [vmem:[%s14280_s8 + $0xb8] sm:$0xff] }
 0x643   :  { %5341 = vrot.lane.b32.xlu2 %v13243_v17, %s7901_s24  ;;  %v5071_v41 = vpop.permute.xlu0 %5070  ;;  %v7474_v27 = vpop.permute.xlu1 %7473 }
 0x644   :  { %v7475_v54 = vunpack.i.l.bf16 %v7474_v27  ;;  %v7476_v8 = vunpack.i.h.bf16 %v7474_v27 }
 0x645   :  { %v13268_v33 = vpop.permute.xlu2 %5082  ;;  %7256 = vmatmul.msk.f32.gmra.mxu0 %vm4597_vm15, %v13076_v6 }
 0x646   :  { %7234 = vmatmul.msk.f32.gmra.mxu3 %vm4597_vm15, %v13043_v13  ;;  %7250 = vmatmul.msk.f32.gmra.mxu2 %vm4597_vm15, %v13062_v22  ;;  %v4554_v13 = vpop.f32.mrf.mxu0 }
 0x647   :  { %5219 = vmatpush.msra.mxu0 %v7475_v54  ;;  %v7507_v22 = vpack.i.bf16 %v4551_v58, %v4554_v13 }
 0x649   :  { %5220 = vmatpush.msra.mxu0 %v7476_v8  ;;  %5339 = vrot.lane.b32.xlu0 %v13224_v25, %s7901_s24 }
 0x64a   :  { %5527 = vrot.lane.b32.xlu1 %v13203_v24, %s7904_s21  ;;  %7269 = vmatmul.msk.f32.gmra.mxu1 %vm4597_vm15, %v4974_v45 }
 0x64b   :  { %5531 = vrot.lane.b32.xlu2 %v13243_v17, %s7904_s21  ;;  %v5164_v6 = vpop.permute.xlu0 %5163  ;;  %v5073_v35 = vpop.permute.xlu1 %5072 }
 0x64d   :  { %v13283_v50 = vpop.permute.xlu2 %4985  ;;  %7257 = vmatmul.msk.f32.gmra.mxu0 %vm4597_vm15, %v13190_v53 }
 0x64e   :  { %7235 = vmatmul.msk.f32.gmra.mxu3 %vm4597_vm15, %v13045_v18  ;;  %7251 = vmatmul.msk.f32.gmra.mxu2 %vm4597_vm15, %v13143_v43  ;;  %v7517_v18 = vpack.i.bf16 %v13219_v39, %v4548_v20 }
 0x651   :  { %7508 = vrot.lane.b32.xlu0 %v7507_v22, %s7903_s23 }
 0x652   :  { %5529 = vrot.lane.b32.xlu1 %v13224_v25, %s7904_s21  ;;  %7270 = vmatmul.msk.f32.gmra.mxu1 %vm4597_vm15, %v13112_v42  ;;  %v13308_v42 = vld [vmem:[%s14280_s8 + $0x38] sm:$0xff] }
 0x653   :  { %7528 = vrot.lane.b32.xlu2 %v7507_v22, %s7904_s21  ;;  %v4978_v5 = vpop.permute.xlu0 %4977  ;;  %v5166_v49 = vpop.permute.xlu1 %5165 }
 0x655   :  { %v13297_v12 = vpop.permute.xlu2 %5175  ;;  %7258 = vmatmul.msk.f32.gmra.mxu0 %vm4597_vm15, %v13188_v28 }
 0x656   :  { %7260 = vmatmul.msk.f32.vlgmr.msra.gmra.mxu3 %vm4597_vm15, %v12970_v14  ;;  %7276 = vmatmul.msk.f32.vlgmr.msra.gmra.mxu2 %vm4597_vm15, %v5069_v4 }
 0x657   :  { %5646 = vmatpush.msra.mxu3 %v4554_v13 }
 0x659   :  { %5647 = vmatpush.msra.mxu3 %v4551_v58  ;;  %7518 = vrot.lane.b32.xlu0 %v7517_v18, %s7903_s23 }
 0x65a   :  { %7513 = vrot.lane.b32.xlu1 %v7507_v22, %s7901_s24  ;;  %7271 = vmatmul.msk.f32.gmra.mxu1 %vm4597_vm15, %v4978_v5 }
 0x65b   :  { %5648 = vmatpush.msra.mxu3 %v4548_v20  ;;  %5782 = vrot.lane.b32.xlu2 %v13308_v42, %s7903_s23  ;;  %v4980_v14 = vpop.permute.xlu0 %4979  ;;  %v5168_v43 = vpop.permute.xlu1 %5167 }
 0x65d   :  { %5649 = vmatpush.msra.mxu3 %v13219_v39  ;;  %v13316_v47 = vpop.permute.xlu2 %5426  ;;  %7259 = vmatmul.msk.f32.gmra.mxu0 %vm4597_vm15, %v13092_v40 }
 0x65e   :  { %7261 = vmatmul.msk.f32.gmra.mxu3 %vm4597_vm15, %v12965_v21  ;;  %7277 = vmatmul.msk.f32.gmra.mxu2 %vm4597_vm15, %v5071_v41 }
 0x661   :  { %7523 = vrot.lane.b32.xlu0 %v7517_v18, %s7901_s24 }
 0x662   :  { %5780 = vrot.lane.b32.xlu1 %v13326_v51, %s7903_s23  ;;  %7272 = vmatmul.msk.f32.gmra.mxu1 %vm4597_vm15, %v4980_v14 }
 0x663   :  { %5784 = vrot.lane.b32.xlu2 %v13331_v44, %s7903_s23  ;;  %v4982_v21 = vpop.permute.xlu0 %4981  ;;  %v5170_v40 = vpop.permute.xlu1 %5169 }
 0x665   :  { %v13339_v48 = vpop.permute.xlu2 %5428  ;;  %7284 = vmatmul.msk.f32.vlgmr.msra.gmra.mxu0 %vm4597_vm15, %v13168_v19 }
 0x666   :  { %7262 = vmatmul.msk.f32.gmra.mxu3 %vm4597_vm15, %v12940_v31  ;;  %7278 = vmatmul.msk.f32.gmra.mxu2 %vm4597_vm15, %v5073_v35 }
 0x669   :  { %7533 = vrot.lane.b32.xlu0 %v7517_v18, %s7904_s21 }
 0x66a   :  { %5683 = vrot.lane.b32.xlu1 %v13326_v51, %s7901_s24  ;;  %7273 = vmatmul.msk.f32.gmra.mxu1 %vm4597_vm15, %v4982_v21 }
 0x66b   :  { %5786 = vrot.lane.b32.xlu2 %v13349_v36, %s7903_s23  ;;  %v4984_v19 = vpop.permute.xlu0 %4983  ;;  %v5172_v28 = vpop.permute.xlu1 %5171 }
 0x66d   :  { %v7504_v31 = vpop.permute.xlu2 %7503  ;;  %7285 = vmatmul.msk.f32.gmra.mxu0 %vm4597_vm15, %v5164_v6  ;;  %v5974_v6 = vld [vmem:[%s14282_s10] sm:$0xff] }
 0x66e   :  { %v7505_v53 = vunpack.i.l.bf16 %v7504_v31  ;;  %7263 = vmatmul.msk.f32.gmra.mxu3 %vm4597_vm15, %v12988_v3  ;;  %7279 = vmatmul.msk.f32.gmra.mxu2 %vm4597_vm15, %v13192_v15  ;;  %v7506_v59 = vunpack.i.h.bf16 %v7504_v31 }
 0x670   :  { %5573 = vmatpush.msrb.mxu0 %v7505_v53  ;;  %v5966_v53 = vld [vmem:[%s14281_s9] sm:$0xff] }
 0x671   :  { %5685 = vrot.lane.b32.xlu0 %v13308_v42, %s7901_s24 }
 0x672   :  { %5873 = vrot.lane.b32.xlu1 %v13326_v51, %s7904_s21  ;;  %7274 = vmatmul.msk.f32.gmra.mxu1 %vm4597_vm15, %v4984_v19 }
 0x673   :  { %5574 = vmatpush.msrb.mxu0 %v7506_v59  ;;  %5788 = vrot.lane.b32.xlu2 %v13365_v38, %s7903_s23  ;;  %v7479_v3 = vpop.permute.xlu0 %7478  ;;  %v5174_v15 = vpop.permute.xlu1 %5173  ;;  %v5967_v59 = vld [vmem:[%s14281_s9 + $0x8] sm:$0xff] }
 0x674   :  { %v7480_v63 = vunpack.i.l.bf16 %v7479_v3  ;;  %v7481_v61 = vunpack.i.h.bf16 %v7479_v3 }
 0x675   :  { %v13374_v45 = vpop.permute.xlu2 %5430  ;;  %7286 = vmatmul.msk.f32.gmra.mxu0 %vm4597_vm15, %v5166_v49 }
 0x676   :  { %7264 = vmatmul.msk.f32.gmra.mxu3 %vm4597_vm15, %v13002_v56  ;;  %7280 = vmatmul.msk.f32.gmra.mxu2 %vm4597_vm15, %v13211_v11 }
 0x679   :  { %5687 = vrot.lane.b32.xlu0 %v13331_v44, %s7901_s24 }
 0x67a   :  { %5875 = vrot.lane.b32.xlu1 %v13308_v42, %s7904_s21  ;;  %7275 = vmatmul.msk.f32.gmra.mxu1 %vm4597_vm15, %v13283_v50 }
 0x67b   :  { %5790 = vrot.lane.b32.xlu2 %v13384_v2, %s7903_s23  ;;  %v13394_v56 = vpop.permute.xlu0 %7483  ;;  %v5425_v11 = vpop.permute.xlu1 %5424 }
 0x67c   :  { %v7485_v35 = vunpack.i.l.bf16 %v13394_v56 }
 0x67d   :  { %v13396_v39 = vpop.permute.xlu2 %5432  ;;  %7287 = vmatmul.msk.f32.gmra.mxu0 %vm4597_vm15, %v5168_v43  ;;  %v5968_v43 = vld [vmem:[%s14281_s9 + $0x10] sm:$0xff] }
 0x67e   :  { %7265 = vmatmul.msk.f32.gmra.mxu3 %vm4597_vm15, %v13016_v16  ;;  %7281 = vmatmul.msk.f32.gmra.mxu2 %vm4597_vm15, %v13232_v55 }
 0x681   :  { %5689 = vrot.lane.b32.xlu0 %v13349_v36, %s7901_s24 }
 0x682   :  { %5877 = vrot.lane.b32.xlu1 %v13331_v44, %s7904_s21 }
 0x683   :  { %5792 = vrot.lane.b32.xlu2 %v13406_v30, %s7903_s23  ;;  %v7489_v37 = vpop.permute.xlu0 %7488  ;;  %v5328_v16 = vpop.permute.xlu1 %5327 }
 0x684   :  { %v7490_v1 = vunpack.i.l.bf16 %v7489_v37  ;;  %v7491_v55 = vunpack.i.h.bf16 %v7489_v37 }
 0x685   :  { %v13414_v60 = vpop.permute.xlu2 %5434  ;;  %7288 = vmatmul.msk.f32.gmra.mxu0 %vm4597_vm15, %v5170_v40 }
 0x686   :  { %7266 = vmatmul.msk.f32.gmra.mxu3 %vm4597_vm15, %v13033_v32  ;;  %7282 = vmatmul.msk.f32.gmra.mxu2 %vm4597_vm15, %v13253_v34  ;;  %v4694_v34 = vpop.f32.mrf.mxu1 }
 0x687   :  { %5575 = vmatpush.msrb.mxu0 %v7490_v1 }
 0x689   :  { %5576 = vmatpush.msrb.mxu0 %v7491_v55  ;;  %5691 = vrot.lane.b32.xlu0 %v13365_v38, %s7901_s24  ;;  %v5975_v55 = vld [vmem:[%s14282_s10 + $0x8] sm:$0xff] }
 0x68a   :  { %5879 = vrot.lane.b32.xlu1 %v13349_v36, %s7904_s21 }
 0x68b   :  { %5794 = vrot.lane.b32.xlu2 %v13424_v7, %s7903_s23  ;;  %v7494_v32 = vpop.permute.xlu0 %7493  ;;  %v5518_v20 = vpop.permute.xlu1 %5517 }
 0x68c   :  { %v7495_v23 = vunpack.i.l.bf16 %v7494_v32  ;;  %v7496_v4 = vunpack.i.h.bf16 %v7494_v32 }
 0x68d   :  { %v13432_v10 = vpop.permute.xlu2 %5436  ;;  %7289 = vmatmul.msk.f32.gmra.mxu0 %vm4597_vm15, %v5172_v28 }
 0x68e   :  { %7267 = vmatmul.msk.f32.gmra.mxu3 %vm4597_vm15, %v13052_v0  ;;  %7283 = vmatmul.msk.f32.gmra.mxu2 %vm4597_vm15, %v13268_v33  ;;  %v4697_v5 = vpop.f32.mrf.mxu1 }
 0x68f   :  { %5480 = vmatpush.msrb.mxu2 %v7495_v23 }
 0x691   :  { %5481 = vmatpush.msrb.mxu2 %v7496_v4  ;;  %5693 = vrot.lane.b32.xlu0 %v13384_v2, %s7901_s24 }
 0x692   :  { %5881 = vrot.lane.b32.xlu1 %v13365_v38, %s7904_s21 }
 0x693   :  { %5482 = vmatpush.msrb.mxu2 %v7480_v63  ;;  %5887 = vrot.lane.b32.xlu2 %v13424_v7, %s7904_s21  ;;  %v5330_v0 = vpop.permute.xlu0 %5329  ;;  %v7499_v58 = vpop.permute.xlu1 %7498 }
 0x694   :  { %v7500_v41 = vunpack.i.l.bf16 %v7499_v58  ;;  %v7501_v54 = vunpack.i.h.bf16 %v7499_v58  ;;  %v5978_v58 = vld [vmem:[%s14282_s10 + $0x20] sm:$0xff] }
 0x695   :  { %5483 = vmatpush.msrb.mxu2 %v7481_v61  ;;  %v13445_v27 = vpop.permute.xlu2 %5438  ;;  %7290 = vmatmul.msk.f32.gmra.mxu0 %vm4597_vm15, %v5174_v15  ;;  %v5977_v15 = vld [vmem:[%s14282_s10 + $0x18] sm:$0xff] }
 0x696   :  { %7292 = vmatmul.msk.f32.vlgmr.msrb.gmra.mxu3 %vm4597_vm15, %v13117_v9  ;;  %7308 = vmatmul.msk.f32.vlgmr.msrb.gmra.mxu2 %vm4597_vm15, %v5425_v11  ;;  %v7486_v9 = vunpack.i.h.bf16 %v13394_v56  ;;  %v4700_v31 = vpop.f32.mrf.mxu1 }
 0x697   :  { %5387 = vmatpush.msrb.mxu1 %v7500_v41 }
 0x698   :  { %v4631_v33 = vpop.f32.mrf.mxu3  ;;  %v4773_v8 = vpop.f32.mrf.mxu2 }
 0x699   :  { %v4689_v13 = vadd.f32 %v4688_v46, %v4631_v33  ;;  %5388 = vmatpush.msrb.mxu1 %v7501_v54  ;;  %5695 = vrot.lane.b32.xlu0 %v13406_v30, %s7901_s24 }
 0x69a   :  { %5883 = vrot.lane.b32.xlu1 %v13384_v2, %s7904_s21 }
 0x69b   :  { %v13460_v50 = vadd.f32 %v4773_v8, %v4689_v13  ;;  %5389 = vmatpush.msrb.mxu1 %v7485_v35  ;;  %6215 = vperm.xlu2 %7415, %v5974_v6   ;;  %v5332_v22 = vpop.permute.xlu0 %5331  ;;  %v5520_v49 = vpop.permute.xlu1 %5519 }
 0x69d   :  { %5390 = vmatpush.msrb.mxu1 %v7486_v9  ;;  %v13462_v18 = vpop.permute.xlu2 %5341  ;;  %7291 = vmatmul.msk.f32.gmra.mxu0 %vm4597_vm15, %v13297_v12 }
 0x69e   :  { %7293 = vmatmul.msk.f32.gmra.mxu3 %vm4597_vm15, %v13099_v52  ;;  %7300 = vmatmul.msk.f32.vlgmr.msrb.gmra.mxu1 %vm4597_vm15, %v5328_v16  ;;  %v4703_v32 = vpop.f32.mrf.mxu1 }
 0x69f   :  { %7309 = vmatmul.msk.f32.gmra.mxu2 %vm4597_vm15, %v13316_v47 }
 0x6a0   :  { %v4776_v14 = vpop.f32.mrf.mxu2  ;;  %v4634_v21 = vpop.f32.mrf.mxu3 }
 0x6a1   :  { %5697 = vrot.lane.b32.xlu0 %v13424_v7, %s7901_s24  ;;  %v4692_v40 = vadd.f32 %v4691_v57, %v4634_v21  ;;  %v5969_v57 = vld [vmem:[%s14281_s9 + $0x18] sm:$0xff] }
 0x6a2   :  { %5885 = vrot.lane.b32.xlu1 %v13406_v30, %s7904_s21  ;;  %v13478_v12 = vpop.f32.mrf.mxu0 }
 0x6a3   :  { %6177 = vperm.xlu2 %7415, %v5968_v43   ;;  %v5334_v52 = vpop.permute.xlu0 %5333  ;;  %v13480_v19 = vadd.f32 %v4776_v14, %v4692_v40  ;;  %v5522_v47 = vpop.permute.xlu1 %5521 }
 0x6a5   :  { %v13482_v28 = vpop.permute.xlu2 %5531  ;;  %7316 = vmatmul.msk.f32.vlgmr.msrb.gmra.mxu0 %vm4597_vm15, %v5518_v20 }
 0x6a6   :  { %7294 = vmatmul.msk.f32.gmra.mxu3 %vm4597_vm15, %v13122_v62  ;;  %7301 = vmatmul.msk.f32.gmra.mxu1 %vm4597_vm15, %v5330_v0  ;;  %v4706_v33 = vpop.f32.mrf.mxu1 }
 0x6a7   :  { %7310 = vmatmul.msk.f32.gmra.mxu2 %vm4597_vm15, %v13339_v48 }
 0x6a8   :  { %v4779_v3 = vpop.f32.mrf.mxu2 }
 0x6a9   :  { %v4637_v56 = vpop.f32.mrf.mxu3  ;;  %6167 = vperm.xlu0 %7414, %v5966_v53  }
 0x6aa   :  { %v4695_v62 = vadd.f32 %v4694_v34, %v4637_v56  ;;  %6172 = vperm.xlu1 %7416, %v5967_v59   ;;  %v13499_v11 = vpop.f32.mrf.mxu0 }
 0x6ab   :  { %6230 = vperm.xlu2 %7415, %v5977_v15   ;;  %v5336_v46 = vpop.permute.xlu0 %5335 }
 0x6ac   :  { %v13501_v37 = vadd.f32 %v4779_v3, %v4695_v62  ;;  %v5524_v48 = vpop.permute.xlu1 %5523 }
 0x6ad   :  { %v7529_v16 = vpop.permute.xlu2 %7528  ;;  %7317 = vmatmul.msk.f32.gmra.mxu0 %vm4597_vm15, %v5520_v49 }
 0x6ae   :  { %v7530_v1 = vunpack.i.l.bf16 %v7529_v16  ;;  %7295 = vmatmul.msk.f32.gmra.mxu3 %vm4597_vm15, %v13155_v29  ;;  %7302 = vmatmul.msk.f32.gmra.mxu1 %vm4597_vm15, %v5332_v22  ;;  %v7531_v20 = vunpack.i.h.bf16 %v7529_v16  ;;  %v4709_v43 = vpop.f32.mrf.mxu1 }
 0x6af   :  { %7311 = vmatmul.msk.f32.gmra.mxu2 %vm4597_vm15, %v13374_v45  ;;  %v5976_v45 = vld [vmem:[%s14282_s10 + $0x10] sm:$0xff] }
 0x6b0   :  { %v4782_v23 = vpop.f32.mrf.mxu2  ;;  %5929 = vmatpush.msra.mxu0 %v7530_v1 }
 0x6b1   :  { %v4640_v4 = vpop.f32.mrf.mxu3  ;;  %6220 = vperm.xlu0 %7414, %v5975_v55  }
 0x6b2   :  { %v4698_v29 = vadd.f32 %v4697_v5, %v4640_v4  ;;  %6182 = vperm.xlu1 %7416, %v5969_v57   ;;  %v13515_v63 = vpop.f32.mrf.mxu0  ;;  %5930 = vmatpush.msra.mxu0 %v7531_v20 }
 0x6b3   :  { %v5338_v34 = vpop.permute.xlu0 %5337 }
 0x6b4   :  { %v13517_v61 = vadd.f32 %v4782_v23, %v4698_v29  ;;  %v5526_v0 = vpop.permute.xlu1 %5525 }
 0x6b5   :  { %7318 = vmatmul.msk.f32.gmra.mxu0 %vm4597_vm15, %v5522_v47  ;;  %v5783_v1 = vpop.permute.xlu2 %5782 }
 0x6b6   :  { %7296 = vmatmul.msk.f32.gmra.mxu3 %vm4597_vm15, %v13178_v26  ;;  %7303 = vmatmul.msk.f32.gmra.mxu1 %vm4597_vm15, %v5334_v52 }
 0x6b7   :  { %7312 = vmatmul.msk.f32.gmra.mxu2 %vm4597_vm15, %v13396_v39  ;;  %v5970_v39 = vld [vmem:[%s14281_s9 + $0x20] sm:$0xff] }
 0x6b8   :  { %v4785_v41 = vpop.f32.mrf.mxu2 }
 0x6b9   :  { %v4643_v54 = vpop.f32.mrf.mxu3  ;;  %6225 = vperm.xlu0 %7414, %v5976_v45  }
 0x6ba   :  { %v4701_v8 = vadd.f32 %v4700_v31, %v4643_v54  ;;  %6235 = vperm.xlu1 %7416, %v5978_v58   ;;  %v13531_v26 = vpop.f32.mrf.mxu0 }
 0x6bb   :  { %v5340_v6 = vpop.permute.xlu0 %5339 }
 0x6bc   :  { %v13533_v35 = vadd.f32 %v4785_v41, %v4701_v8  ;;  %v5528_v13 = vpop.permute.xlu1 %5527 }
 0x6bd   :  { %7319 = vmatmul.msk.f32.gmra.mxu0 %vm4597_vm15, %v5524_v48  ;;  %v5785_v58 = vpop.permute.xlu2 %5784 }
 0x6be   :  { %7297 = vmatmul.msk.f32.gmra.mxu3 %vm4597_vm15, %v13203_v24  ;;  %7304 = vmatmul.msk.f32.gmra.mxu1 %vm4597_vm15, %v5336_v46 }
 0x6bf   :  { %7313 = vmatmul.msk.f32.gmra.mxu2 %vm4597_vm15, %v13414_v60 }
 0x6c1   :  { %v4646_v9 = vpop.f32.mrf.mxu3  ;;  %v4788_v22 = vpop.f32.mrf.mxu2  ;;  %6187 = vperm.xlu0 %7414, %v5970_v39  }
 0x6c2   :  { %v4704_v5 = vadd.f32 %v4703_v32, %v4646_v9  ;;  %v13544_v49 = vpop.f32.mrf.mxu0 }
 0x6c3   :  { %v7509_v14 = vpop.permute.xlu0 %7508 }
 0x6c4   :  { %v13546_v21 = vadd.f32 %v4788_v22, %v4704_v5  ;;  %v7510_v24 = vunpack.i.l.bf16 %v7509_v14  ;;  %v5530_v40 = vpop.permute.xlu1 %5529  ;;  %v7511_v60 = vunpack.i.h.bf16 %v7509_v14 }
 0x6c5   :  { %7320 = vmatmul.msk.f32.gmra.mxu0 %vm4597_vm15, %v5526_v0 }
 0x6c6   :  { %7298 = vmatmul.msk.f32.gmra.mxu3 %vm4597_vm15, %v13224_v25  ;;  %7305 = vmatmul.msk.f32.gmra.mxu1 %vm4597_vm15, %v5338_v34  ;;  %v13559_v25 = vpop.f32.mrf.mxu1 }
 0x6c7   :  { %7314 = vmatmul.msk.f32.gmra.mxu2 %vm4597_vm15, %v13432_v10 }
 0x6c8   :  { %5836 = vmatpush.msra.mxu2 %v7510_v24 }
 0x6c9   :  { %v4649_v52 = vpop.f32.mrf.mxu3  ;;  %v4791_v47 = vpop.f32.mrf.mxu2 }
 0x6ca   :  { %v4707_v31 = vadd.f32 %v4706_v33, %v4649_v52  ;;  %5837 = vmatpush.msra.mxu2 %v7511_v60  ;;  %v13554_v53 = vpop.f32.mrf.mxu0 }
 0x6cb   :  { %v7519_v59 = vpop.permute.xlu0 %7518 }
 0x6cc   :  { %v13556_v3 = vadd.f32 %v4791_v47, %v4707_v31  ;;  %v7520_v15 = vunpack.i.l.bf16 %v7519_v59  ;;  %v7514_v56 = vpop.permute.xlu1 %7513  ;;  %v7521_v46 = vunpack.i.h.bf16 %v7519_v59 }
 0x6cd   :  { %v7515_v62 = vunpack.i.l.bf16 %v7514_v56  ;;  %7321 = vmatmul.msk.f32.gmra.mxu0 %vm4597_vm15, %v5528_v13  ;;  %v7516_v10 = vunpack.i.h.bf16 %v7514_v56 }
 0x6ce   :  { %7299 = vmatmul.msk.f32.gmra.mxu3 %vm4597_vm15, %v13243_v17  ;;  %7306 = vmatmul.msk.f32.gmra.mxu1 %vm4597_vm15, %v5340_v6  ;;  %v13576_v4 = vpop.f32.mrf.mxu1 }
 0x6cf   :  { %7315 = vmatmul.msk.f32.gmra.mxu2 %vm4597_vm15, %v13445_v27  ;;  %5743 = vmatpush.msra.mxu1 %v7515_v62 }
 0x6d0   :  { %5838 = vmatpush.msra.mxu2 %v7520_v15 }
 0x6d1   :  { %v4652_v48 = vpop.f32.mrf.mxu3  ;;  %v4794_v16 = vpop.f32.mrf.mxu2  ;;  %5744 = vmatpush.msra.mxu1 %v7516_v10 }
 0x6d2   :  { %v4710_v55 = vadd.f32 %v4709_v43, %v4652_v48  ;;  %5839 = vmatpush.msra.mxu2 %v7521_v46  ;;  %v13566_v57 = vpop.f32.mrf.mxu0 }
 0x6d3   :  { %v7524_v32 = vpop.permute.xlu0 %7523 }
 0x6d4   :  { %v13568_v20 = vadd.f32 %v4794_v16, %v4710_v55  ;;  %v7525_v17 = vunpack.i.l.bf16 %v7524_v32  ;;  %v5781_v23 = vpop.permute.xlu1 %5780  ;;  %v7526_v27 = vunpack.i.h.bf16 %v7524_v32 }
 0x6d5   :  { %7322 = vmatmul.msk.f32.gmra.mxu0 %vm4597_vm15, %v5530_v40 }
 0x6d6   :  { %7307 = vmatmul.msk.f32.gmra.mxu1 %vm4597_vm15, %v13462_v18  ;;  %7324 = vmatmul.msk.f32.vlgmr.msra.gmra.mxu3 %vm4597_vm15, %v13326_v51  ;;  %v13594_v8 = vpop.f32.mrf.mxu1 }
 0x6d7   :  { %5745 = vmatpush.msra.mxu1 %v7525_v17  ;;  %7340 = vmatmul.msk.f32.vlgmr.msra.gmra.mxu2 %vm4597_vm15, %v5781_v23 }
 0x6d9   :  { %v13578_v29 = vpop.f32.mrf.mxu3  ;;  %v13580_v34 = vpop.f32.mrf.mxu2  ;;  %5746 = vmatpush.msra.mxu1 %v7526_v27 }
 0x6da   :  { %v13582_v0 = vpop.f32.mrf.mxu0 }
 0x6db   :  { %v7534_v45 = vpop.permute.xlu0 %7533 }
 0x6dc   :  { %v7535_v41 = vunpack.i.l.bf16 %v7534_v45  ;;  %v5684_v18 = vpop.permute.xlu1 %5683  ;;  %v7536_v51 = vunpack.i.h.bf16 %v7534_v45 }
 0x6dd   :  { %7323 = vmatmul.msk.f32.gmra.mxu0 %vm4597_vm15, %v13482_v28 }
 0x6de   :  { %7325 = vmatmul.msk.f32.gmra.mxu3 %vm4597_vm15, %v13308_v42  ;;  %7332 = vmatmul.msk.f32.vlgmr.msra.gmra.mxu1 %vm4597_vm15, %v5684_v18  ;;  %v5787_v42 = vpop.permute.xlu2 %5786  ;;  %v13609_v14 = vpop.f32.mrf.mxu1 }
 0x6df   :  { %5931 = vmatpush.msra.mxu0 %v7535_v41  ;;  %7341 = vmatmul.msk.f32.gmra.mxu2 %vm4597_vm15, %v5783_v1 }
 0x6e1   :  { %v13590_v54 = vpop.f32.mrf.mxu3  ;;  %v13592_v33 = vpop.f32.mrf.mxu2  ;;  %5932 = vmatpush.msra.mxu0 %v7536_v51 }
 0x6e2   :  { %v13596_v6 = vpop.f32.mrf.mxu0 }
 0x6e3   :  { %v5686_v13 = vpop.permute.xlu0 %5685 }
 0x6e4   :  { %v5874_v28 = vpop.permute.xlu1 %5873 }
 0x6e5   :  { %7348 = vmatmul.msk.f32.vlgmr.msra.gmra.mxu0 %vm4597_vm15, %v5874_v28 }
 0x6e6   :  { %7326 = vmatmul.msk.f32.gmra.mxu3 %vm4597_vm15, %v13331_v44  ;;  %7333 = vmatmul.msk.f32.gmra.mxu1 %vm4597_vm15, %v5686_v13  ;;  %v5789_v44 = vpop.permute.xlu2 %5788  ;;  %v5048_v31 = vpop.f32.mrf.mxu1 }
 0x6e7   :  { %7342 = vmatmul.msk.f32.gmra.mxu2 %vm4597_vm15, %v5785_v58 }
 0x6e9   :  { %v13603_v39 = vpop.f32.mrf.mxu3  ;;  %v13605_v9 = vpop.f32.mrf.mxu2 }
 0x6ea   :  { %v13607_v22 = vpop.f32.mrf.mxu0 }
 0x6eb   :  { %v5688_v5 = vpop.permute.xlu0 %5687 }
 0x6ec   :  { %v5876_v43 = vpop.permute.xlu1 %5875 }
 0x6ed   :  { %7349 = vmatmul.msk.f32.gmra.mxu0 %vm4597_vm15, %v5876_v43 }
 0x6ee   :  { %7327 = vmatmul.msk.f32.gmra.mxu3 %vm4597_vm15, %v13349_v36  ;;  %7334 = vmatmul.msk.f32.gmra.mxu1 %vm4597_vm15, %v5688_v5  ;;  %v4894_v36 = vadd.f32 %v13544_v49, %v13533_v35  ;;  %v5791_v56 = vpop.permute.xlu2 %5790  ;;  %v5051_v35 = vpop.f32.mrf.mxu1 }
 0x6ef   :  { %7343 = vmatmul.msk.f32.gmra.mxu2 %vm4597_vm15, %v5787_v42 }
 0x6f1   :  { %v13616_v24 = vpop.f32.mrf.mxu3  ;;  %v13618_v40 = vpop.f32.mrf.mxu2 }
 0x6f2   :  { %v13620_v60 = vpop.f32.mrf.mxu0 }
 0x6f3   :  { %v5690_v52 = vpop.permute.xlu0 %5689 }
 0x6f4   :  { %v5878_v47 = vpop.permute.xlu1 %5877 }
 0x6f5   :  { %7350 = vmatmul.msk.f32.gmra.mxu0 %vm4597_vm15, %v5878_v47 }
 0x6f6   :  { %7328 = vmatmul.msk.f32.gmra.mxu3 %vm4597_vm15, %v13365_v38  ;;  %7335 = vmatmul.msk.f32.gmra.mxu1 %vm4597_vm15, %v5690_v52  ;;  %v4895_v38 = vadd.f32 %v13554_v53, %v13546_v21  ;;  %v5793_v45 = vpop.permute.xlu2 %5792  ;;  %v4896_v21 = vadd.f32 %v13566_v57, %v13556_v3  ;;  %v5054_v28 = vpop.f32.mrf.mxu1  ;;  %v4897_v3 = vadd.f32 %v13582_v0, %v13568_v20 }
 0x6f7   :  { %7344 = vmatmul.msk.f32.gmra.mxu2 %vm4597_vm15, %v5789_v44 }
 0x6f9   :  { %v4951_v59 = vpop.f32.mrf.mxu3  ;;  %v5141_v15 = vpop.f32.mrf.mxu2 }
 0x6fa   :  { %v4967_v62 = vadd.f32 %v4951_v59, %v4894_v36  ;;  %v13629_v10 = vpop.f32.mrf.mxu0 }
 0x6fb   :  { %v5692_v46 = vpop.permute.xlu0 %5691 }
 0x6fc   :  { %v5880_v48 = vpop.permute.xlu1 %5879  ;;  %v5064_v16 = vadd.f32 %v5048_v31, %v4967_v62 }
 0x6fd   :  { %7351 = vmatmul.msk.f32.gmra.mxu0 %vm4597_vm15, %v5880_v48 }
 0x6fe   :  { %7329 = vmatmul.msk.f32.gmra.mxu3 %vm4597_vm15, %v13384_v2  ;;  %7336 = vmatmul.msk.f32.gmra.mxu1 %vm4597_vm15, %v5692_v46  ;;  %v5157_v49 = vadd.f32 %v5141_v15, %v5064_v16  ;;  %v5057_v59 = vpop.f32.mrf.mxu1 }
 0x6ff   :  { %7345 = vmatmul.msk.f32.gmra.mxu2 %vm4597_vm15, %v5791_v56 }
 0x701   :  { %v4954_v1 = vpop.f32.mrf.mxu3  ;;  %v5144_v55 = vpop.f32.mrf.mxu2 }
 0x702   :  { %v4968_v32 = vadd.f32 %v4954_v1, %v4895_v38  ;;  %v5234_v17 = vpop.f32.mrf.mxu0 }
 0x703   :  { %v13638_v23 = vadd.f32 %v5234_v17, %v5157_v49  ;;  %v5694_v27 = vpop.permute.xlu0 %5693 }
 0x704   :  { %v5065_v58 = vadd.f32 %v5051_v35, %v4968_v32  ;;  %v5882_v41 = vpop.permute.xlu1 %5881 }
 0x705   :  { %7352 = vmatmul.msk.f32.gmra.mxu0 %vm4597_vm15, %v5882_v41 }
 0x706   :  { %v5158_v2 = vadd.f32 %v5144_v55, %v5065_v58  ;;  %7330 = vmatmul.msk.f32.gmra.mxu3 %vm4597_vm15, %v13406_v30  ;;  %7337 = vmatmul.msk.f32.gmra.mxu1 %vm4597_vm15, %v5694_v27  ;;  %v5795_v30 = vpop.permute.xlu2 %5794 }
 0x707   :  { %7346 = vmatmul.msk.f32.gmra.mxu2 %vm4597_vm15, %v5793_v45 }
 0x709   :  { %v4957_v53 = vpop.f32.mrf.mxu3  ;;  %v5147_v18 = vpop.f32.mrf.mxu2 }
 0x70a   :  { %v4969_v51 = vadd.f32 %v4957_v53, %v4896_v21  ;;  %v5237_v13 = vpop.f32.mrf.mxu0 }
 0x70b   :  { %v13647_v42 = vadd.f32 %v5237_v13, %v5158_v2  ;;  %v5696_v5 = vpop.permute.xlu0 %5695 }
 0x70c   :  { %v5066_v43 = vadd.f32 %v5054_v28, %v4969_v51  ;;  %v5884_v44 = vpop.permute.xlu1 %5883 }
 0x70d   :  { %7353 = vmatmul.msk.f32.gmra.mxu0 %vm4597_vm15, %v5884_v44 }
 0x70e   :  { %v5159_v52 = vadd.f32 %v5147_v18, %v5066_v43  ;;  %7331 = vmatmul.msk.f32.gmra.mxu3 %vm4597_vm15, %v13424_v7  ;;  %7338 = vmatmul.msk.f32.gmra.mxu1 %vm4597_vm15, %v5696_v5  ;;  %v5888_v0 = vpop.permute.xlu2 %5887  ;;  %v4890_v5 = vadd.f32 %v13478_v12, %v13460_v50 }
 0x70f   :  { %7347 = vmatmul.msk.f32.gmra.mxu2 %vm4597_vm15, %v5795_v30 }
 0x710   :  { %v4963_v44 = vadd.f32 %v13578_v29, %v4890_v5 }
 0x711   :  { %v4960_v57 = vpop.f32.mrf.mxu3  ;;  %v5150_v47 = vpop.f32.mrf.mxu2 }
 0x712   :  { %v4970_v31 = vadd.f32 %v4960_v57, %v4897_v3  ;;  %v5240_v36 = vpop.f32.mrf.mxu0  ;;  %v5060_v57 = vadd.f32 %v13559_v25, %v4963_v44 }
 0x713   :  { %v13656_v15 = vadd.f32 %v5240_v36, %v5159_v52  ;;  %v5698_v56 = vpop.permute.xlu0 %5697 }
 0x714   :  { %v5067_v62 = vadd.f32 %v5057_v59, %v4970_v31  ;;  %v5886_v46 = vpop.permute.xlu1 %5885  ;;  %v5153_v36 = vadd.f32 %v13580_v34, %v5060_v57 }
 0x715   :  { %7354 = vmatmul.msk.f32.gmra.mxu0 %vm4597_vm15, %v5886_v46 }
 0x716   :  { %v5160_v7 = vadd.f32 %v5150_v47, %v5067_v62  ;;  %7339 = vmatmul.msk.f32.gmra.mxu1 %vm4597_vm15, %v5698_v56  ;;  %v4891_v47 = vadd.f32 %v13499_v11, %v13480_v19  ;;  %v5246_v56 = vadd.f32 %v13596_v6, %v5153_v36  ;;  %v4892_v19 = vadd.f32 %v13515_v63, %v13501_v37 }
 0x717   :  { %v4893_v37 = vadd.f32 %v13531_v26, %v13517_v61 }
 0x718   :  { %v4964_v50 = vadd.f32 %v13590_v54, %v4891_v47  ;;  %v4965_v54 = vadd.f32 %v13603_v39, %v4892_v19 }
 0x719   :  { %v5295_v48 = vpop.f32.mrf.mxu3  ;;  %v5485_v16 = vpop.f32.mrf.mxu2 }
 0x71a   :  { %v5243_v38 = vpop.f32.mrf.mxu0  ;;  %v5061_v62 = vadd.f32 %v13576_v4, %v4964_v50  ;;  %v5319_v25 = vadd.f32 %v5295_v48, %v5246_v56  ;;  %v5062_v4 = vadd.f32 %v13594_v8, %v4965_v54 }
 0x71b   :  { %v13660_v35 = vadd.f32 %v5243_v38, %v5160_v7  ;;  %v5392_v20 = vpop.f32.mrf.mxu1 }
 0x71c   :  { %v5154_v34 = vadd.f32 %v13592_v33, %v5061_v62  ;;  %v5416_v46 = vadd.f32 %v5392_v20, %v5319_v25  ;;  %v5155_v39 = vadd.f32 %v13605_v9, %v5062_v4  ;;  %v4966_v20 = vadd.f32 %v13616_v24, %v4893_v37 }
 0x71d   :  { %7355 = vmatmul.msk.f32.gmra.mxu0 %vm4597_vm15, %v5888_v0 }
 0x71e   :  { %v5247_v6 = vadd.f32 %v13607_v22, %v5154_v34  ;;  %v5509_v5 = vadd.f32 %v5485_v16, %v5416_v46  ;;  %v5248_v22 = vadd.f32 %v13620_v60, %v5155_v39  ;;  %v5063_v16 = vadd.f32 %v13609_v14, %v4966_v20 }
 0x720   :  { %v5156_v9 = vadd.f32 %v13618_v40, %v5063_v16 }
 0x721   :  { %v5298_v49 = vpop.f32.mrf.mxu3 }
 0x722   :  { %v5488_v1 = vpop.f32.mrf.mxu2  ;;  %v5578_v55 = vpop.f32.mrf.mxu0  ;;  %v5320_v48 = vadd.f32 %v5298_v49, %v5247_v6  ;;  %v5249_v54 = vadd.f32 %v13629_v10, %v5156_v9 }
 0x723   :  { %v5395_v32 = vpop.f32.mrf.mxu1  ;;  %v5602_v63 = vadd.f32 %v5578_v55, %v5509_v5 }
 0x724   :  { %v5417_v44 = vadd.f32 %v5395_v32, %v5320_v48 }
 0x726   :  { %v5510_v56 = vadd.f32 %v5488_v1, %v5417_v44 }
 0x729   :  { %v5301_v17 = vpop.f32.mrf.mxu3 }
 0x72a   :  { %v13663_v27 = vpop.f32.mrf.mxu2  ;;  %v5581_v45 = vpop.f32.mrf.mxu0  ;;  %v5321_v49 = vadd.f32 %v5301_v17, %v5248_v22 }
 0x72b   :  { %v5398_v58 = vpop.f32.mrf.mxu1  ;;  %v5603_v61 = vadd.f32 %v5581_v45, %v5510_v56 }
 0x72c   :  { %v5418_v62 = vadd.f32 %v5398_v58, %v5321_v49 }
 0x72e   :  { %v5511_v17 = vadd.f32 %v13663_v27, %v5418_v62 }
 0x731   :  { %v13665_v41 = vpop.f32.mrf.mxu3 }
 0x732   :  { %v13667_v2 = vpop.f32.mrf.mxu2  ;;  %v13669_v21 = vpop.f32.mrf.mxu0  ;;  %v5322_v1 = vadd.f32 %v13665_v41, %v5249_v54 }
 0x733   :  { %v13671_v53 = vpop.f32.mrf.mxu1  ;;  %v5604_v40 = vadd.f32 %v13669_v21, %v5511_v17 }
 0x734   :  { %v5419_v46 = vadd.f32 %v13671_v53, %v5322_v1 }
 0x736   :  { %v5512_v41 = vadd.f32 %v13667_v2, %v5419_v46 }
 0x739   :  { %v13673_v18 = vpop.f32.mrf.mxu3 }
 0x73a   :  { %v13675_v51 = vpop.f32.mrf.mxu2  ;;  %v13677_v13 = vpop.f32.mrf.mxu0  ;;  %v5323_v27 = vadd.f32 %v13673_v18, %v13638_v23 }
 0x73b   :  { %v13679_v28 = vpop.f32.mrf.mxu1  ;;  %v5605_v21 = vadd.f32 %v13677_v13, %v5512_v41 }
 0x73c   :  { %v5420_v39 = vadd.f32 %v13679_v28, %v5323_v27 }
 0x73e   :  { %v5513_v2 = vadd.f32 %v13675_v51, %v5420_v39 }
 0x741   :  { %v13683_v43 = vpop.f32.mrf.mxu3 }
 0x742   :  { %v13686_v30 = vpop.f32.mrf.mxu2  ;;  %v13688_v52 = vpop.f32.mrf.mxu0  ;;  %v5324_v23 = vadd.f32 %v13683_v43, %v13647_v42 }
 0x743   :  { %v13690_v3 = vpop.f32.mrf.mxu1  ;;  %v5606_v18 = vadd.f32 %v13688_v52, %v5513_v2  ;;  %v13797_v2 = vpop.permute.xlu2 %6215 }
 0x744   :  { %v5421_v16 = vadd.f32 %v13690_v3, %v5324_v23 }
 0x746   :  { %v5514_v51 = vadd.f32 %v13686_v30, %v5421_v16 }
 0x749   :  { %v13695_v31 = vpop.f32.mrf.mxu3 }
 0x74a   :  { %v13699_v12 = vpop.f32.mrf.mxu2  ;;  %v13701_v29 = vpop.f32.mrf.mxu0  ;;  %v5325_v42 = vadd.f32 %v13695_v31, %v13656_v15 }
 0x74b   :  { %v13703_v59 = vpop.f32.mrf.mxu1  ;;  %v5607_v43 = vadd.f32 %v13701_v29, %v5514_v51 }
 0x751   :  { %v13709_v11 = vpop.f32.mrf.mxu3 }
 0x752   :  { %v13713_v7 = vpop.f32.mrf.mxu2  ;;  %v13715_v38 = vpop.f32.mrf.mxu0  ;;  %v5326_v15 = vadd.f32 %v13709_v11, %v13660_v35 }
 0x753   :  { %v13717_v0 = vpop.f32.mrf.mxu1 }
 0x754   :  { %v5423_v17 = vadd.f32 %v13717_v0, %v5326_v15 }
 0x756   :  { %v5516_v35 = vadd.f32 %v13713_v7, %v5423_v17 }
 0x759   :  { %v5651_v33 = vpop.f32.mrf.mxu3 }
 0x75a   :  { %v5675_v57 = vadd.f32 %v5651_v33, %v5602_v63  ;;  %v13725_v47 = vpop.f32.mrf.mxu0  ;;  %v5841_v36 = vpop.f32.mrf.mxu2 }
 0x75b   :  { %v5748_v50 = vpop.f32.mrf.mxu1 }
 0x75c   :  { %v5772_v8 = vadd.f32 %v5748_v50, %v5675_v57 }
 0x75e   :  { %v5865_v26 = vadd.f32 %v5841_v36, %v5772_v8 }
 0x761   :  { %v5654_v55 = vpop.f32.mrf.mxu3 }
 0x762   :  { %v5676_v24 = vadd.f32 %v5654_v55, %v5603_v61  ;;  %v5934_v32 = vpop.f32.mrf.mxu0  ;;  %v5844_v25 = vpop.f32.mrf.mxu2 }
 0x763   :  { %v5751_v19 = vpop.f32.mrf.mxu1  ;;  %v13730_v34 = vadd.f32 %v5934_v32, %v5865_v26 }
 0x764   :  { %v5773_v60 = vadd.f32 %v5751_v19, %v5676_v24  ;;  %v5422_v24 = vadd.f32 %v13703_v59, %v5325_v42 }
 0x765   :  { %v5982_v14 = vsel %vm4597_vm15, %v13730_v34, 0.0 }
 0x766   :  { %5983 = vadd.xlane.f32.xlu1 %v5982_v14  ;;  %v5866_v45 = vadd.f32 %v5844_v25, %v5773_v60  ;;  %v5515_v30 = vadd.f32 %v13699_v12, %v5422_v24  ;;  %v5609_v12 = vadd.f32 %v13725_v47, %v5516_v35  ;;  %v13789_v47 = vpop.permute.xlu0 %6167 }
 0x768   :  { %v5608_v31 = vadd.f32 %v13715_v38, %v5515_v30 }
 0x769   :  { %v5657_v58 = vpop.f32.mrf.mxu3 }
 0x76a   :  { %v5677_v6 = vadd.f32 %v5657_v58, %v5604_v40  ;;  %v5937_v4 = vpop.f32.mrf.mxu0  ;;  %v5847_v48 = vpop.f32.mrf.mxu2 }
 0x76b   :  { %v5754_v5 = vpop.f32.mrf.mxu1  ;;  %v13739_v10 = vadd.f32 %v5937_v4, %v5866_v45 }
 0x76c   :  { %v5774_v37 = vadd.f32 %v5754_v5, %v5677_v6 }
 0x76d   :  { %v5985_v63 = vsel %vm4597_vm15, %v13739_v10, 0.0 }
 0x76e   :  { %5986 = vadd.xlane.f32.xlu0 %v5985_v63  ;;  %v5867_v33 = vadd.f32 %v5847_v48, %v5774_v37 }
 0x771   :  { %v5660_v53 = vpop.f32.mrf.mxu3 }
 0x772   :  { %v5678_v20 = vadd.f32 %v5660_v53, %v5605_v21  ;;  %v5940_v44 = vpop.f32.mrf.mxu0  ;;  %v5850_v57 = vpop.f32.mrf.mxu2 }
 0x773   :  { %v5757_v36 = vpop.f32.mrf.mxu1  ;;  %v13748_v50 = vadd.f32 %v5940_v44, %v5867_v33  ;;  %v7908_v44 = vmov 32.0  }
 0x774   :  { %v5775_v22 = vadd.f32 %v5757_v36, %v5678_v20  ;;  %v13791_v20 = vpop.permute.xlu1 %6172  ;;  %7847 = vrcp.f32 %v7908_v44  ;;  %v13793_v36 = vpop.permute.xlu0 %6220 }
 0x775   :  { %v5988_v8 = vsel %vm4597_vm15, %v13748_v50, 0.0 }
 0x776   :  { %5989 = vadd.xlane.f32.xlu2 %v5988_v8  ;;  %v5868_v13 = vadd.f32 %v5850_v57, %v5775_v22 }
 0x779   :  { %v5663_v28 = vpop.f32.mrf.mxu3 }
 0x77a   :  { %v5679_v49 = vadd.f32 %v5663_v28, %v5606_v18  ;;  %v5943_v56 = vpop.f32.mrf.mxu0  ;;  %v5853_v61 = vpop.f32.mrf.mxu2 }
 0x77b   :  { %v5760_v26 = vpop.f32.mrf.mxu1  ;;  %v13757_v55 = vadd.f32 %v5943_v56, %v5868_v13  ;;  %v7848_v57 = vpop.eup %7847 }
 0x77c   :  { %v5776_v9 = vadd.f32 %v5760_v26, %v5679_v49  ;;  %v13795_v22 = vpop.permute.xlu1 %6182  ;;  %v6007_v8 = vmul.f32 32.0, %v7848_v57  ;;  %v13799_v18 = vpop.permute.xlu0 %6225  ;;  %vm6011_vm0 = vweird.f32 %v7848_v57 }
 0x77d   :  { %v5991_v62 = vsel %vm4597_vm15, %v13757_v55, 0.0  ;;  %v13803_v49 = vpop.permute.xlu2 %6177 }
 0x77e   :  { %5992 = vadd.xlane.f32.xlu1 %v5991_v62  ;;  %v5869_v52 = vadd.f32 %v5853_v61, %v5776_v9  ;;  %v6008_v23 = vsub.f32 1.0, %v6007_v8 }
 0x780   :  { %v6009_v13 = vmul.f32 %v7848_v57, %v6008_v23 }
 0x781   :  { %v5666_v3 = vpop.f32.mrf.mxu3 }
 0x782   :  { %v5680_v32 = vadd.f32 %v5666_v3, %v5607_v43  ;;  %v5946_v25 = vpop.f32.mrf.mxu0  ;;  %v5856_v19 = vpop.f32.mrf.mxu2  ;;  %v6010_v16 = vadd.f32 %v7848_v57, %v6009_v13 }
 0x783   :  { %v5763_v54 = vpop.f32.mrf.mxu1  ;;  %v13766_v60 = vadd.f32 %v5946_v25, %v5869_v52 }
 0x784   :  { %v5777_v14 = vadd.f32 %v5763_v54, %v5680_v32  ;;  %v13801_v28 = vpop.permute.xlu1 %6235  ;;  %v13805_v56 = vsel %vm6011_vm0, %v7848_v57, %v6010_v16  ;;  %v13807_v61 = vpop.permute.xlu0 %6187  ;;  %v7381_v57 = vld [vmem:[%s14283_s11] sm:$0xff]  }
 0x785   :  { %v5994_v1 = vsel %vm4597_vm15, %v13766_v60, 0.0  ;;  %v13816_v43 = vpop.permute.xlu2 %6230  ;;  %v7383_v8 = vunpack.c.h.bf16 %v7381_v57  ;;  %v7382_v13 = vunpack.c.l.bf16 %v7381_v57 }
 0x786   :  { %5995 = vadd.xlane.f32.xlu0 %v5994_v1  ;;  %v5870_v29 = vadd.f32 %v5856_v19, %v5777_v14 }
 0x789   :  { %v5669_v59 = vpop.f32.mrf.mxu3 }
 0x78a   :  { %v5681_v40 = vadd.f32 %v5669_v59, %v5608_v31  ;;  %v5949_v45 = vpop.f32.mrf.mxu0  ;;  %v5859_v6 = vpop.f32.mrf.mxu2 }
 0x78b   :  { %v5766_v58 = vpop.f32.mrf.mxu1  ;;  %v13775_v46 = vadd.f32 %v5949_v45, %v5870_v29 }
 0x78c   :  { %v5778_v4 = vadd.f32 %v5766_v58, %v5681_v40  ;;  %v5971_v58 = vld [vmem:[%s14281_s9 + $0x28] sm:$0xff] }
 0x78d   :  { %v5997_v48 = vsel %vm4597_vm15, %v13775_v46, 0.0 }
 0x78e   :  { %5998 = vadd.xlane.f32.xlu2 %v5997_v48  ;;  %v5871_v11 = vadd.f32 %v5859_v6, %v5778_v4 }
 0x791   :  { %v5672_v38 = vpop.f32.mrf.mxu3 }
 0x792   :  { %v5682_v5 = vadd.f32 %v5672_v38, %v5609_v12  ;;  %v5952_v37 = vpop.f32.mrf.mxu0  ;;  %v5862_v21 = vpop.f32.mrf.mxu2 }
 0x793   :  { %v5769_v0 = vpop.f32.mrf.mxu1  ;;  %v13781_v63 = vadd.f32 %v5952_v37, %v5871_v11 }
 0x794   :  { %v5779_v27 = vadd.f32 %v5769_v0, %v5682_v5 }
 0x795   :  { %v6000_v41 = vsel %vm4597_vm15, %v13781_v63, 0.0 }
 0x796   :  { %6001 = vadd.xlane.f32.xlu1 %v6000_v41  ;;  %v5872_v33 = vadd.f32 %v5862_v21, %v5779_v27 }
 0x79a   :  { %v5955_v53 = vpop.f32.mrf.mxu0 }
 0x79b   :  { %v13785_v39 = vadd.f32 %v5955_v53, %v5872_v33  ;;  %v7388_v53 = vld [vmem:[%s14283_s11 + $0x8] sm:$0xff]  }
 0x79c   :  { %v7386_v44 = vunpack.c.l.bf16 %v7388_v53 }
 0x79d   :  { %v6003_v7 = vsel %vm4597_vm15, %v13785_v39, 0.0 }
 0x79e   :  { %6004 = vadd.xlane.f32.xlu0 %v6003_v7  ;;  %v7387_v7 = vunpack.c.h.bf16 %v7388_v53 }
 0x7a0   :  { %6322 = vmatpush.msrb.mxu3 %v7387_v7 }
 0x7a2   :  { %6323 = vmatpush.msrb.mxu3 %v7386_v44 }
 0x7a4   :  { %6324 = vmatpush.msrb.mxu3 %v7383_v8 }
 0x7a6   :  { %6325 = vmatpush.msrb.mxu3 %v7382_v13 }
 0x7d9   :  { %v5984_v26 = vpop.xlane.xlu1 %5983 }
 0x7da   :  { %v6013_v9 = vmul.f32 %v13805_v56, %v5984_v26 }
 0x7dc   :  { %v13811_v62 = vsub.f32 %v13730_v34, %v6013_v9  ;;  %v5981_v9 = vld [vmem:[%s14282_s10 + $0x38] sm:$0xff] }
 0x7de   :  { %v6029_v42 = vmul.f32 %v13811_v62, %v13811_v62 }
 0x7e0   :  { %v6037_v51 = vsel %vm4597_vm15, %v6029_v42, 0.0 }
 0x7e1   :  { %v5987_v52 = vpop.xlane.xlu0 %5986  ;;  %6038 = vadd.xlane.f32.xlu2 %v6037_v51 }
 0x7e2   :  { %v6014_v3 = vmul.f32 %v13805_v56, %v5987_v52 }
 0x7e4   :  { %v13820_v24 = vsub.f32 %v13739_v10, %v6014_v3 }
 0x7e6   :  { %v6030_v32 = vmul.f32 %v13820_v24, %v13820_v24 }
 0x7e8   :  { %v6040_v34 = vsel %vm4597_vm15, %v6030_v32, 0.0 }
 0x7e9   :  { %v5990_v25 = vpop.xlane.xlu2 %5989  ;;  %6041 = vadd.xlane.f32.xlu1 %v6040_v34 }
 0x7ea   :  { %v6015_v19 = vmul.f32 %v13805_v56, %v5990_v25 }
 0x7ec   :  { %v13827_v54 = vsub.f32 %v13748_v50, %v6015_v19 }
 0x7ee   :  { %v6031_v14 = vmul.f32 %v13827_v54, %v13827_v54 }
 0x7f0   :  { %v6043_v1 = vsel %vm4597_vm15, %v6031_v14, 0.0 }
 0x7f1   :  { %v5993_v15 = vpop.xlane.xlu1 %5992  ;;  %6044 = vadd.xlane.f32.xlu0 %v6043_v1 }
 0x7f2   :  { %v6016_v10 = vmul.f32 %v13805_v56, %v5993_v15 }
 0x7f4   :  { %v13834_v30 = vsub.f32 %v13757_v55, %v6016_v10  ;;  %v5979_v55 = vld [vmem:[%s14282_s10 + $0x28] sm:$0xff] }
 0x7f6   :  { %v6032_v31 = vmul.f32 %v13834_v30, %v13834_v30 }
 0x7f8   :  { %v6046_v29 = vsel %vm4597_vm15, %v6032_v31, 0.0 }
 0x7f9   :  { %v5996_v59 = vpop.xlane.xlu0 %5995  ;;  %6047 = vadd.xlane.f32.xlu2 %v6046_v29 }
 0x7fa   :  { %v6017_v50 = vmul.f32 %v13805_v56, %v5996_v59 }
 0x7fc   :  { %v13841_v17 = vsub.f32 %v13766_v60, %v6017_v50  ;;  %v5972_v60 = vld [vmem:[%s14281_s9 + $0x30] sm:$0xff] }
 0x7fe   :  { %v6033_v40 = vmul.f32 %v13841_v17, %v13841_v17 }
 0x800   :  { %v6049_v45 = vsel %vm4597_vm15, %v6033_v40, 0.0 }
 0x801   :  { %6050 = vadd.xlane.f32.xlu1 %v6049_v45  ;;  %v5999_v6 = vpop.xlane.xlu2 %5998 }
 0x802   :  { %v6018_v4 = vmul.f32 %v13805_v56, %v5999_v6 }
 0x804   :  { %v13857_v48 = vsub.f32 %v13775_v46, %v6018_v4 }
 0x805   :  { %6240 = vperm.xlu0 %7414, %v5979_v55  }
 0x806   :  { %v6034_v12 = vmul.f32 %v13857_v48, %v13857_v48 }
 0x808   :  { %v6052_v38 = vsel %vm4597_vm15, %v6034_v12, 0.0 }
 0x809   :  { %v6002_v35 = vpop.xlane.xlu1 %6001 }
 0x80a   :  { %v6019_v11 = vmul.f32 %v13805_v56, %v6002_v35 }
 0x80c   :  { %v13864_v5 = vsub.f32 %v13781_v63, %v6019_v11  ;;  %v5973_v63 = vld [vmem:[%s14281_s9 + $0x38] sm:$0xff] }
 0x80e   :  { %v6035_v0 = vmul.f32 %v13864_v5, %v13864_v5 }
 0x810   :  { %v6055_v46 = vsel %vm4597_vm15, %v6035_v0, 0.0 }
 0x811   :  { %6192 = vperm.xlu2 %7415, %v5971_v58   ;;  %v6005_v37 = vpop.xlane.xlu0 %6004 }
 0x812   :  { %v6020_v27 = vmul.f32 %v13805_v56, %v6005_v37 }
 0x814   :  { %v13871_v41 = vsub.f32 %v13785_v39, %v6020_v27  ;;  %v5980_v39 = vld [vmem:[%s14282_s10 + $0x30] sm:$0xff] }
 0x816   :  { %v6036_v21 = vmul.f32 %v13871_v41, %v13871_v41 }
 0x818   :  { %v6058_v33 = vsel %vm4597_vm15, %v6036_v21, 0.0 }
 0x81a   :  { %6197 = vperm.xlu1 %7416, %v5972_v60  }
 0x82f   :  { %6053 = vadd.xlane.f32.xlu0 %v6052_v38 }
 0x83a   :  { %6056 = vadd.xlane.f32.xlu2 %v6055_v46 }
 0x843   :  { %6202 = vperm.xlu0 %7414, %v5973_v63  }
 0x844   :  { %6059 = vadd.xlane.f32.xlu1 %v6058_v33 }
 0x852   :  { %6245 = vperm.xlu2 %7415, %v5980_v39  }
 0x854   :  { %v6039_v23 = vpop.xlane.xlu2 %6038 }
 0x855   :  { %v6061_v16 = vmul.f32 %v6039_v23, %v13805_v56 }
 0x857   :  { %v6069_v26 = vadd.f32 1e-05, %v6061_v16 }
 0x859   :  { %7849 = vrsqrt.f32 %v6069_v26  ;;  %vm6083_vm2 = vweird.f32 %v6069_v26 }
 0x85c   :  { %v6042_v42 = vpop.xlane.xlu1 %6041 }
 0x85d   :  { %v6062_v51 = vmul.f32 %v6042_v42, %v13805_v56  ;;  %6250 = vperm.xlu1 %7416, %v5981_v9  }
 0x85f   :  { %v7850_v52 = vpop.eup %7849  ;;  %v6070_v3 = vadd.f32 1e-05, %v6062_v51 }
 0x860   :  { %v6078_v32 = vmul.f32 %v7850_v52, %v6069_v26  ;;  %vm6084_vm1 = vweird.f32 %v7850_v52 }
 0x861   :  { %7851 = vrsqrt.f32 %v6070_v3  ;;  %vm6085_vm3 = vmor %vm6083_vm2, %vm6084_vm1  ;;  %vm6093_vm5 = vweird.f32 %v6070_v3 }
 0x862   :  { %v6079_v34 = vmul.f32 %v7850_v52, %v6078_v32 }
 0x864   :  { %v6080_v25 = vmul.f32 0.5, %v6079_v34  ;;  %v6045_v19 = vpop.xlane.xlu0 %6044 }
 0x865   :  { %v6063_v14 = vmul.f32 %v6045_v19, %v13805_v56 }
 0x866   :  { %v6081_v1 = vsub.f32 1.5, %v6080_v25 }
 0x867   :  { %v7852_v15 = vpop.eup %7851  ;;  %v6071_v10 = vadd.f32 1e-05, %v6063_v14 }
 0x868   :  { %v6082_v31 = vmul.f32 %v7850_v52, %v6081_v1  ;;  %v6088_v29 = vmul.f32 %v7852_v15, %v6070_v3  ;;  %vm6094_vm4 = vweird.f32 %v7852_v15 }
 0x869   :  { %7853 = vrsqrt.f32 %v6071_v10  ;;  %vm6095_vm6 = vmor %vm6093_vm5, %vm6094_vm4  ;;  %vm6103_vm8 = vweird.f32 %v6071_v10 }
 0x86a   :  { %v6086_v59 = vsel %vm6085_vm3, %v7850_v52, %v6082_v31  ;;  %v6089_v50 = vmul.f32 %v7852_v15, %v6088_v29 }
 0x86b   :  { %v6157_v40 = vmul.f32 %v6086_v59, %v13811_v62 }
 0x86c   :  { %v6090_v45 = vmul.f32 0.5, %v6089_v50  ;;  %v6048_v55 = vpop.xlane.xlu2 %6047 }
 0x86d   :  { %v6205_v58 = vmul.f32 %v13789_v47, %v6157_v40  ;;  %v6064_v60 = vmul.f32 %v6048_v55, %v13805_v56 }
 0x86e   :  { %v6091_v6 = vsub.f32 1.5, %v6090_v45 }
 0x86f   :  { %v7854_v4 = vpop.eup %7853  ;;  %v6253_v35 = vadd.f32 %v13797_v2, %v6205_v58  ;;  %v6072_v12 = vadd.f32 1e-05, %v6064_v60 }
 0x870   :  { %v6092_v11 = vmul.f32 %v7852_v15, %v6091_v6  ;;  %v6098_v38 = vmul.f32 %v7854_v4, %v6071_v10  ;;  %vm6104_vm7 = vweird.f32 %v7854_v4 }
 0x871   :  { %v6261_v37 = vmul.f32 0.2, %v6253_v35  ;;  %7855 = vrsqrt.f32 %v6072_v12  ;;  %vm6105_vm9 = vmor %vm6103_vm8, %vm6104_vm7  ;;  %vm6113_vm11 = vweird.f32 %v6072_v12 }
 0x872   :  { %v6096_v0 = vsel %vm6095_vm6, %v7852_v15, %v6092_v11  ;;  %v6099_v62 = vmul.f32 %v7854_v4, %v6098_v38 }
 0x873   :  { %v6269_v27 = vmax.f32 %v6253_v35, %v6261_v37  ;;  %v6158_v46 = vmul.f32 %v6096_v0, %v13820_v24 }
 0x874   :  { %v6100_v47 = vmul.f32 0.5, %v6099_v62  ;;  %v6051_v21 = vpop.xlane.xlu1 %6050  ;;  %v6193_v55 = vpop.permute.xlu2 %6192 }
 0x875   :  { %v6065_v63 = vmul.f32 %v6051_v21, %v13805_v56  ;;  %7356 = vmatmul.msk.f32.vlgmr.msrb.gmra.mxu3 %vm4597_vm15, %v6269_v27  ;;  %v6206_v2 = vmul.f32 %v13791_v20, %v6158_v46  ;;  %v13922_v46 = vld [vmem:[%s14284_s12] sm:$0xff]  ;;  %s7909_s12 = smov 114  }
 0x876   :  { %v6101_v33 = vsub.f32 1.5, %v6100_v47 }
 0x877   :  { %v7856_v53 = vpop.eup %7855  ;;  %v6073_v7 = vadd.f32 1e-05, %v6065_v63  ;;  %v6254_v39 = vadd.f32 %v13793_v36, %v6206_v2  ;;  %v6241_v40 = vpop.permute.xlu0 %6240  ;;  %v6352_v63 = vperm.slane %v13922_v46, 0 }
 0x878   :  { %v6102_v44 = vmul.f32 %v7854_v4, %v6101_v33  ;;  %v6108_v57 = vmul.f32 %v7856_v53, %v6072_v12  ;;  %vm6114_vm10 = vweird.f32 %v7856_v53 }
 0x879   :  { %7857 = vrsqrt.f32 %v6073_v7  ;;  %v6262_v24 = vmul.f32 0.2, %v6254_v39  ;;  %vm6115_vm12 = vmor %vm6113_vm11, %vm6114_vm10  ;;  %vm6123_vm14 = vweird.f32 %v6073_v7  ;;  %6353 = vrot.lane.b32.xlu2 %v6352_v63, %s7903_s23 }
 0x87a   :  { %v6106_v8 = vsel %vm6105_vm9, %v7854_v4, %v6102_v44  ;;  %v6109_v23 = vmul.f32 %v7856_v53, %v6108_v57  ;;  %v6432_v57 = vperm.slane %v13922_v46, 1 }
 0x87b   :  { %v6159_v13 = vmul.f32 %v6106_v8, %v13827_v54  ;;  %v6270_v16 = vmax.f32 %v6254_v39, %v6262_v24 }
 0x87c   :  { %v6110_v26 = vmul.f32 0.5, %v6109_v23 }
 0x87d   :  { %7357 = vmatmul.msk.f32.gmra.mxu3 %vm4597_vm15, %v6270_v16  ;;  %v6207_v20 = vmul.f32 %v13803_v49, %v6159_v13 }
 0x87e   :  { %v6111_v9 = vsub.f32 1.5, %v6110_v26 }
 0x87f   :  { %v7858_v42 = vpop.eup %7857  ;;  %v6255_v36 = vadd.f32 %v13799_v18, %v6207_v20 }
 0x880   :  { %v6112_v51 = vmul.f32 %v7856_v53, %v6111_v9  ;;  %v6118_v52 = vmul.f32 %v7858_v42, %v6073_v7  ;;  %vm6124_vm13 = vweird.f32 %v7858_v42 }
 0x881   :  { %v6263_v3 = vmul.f32 0.2, %v6255_v36  ;;  %vm6125_vm0 = vmor %vm6123_vm14, %vm6124_vm13  ;;  %6480 = vrot.lane.b32.xlu2 %v6432_v57, %s7903_s23  ;;  %vm7138_vm13 = vcmask 8192  }
 0x882   :  { %v6116_v32 = vsel %vm6115_vm12, %v7856_v53, %v6112_v51  ;;  %v6119_v34 = vmul.f32 %v7858_v42, %v6118_v52 }
 0x883   :  { %v6160_v54 = vmul.f32 %v6116_v32, %v13834_v30  ;;  %v6271_v25 = vmax.f32 %v6255_v36, %v6263_v3  ;;  %v6529_v36 = vperm.slane %v13922_v46, 2 }
 0x884   :  { %v6120_v19 = vmul.f32 0.5, %v6119_v34 }
 0x885   :  { %7358 = vmatmul.msk.f32.gmra.mxu3 %vm4597_vm15, %v6271_v25  ;;  %v6208_v49 = vmul.f32 %v13795_v22, %v6160_v54 }
 0x886   :  { %v6121_v14 = vsub.f32 1.5, %v6120_v19  ;;  %v6820_v19 = vperm.slane %v13922_v46, 5 }
 0x887   :  { %v6256_v1 = vadd.f32 %v13816_v43, %v6208_v49 }
 0x888   :  { %v6122_v18 = vmul.f32 %v7858_v42, %v6121_v14 }
 0x889   :  { %v6264_v15 = vmul.f32 0.2, %v6256_v1  ;;  %6577 = vrot.lane.b32.xlu2 %v6529_v36, %s7903_s23 }
 0x88a   :  { %v6126_v10 = vsel %vm6125_vm0, %v7858_v42, %v6122_v18 }
 0x88b   :  { %v6161_v31 = vmul.f32 %v6126_v10, %v13841_v17  ;;  %v6272_v29 = vmax.f32 %v6256_v1, %v6264_v15  ;;  %v6723_v10 = vperm.slane %v13922_v46, 4 }
 0x88c   :  { %v6198_v35 = vpop.permute.xlu1 %6197 }
 0x88d   :  { %7359 = vmatmul.msk.f32.gmra.mxu3 %vm4597_vm15, %v6272_v29  ;;  %v6209_v30 = vmul.f32 %v13807_v61, %v6161_v31  ;;  %v6626_v31 = vperm.slane %v13922_v46, 3 }
 0x88f   :  { %v6257_v59 = vadd.f32 %v13801_v28, %v6209_v30  ;;  %6674 = vrot.lane.b32.xlu1 %v6626_v31, %s7903_s23 }
 0x891   :  { %v6265_v50 = vmul.f32 0.2, %v6257_v59  ;;  %6868 = vrot.lane.b32.xlu2 %v6820_v19, %s7903_s23 }
 0x893   :  { %v6273_v22 = vmax.f32 %v6257_v59, %v6265_v50 }
 0x895   :  { %7360 = vmatmul.msk.f32.gmra.mxu3 %vm4597_vm15, %v6273_v22 }
 0x899   :  { %6771 = vrot.lane.b32.xlu2 %v6723_v10, %s7903_s23 }
 0x8a2   :  { %v6054_v43 = vpop.xlane.xlu0 %6053 }
 0x8a3   :  { %v6066_v45 = vmul.f32 %v6054_v43, %v13805_v56 }
 0x8a5   :  { %v6074_v58 = vadd.f32 1e-05, %v6066_v45 }
 0x8a7   :  { %7859 = vrsqrt.f32 %v6074_v58  ;;  %vm6133_vm2 = vweird.f32 %v6074_v58 }
 0x8ad   :  { %v7860_v60 = vpop.eup %7859  ;;  %v6057_v17 = vpop.xlane.xlu2 %6056 }
 0x8ae   :  { %v6128_v6 = vmul.f32 %v7860_v60, %v6074_v58  ;;  %v6067_v4 = vmul.f32 %v6057_v17, %v13805_v56  ;;  %vm6134_vm1 = vweird.f32 %v7860_v60 }
 0x8af   :  { %vm6135_vm3 = vmor %vm6133_vm2, %vm6134_vm1 }
 0x8b0   :  { %v6129_v61 = vmul.f32 %v7860_v60, %v6128_v6  ;;  %v6075_v12 = vadd.f32 1e-05, %v6067_v4 }
 0x8b2   :  { %v6130_v28 = vmul.f32 0.5, %v6129_v61  ;;  %7861 = vrsqrt.f32 %v6075_v12  ;;  %vm6143_vm5 = vweird.f32 %v6075_v12 }
 0x8b4   :  { %v6131_v11 = vsub.f32 1.5, %v6130_v28 }
 0x8b5   :  { %v6246_v9 = vpop.permute.xlu2 %6245  ;;  %v6203_v25 = vpop.permute.xlu0 %6202 }
 0x8b6   :  { %v6132_v38 = vmul.f32 %v7860_v60, %v6131_v11 }
 0x8b7   :  { %v6060_v37 = vpop.xlane.xlu1 %6059 }
 0x8b8   :  { %v7862_v0 = vpop.eup %7861  ;;  %v6136_v62 = vsel %vm6135_vm3, %v7860_v60, %v6132_v38  ;;  %v6068_v27 = vmul.f32 %v6060_v37, %v13805_v56 }
 0x8b9   :  { %v6162_v47 = vmul.f32 %v6136_v62, %v13857_v48  ;;  %v6138_v21 = vmul.f32 %v7862_v0, %v6075_v12  ;;  %vm6144_vm4 = vweird.f32 %v7862_v0 }
 0x8ba   :  { %v6076_v2 = vadd.f32 1e-05, %v6068_v27  ;;  %vm6145_vm6 = vmor %vm6143_vm5, %vm6144_vm4 }
 0x8bb   :  { %v6139_v33 = vmul.f32 %v7862_v0, %v6138_v21  ;;  %v6210_v53 = vmul.f32 %v6193_v55, %v6162_v47 }
 0x8bc   :  { %7863 = vrsqrt.f32 %v6076_v2  ;;  %vm6153_vm8 = vweird.f32 %v6076_v2 }
 0x8bd   :  { %v6140_v7 = vmul.f32 0.5, %v6139_v33  ;;  %v6258_v39 = vadd.f32 %v6241_v40, %v6210_v53 }
 0x8bf   :  { %v6141_v44 = vsub.f32 1.5, %v6140_v7  ;;  %v6266_v56 = vmul.f32 0.2, %v6258_v39 }
 0x8c1   :  { %v6142_v24 = vmul.f32 %v7862_v0, %v6141_v44  ;;  %v6274_v8 = vmax.f32 %v6258_v39, %v6266_v56 }
 0x8c2   :  { %v7864_v48 = vpop.eup %7863 }
 0x8c3   :  { %v6146_v23 = vsel %vm6145_vm6, %v7862_v0, %v6142_v24  ;;  %v6148_v13 = vmul.f32 %v7864_v48, %v6076_v2  ;;  %7361 = vmatmul.msk.f32.gmra.mxu3 %vm4597_vm15, %v6274_v8  ;;  %vm6154_vm7 = vweird.f32 %v7864_v48 }
 0x8c4   :  { %v6163_v16 = vmul.f32 %v6146_v23, %v13864_v5  ;;  %vm6155_vm9 = vmor %vm6153_vm8, %vm6154_vm7 }
 0x8c5   :  { %v6149_v26 = vmul.f32 %v7864_v48, %v6148_v13 }
 0x8c6   :  { %v6211_v20 = vmul.f32 %v6198_v35, %v6163_v16  ;;  %v7111_v16 = vld [vmem:[#allocation2] sm:$0x1] }
 0x8c7   :  { %v6150_v42 = vmul.f32 0.5, %v6149_v26 }
 0x8c8   :  { %v6259_v51 = vadd.f32 %v6246_v9, %v6211_v20 }
 0x8c9   :  { %v6151_v52 = vsub.f32 1.5, %v6150_v42 }
 0x8ca   :  { %v6267_v3 = vmul.f32 0.2, %v6259_v51 }
 0x8cb   :  { %v6152_v32 = vmul.f32 %v7864_v48, %v6151_v52 }
 0x8cc   :  { %v6275_v34 = vmax.f32 %v6259_v51, %v6267_v3  ;;  %v6917_v3 = vperm.slane %v13922_v46, 6 }
 0x8cd   :  { %v6156_v54 = vsel %vm6155_vm9, %v7864_v48, %v6152_v32 }
 0x8ce   :  { %7362 = vmatmul.msk.f32.gmra.mxu3 %vm4597_vm15, %v6275_v34  ;;  %v6164_v5 = vmul.f32 %v6156_v54, %v13871_v41 }
 0x8cf   :  { %v6251_v14 = vpop.permute.xlu1 %6250 }
 0x8d0   :  { %v6212_v49 = vmul.f32 %v6203_v25, %v6164_v5 }
 0x8d2   :  { %v6260_v1 = vadd.f32 %v6251_v14, %v6212_v49  ;;  %v7014_v14 = vperm.slane %v13922_v46, 7 }
 0x8d3   :  { %v13998_v60 = vpop.permute.xlu2 %6353 }
 0x8d4   :  { %v6268_v18 = vmul.f32 0.2, %v6260_v1 }
 0x8d6   :  { %v6276_v15 = vmax.f32 %v6260_v1, %v6268_v18 }
 0x8d8   :  { %7363 = vmatmul.msk.f32.gmra.mxu3 %vm4597_vm15, %v6276_v15  ;;  %vm6387_vm15 = vcmask 523264  }
 0x8db   :  { %v14006_v17 = vpop.permute.xlu2 %6480 }
 0x8e3   :  { %v14012_v61 = vpop.permute.xlu2 %6577 }
 0x8eb   :  { %v14018_v12 = vpop.permute.xlu2 %6868 }
 0x8f3   :  { %v14027_v37 = vpop.permute.xlu2 %6771 }
 0x8f8   :  { %v13952_v41 = vpop.f32.mrf.mxu3 }
 0x900   :  { %v13954_v29 = vpop.f32.mrf.mxu3 }
 0x901   :  { %v13958_v30 = vpack.i.bf16 %v13952_v41, %v13954_v29  ;;  %v7537_v59 = vpack.i.bf16 %v13954_v29, %v13952_v41  ;;  %v14025_v11 = vpop.permute.xlu1 %6674 }
 0x903   :  { %7568 = vrot.lane.b32.xlu2 %v13958_v30, %s7909_s12  ;;  %7538 = vrot.lane.b32.xlu0 %v7537_v59, %s7910_s2 }
 0x904   :  { %7543 = vrot.lane.b32.xlu1 %v7537_v59, %s7911_s20 }
 0x908   :  { %v6333_v50 = vpop.f32.mrf.mxu3 }
 0x90b   :  { %7583 = vrot.lane.b32.xlu2 %v13958_v30, %s7912_s3  ;;  %7548 = vrot.lane.b32.xlu0 %v7537_v59, %s7913_s15 }
 0x90c   :  { %7553 = vrot.lane.b32.xlu1 %v7537_v59, %s7914_s1 }
 0x910   :  { %v6336_v22 = vpop.f32.mrf.mxu3 }
 0x911   :  { %v13974_v40 = vpack.i.bf16 %v6333_v50, %v6336_v22  ;;  %v7597_v43 = vpack.i.bf16 %v6336_v22, %v6333_v50 }
 0x913   :  { %7588 = vrot.lane.b32.xlu2 %v13958_v30, %s7915_s22  ;;  %7558 = vrot.lane.b32.xlu0 %v7537_v59, %s7916_s13 }
 0x914   :  { %7563 = vrot.lane.b32.xlu1 %v7537_v59, %s7917_s25 }
 0x918   :  { %v6339_v45 = vpop.f32.mrf.mxu3 }
 0x91b   :  { %7628 = vrot.lane.b32.xlu0 %v13974_v40, %s7918_s27  ;;  %7598 = vrot.lane.b32.xlu2 %v7597_v43, %s7911_s20 }
 0x91c   :  { %7573 = vrot.lane.b32.xlu1 %v13958_v30, %s7918_s27 }
 0x923   :  { %7638 = vrot.lane.b32.xlu0 %v13974_v40, %s7912_s3  ;;  %7608 = vrot.lane.b32.xlu2 %v7597_v43, %s7914_s1 }
 0x924   :  { %7578 = vrot.lane.b32.xlu1 %v13958_v30, %s7900_s0 }
 0x92b   :  { %7643 = vrot.lane.b32.xlu0 %v13974_v40, %s7915_s22  ;;  %7618 = vrot.lane.b32.xlu2 %v7597_v43, %s7917_s25 }
 0x92c   :  { %7593 = vrot.lane.b32.xlu1 %v7597_v43, %s7910_s2 }
 0x933   :  { %7653 = vrot.lane.b32.xlu0 %v13974_v40, %s7919_s28  ;;  %7633 = vrot.lane.b32.xlu2 %v13974_v40, %s7900_s0 }
 0x934   :  { %7603 = vrot.lane.b32.xlu1 %v7597_v43, %s7913_s15 }
 0x93c   :  { %7613 = vrot.lane.b32.xlu1 %v7597_v43, %s7916_s13 }
 0x944   :  { %7623 = vrot.lane.b32.xlu1 %v13974_v40, %s7909_s12 }
 0x946   :  { %v6342_v55 = vpop.f32.mrf.mxu3 }
 0x947   :  { %v7667_v58 = vpack.i.bf16 %v6342_v55, %v6339_v45  ;;  %v7697_v4 = vpack.i.bf16 %v6339_v45, %v6342_v55 }
 0x949   :  { %7668 = vrot.lane.b32.xlu0 %v7667_v58, %s7911_s20  ;;  %7663 = vrot.lane.b32.xlu2 %v7667_v58, %s7910_s2 }
 0x94c   :  { %7648 = vrot.lane.b32.xlu1 %v13974_v40, %s7920_s4 }
 0x951   :  { %7678 = vrot.lane.b32.xlu0 %v7667_v58, %s7914_s1  ;;  %7673 = vrot.lane.b32.xlu2 %v7667_v58, %s7913_s15  ;;  %v6345_v6 = vpop.f32.mrf.mxu3 }
 0x954   :  { %7658 = vrot.lane.b32.xlu1 %v13974_v40, %s7921_s30 }
 0x959   :  { %7688 = vrot.lane.b32.xlu0 %v7667_v58, %s7917_s25  ;;  %7683 = vrot.lane.b32.xlu2 %v7667_v58, %s7916_s13 }
 0x95b   :  { %v6348_v35 = vpop.f32.mrf.mxu3 }
 0x95c   :  { %7698 = vrot.lane.b32.xlu1 %v7697_v4, %s7918_s27  ;;  %6420 = vmatpush.msrb.mxu2 %v6348_v35  ;;  %v7742_v28 = vpack.i.bf16 %v6348_v35, %v6345_v6  ;;  %v7767_v38 = vpack.i.bf16 %v6345_v6, %v6348_v35 }
 0x95d   :  { %v14038_v27 = vpop.permute.xlu2 %7568 }
 0x95e   :  { %6421 = vmatpush.msrb.mxu2 %v6345_v6 }
 0x960   :  { %6422 = vmatpush.msrb.mxu2 %v6342_v55 }
 0x961   :  { %7693 = vrot.lane.b32.xlu0 %v7697_v4, %s7909_s12  ;;  %7703 = vrot.lane.b32.xlu2 %v7697_v4, %s7900_s0 }
 0x962   :  { %6423 = vmatpush.msrb.mxu2 %v6339_v45 }
 0x964   :  { %7728 = vrot.lane.b32.xlu1 %v7697_v4, %s7921_s30  ;;  %6424 = vmatpush.msrb.mxu2 %v6336_v22 }
 0x965   :  { %v14047_v63 = vpop.permute.xlu2 %7583 }
 0x966   :  { %6425 = vmatpush.msrb.mxu2 %v6333_v50 }
 0x968   :  { %6426 = vmatpush.msrb.mxu2 %v13954_v29 }
 0x969   :  { %7708 = vrot.lane.b32.xlu0 %v7697_v4, %s7912_s3  ;;  %7713 = vrot.lane.b32.xlu2 %v7697_v4, %s7915_s22 }
 0x96a   :  { %6427 = vmatpush.msrb.mxu2 %v13952_v41 }
 0x96b   :  { %7365 = vmatmul.msk.f32.vlgmr.msrb.gmra.mxu2 %vm6387_vm15, %v13922_v46 }
 0x96c   :  { %7743 = vrot.lane.b32.xlu1 %v7742_v28, %s7911_s20 }
 0x96d   :  { %v14057_v53 = vpop.permute.xlu2 %7588 }
 0x971   :  { %7718 = vrot.lane.b32.xlu0 %v7697_v4, %s7920_s4  ;;  %7768 = vrot.lane.b32.xlu2 %v7767_v38, %s7909_s12 }
 0x974   :  { %7753 = vrot.lane.b32.xlu1 %v7742_v28, %s7914_s1 }
 0x975   :  { %v14034_v62 = vpop.permute.xlu0 %7538  ;;  %v7599_v56 = vpop.permute.xlu2 %7598 }
 0x976   :  { %v14032_v0 = vpop.permute.xlu1 %7543  ;;  %v7601_v6 = vunpack.i.h.bf16 %v7599_v56  ;;  %v7600_v35 = vunpack.i.l.bf16 %v7599_v56 }
 0x979   :  { %7723 = vrot.lane.b32.xlu0 %v7697_v4, %s7919_s28  ;;  %7773 = vrot.lane.b32.xlu2 %v7767_v38, %s7918_s27 }
 0x97c   :  { %7763 = vrot.lane.b32.xlu1 %v7742_v28, %s7917_s25 }
 0x97d   :  { %v14043_v21 = vpop.permute.xlu0 %7548  ;;  %v14077_v48 = vpop.permute.xlu2 %7608 }
 0x97e   :  { %v14041_v47 = vpop.permute.xlu1 %7553 }
 0x981   :  { %7733 = vrot.lane.b32.xlu0 %v7697_v4, %s7922_s7  ;;  %7813 = vrot.lane.b32.xlu2 %v7767_v38, %s7921_s30 }
 0x984   :  { %7783 = vrot.lane.b32.xlu1 %v7767_v38, %s7912_s3 }
 0x985   :  { %v14054_v33 = vpop.permute.xlu0 %7558  ;;  %v14086_v26 = vpop.permute.xlu2 %7618 }
 0x986   :  { %v14050_v2 = vpop.permute.xlu1 %7563 }
 0x989   :  { %7818 = vrot.lane.b32.xlu2 %v7767_v38, %s7922_s7  ;;  %7738 = vrot.lane.b32.xlu0 %v7742_v28, %s7910_s2 }
 0x98c   :  { %7798 = vrot.lane.b32.xlu1 %v7767_v38, %s7920_s4 }
 0x98d   :  { %v14065_v39 = vpop.permute.xlu0 %7628  ;;  %v14094_v42 = vpop.permute.xlu2 %7633 }
 0x98e   :  { %v14059_v7 = vpop.permute.xlu1 %7573 }
 0x991   :  { %7823 = vrot.lane.b32.xlu2 %v13958_v30, %s7919_s28  ;;  %7748 = vrot.lane.b32.xlu0 %v7742_v28, %s7913_s15 }
 0x994   :  { %7803 = vrot.lane.b32.xlu1 %v7767_v38, %s7919_s28 }
 0x995   :  { %v14074_v8 = vpop.permute.xlu0 %7638 }
 0x996   :  { %v14067_v44 = vpop.permute.xlu1 %7578 }
 0x999   :  { %7758 = vrot.lane.b32.xlu0 %v7742_v28, %s7916_s13  ;;  %7062 = vrot.lane.b32.xlu2 %v7014_v14, %s7903_s23 }
 0x99c   :  { %7808 = vrot.lane.b32.xlu1 %v13958_v30, %s7920_s4 }
 0x99d   :  { %v14083_v13 = vpop.permute.xlu0 %7643 }
 0x99e   :  { %v14072_v24 = vpop.permute.xlu1 %7593 }
 0x9a1   :  { %7778 = vrot.lane.b32.xlu0 %v7767_v38, %s7900_s0  ;;  %s7923_s0 = smov [#allocation3]  }
 0x9a3   :  { %v14101_v32 = vpop.permute.xlu2 %7663 }
 0x9a4   :  { %7833 = vrot.lane.b32.xlu1 %v13958_v30, %s7922_s7 }
 0x9a5   :  { %v14092_v9 = vpop.permute.xlu0 %7653 }
 0x9a6   :  { %v14081_v23 = vpop.permute.xlu1 %7603 }
 0x9a9   :  { %7788 = vrot.lane.b32.xlu0 %v7767_v38, %s7915_s22  ;;  %v7546_v38 = vunpack.i.h.bf16 %v14032_v0 }
 0x9ab   :  { %v14110_v25 = vpop.permute.xlu2 %7673 }
 0x9ac   :  { %7114 = vperm.xlu1 %7416, %v7111_v16  }
 0x9ae   :  { %v14088_v20 = vpop.permute.xlu1 %7613 }
 0x9b1   :  { %7793 = vrot.lane.b32.xlu0 %v13974_v40, %s7922_s7 }
 0x9b3   :  { %v14120_v18 = vpop.permute.xlu2 %7683 }
 0x9b6   :  { %v14096_v51 = vpop.permute.xlu1 %7623 }
 0x9b9   :  { %7828 = vrot.lane.b32.xlu0 %v13958_v30, %s7921_s30 }
 0x9bb   :  { %v7669_v52 = vpop.permute.xlu0 %7668  ;;  %v14130_v30 = vpop.permute.xlu2 %7703 }
 0x9bc   :  { %v7671_v40 = vunpack.i.h.bf16 %v7669_v52  ;;  %v7670_v45 = vunpack.i.l.bf16 %v7669_v52  ;;  %v7545_v52 = vunpack.i.l.bf16 %v14032_v0 }
 0x9be   :  { %v14103_v34 = vpop.permute.xlu1 %7648 }
 0x9c1   :  { %6965 = vrot.lane.b32.xlu0 %v6917_v3, %s7903_s23  ;;  %s7145_s23 = sshll.u32 %s7923_s0, 4  ;;  %s7146_s23 = int_to_ptr.vmem [resolvable:$true] %s7145_s23 }
 0x9c3   :  { %v7679_v54 = vpop.permute.xlu0 %7678  ;;  %v14134_v55 = vpop.permute.xlu2 %7713 }
 0x9c4   :  { %v7681_v16 = vunpack.i.h.bf16 %v7679_v54 }
 0x9c6   :  { %v14108_v5 = vpop.permute.xlu1 %7658 }
 0x9cb   :  { %v14112_v49 = vpop.permute.xlu0 %7688  ;;  %v7769_v56 = vpop.permute.xlu2 %7768 }
 0x9ce   :  { %v14115_v1 = vpop.permute.xlu1 %7698 }
 0x9d3   :  { %v14122_v15 = vpop.permute.xlu0 %7693 }
 0x9d6   :  { %v14124_v41 = vpop.permute.xlu1 %7728 }
 0x9db   :  { %v14128_v29 = vpop.permute.xlu0 %7708 }
 0x9de   :  { %v7744_v59 = vpop.permute.xlu1 %7743 }
 0x9df   :  { %v7746_v50 = vunpack.i.h.bf16 %v7744_v59  ;;  %v7745_v22 = vunpack.i.l.bf16 %v7744_v59 }
 0x9e1   :  { %6467 = vmatpush.msrb.mxu0 %v7746_v50  ;;  %v7680_v50 = vunpack.i.l.bf16 %v7679_v54  ;;  %v7555_v54 = vunpack.i.l.bf16 %v14041_v47 }
 0x9e3   :  { %6468 = vmatpush.msrb.mxu0 %v7745_v22  ;;  %v14132_v43 = vpop.permute.xlu0 %7718 }
 0x9e5   :  { %6469 = vmatpush.msrb.mxu0 %v7671_v40  ;;  %v7611_v40 = vunpack.i.h.bf16 %v14077_v48 }
 0x9e6   :  { %v7754_v58 = vpop.permute.xlu1 %7753 }
 0x9e7   :  { %v7756_v4 = vunpack.i.h.bf16 %v7754_v58  ;;  %6470 = vmatpush.msrb.mxu0 %v7670_v45  ;;  %v7755_v28 = vunpack.i.l.bf16 %v7754_v58  ;;  %v7610_v45 = vunpack.i.l.bf16 %v14077_v48  ;;  %v7556_v58 = vunpack.i.h.bf16 %v14041_v47 }
 0x9e8   :  { %v7695_v48 = vunpack.i.l.bf16 %v14122_v15 }
 0x9e9   :  { %6471 = vmatpush.msrb.mxu0 %v7601_v6  ;;  %6564 = vmatpush.msra.mxu2 %v7756_v4  ;;  %v7770_v6 = vunpack.i.l.bf16 %v7769_v56 }
 0x9eb   :  { %6472 = vmatpush.msrb.mxu0 %v7600_v35  ;;  %6565 = vmatpush.msra.mxu2 %v7755_v28  ;;  %v14137_v59 = vpop.permute.xlu0 %7723  ;;  %v7771_v28 = vunpack.i.h.bf16 %v7769_v56  ;;  %v7625_v56 = vunpack.i.l.bf16 %v14096_v51 }
 0x9ed   :  { %6473 = vmatpush.msrb.mxu0 %v7546_v38  ;;  %6566 = vmatpush.msra.mxu2 %v7681_v16  ;;  %v7710_v16 = vunpack.i.l.bf16 %v14128_v29 }
 0x9ee   :  { %v14140_v22 = vpop.permute.xlu1 %7763 }
 0x9ef   :  { %6474 = vmatpush.msrb.mxu0 %v7545_v52  ;;  %6567 = vmatpush.msra.mxu2 %v7680_v50  ;;  %v7696_v52 = vunpack.i.h.bf16 %v14122_v15  ;;  %v7641_v15 = vunpack.i.h.bf16 %v14074_v8 }
 0x9f0   :  { %7366 = vmatmul.msk.f32.vlgmr.msrb.gmra.mxu0 %vm6387_vm15, %v6432_v57  ;;  %v7774_v57 = vpop.permute.xlu2 %7773 }
 0x9f1   :  { %6568 = vmatpush.msra.mxu2 %v7611_v40  ;;  %v7711_v40 = vunpack.i.h.bf16 %v14128_v29  ;;  %v7570_v29 = vunpack.i.l.bf16 %v14038_v27 }
 0x9f3   :  { %6569 = vmatpush.msra.mxu2 %v7610_v45  ;;  %v14148_v0 = vpop.permute.xlu0 %7733 }
 0x9f5   :  { %6570 = vmatpush.msra.mxu2 %v7556_v58  ;;  %v7666_v58 = vunpack.i.h.bf16 %v14101_v32 }
 0x9f6   :  { %v7784_v4 = vpop.permute.xlu1 %7783 }
 0x9f7   :  { %v7785_v35 = vunpack.i.l.bf16 %v7784_v4  ;;  %6571 = vmatpush.msra.mxu2 %v7555_v54  ;;  %v7786_v38 = vunpack.i.h.bf16 %v7784_v4  ;;  %v7626_v54 = vunpack.i.h.bf16 %v14096_v51  ;;  %v7585_v4 = vunpack.i.l.bf16 %v14047_v63 }
 0x9f8   :  { %7368 = vmatmul.msk.f32.vlgmr.msra.gmra.mxu2 %vm6387_vm15, %v6529_v36  ;;  %v7640_v36 = vunpack.i.l.bf16 %v14074_v8  ;;  %v7814_v51 = vpop.permute.xlu2 %7813  ;;  %v7586_v8 = vunpack.i.h.bf16 %v14047_v63  ;;  %v7700_v63 = vunpack.i.l.bf16 %v14115_v1 }
 0x9f9   :  { %6710 = vmatpush.msrb.mxu2 %v7770_v6  ;;  %6904 = vmatpush.msra.mxu3 %v7785_v35  ;;  %v7665_v6 = vunpack.i.l.bf16 %v14101_v32  ;;  %v7595_v32 = vunpack.i.l.bf16 %v14072_v24 }
 0x9fb   :  { %6711 = vmatpush.msrb.mxu2 %v7771_v28  ;;  %6905 = vmatpush.msra.mxu3 %v7786_v38  ;;  %v7739_v47 = vpop.permute.xlu0 %7738  ;;  %v7571_v28 = vunpack.i.h.bf16 %v14038_v27  ;;  %v7596_v38 = vunpack.i.h.bf16 %v14072_v24  ;;  %v7541_v27 = vunpack.i.h.bf16 %v14034_v62  ;;  %v7540_v24 = vunpack.i.l.bf16 %v14034_v62 }
 0x9fc   :  { %v7741_v50 = vunpack.i.h.bf16 %v7739_v47  ;;  %v7740_v45 = vunpack.i.l.bf16 %v7739_v47  ;;  %v7776_v47 = vunpack.i.h.bf16 %v7774_v57  ;;  %v7660_v62 = vunpack.i.l.bf16 %v14108_v5 }
 0x9fd   :  { %6712 = vmatpush.msrb.mxu2 %v7695_v48  ;;  %6906 = vmatpush.msra.mxu3 %v7710_v16  ;;  %v7775_v48 = vunpack.i.l.bf16 %v7774_v57  ;;  %v7815_v16 = vunpack.i.l.bf16 %v7814_v51  ;;  %v7701_v57 = vunpack.i.h.bf16 %v14115_v1  ;;  %v7631_v1 = vunpack.i.h.bf16 %v14065_v39 }
 0x9fe   :  { %6398 = vmatpush.msrb.mxu1 %v7741_v50  ;;  %v7730_v50 = vunpack.i.l.bf16 %v14124_v41 }
 0x9ff   :  { %6713 = vmatpush.msrb.mxu2 %v7696_v52  ;;  %6907 = vmatpush.msra.mxu3 %v7711_v40  ;;  %v7816_v52 = vunpack.i.h.bf16 %v7814_v51  ;;  %v7799_v40 = vpop.permute.xlu1 %7798  ;;  %v7616_v51 = vunpack.i.h.bf16 %v14088_v20 }
 0xa00   :  { %6399 = vmatpush.msrb.mxu1 %v7740_v45 }
 0xa01   :  { %6714 = vmatpush.msrb.mxu2 %v7625_v56  ;;  %6908 = vmatpush.msra.mxu3 %v7640_v36  ;;  %v7731_v56 = vunpack.i.h.bf16 %v14124_v41  ;;  %v7630_v36 = vunpack.i.l.bf16 %v14065_v39  ;;  %v7676_v41 = vunpack.i.h.bf16 %v14110_v25 }
 0xa02   :  { %6400 = vmatpush.msrb.mxu1 %v7666_v58 }
 0xa03   :  { %6715 = vmatpush.msrb.mxu2 %v7626_v54  ;;  %6909 = vmatpush.msra.mxu3 %v7641_v15  ;;  %v7749_v35 = vpop.permute.xlu0 %7748  ;;  %v7661_v15 = vunpack.i.h.bf16 %v14108_v5  ;;  %v7606_v5 = vunpack.i.h.bf16 %v14081_v23 }
 0xa04   :  { %6401 = vmatpush.msrb.mxu1 %v7665_v6  ;;  %v7751_v45 = vunpack.i.h.bf16 %v7749_v35  ;;  %v7750_v58 = vunpack.i.l.bf16 %v7749_v35  ;;  %v7675_v6 = vunpack.i.l.bf16 %v14110_v25  ;;  %v7685_v35 = vunpack.i.l.bf16 %v14120_v18 }
 0xa05   :  { %6716 = vmatpush.msrb.mxu2 %v7570_v29  ;;  %6910 = vmatpush.msra.mxu3 %v7585_v4  ;;  %v7575_v29 = vunpack.i.l.bf16 %v14059_v7  ;;  %v7576_v4 = vunpack.i.h.bf16 %v14059_v7  ;;  %v7605_v25 = vunpack.i.l.bf16 %v14081_v23  ;;  %v7615_v7 = vunpack.i.l.bf16 %v14088_v20 }
 0xa06   :  { %6402 = vmatpush.msrb.mxu1 %v7596_v38  ;;  %v7550_v23 = vunpack.i.l.bf16 %v14043_v21 }
 0xa07   :  { %6717 = vmatpush.msrb.mxu2 %v7571_v28  ;;  %6911 = vmatpush.msra.mxu3 %v7586_v8  ;;  %v7800_v28 = vunpack.i.l.bf16 %v7799_v40  ;;  %v14193_v38 = vpop.permute.xlu1 %7803  ;;  %v7801_v8 = vunpack.i.h.bf16 %v7799_v40 }
 0xa08   :  { %7371 = vmatmul.msk.f32.vlgmr.msrb.gmra.mxu2 %vm6387_vm15, %v14025_v11  ;;  %7375 = vmatmul.msk.f32.vlgmr.msra.gmra.mxu3 %vm6387_vm15, %v14018_v12 }
 0xa09   :  { %6855 = vmatpush.msra.mxu2 %v7775_v48  ;;  %7098 = vmatpush.msrb.mxu3 %v7815_v16  ;;  %v7720_v48 = vunpack.i.l.bf16 %v14132_v43  ;;  %v7721_v16 = vunpack.i.h.bf16 %v14132_v43  ;;  %v7765_v43 = vunpack.i.l.bf16 %v14140_v22 }
 0xa0a   :  { %6403 = vmatpush.msrb.mxu1 %v7595_v32  ;;  %v7561_v32 = vunpack.i.h.bf16 %v14054_v33 }
 0xa0b   :  { %6856 = vmatpush.msra.mxu2 %v7776_v47  ;;  %7099 = vmatpush.msrb.mxu3 %v7816_v52  ;;  %v7759_v11 = vpop.permute.xlu0 %7758  ;;  %v7560_v47 = vunpack.i.l.bf16 %v14054_v33  ;;  %v7651_v33 = vunpack.i.h.bf16 %v14103_v34 }
 0xa0c   :  { %6404 = vmatpush.msrb.mxu1 %v7541_v27  ;;  %v7761_v12 = vunpack.i.h.bf16 %v7759_v11  ;;  %v7760_v54 = vunpack.i.l.bf16 %v7759_v11  ;;  %v7650_v27 = vunpack.i.l.bf16 %v14103_v34  ;;  %v7621_v34 = vunpack.i.h.bf16 %v14086_v26 }
 0xa0d   :  { %6857 = vmatpush.msra.mxu2 %v7700_v63  ;;  %7100 = vmatpush.msrb.mxu3 %v7730_v50  ;;  %v7691_v50 = vunpack.i.h.bf16 %v14112_v49 }
 0xa0e   :  { %6405 = vmatpush.msrb.mxu1 %v7540_v24  ;;  %6613 = vmatpush.msra.mxu0 %v7761_v12  ;;  %v7635_v12 = vunpack.i.l.bf16 %v14094_v42 }
 0xa0f   :  { %6858 = vmatpush.msra.mxu2 %v7701_v57  ;;  %7364 = vmatmul.msk.f32.vlgmr.msrb.gmra.mxu1 %vm6387_vm15, %v13998_v60  ;;  %v7686_v60 = vunpack.i.h.bf16 %v14120_v18  ;;  %v7551_v18 = vunpack.i.h.bf16 %v14043_v21  ;;  %v14213_v21 = vpop.permute.xlu2 %7818  ;;  %v7809_v63 = vpop.permute.xlu1 %7808 }
 0xa10   :  { %6516 = vmatpush.msra.mxu1 %v7751_v45  ;;  %7101 = vmatpush.msrb.mxu3 %v7731_v56  ;;  %v7810_v40 = vunpack.i.l.bf16 %v7809_v63  ;;  %v7811_v57 = vunpack.i.h.bf16 %v7809_v63  ;;  %v7620_v56 = vunpack.i.l.bf16 %v14086_v26  ;;  %v7581_v26 = vunpack.i.h.bf16 %v14067_v44 }
 0xa11   :  { %6859 = vmatpush.msra.mxu2 %v7630_v36  ;;  %6614 = vmatpush.msra.mxu0 %v7760_v54  ;;  %v7580_v36 = vunpack.i.l.bf16 %v14067_v44  ;;  %v7806_v54 = vunpack.i.h.bf16 %v14193_v38  ;;  %v7715_v44 = vunpack.i.l.bf16 %v14134_v55 }
 0xa12   :  { %6517 = vmatpush.msra.mxu1 %v7750_v58  ;;  %7102 = vmatpush.msrb.mxu3 %v7660_v62  ;;  %v7565_v62 = vunpack.i.l.bf16 %v14050_v2 }
 0xa13   :  { %6860 = vmatpush.msra.mxu2 %v7631_v1  ;;  %v7779_v39 = vpop.permute.xlu0 %7778  ;;  %6615 = vmatpush.msra.mxu0 %v7686_v60  ;;  %v7726_v60 = vunpack.i.h.bf16 %v14137_v59 }
 0xa14   :  { %6518 = vmatpush.msra.mxu1 %v7676_v41  ;;  %7103 = vmatpush.msrb.mxu3 %v7661_v15  ;;  %v7780_v52 = vunpack.i.l.bf16 %v7779_v39  ;;  %v7781_v24 = vunpack.i.h.bf16 %v7779_v39  ;;  %v7725_v15 = vunpack.i.l.bf16 %v14137_v59  ;;  %v7646_v39 = vunpack.i.h.bf16 %v14083_v13 }
 0xa15   :  { %6861 = vmatpush.msra.mxu2 %v7575_v29  ;;  %6616 = vmatpush.msra.mxu0 %v7685_v35  ;;  %v7716_v29 = vunpack.i.h.bf16 %v14134_v55  ;;  %v7590_v55 = vunpack.i.l.bf16 %v14057_v53  ;;  %v7591_v59 = vunpack.i.h.bf16 %v14057_v53  ;;  %v7736_v53 = vunpack.i.h.bf16 %v14148_v0 }
 0xa16   :  { %6519 = vmatpush.msra.mxu1 %v7675_v6  ;;  %v7645_v6 = vunpack.i.l.bf16 %v14083_v13  ;;  %v7821_v13 = vunpack.i.h.bf16 %v14213_v21 }
 0xa17   :  { %6862 = vmatpush.msra.mxu2 %v7576_v4  ;;  %6617 = vmatpush.msra.mxu0 %v7616_v51  ;;  %v7824_v45 = vpop.permute.xlu2 %7823  ;;  %v7656_v4 = vunpack.i.h.bf16 %v14092_v9  ;;  %v7834_v51 = vpop.permute.xlu1 %7833 }
 0xa18   :  { %6520 = vmatpush.msra.mxu1 %v7606_v5  ;;  %7374 = vmatmul.msk.f32.vlgmr.msra.gmra.mxu2 %vm6387_vm15, %v6820_v19  ;;  %v7766_v19 = vunpack.i.h.bf16 %v14140_v22  ;;  %v7690_v22 = vunpack.i.l.bf16 %v14112_v49  ;;  %v7636_v49 = vunpack.i.h.bf16 %v14094_v42  ;;  %v7825_v35 = vunpack.i.l.bf16 %v7824_v45 }
 0xa19   :  { %7049 = vmatpush.msrb.mxu2 %v7800_v28  ;;  %6618 = vmatpush.msra.mxu0 %v7615_v7  ;;  %v7826_v5 = vunpack.i.h.bf16 %v7824_v45  ;;  %v7820_v28 = vunpack.i.l.bf16 %v14213_v21  ;;  %v7836_v46 = vunpack.i.h.bf16 %v7834_v51  ;;  %v6429_v7 = vpop.f32.mrf.mxu2 }
 0xa1a   :  { %6521 = vmatpush.msra.mxu1 %v7605_v25 }
 0xa1b   :  { %7050 = vmatpush.msrb.mxu2 %v7801_v8  ;;  %v14206_v20 = vpop.permute.xlu0 %7788  ;;  %6619 = vmatpush.msra.mxu0 %v7561_v32 }
 0xa1c   :  { %6522 = vmatpush.msra.mxu1 %v7551_v18  ;;  %v7790_v42 = vunpack.i.l.bf16 %v14206_v20 }
 0xa1d   :  { %7051 = vmatpush.msrb.mxu2 %v7720_v48  ;;  %6620 = vmatpush.msra.mxu0 %v7560_v47 }
 0xa1e   :  { %6523 = vmatpush.msra.mxu1 %v7550_v23  ;;  %7369 = vmatmul.msk.f32.vlgmr.msra.gmra.mxu0 %vm6387_vm15, %v14012_v61  ;;  %v7706_v61 = vunpack.i.h.bf16 %v14130_v30 }
 0xa1f   :  { %7052 = vmatpush.msrb.mxu2 %v7721_v16  ;;  %7367 = vmatmul.msk.f32.vlgmr.msra.gmra.mxu1 %vm6387_vm15, %v14006_v17  ;;  %v7705_v17 = vunpack.i.l.bf16 %v14130_v30  ;;  %v7566_v30 = vunpack.i.h.bf16 %v14050_v2  ;;  %v7791_v2 = vunpack.i.h.bf16 %v14206_v20 }
 0xa20   :  { %6661 = vmatpush.msrb.mxu1 %v7766_v19  ;;  %6758 = vmatpush.msrb.mxu0 %v7780_v52 }
 0xa21   :  { %7053 = vmatpush.msrb.mxu2 %v7650_v27 }
 0xa22   :  { %6662 = vmatpush.msrb.mxu1 %v7765_v43  ;;  %6759 = vmatpush.msrb.mxu0 %v7781_v24 }
 0xa23   :  { %7054 = vmatpush.msrb.mxu2 %v7651_v33  ;;  %v14222_v11 = vpop.permute.xlu0 %7793 }
 0xa24   :  { %6663 = vmatpush.msrb.mxu1 %v7691_v50  ;;  %6760 = vmatpush.msrb.mxu0 %v7705_v17  ;;  %v7796_v25 = vunpack.i.h.bf16 %v14222_v11 }
 0xa25   :  { %7055 = vmatpush.msrb.mxu2 %v7810_v40 }
 0xa26   :  { %6664 = vmatpush.msrb.mxu1 %v7690_v22  ;;  %6761 = vmatpush.msrb.mxu0 %v7706_v61 }
 0xa27   :  { %7056 = vmatpush.msrb.mxu2 %v7811_v57 }
 0xa28   :  { %6665 = vmatpush.msrb.mxu1 %v7621_v34  ;;  %7378 = vmatmul.msk.f32.vlgmr.msrb.gmra.mxu2 %vm6387_vm15, %v7014_v14  ;;  %v7805_v14 = vunpack.i.l.bf16 %v14193_v38  ;;  %v7795_v38 = vunpack.i.l.bf16 %v14222_v11 }
 0xa29   :  { %6762 = vmatpush.msrb.mxu0 %v7635_v12 }
 0xa2a   :  { %6666 = vmatpush.msrb.mxu1 %v7620_v56 }
 0xa2b   :  { %6763 = vmatpush.msrb.mxu0 %v7636_v49  ;;  %v7829_v58 = vpop.permute.xlu0 %7828  ;;  %v7115_v49 = vpop.permute.xlu1 %7114 }
 0xa2c   :  { %6667 = vmatpush.msrb.mxu1 %v7566_v30  ;;  %v7830_v1 = vunpack.i.l.bf16 %v7829_v58  ;;  %v7831_v41 = vunpack.i.h.bf16 %v7829_v58 }
 0xa2d   :  { %6764 = vmatpush.msrb.mxu0 %v7580_v36  ;;  %v7117_v36 = vperm.slane %v7115_v49, 0 }
 0xa2e   :  { %6668 = vmatpush.msrb.mxu1 %v7565_v62  ;;  %7104 = vmatpush.msrb.mxu3 %v7830_v1 }
 0xa2f   :  { %7370 = vmatmul.msk.f32.vlgmr.msrb.gmra.mxu1 %vm6387_vm15, %v6626_v31  ;;  %6765 = vmatpush.msrb.mxu0 %v7581_v26  ;;  %v7063_v31 = vpop.permute.xlu2 %7062 }
 0xa30   :  { %6807 = vmatpush.msra.mxu1 %v7790_v42  ;;  %7372 = vmatmul.msk.f32.vlgmr.msrb.gmra.mxu0 %vm6387_vm15, %v6723_v10  ;;  %v7655_v10 = vunpack.i.l.bf16 %v14092_v9  ;;  %v7735_v9 = vunpack.i.l.bf16 %v14148_v0 }
 0xa31   :  { %6952 = vmatpush.msra.mxu0 %v7805_v14  ;;  %7105 = vmatpush.msrb.mxu3 %v7831_v41 }
 0xa32   :  { %6808 = vmatpush.msra.mxu1 %v7791_v2  ;;  %7379 = vmatmul.msk.f32.vlgmr.msrb.gmra.mxu3 %vm6387_vm15, %v7063_v31 }
 0xa33   :  { %6953 = vmatpush.msra.mxu0 %v7806_v54 }
 0xa34   :  { %6809 = vmatpush.msra.mxu1 %v7715_v44 }
 0xa35   :  { %6954 = vmatpush.msra.mxu0 %v7725_v15 }
 0xa36   :  { %6810 = vmatpush.msra.mxu1 %v7716_v29 }
 0xa37   :  { %6955 = vmatpush.msra.mxu0 %v7726_v60 }
 0xa38   :  { %6811 = vmatpush.msra.mxu1 %v7645_v6 }
 0xa39   :  { %6956 = vmatpush.msra.mxu0 %v7655_v10 }
 0xa3a   :  { %6812 = vmatpush.msra.mxu1 %v7646_v39 }
 0xa3b   :  { %6957 = vmatpush.msra.mxu0 %v7656_v4 }
 0xa3c   :  { %6813 = vmatpush.msra.mxu1 %v7590_v55 }
 0xa3d   :  { %6958 = vmatpush.msra.mxu0 %v7825_v35 }
 0xa3e   :  { %6814 = vmatpush.msra.mxu1 %v7591_v59 }
 0xa3f   :  { %6959 = vmatpush.msra.mxu0 %v7826_v5  ;;  %7373 = vmatmul.msk.f32.vlgmr.msra.gmra.mxu1 %vm6387_vm15, %v14027_v37  ;;  %v7835_v37 = vunpack.i.l.bf16 %v7834_v51 }
 0xa40   :  { %7376 = vmatmul.msk.f32.vlgmr.msra.gmra.mxu0 %vm6387_vm15, %v6917_v3  ;;  %7001 = vmatpush.msrb.mxu1 %v7820_v28  ;;  %v6966_v3 = vpop.permute.xlu0 %6965 }
 0xa42   :  { %7002 = vmatpush.msrb.mxu1 %v7821_v13 }
 0xa44   :  { %7003 = vmatpush.msrb.mxu1 %v7735_v9 }
 0xa46   :  { %7004 = vmatpush.msrb.mxu1 %v7736_v53 }
 0xa48   :  { %7005 = vmatpush.msrb.mxu1 %v7795_v38 }
 0xa4a   :  { %7006 = vmatpush.msrb.mxu1 %v7796_v25 }
 0xa4c   :  { %7007 = vmatpush.msrb.mxu1 %v7835_v37 }
 0xa4e   :  { %7008 = vmatpush.msrb.mxu1 %v7836_v46 }
 0xa4f   :  { %7377 = vmatmul.msk.f32.vlgmr.msrb.gmra.mxu1 %vm6387_vm15, %v6966_v3 }
 0xa6d   :  { %v6476_v0 = vpop.f32.mrf.mxu0 }
 0xa7b   :  { %v6573_v16 = vpop.f32.mrf.mxu2 }
 0xa8b   :  { %v6719_v21 = vpop.f32.mrf.mxu2  ;;  %v6913_v22 = vpop.f32.mrf.mxu3 }
 0xa8c   :  { %v6407_v8 = vpop.f32.mrf.mxu1 }
 0xa8d   :  { %v6430_v18 = vadd.f32 %v6429_v7, %v6407_v8 }
 0xa8f   :  { %v6479_v32 = vadd.f32 %v6476_v0, %v6430_v18 }
 0xa9b   :  { %v6622_v47 = vpop.f32.mrf.mxu0  ;;  %v6864_v17 = vpop.f32.mrf.mxu2 }
 0xa9c   :  { %v6525_v48 = vpop.f32.mrf.mxu1 }
 0xa9d   :  { %v6528_v23 = vadd.f32 %v6525_v48, %v6479_v32 }
 0xa9f   :  { %v6576_v20 = vadd.f32 %v6573_v16, %v6528_v23 }
 0xaa1   :  { %v6625_v27 = vadd.f32 %v6622_v47, %v6576_v20 }
 0xaab   :  { %v7058_v12 = vpop.f32.mrf.mxu2 }
 0xaac   :  { %v6670_v19 = vpop.f32.mrf.mxu1 }
 0xaad   :  { %v6673_v52 = vadd.f32 %v6670_v19, %v6625_v27  ;;  %v6767_v63 = vpop.f32.mrf.mxu0 }
 0xaaf   :  { %v6722_v43 = vadd.f32 %v6719_v21, %v6673_v52 }
 0xab1   :  { %v6770_v24 = vadd.f32 %v6767_v63, %v6722_v43 }
 0xab5   :  { %v7107_v30 = vpop.f32.mrf.mxu3 }
 0xabc   :  { %v6816_v33 = vpop.f32.mrf.mxu1 }
 0xabd   :  { %v6819_v50 = vadd.f32 %v6816_v33, %v6770_v24  ;;  %v6961_v61 = vpop.f32.mrf.mxu0 }
 0xabf   :  { %v6867_v40 = vadd.f32 %v6864_v17, %v6819_v50 }
 0xac1   :  { %v6916_v11 = vadd.f32 %v6913_v22, %v6867_v40 }
 0xac3   :  { %v6964_v57 = vadd.f32 %v6961_v61, %v6916_v11 }
 0xacc   :  { %v7010_v34 = vpop.f32.mrf.mxu1 }
 0xacd   :  { %v7013_v56 = vadd.f32 %v7010_v34, %v6964_v57 }
 0xacf   :  { %v7061_v45 = vadd.f32 %v7058_v12, %v7013_v56 }
 0xad1   :  { %v7110_v62 = vadd.f32 %v7107_v30, %v7061_v45 }
 0xad3   :  { %v7118_v58 = vadd.f32 %v7117_v36, %v7110_v62 }
 0xad5   :  { %v7119_v26 = vsub.f32 0.0, %v7118_v58 }
 0xad7   :  { %v7120_v1 = vmul.f32 1.442695, %v7119_v26 }
 0xad9   :  { %7865 = vpow2.f32 %v7120_v1 }
 0xadf   :  { %v7866_v14 = vpop.eup %7865 }
 0xae0   :  { %v7122_v42 = vadd.f32 1.0, %v7866_v14 }
 0xae2   :  { %7867 = vrcp.f32 %v7122_v42  ;;  %v7134_v44 = vand.u32 2147483648, %v7122_v42  ;;  %v7132_v31 = vand.u32 2147483647, %v7122_v42  ;;  %vm7128_vm11 = vweird.f32 %v7122_v42 }
 0xae4   :  { %v7135_v60 = vor.u32 1.1754944e-38, %v7134_v44  ;;  %vm7133_vm14 = vcmp.eq.f32.partialorder %v7132_v31, 8.507059e+37 }
 0xae8   :  { %v7868_v54 = vpop.eup %7867 }
 0xae9   :  { %v7124_v2 = vmul.f32 %v7868_v54, %v7122_v42  ;;  %vm7129_vm10 = vweird.f32 %v7868_v54 }
 0xaea   :  { %vm7130_vm12 = vmor %vm7128_vm11, %vm7129_vm10 }
 0xaeb   :  { %v7125_v41 = vsub.f32 1.0, %v7124_v2 }
 0xaed   :  { %v7126_v15 = vmul.f32 %v7868_v54, %v7125_v41 }
 0xaef   :  { %v7127_v29 = vadd.f32 %v7868_v54, %v7126_v15 }
 0xaf1   :  { %v7131_v6 = vsel %vm7130_vm12, %v7868_v54, %v7127_v29 }
 0xaf2   :  { %v7136_v10 = vsel %vm7133_vm14, %v7135_v60, %v7131_v6 }
 0xaf3   :  { %7139 = vst.msk [vmem:[#allocation3] sm:$0x1] %vm7138_vm13, %v7136_v10 }
 0xaf4   :  { %7150 = dma.vmem_to_hbm [thread:$0]  %s7146_s23, 16, %s7148_s26, [#allocation4]  }
 0xaf5   :  { %7897 = dma.done.wait [#allocation4], 16  }
 0xaf6   :  { %7898 = vsyncadd [#allocation4], 4294967280 }
 0xaf7   :  { %7155 = vsyncpa [#allocation4], 1 }

</bundles_post_ra>
